<compile_context>
chip_gen: v7x
topology: tpu7x:2x2x1
jax: 0.10.0
libtpu: 0.0.40
codegen_flags: <defaults>
</compile_context>

<pallas_src>
import functools

import jax
import jax.numpy as jnp
from jax.experimental import pallas as pl
from jax.experimental.pallas import tpu as pltpu

N_FEATS = 32
DIST_C = 8        # int(32 * 0.25)
REMAIN_C = 24     # 32 - 8
LRELU_SLOPE = 0.05

TARGET_M = 4096   # target spatial matmul rows per grid step (v7x-safe VMEM)


def _row_tile(h, wd):
    """Largest divisor of H with tr*W <= TARGET_M (rows of the tap-packed dot)."""
    cap = max(1, min(TARGET_M // max(wd, 1), h))
    for d in range(cap, 0, -1):
        if h % d == 0:
            return d
    return h


# ---------------------------------------------------------------------------
# In-kernel helpers
# ---------------------------------------------------------------------------
def _build_patches(top_ref, mid_ref, bot_ref, *, tr, wd):
    """im2col slab (tr*wd, 9*cin) with the 1-pixel zero border applied in-kernel.

    top_ref : (1, 1,  wd, cin)  row max(ti*tr-1, 0)      (zeroed when ti == 0)
    mid_ref : (1, tr, wd, cin)  rows [ti*tr, ti*tr+tr)
    bot_ref : (1, 1,  wd, cin)  row min(ti*tr+tr, H-1)   (zeroed when ti == last)
    """
    ti = pl.program_id(1)
    nt = pl.num_programs(1)
    mid = mid_ref[0]                                       # (tr, wd, cin)
    cin = mid.shape[-1]
    dt = mid.dtype

    # zero halo rows that fall outside the image (scalar 0/1 masks)
    top_keep = jnp.where(ti > 0, 1.0, 0.0)
    bot_keep = jnp.where(ti < nt - 1, 1.0, 0.0)
    top = (top_ref[0].astype(jnp.float32) * top_keep).astype(dt)
    bot = (bot_ref[0].astype(jnp.float32) * bot_keep).astype(dt)

    rows = jnp.concatenate([top, mid, bot], axis=0)        # (tr+2, wd, cin)
    zcol = jnp.zeros((tr + 2, 1, cin), dt)
    win = jnp.concatenate([zcol, rows, zcol], axis=1)      # (tr+2, wd+2, cin)

    # pack the 3 kx taps onto the lane axis, then the 3 ky taps -> K = 9*cin
    cols = jnp.concatenate([win[:, kx:kx + wd, :] for kx in range(3)],
                           axis=-1)                        # (tr+2, wd, 3*cin)
    slabs = [cols[ky:ky + tr].reshape(tr * wd, 3 * cin) for ky in range(3)]
    return jnp.concatenate(slabs, axis=-1)                 # (tr*wd, 9*cin)


# ---------------------------------------------------------------------------
# Pallas kernels
# ---------------------------------------------------------------------------
def _conv3x3_kernel(top_ref, mid_ref, bot_ref, w_ref, b_ref, *rest,
                    act, has_residual, split, tr, wd):
    """3x3 conv as ONE tap-packed MXU dot; fused bias / LeakyReLU / residual.

    w_ref : (9*Cin, Cout) bf16 resident weights (tap-major, then channel)
    b_ref : (1, Cout)     f32 bias
    rest  : [res (1,tr,wd,Cout)]?, then output ref(s)
            split=False -> o (1,tr,wd,Cout)
            split=True  -> o_dist (1,tr,wd,8), o_rem (1,tr,wd,24)
    """
    cout = w_ref.shape[-1]
    m = tr * wd

    patches = _build_patches(top_ref, mid_ref, bot_ref, tr=tr, wd=wd)
    acc = jnp.dot(patches, w_ref[...], preferred_element_type=jnp.float32)
    acc = acc + b_ref[...].astype(jnp.float32)
    if act == "lrelu":
        acc = jnp.where(acc >= 0.0, acc, LRELU_SLOPE * acc)

    idx = 0
    if has_residual:
        acc = acc + rest[idx][...].reshape(m, cout).astype(jnp.float32)
        idx += 1

    if split:
        od_ref, or_ref = rest[idx], rest[idx + 1]
        od_ref[...] = acc[:, :DIST_C].reshape(1, tr, wd, DIST_C).astype(od_ref.dtype)
        or_ref[...] = acc[:, DIST_C:].reshape(1, tr, wd, REMAIN_C).astype(or_ref.dtype)
    else:
        o_ref = rest[idx]
        o_ref[...] = acc.reshape(1, tr, wd, cout).astype(o_ref.dtype)


def _c4_concat_stats_kernel(top_ref, mid_ref, bot_ref, w_ref, b_ref,
                            d1_ref, d2_ref, d3_ref,
                            ocat_ref, stat_ref, sum_sc, sq_sc, *, tr, wd, inv_hw):
    """c4 (3x3, 24->8) + 32-ch concat + CCA (std + mean) reduction, fused."""
    ti = pl.program_id(1)
    nt = pl.num_programs(1)
    m = tr * wd

    patches = _build_patches(top_ref, mid_ref, bot_ref, tr=tr, wd=wd)
    c4 = jnp.dot(patches, w_ref[...], preferred_element_type=jnp.float32)
    c4 = c4 + b_ref[...].astype(jnp.float32)               # (m, 8)

    cat = jnp.concatenate(
        [d1_ref[...].reshape(m, DIST_C).astype(jnp.float32),
         d2_ref[...].reshape(m, DIST_C).astype(jnp.float32),
         d3_ref[...].reshape(m, DIST_C).astype(jnp.float32),
         c4], axis=-1)                                      # (m, 32)
    ocat_ref[...] = cat.reshape(1, tr, wd, N_FEATS).astype(ocat_ref.dtype)

    @pl.when(ti == 0)
    def _():
        sum_sc[...] = jnp.zeros_like(sum_sc)
        sq_sc[...] = jnp.zeros_like(sq_sc)

    sum_sc[...] += jnp.sum(cat, axis=0, keepdims=True)
    sq_sc[...] += jnp.sum(cat * cat, axis=0, keepdims=True)

    @pl.when(ti == nt - 1)
    def _():
        mean = sum_sc[...] * inv_hw
        var = jnp.maximum(sq_sc[...] * inv_hw - mean * mean, 0.0)
        stat_ref[...] = (mean + jnp.sqrt(var)).reshape(1, 1, N_FEATS)


def _conv1x1_res_kernel(x_ref, w_ref, b_ref, r_ref, o_ref, *, tr, wd):
    """IMD c5: 1x1 conv with CCA-scaled weights + bias + module residual."""
    m = tr * wd
    cin = x_ref.shape[-1]
    cout = o_ref.shape[-1]
    acc = jnp.dot(x_ref[...].reshape(m, cin), w_ref[0],
                  preferred_element_type=jnp.float32)
    acc = acc + b_ref[...].astype(jnp.float32)
    acc = acc + r_ref[...].reshape(m, cout).astype(jnp.float32)
    o_ref[...] = acc.reshape(1, tr, wd, cout).astype(o_ref.dtype)


# ---------------------------------------------------------------------------
# Pallas wrappers
# ---------------------------------------------------------------------------
def _halo_specs(tr, wd, cin, h):
    top = pl.BlockSpec((1, 1, wd, cin),
                       lambda ni, ti: (ni, jnp.maximum(ti * tr - 1, 0), 0, 0))
    mid = pl.BlockSpec((1, tr, wd, cin), lambda ni, ti: (ni, ti, 0, 0))
    bot = pl.BlockSpec((1, 1, wd, cin),
                       lambda ni, ti: (ni, jnp.minimum(ti * tr + tr, h - 1), 0, 0))
    return top, mid, bot


def conv3x3(x, w, b, act=None, residual=None, split=False, out_dtype=None):
    n, h, wd, cin = x.shape
    cout = w.shape[-1]
    if out_dtype is None:
        out_dtype = x.dtype
    if split:
        assert cout == N_FEATS
    tr = _row_tile(h, wd)
    nt = h // tr

    xb = x.astype(jnp.bfloat16)
    wk = w.reshape(9 * cin, cout).astype(jnp.bfloat16)
    b2 = b.reshape(1, cout).astype(jnp.float32)

    top_spec, mid_spec, bot_spec = _halo_specs(tr, wd, cin, h)
    in_specs = [top_spec, mid_spec, bot_spec,
                pl.BlockSpec((9 * cin, cout), lambda ni, ti: (0, 0)),
                pl.BlockSpec((1, cout), lambda ni, ti: (0, 0))]
    args = [xb, xb, xb, wk, b2]
    if residual is not None:
        in_specs.append(pl.BlockSpec((1, tr, wd, cout), lambda ni, ti: (ni, ti, 0, 0)))
        args.append(residual.astype(jnp.bfloat16))

    if split:
        out_shape = (jax.ShapeDtypeStruct((n, h, wd, DIST_C), out_dtype),
                     jax.ShapeDtypeStruct((n, h, wd, REMAIN_C), out_dtype))
        out_specs = (pl.BlockSpec((1, tr, wd, DIST_C), lambda ni, ti: (ni, ti, 0, 0)),
                     pl.BlockSpec((1, tr, wd, REMAIN_C), lambda ni, ti: (ni, ti, 0, 0)))
    else:
        out_shape = jax.ShapeDtypeStruct((n, h, wd, cout), out_dtype)
        out_specs = pl.BlockSpec((1, tr, wd, cout), lambda ni, ti: (ni, ti, 0, 0))

    kernel = functools.partial(_conv3x3_kernel, act=act,
                               has_residual=residual is not None,
                               split=split, tr=tr, wd=wd)
    return pl.pallas_call(
        kernel,
        out_shape=out_shape,
        grid=(n, nt),
        in_specs=in_specs,
        out_specs=out_specs,
        compiler_params=pltpu.CompilerParams(
            dimension_semantics=("parallel", "parallel")),
    )(*args)


def c4_concat_stats(r3, d1, d2, d3, w, b):
    """c4 conv, 32-ch concat [d1,d2,d3,c4] and CCA (std+mean) stats, one pass."""
    n, h, wd, cin = r3.shape          # cin = 24
    cout = w.shape[-1]                # 8
    tr = _row_tile(h, wd)
    nt = h // tr

    xb = r3.astype(jnp.bfloat16)
    wk = w.reshape(9 * cin, cout).astype(jnp.bfloat16)
    b2 = b.reshape(1, cout).astype(jnp.float32)

    top_spec, mid_spec, bot_spec = _halo_specs(tr, wd, cin, h)
    dist_spec = pl.BlockSpec((1, tr, wd, DIST_C), lambda ni, ti: (ni, ti, 0, 0))

    kernel = functools.partial(_c4_concat_stats_kernel, tr=tr, wd=wd,
                               inv_hw=1.0 / float(h * wd))
    return pl.pallas_call(
        kernel,
        out_shape=(jax.ShapeDtypeStruct((n, h, wd, N_FEATS), jnp.bfloat16),
                   jax.ShapeDtypeStruct((n, 1, N_FEATS), jnp.float32)),
        grid=(n, nt),
        in_specs=[top_spec, mid_spec, bot_spec,
                  pl.BlockSpec((9 * cin, cout), lambda ni, ti: (0, 0)),
                  pl.BlockSpec((1, cout), lambda ni, ti: (0, 0)),
                  dist_spec, dist_spec, dist_spec],
        out_specs=(pl.BlockSpec((1, tr, wd, N_FEATS), lambda ni, ti: (ni, ti, 0, 0)),
                   pl.BlockSpec((1, 1, N_FEATS), lambda ni, ti: (ni, 0, 0))),
        scratch_shapes=[pltpu.VMEM((1, N_FEATS), jnp.float32),
                        pltpu.VMEM((1, N_FEATS), jnp.float32)],
        compiler_params=pltpu.CompilerParams(
            dimension_semantics=("parallel", "arbitrary")),
    )(xb, xb, xb, wk, b2, d1, d2, d3)


def conv1x1_res(x, w_scaled, b, residual):
    """1x1 conv with per-batch (CCA-scaled) weights + bias + residual."""
    n, h, wd, cin = x.shape
    cout = w_scaled.shape[-1]
    tr = _row_tile(h, wd)
    nt = h // tr
    kernel = functools.partial(_conv1x1_res_kernel, tr=tr, wd=wd)
    return pl.pallas_call(
        kernel,
        out_shape=jax.ShapeDtypeStruct((n, h, wd, cout), x.dtype),
        grid=(n, nt),
        in_specs=[
            pl.BlockSpec((1, tr, wd, cin), lambda ni, ti: (ni, ti, 0, 0)),
            pl.BlockSpec((1, cin, cout), lambda ni, ti: (ni, 0, 0)),
            pl.BlockSpec((1, cout), lambda ni, ti: (0, 0)),
            pl.BlockSpec((1, tr, wd, cout), lambda ni, ti: (ni, ti, 0, 0)),
        ],
        out_specs=pl.BlockSpec((1, tr, wd, cout), lambda ni, ti: (ni, ti, 0, 0)),
        compiler_params=pltpu.CompilerParams(
            dimension_semantics=("parallel", "parallel")),
    )(x.astype(jnp.bfloat16), w_scaled.astype(jnp.bfloat16),
      b.astype(jnp.float32), residual.astype(jnp.bfloat16))


# ---------------------------------------------------------------------------
# Model
# ---------------------------------------------------------------------------
def imd_module(x, p):
    d1, r1 = conv3x3(x, p["c1_w"], p["c1_b"], act="lrelu", split=True)
    d2, r2 = conv3x3(r1, p["c2_w"], p["c2_b"], act="lrelu", split=True)
    d3, r3 = conv3x3(r2, p["c3_w"], p["c3_b"], act="lrelu", split=True)
    out, stats = c4_concat_stats(r3, d1, d2, d3, p["c4_w"], p["c4_b"])

    # CCALayer FCs: (std + mean) -> 32->2 ReLU -> 2->32 Sigmoid (plain XLA).
    n = out.shape[0]
    hid = N_FEATS // 16
    st = stats.reshape(n, N_FEATS)
    y = jnp.maximum(st @ p["du1_w"].reshape(N_FEATS, hid) + p["du1_b"], 0.0)
    s = jax.nn.sigmoid(y @ p["du2_w"].reshape(hid, N_FEATS) + p["du2_b"])

    # fold the per-(batch, input channel) CCA scale into the 1x1 c5 weights
    w_scaled = s[:, :, None] * p["c5_w"].reshape(N_FEATS, N_FEATS)   # (n, 32, 32)
    return conv1x1_res(out, w_scaled, p["c5_b"].reshape(1, N_FEATS), residual=x)


def colornet_forward(x_nchw, params):
    # layout: NCHW (PyTorch) -> NHWC bf16 for the Pallas kernels -> back.
    x = jnp.transpose(x_nchw, (0, 2, 3, 1)).astype(jnp.bfloat16)
    h = conv3x3(x, params["head_w"], params["head_b"])
    r = h
    for i in range(4):
        r = imd_module(r, params["body"][i])
    # last body conv, with the global residual (res += head output) fused in
    r = conv3x3(r, params["bconv_w"], params["bconv_b"], residual=h)
    out = conv3x3(r, params["tail_w"], params["tail_b"], out_dtype=jnp.float32)
    return jnp.transpose(out, (0, 3, 1, 2))


# ---------------------------------------------------------------------------
# Deterministic parameter init (synthetic, no checkpoint)
# ---------------------------------------------------------------------------
def _init_conv(key, kh, kw, cin, cout):
    wk, bk = jax.random.split(key)
    fan_in = kh * kw * cin
    w = jax.random.normal(wk, (kh, kw, cin, cout), jnp.float32) / jnp.sqrt(float(fan_in))
    b = 0.01 * jax.random.normal(bk, (cout,), jnp.float32)
    return w, b


def init_params(key):
    keys = jax.random.split(key, 64)
    ki = iter(keys)
    p = {}
    p["head_w"], p["head_b"] = _init_conv(next(ki), 3, 3, 3, N_FEATS)
    body = []
    for _ in range(4):
        m = {}
        m["c1_w"], m["c1_b"] = _init_conv(next(ki), 3, 3, N_FEATS, N_FEATS)
        m["c2_w"], m["c2_b"] = _init_conv(next(ki), 3, 3, REMAIN_C, N_FEATS)
        m["c3_w"], m["c3_b"] = _init_conv(next(ki), 3, 3, REMAIN_C, N_FEATS)
        m["c4_w"], m["c4_b"] = _init_conv(next(ki), 3, 3, REMAIN_C, DIST_C)
        m["c5_w"], m["c5_b"] = _init_conv(next(ki), 1, 1, N_FEATS, N_FEATS)
        m["du1_w"], m["du1_b"] = _init_conv(next(ki), 1, 1, N_FEATS, N_FEATS // 16)
        m["du2_w"], m["du2_b"] = _init_conv(next(ki), 1, 1, N_FEATS // 16, N_FEATS)
        body.append(m)
    p["body"] = body
    p["bconv_w"], p["bconv_b"] = _init_conv(next(ki), 3, 3, N_FEATS, N_FEATS)
    p["tail_w"], p["tail_b"] = _init_conv(next(ki), 3, 3, N_FEATS, 3)
    return p


if __name__ == "__main__":
    params = init_params(jax.random.PRNGKey(1))
    x = jax.random.normal(jax.random.PRNGKey(0), (2, 3, 16, 16), jnp.float32)

    fwd = jax.jit(functools.partial(colornet_forward, params=params))
    y = fwd(x)
    jax.block_until_ready(y)
    assert y.shape == (2, 3, 16, 16) and y.dtype == jnp.float32
    print("KERNEL_OK")
</pallas_src>

<mosaic_0001>
module attributes {stable_mosaic.version = 11 : i64} {
  func.func @_conv3x3_kernel(%arg0: i32, %arg1: i32, %arg2: memref<1x1x16x3xbf16, #tpu.memory_space<vmem>>, %arg3: memref<1x16x16x3xbf16, #tpu.memory_space<vmem>>, %arg4: memref<1x1x16x3xbf16, #tpu.memory_space<vmem>>, %arg5: memref<27x32xbf16, #tpu.memory_space<vmem>>, %arg6: memref<1x32xf32, #tpu.memory_space<vmem>>, %arg7: memref<1x16x16x32xbf16, #tpu.memory_space<vmem>>) attributes {dimension_semantics = [#tpu.dimension_semantics<parallel>, #tpu.dimension_semantics<parallel>], iteration_bounds = array<i64: 2, 1>, scalar_prefetch = 0 : i64, scratch_operands = 0 : i64, tpu.core_type = #tpu.core_type<tc>, window_params = [{transform_indices = @transform_0, window_bounds = array<i64: 1, 1, 16, 3>}, {transform_indices = @transform_1, window_bounds = array<i64: 1, 16, 16, 3>}, {transform_indices = @transform_2, window_bounds = array<i64: 1, 1, 16, 3>}, {pipeline_mode = #tpu.pipeline_mode<synchronous>, transform_indices = @transform_3, window_bounds = array<i64: 27, 32>}, {pipeline_mode = #tpu.pipeline_mode<synchronous>, transform_indices = @transform_4, window_bounds = array<i64: 1, 32>}, {transform_indices = @transform_5, window_bounds = array<i64: 1, 16, 16, 32>}]} {
    %c0 = arith.constant 0 : index
    %c0_0 = arith.constant 0 : index
    %c0_1 = arith.constant 0 : index
    %c0_2 = arith.constant 0 : index
    %0 = vector.load %arg3[%c0, %c0_0, %c0_1, %c0_2] : memref<1x16x16x3xbf16, #tpu.memory_space<vmem>>, vector<1x16x16x3xbf16>
    %1 = vector.shape_cast %0 : vector<1x16x16x3xbf16> to vector<16x16x3xbf16>
    %c0_i32 = arith.constant 0 : i32
    %2 = arith.cmpi sgt, %arg1, %c0_i32 : i32
    %cst = arith.constant 1.000000e+00 : f32
    %cst_3 = arith.constant 0.000000e+00 : f32
    %3 = arith.select %2, %cst, %cst_3 : f32
    %c0_i32_4 = arith.constant 0 : i32
    %4 = arith.cmpi slt, %arg1, %c0_i32_4 : i32
    %cst_5 = arith.constant 1.000000e+00 : f32
    %cst_6 = arith.constant 0.000000e+00 : f32
    %5 = arith.select %4, %cst_5, %cst_6 : f32
    %c0_7 = arith.constant 0 : index
    %c0_8 = arith.constant 0 : index
    %c0_9 = arith.constant 0 : index
    %c0_10 = arith.constant 0 : index
    %6 = vector.load %arg2[%c0_7, %c0_8, %c0_9, %c0_10] : memref<1x1x16x3xbf16, #tpu.memory_space<vmem>>, vector<1x1x16x3xbf16>
    %7 = vector.shape_cast %6 : vector<1x1x16x3xbf16> to vector<1x16x3xbf16>
    %8 = arith.extf %7 : vector<1x16x3xbf16> to vector<1x16x3xf32>
    %9 = vector.broadcast %3 : f32 to vector<1x16x3xf32>
    %10 = arith.mulf %8, %9 : vector<1x16x3xf32>
    %11 = arith.truncf %10 : vector<1x16x3xf32> to vector<1x16x3xbf16>
    %c0_11 = arith.constant 0 : index
    %c0_12 = arith.constant 0 : index
    %c0_13 = arith.constant 0 : index
    %c0_14 = arith.constant 0 : index
    %12 = vector.load %arg4[%c0_11, %c0_12, %c0_13, %c0_14] : memref<1x1x16x3xbf16, #tpu.memory_space<vmem>>, vector<1x1x16x3xbf16>
    %13 = vector.shape_cast %12 : vector<1x1x16x3xbf16> to vector<1x16x3xbf16>
    %14 = arith.extf %13 : vector<1x16x3xbf16> to vector<1x16x3xf32>
    %15 = vector.broadcast %5 : f32 to vector<1x16x3xf32>
    %16 = arith.mulf %14, %15 : vector<1x16x3xf32>
    %17 = arith.truncf %16 : vector<1x16x3xf32> to vector<1x16x3xbf16>
    %18 = tpu.concatenate %11, %1, %17 in 0 : vector<1x16x3xbf16>, vector<16x16x3xbf16>, vector<1x16x3xbf16> -> vector<18x16x3xbf16>
    %cst_15 = arith.constant 0.000000e+00 : bf16
    %19 = vector.broadcast %cst_15 : bf16 to vector<18x1x3xbf16>
    %20 = tpu.concatenate %19, %18, %19 in 1 : vector<18x1x3xbf16>, vector<18x16x3xbf16>, vector<18x1x3xbf16> -> vector<18x18x3xbf16>
    %21 = vector.extract_strided_slice %20 {offsets = [0, 0, 0], sizes = [18, 16, 3], strides = [1, 1, 1]} : vector<18x18x3xbf16> to vector<18x16x3xbf16>
    %22 = vector.extract_strided_slice %20 {offsets = [0, 1, 0], sizes = [18, 16, 3], strides = [1, 1, 1]} : vector<18x18x3xbf16> to vector<18x16x3xbf16>
    %23 = vector.extract_strided_slice %20 {offsets = [0, 2, 0], sizes = [18, 16, 3], strides = [1, 1, 1]} : vector<18x18x3xbf16> to vector<18x16x3xbf16>
    %24 = tpu.concatenate %21, %22, %23 in 2 : vector<18x16x3xbf16>, vector<18x16x3xbf16>, vector<18x16x3xbf16> -> vector<18x16x9xbf16>
    %25 = vector.extract_strided_slice %24 {offsets = [0, 0, 0], sizes = [16, 16, 9], strides = [1, 1, 1]} : vector<18x16x9xbf16> to vector<16x16x9xbf16>
    %26 = vector.shape_cast %25 : vector<16x16x9xbf16> to vector<256x9xbf16>
    %27 = vector.extract_strided_slice %24 {offsets = [1, 0, 0], sizes = [16, 16, 9], strides = [1, 1, 1]} : vector<18x16x9xbf16> to vector<16x16x9xbf16>
    %28 = vector.shape_cast %27 : vector<16x16x9xbf16> to vector<256x9xbf16>
    %29 = vector.extract_strided_slice %24 {offsets = [2, 0, 0], sizes = [16, 16, 9], strides = [1, 1, 1]} : vector<18x16x9xbf16> to vector<16x16x9xbf16>
    %30 = vector.shape_cast %29 : vector<16x16x9xbf16> to vector<256x9xbf16>
    %31 = tpu.concatenate %26, %28, %30 in 1 : vector<256x9xbf16>, vector<256x9xbf16>, vector<256x9xbf16> -> vector<256x27xbf16>
    %c0_16 = arith.constant 0 : index
    %c0_17 = arith.constant 0 : index
    %32 = vector.load %arg5[%c0_16, %c0_17] : memref<27x32xbf16, #tpu.memory_space<vmem>>, vector<27x32xbf16>
    %cst_18 = arith.constant dense<0.000000e+00> : vector<256x32xf32>
    %33 = tpu.matmul %31, %32, %cst_18 {dimension_numbers = #tpu.dot_dimension_numbers<[1], [0], [0], [1], [0, 0, 1, 1], [], []>} : vector<256x27xbf16>, vector<27x32xbf16>, vector<256x32xf32> -> vector<256x32xf32>
    %c0_19 = arith.constant 0 : index
    %c0_20 = arith.constant 0 : index
    %34 = vector.load %arg6[%c0_19, %c0_20] : memref<1x32xf32, #tpu.memory_space<vmem>>, vector<1x32xf32>
    %35 = vector.broadcast %34 : vector<1x32xf32> to vector<256x32xf32>
    %36 = arith.addf %33, %35 : vector<256x32xf32>
    %37 = vector.shape_cast %36 : vector<256x32xf32> to vector<1x16x16x32xf32>
    %38 = arith.truncf %37 : vector<1x16x16x32xf32> to vector<1x16x16x32xbf16>
    %c0_21 = arith.constant 0 : index
    %c0_22 = arith.constant 0 : index
    %c0_23 = arith.constant 0 : index
    %c0_24 = arith.constant 0 : index
    %39 = vector.load %arg7[%c0_21, %c0_22, %c0_23, %c0_24] : memref<1x16x16x32xbf16, #tpu.memory_space<vmem>>, vector<1x16x16x32xbf16>
    tpu.vector_store %arg7[%c0_21, %c0_22, %c0_23, %c0_24], %38 {strides = array<i32>} : memref<1x16x16x32xbf16, #tpu.memory_space<vmem>>, vector<1x16x16x32xbf16>,
    return
  }
  func.func @transform_0(%arg0: i32, %arg1: i32) -> (i32, i32, i32, i32) {
    %c16_i32 = arith.constant 16 : i32
    %0 = arith.muli %arg1, %c16_i32 : i32
    %c1_i32 = arith.constant 1 : i32
    %1 = arith.subi %0, %c1_i32 : i32
    %c0_i32 = arith.constant 0 : i32
    %2 = arith.maxsi %1, %c0_i32 : i32
    %c0_i32_0 = arith.constant 0 : i32
    %c0_i32_1 = arith.constant 0 : i32
    %c0_i32_2 = arith.constant 0 : i32
    return %arg0, %2, %c0_i32_0, %c0_i32_1 : i32, i32, i32, i32
  }
  func.func @transform_1(%arg0: i32, %arg1: i32) -> (i32, i32, i32, i32) {
    %c0_i32 = arith.constant 0 : i32
    %c0_i32_0 = arith.constant 0 : i32
    %c0_i32_1 = arith.constant 0 : i32
    return %arg0, %arg1, %c0_i32, %c0_i32_0 : i32, i32, i32, i32
  }
  func.func @transform_2(%arg0: i32, %arg1: i32) -> (i32, i32, i32, i32) {
    %c16_i32 = arith.constant 16 : i32
    %0 = arith.muli %arg1, %c16_i32 : i32
    %c16_i32_0 = arith.constant 16 : i32
    %1 = arith.addi %0, %c16_i32_0 : i32
    %c15_i32 = arith.constant 15 : i32
    %2 = arith.minsi %1, %c15_i32 : i32
    %c0_i32 = arith.constant 0 : i32
    %c0_i32_1 = arith.constant 0 : i32
    %c0_i32_2 = arith.constant 0 : i32
    return %arg0, %2, %c0_i32, %c0_i32_1 : i32, i32, i32, i32
  }
  func.func @transform_3(%arg0: i32, %arg1: i32) -> (i32, i32) {
    %c0_i32 = arith.constant 0 : i32
    %c0_i32_0 = arith.constant 0 : i32
    %c0_i32_1 = arith.constant 0 : i32
    return %c0_i32, %c0_i32_0 : i32, i32
  }
  func.func @transform_4(%arg0: i32, %arg1: i32) -> (i32, i32) {
    %c0_i32 = arith.constant 0 : i32
    %c0_i32_0 = arith.constant 0 : i32
    %c0_i32_1 = arith.constant 0 : i32
    return %c0_i32, %c0_i32_0 : i32, i32
  }
  func.func @transform_5(%arg0: i32, %arg1: i32) -> (i32, i32, i32, i32) {
    %c0_i32 = arith.constant 0 : i32
    %c0_i32_0 = arith.constant 0 : i32
    %c0_i32_1 = arith.constant 0 : i32
    return %arg0, %arg1, %c0_i32, %c0_i32_0 : i32, i32, i32, i32
  }
}

module attributes {stable_mosaic.version = 11 : i64} {
  func.func @_conv3x3_kernel(%arg0: i32, %arg1: i32, %arg2: memref<1x1x16x32xbf16, #tpu.memory_space<vmem>>, %arg3: memref<1x16x16x32xbf16, #tpu.memory_space<vmem>>, %arg4: memref<1x1x16x32xbf16, #tpu.memory_space<vmem>>, %arg5: memref<288x32xbf16, #tpu.memory_space<vmem>>, %arg6: memref<1x32xf32, #tpu.memory_space<vmem>>, %arg7: memref<1x16x16x8xbf16, #tpu.memory_space<vmem>>, %arg8: memref<1x16x16x24xbf16, #tpu.memory_space<vmem>>) attributes {dimension_semantics = [#tpu.dimension_semantics<parallel>, #tpu.dimension_semantics<parallel>], iteration_bounds = array<i64: 2, 1>, scalar_prefetch = 0 : i64, scratch_operands = 0 : i64, tpu.core_type = #tpu.core_type<tc>, window_params = [{transform_indices = @transform_0, window_bounds = array<i64: 1, 1, 16, 32>}, {transform_indices = @transform_1, window_bounds = array<i64: 1, 16, 16, 32>}, {transform_indices = @transform_2, window_bounds = array<i64: 1, 1, 16, 32>}, {pipeline_mode = #tpu.pipeline_mode<synchronous>, transform_indices = @transform_3, window_bounds = array<i64: 288, 32>}, {pipeline_mode = #tpu.pipeline_mode<synchronous>, transform_indices = @transform_4, window_bounds = array<i64: 1, 32>}, {transform_indices = @transform_5, window_bounds = array<i64: 1, 16, 16, 8>}, {transform_indices = @transform_6, window_bounds = array<i64: 1, 16, 16, 24>}]} {
    %c0 = arith.constant 0 : index
    %c0_0 = arith.constant 0 : index
    %c0_1 = arith.constant 0 : index
    %c0_2 = arith.constant 0 : index
    %0 = vector.load %arg3[%c0, %c0_0, %c0_1, %c0_2] : memref<1x16x16x32xbf16, #tpu.memory_space<vmem>>, vector<1x16x16x32xbf16>
    %1 = vector.shape_cast %0 : vector<1x16x16x32xbf16> to vector<16x16x32xbf16>
    %c0_i32 = arith.constant 0 : i32
    %2 = arith.cmpi sgt, %arg1, %c0_i32 : i32
    %cst = arith.constant 1.000000e+00 : f32
    %cst_3 = arith.constant 0.000000e+00 : f32
    %3 = arith.select %2, %cst, %cst_3 : f32
    %c0_i32_4 = arith.constant 0 : i32
    %4 = arith.cmpi slt, %arg1, %c0_i32_4 : i32
    %cst_5 = arith.constant 1.000000e+00 : f32
    %cst_6 = arith.constant 0.000000e+00 : f32
    %5 = arith.select %4, %cst_5, %cst_6 : f32
    %c0_7 = arith.constant 0 : index
    %c0_8 = arith.constant 0 : index
    %c0_9 = arith.constant 0 : index
    %c0_10 = arith.constant 0 : index
    %6 = vector.load %arg2[%c0_7, %c0_8, %c0_9, %c0_10] : memref<1x1x16x32xbf16, #tpu.memory_space<vmem>>, vector<1x1x16x32xbf16>
    %7 = vector.shape_cast %6 : vector<1x1x16x32xbf16> to vector<1x16x32xbf16>
    %8 = arith.extf %7 : vector<1x16x32xbf16> to vector<1x16x32xf32>
    %9 = vector.broadcast %3 : f32 to vector<1x16x32xf32>
    %10 = arith.mulf %8, %9 : vector<1x16x32xf32>
    %11 = arith.truncf %10 : vector<1x16x32xf32> to vector<1x16x32xbf16>
    %c0_11 = arith.constant 0 : index
    %c0_12 = arith.constant 0 : index
    %c0_13 = arith.constant 0 : index
    %c0_14 = arith.constant 0 : index
    %12 = vector.load %arg4[%c0_11, %c0_12, %c0_13, %c0_14] : memref<1x1x16x32xbf16, #tpu.memory_space<vmem>>, vector<1x1x16x32xbf16>
    %13 = vector.shape_cast %12 : vector<1x1x16x32xbf16> to vector<1x16x32xbf16>
    %14 = arith.extf %13 : vector<1x16x32xbf16> to vector<1x16x32xf32>
    %15 = vector.broadcast %5 : f32 to vector<1x16x32xf32>
    %16 = arith.mulf %14, %15 : vector<1x16x32xf32>
    %17 = arith.truncf %16 : vector<1x16x32xf32> to vector<1x16x32xbf16>
    %18 = tpu.concatenate %11, %1, %17 in 0 : vector<1x16x32xbf16>, vector<16x16x32xbf16>, vector<1x16x32xbf16> -> vector<18x16x32xbf16>
    %cst_15 = arith.constant 0.000000e+00 : bf16
    %19 = vector.broadcast %cst_15 : bf16 to vector<18x1x32xbf16>
    %20 = tpu.concatenate %19, %18, %19 in 1 : vector<18x1x32xbf16>, vector<18x16x32xbf16>, vector<18x1x32xbf16> -> vector<18x18x32xbf16>
    %21 = vector.extract_strided_slice %20 {offsets = [0, 0, 0], sizes = [18, 16, 32], strides = [1, 1, 1]} : vector<18x18x32xbf16> to vector<18x16x32xbf16>
    %22 = vector.extract_strided_slice %20 {offsets = [0, 1, 0], sizes = [18, 16, 32], strides = [1, 1, 1]} : vector<18x18x32xbf16> to vector<18x16x32xbf16>
    %23 = vector.extract_strided_slice %20 {offsets = [0, 2, 0], sizes = [18, 16, 32], strides = [1, 1, 1]} : vector<18x18x32xbf16> to vector<18x16x32xbf16>
    %24 = tpu.concatenate %21, %22, %23 in 2 : vector<18x16x32xbf16>, vector<18x16x32xbf16>, vector<18x16x32xbf16> -> vector<18x16x96xbf16>
    %25 = vector.extract_strided_slice %24 {offsets = [0, 0, 0], sizes = [16, 16, 96], strides = [1, 1, 1]} : vector<18x16x96xbf16> to vector<16x16x96xbf16>
    %26 = vector.shape_cast %25 : vector<16x16x96xbf16> to vector<256x96xbf16>
    %27 = vector.extract_strided_slice %24 {offsets = [1, 0, 0], sizes = [16, 16, 96], strides = [1, 1, 1]} : vector<18x16x96xbf16> to vector<16x16x96xbf16>
    %28 = vector.shape_cast %27 : vector<16x16x96xbf16> to vector<256x96xbf16>
    %29 = vector.extract_strided_slice %24 {offsets = [2, 0, 0], sizes = [16, 16, 96], strides = [1, 1, 1]} : vector<18x16x96xbf16> to vector<16x16x96xbf16>
    %30 = vector.shape_cast %29 : vector<16x16x96xbf16> to vector<256x96xbf16>
    %31 = tpu.concatenate %26, %28, %30 in 1 : vector<256x96xbf16>, vector<256x96xbf16>, vector<256x96xbf16> -> vector<256x288xbf16>
    %c0_16 = arith.constant 0 : index
    %c0_17 = arith.constant 0 : index
    %32 = vector.load %arg5[%c0_16, %c0_17] : memref<288x32xbf16, #tpu.memory_space<vmem>>, vector<288x32xbf16>
    %cst_18 = arith.constant dense<0.000000e+00> : vector<256x32xf32>
    %33 = tpu.matmul %31, %32, %cst_18 {dimension_numbers = #tpu.dot_dimension_numbers<[1], [0], [0], [1], [0, 0, 1, 1], [], []>} : vector<256x288xbf16>, vector<288x32xbf16>, vector<256x32xf32> -> vector<256x32xf32>
    %c0_19 = arith.constant 0 : index
    %c0_20 = arith.constant 0 : index
    %34 = vector.load %arg6[%c0_19, %c0_20] : memref<1x32xf32, #tpu.memory_space<vmem>>, vector<1x32xf32>
    %35 = vector.broadcast %34 : vector<1x32xf32> to vector<256x32xf32>
    %36 = arith.addf %33, %35 : vector<256x32xf32>
    %cst_21 = arith.constant 0.000000e+00 : f32
    %37 = vector.broadcast %cst_21 : f32 to vector<256x32xf32>
    %38 = arith.cmpf oge, %36, %37 : vector<256x32xf32>
    %cst_22 = arith.constant 5.000000e-02 : f32
    %39 = vector.broadcast %cst_22 : f32 to vector<256x32xf32>
    %40 = arith.mulf %39, %36 : vector<256x32xf32>
    %41 = arith.select %38, %36, %40 : vector<256x32xi1>, vector<256x32xf32>
    %42 = vector.extract_strided_slice %41 {offsets = [0, 0], sizes = [256, 8], strides = [1, 1]} : vector<256x32xf32> to vector<256x8xf32>
    %43 = vector.shape_cast %42 : vector<256x8xf32> to vector<1x16x16x8xf32>
    %44 = arith.truncf %43 : vector<1x16x16x8xf32> to vector<1x16x16x8xbf16>
    %c0_23 = arith.constant 0 : index
    %c0_24 = arith.constant 0 : index
    %c0_25 = arith.constant 0 : index
    %c0_26 = arith.constant 0 : index
    %45 = vector.load %arg7[%c0_23, %c0_24, %c0_25, %c0_26] : memref<1x16x16x8xbf16, #tpu.memory_space<vmem>>, vector<1x16x16x8xbf16>
    tpu.vector_store %arg7[%c0_23, %c0_24, %c0_25, %c0_26], %44 {strides = array<i32>} : memref<1x16x16x8xbf16, #tpu.memory_space<vmem>>, vector<1x16x16x8xbf16>,
    %46 = vector.extract_strided_slice %41 {offsets = [0, 8], sizes = [256, 24], strides = [1, 1]} : vector<256x32xf32> to vector<256x24xf32>
    %47 = vector.shape_cast %46 : vector<256x24xf32> to vector<1x16x16x24xf32>
    %48 = arith.truncf %47 : vector<1x16x16x24xf32> to vector<1x16x16x24xbf16>
    %c0_27 = arith.constant 0 : index
    %c0_28 = arith.constant 0 : index
    %c0_29 = arith.constant 0 : index
    %c0_30 = arith.constant 0 : index
    %49 = vector.load %arg8[%c0_27, %c0_28, %c0_29, %c0_30] : memref<1x16x16x24xbf16, #tpu.memory_space<vmem>>, vector<1x16x16x24xbf16>
    tpu.vector_store %arg8[%c0_27, %c0_28, %c0_29, %c0_30], %48 {strides = array<i32>} : memref<1x16x16x24xbf16, #tpu.memory_space<vmem>>, vector<1x16x16x24xbf16>,
    return
  }
  func.func @transform_0(%arg0: i32, %arg1: i32) -> (i32, i32, i32, i32) {
    %c16_i32 = arith.constant 16 : i32
    %0 = arith.muli %arg1, %c16_i32 : i32
    %c1_i32 = arith.constant 1 : i32
    %1 = arith.subi %0, %c1_i32 : i32
    %c0_i32 = arith.constant 0 : i32
    %2 = arith.maxsi %1, %c0_i32 : i32
    %c0_i32_0 = arith.constant 0 : i32
    %c0_i32_1 = arith.constant 0 : i32
    %c0_i32_2 = arith.constant 0 : i32
    return %arg0, %2, %c0_i32_0, %c0_i32_1 : i32, i32, i32, i32
  }
  func.func @transform_1(%arg0: i32, %arg1: i32) -> (i32, i32, i32, i32) {
    %c0_i32 = arith.constant 0 : i32
    %c0_i32_0 = arith.constant 0 : i32
    %c0_i32_1 = arith.constant 0 : i32
    return %arg0, %arg1, %c0_i32, %c0_i32_0 : i32, i32, i32, i32
  }
  func.func @transform_2(%arg0: i32, %arg1: i32) -> (i32, i32, i32, i32) {
    %c16_i32 = arith.constant 16 : i32
    %0 = arith.muli %arg1, %c16_i32 : i32
    %c16_i32_0 = arith.constant 16 : i32
    %1 = arith.addi %0, %c16_i32_0 : i32
    %c15_i32 = arith.constant 15 : i32
    %2 = arith.minsi %1, %c15_i32 : i32
    %c0_i32 = arith.constant 0 : i32
    %c0_i32_1 = arith.constant 0 : i32
    %c0_i32_2 = arith.constant 0 : i32
    return %arg0, %2, %c0_i32, %c0_i32_1 : i32, i32, i32, i32
  }
  func.func @transform_3(%arg0: i32, %arg1: i32) -> (i32, i32) {
    %c0_i32 = arith.constant 0 : i32
    %c0_i32_0 = arith.constant 0 : i32
    %c0_i32_1 = arith.constant 0 : i32
    return %c0_i32, %c0_i32_0 : i32, i32
  }
  func.func @transform_4(%arg0: i32, %arg1: i32) -> (i32, i32) {
    %c0_i32 = arith.constant 0 : i32
    %c0_i32_0 = arith.constant 0 : i32
    %c0_i32_1 = arith.constant 0 : i32
    return %c0_i32, %c0_i32_0 : i32, i32
  }
  func.func @transform_5(%arg0: i32, %arg1: i32) -> (i32, i32, i32, i32) {
    %c0_i32 = arith.constant 0 : i32
    %c0_i32_0 = arith.constant 0 : i32
    %c0_i32_1 = arith.constant 0 : i32
    return %arg0, %arg1, %c0_i32, %c0_i32_0 : i32, i32, i32, i32
  }
  func.func @transform_6(%arg0: i32, %arg1: i32) -> (i32, i32, i32, i32) {
    %c0_i32 = arith.constant 0 : i32
    %c0_i32_0 = arith.constant 0 : i32
    %c0_i32_1 = arith.constant 0 : i32
    return %arg0, %arg1, %c0_i32, %c0_i32_0 : i32, i32, i32, i32
  }
}

module attributes {stable_mosaic.version = 11 : i64} {
  func.func @_c4_concat_stats_kernel(%arg0: i32, %arg1: i32, %arg2: memref<1x1x16x24xbf16, #tpu.memory_space<vmem>>, %arg3: memref<1x16x16x24xbf16, #tpu.memory_space<vmem>>, %arg4: memref<1x1x16x24xbf16, #tpu.memory_space<vmem>>, %arg5: memref<216x8xbf16, #tpu.memory_space<vmem>>, %arg6: memref<1x8xf32, #tpu.memory_space<vmem>>, %arg7: memref<1x16x16x8xbf16, #tpu.memory_space<vmem>>, %arg8: memref<1x16x16x8xbf16, #tpu.memory_space<vmem>>, %arg9: memref<1x16x16x8xbf16, #tpu.memory_space<vmem>>, %arg10: memref<1x16x16x32xbf16, #tpu.memory_space<vmem>>, %arg11: memref<1x1x32xf32, #tpu.memory_space<vmem>>, %arg12: memref<1x32xf32, #tpu.memory_space<vmem>>, %arg13: memref<1x32xf32, #tpu.memory_space<vmem>>) attributes {dimension_semantics = [#tpu.dimension_semantics<parallel>, #tpu.dimension_semantics<arbitrary>], iteration_bounds = array<i64: 2, 1>, scalar_prefetch = 0 : i64, scratch_operands = 2 : i64, tpu.core_type = #tpu.core_type<tc>, window_params = [{transform_indices = @transform_0, window_bounds = array<i64: 1, 1, 16, 24>}, {transform_indices = @transform_1, window_bounds = array<i64: 1, 16, 16, 24>}, {transform_indices = @transform_2, window_bounds = array<i64: 1, 1, 16, 24>}, {pipeline_mode = #tpu.pipeline_mode<synchronous>, transform_indices = @transform_3, window_bounds = array<i64: 216, 8>}, {pipeline_mode = #tpu.pipeline_mode<synchronous>, transform_indices = @transform_4, window_bounds = array<i64: 1, 8>}, {transform_indices = @transform_5, window_bounds = array<i64: 1, 16, 16, 8>}, {transform_indices = @transform_6, window_bounds = array<i64: 1, 16, 16, 8>}, {transform_indices = @transform_7, window_bounds = array<i64: 1, 16, 16, 8>}, {transform_indices = @transform_8, window_bounds = array<i64: 1, 16, 16, 32>}, {transform_indices = @transform_9, window_bounds = array<i64: 1, 1, 32>}]} {
    %c0 = arith.constant 0 : index
    %c0_0 = arith.constant 0 : index
    %c0_1 = arith.constant 0 : index
    %c0_2 = arith.constant 0 : index
    %0 = vector.load %arg3[%c0, %c0_0, %c0_1, %c0_2] : memref<1x16x16x24xbf16, #tpu.memory_space<vmem>>, vector<1x16x16x24xbf16>
    %1 = vector.shape_cast %0 : vector<1x16x16x24xbf16> to vector<16x16x24xbf16>
    %c0_i32 = arith.constant 0 : i32
    %2 = arith.cmpi sgt, %arg1, %c0_i32 : i32
    %cst = arith.constant 1.000000e+00 : f32
    %cst_3 = arith.constant 0.000000e+00 : f32
    %3 = arith.select %2, %cst, %cst_3 : f32
    %c0_i32_4 = arith.constant 0 : i32
    %4 = arith.cmpi slt, %arg1, %c0_i32_4 : i32
    %cst_5 = arith.constant 1.000000e+00 : f32
    %cst_6 = arith.constant 0.000000e+00 : f32
    %5 = arith.select %4, %cst_5, %cst_6 : f32
    %c0_7 = arith.constant 0 : index
    %c0_8 = arith.constant 0 : index
    %c0_9 = arith.constant 0 : index
    %c0_10 = arith.constant 0 : index
    %6 = vector.load %arg2[%c0_7, %c0_8, %c0_9, %c0_10] : memref<1x1x16x24xbf16, #tpu.memory_space<vmem>>, vector<1x1x16x24xbf16>
    %7 = vector.shape_cast %6 : vector<1x1x16x24xbf16> to vector<1x16x24xbf16>
    %8 = arith.extf %7 : vector<1x16x24xbf16> to vector<1x16x24xf32>
    %9 = vector.broadcast %3 : f32 to vector<1x16x24xf32>
    %10 = arith.mulf %8, %9 : vector<1x16x24xf32>
    %11 = arith.truncf %10 : vector<1x16x24xf32> to vector<1x16x24xbf16>
    %c0_11 = arith.constant 0 : index
    %c0_12 = arith.constant 0 : index
    %c0_13 = arith.constant 0 : index
    %c0_14 = arith.constant 0 : index
    %12 = vector.load %arg4[%c0_11, %c0_12, %c0_13, %c0_14] : memref<1x1x16x24xbf16, #tpu.memory_space<vmem>>, vector<1x1x16x24xbf16>
    %13 = vector.shape_cast %12 : vector<1x1x16x24xbf16> to vector<1x16x24xbf16>
    %14 = arith.extf %13 : vector<1x16x24xbf16> to vector<1x16x24xf32>
    %15 = vector.broadcast %5 : f32 to vector<1x16x24xf32>
    %16 = arith.mulf %14, %15 : vector<1x16x24xf32>
    %17 = arith.truncf %16 : vector<1x16x24xf32> to vector<1x16x24xbf16>
    %18 = tpu.concatenate %11, %1, %17 in 0 : vector<1x16x24xbf16>, vector<16x16x24xbf16>, vector<1x16x24xbf16> -> vector<18x16x24xbf16>
    %cst_15 = arith.constant 0.000000e+00 : bf16
    %19 = vector.broadcast %cst_15 : bf16 to vector<18x1x24xbf16>
    %20 = tpu.concatenate %19, %18, %19 in 1 : vector<18x1x24xbf16>, vector<18x16x24xbf16>, vector<18x1x24xbf16> -> vector<18x18x24xbf16>
    %21 = vector.extract_strided_slice %20 {offsets = [0, 0, 0], sizes = [18, 16, 24], strides = [1, 1, 1]} : vector<18x18x24xbf16> to vector<18x16x24xbf16>
    %22 = vector.extract_strided_slice %20 {offsets = [0, 1, 0], sizes = [18, 16, 24], strides = [1, 1, 1]} : vector<18x18x24xbf16> to vector<18x16x24xbf16>
    %23 = vector.extract_strided_slice %20 {offsets = [0, 2, 0], sizes = [18, 16, 24], strides = [1, 1, 1]} : vector<18x18x24xbf16> to vector<18x16x24xbf16>
    %24 = tpu.concatenate %21, %22, %23 in 2 : vector<18x16x24xbf16>, vector<18x16x24xbf16>, vector<18x16x24xbf16> -> vector<18x16x72xbf16>
    %25 = vector.extract_strided_slice %24 {offsets = [0, 0, 0], sizes = [16, 16, 72], strides = [1, 1, 1]} : vector<18x16x72xbf16> to vector<16x16x72xbf16>
    %26 = vector.shape_cast %25 : vector<16x16x72xbf16> to vector<256x72xbf16>
    %27 = vector.extract_strided_slice %24 {offsets = [1, 0, 0], sizes = [16, 16, 72], strides = [1, 1, 1]} : vector<18x16x72xbf16> to vector<16x16x72xbf16>
    %28 = vector.shape_cast %27 : vector<16x16x72xbf16> to vector<256x72xbf16>
    %29 = vector.extract_strided_slice %24 {offsets = [2, 0, 0], sizes = [16, 16, 72], strides = [1, 1, 1]} : vector<18x16x72xbf16> to vector<16x16x72xbf16>
    %30 = vector.shape_cast %29 : vector<16x16x72xbf16> to vector<256x72xbf16>
    %31 = tpu.concatenate %26, %28, %30 in 1 : vector<256x72xbf16>, vector<256x72xbf16>, vector<256x72xbf16> -> vector<256x216xbf16>
    %c0_16 = arith.constant 0 : index
    %c0_17 = arith.constant 0 : index
    %32 = vector.load %arg5[%c0_16, %c0_17] : memref<216x8xbf16, #tpu.memory_space<vmem>>, vector<216x8xbf16>
    %cst_18 = arith.constant dense<0.000000e+00> : vector<256x8xf32>
    %33 = tpu.matmul %31, %32, %cst_18 {dimension_numbers = #tpu.dot_dimension_numbers<[1], [0], [0], [1], [0, 0, 1, 1], [], []>} : vector<256x216xbf16>, vector<216x8xbf16>, vector<256x8xf32> -> vector<256x8xf32>
    %c0_19 = arith.constant 0 : index
    %c0_20 = arith.constant 0 : index
    %34 = vector.load %arg6[%c0_19, %c0_20] : memref<1x8xf32, #tpu.memory_space<vmem>>, vector<1x8xf32>
    %35 = vector.broadcast %34 : vector<1x8xf32> to vector<256x8xf32>
    %36 = arith.addf %33, %35 : vector<256x8xf32>
    %c0_21 = arith.constant 0 : index
    %c0_22 = arith.constant 0 : index
    %c0_23 = arith.constant 0 : index
    %c0_24 = arith.constant 0 : index
    %37 = vector.load %arg7[%c0_21, %c0_22, %c0_23, %c0_24] : memref<1x16x16x8xbf16, #tpu.memory_space<vmem>>, vector<1x16x16x8xbf16>
    %38 = vector.shape_cast %37 : vector<1x16x16x8xbf16> to vector<256x8xbf16>
    %39 = arith.extf %38 : vector<256x8xbf16> to vector<256x8xf32>
    %c0_25 = arith.constant 0 : index
    %c0_26 = arith.constant 0 : index
    %c0_27 = arith.constant 0 : index
    %c0_28 = arith.constant 0 : index
    %40 = vector.load %arg8[%c0_25, %c0_26, %c0_27, %c0_28] : memref<1x16x16x8xbf16, #tpu.memory_space<vmem>>, vector<1x16x16x8xbf16>
    %41 = vector.shape_cast %40 : vector<1x16x16x8xbf16> to vector<256x8xbf16>
    %42 = arith.extf %41 : vector<256x8xbf16> to vector<256x8xf32>
    %c0_29 = arith.constant 0 : index
    %c0_30 = arith.constant 0 : index
    %c0_31 = arith.constant 0 : index
    %c0_32 = arith.constant 0 : index
    %43 = vector.load %arg9[%c0_29, %c0_30, %c0_31, %c0_32] : memref<1x16x16x8xbf16, #tpu.memory_space<vmem>>, vector<1x16x16x8xbf16>
    %44 = vector.shape_cast %43 : vector<1x16x16x8xbf16> to vector<256x8xbf16>
    %45 = arith.extf %44 : vector<256x8xbf16> to vector<256x8xf32>
    %46 = tpu.concatenate %39, %42, %45, %36 in 1 : vector<256x8xf32>, vector<256x8xf32>, vector<256x8xf32>, vector<256x8xf32> -> vector<256x32xf32>
    %47 = vector.shape_cast %46 : vector<256x32xf32> to vector<1x16x16x32xf32>
    %48 = arith.truncf %47 : vector<1x16x16x32xf32> to vector<1x16x16x32xbf16>
    %c0_33 = arith.constant 0 : index
    %c0_34 = arith.constant 0 : index
    %c0_35 = arith.constant 0 : index
    %c0_36 = arith.constant 0 : index
    %49 = vector.load %arg10[%c0_33, %c0_34, %c0_35, %c0_36] : memref<1x16x16x32xbf16, #tpu.memory_space<vmem>>, vector<1x16x16x32xbf16>
    tpu.vector_store %arg10[%c0_33, %c0_34, %c0_35, %c0_36], %48 {strides = array<i32>} : memref<1x16x16x32xbf16, #tpu.memory_space<vmem>>, vector<1x16x16x32xbf16>,
    %c0_i32_37 = arith.constant 0 : i32
    %50 = arith.cmpi eq, %arg1, %c0_i32_37 : i32
    %51 = arith.extui %50 : i1 to i32
    %c0_i32_38 = arith.constant 0 : i32
    %52 = arith.cmpi ne, %51, %c0_i32_38 : i32
    scf.if %52 {
      %cst_51 = arith.constant 0.000000e+00 : f32
      %67 = vector.broadcast %cst_51 : f32 to vector<1x32xf32>
      %c0_52 = arith.constant 0 : index
      %c0_53 = arith.constant 0 : index
      %68 = vector.load %arg12[%c0_52, %c0_53] : memref<1x32xf32, #tpu.memory_space<vmem>>, vector<1x32xf32>
      tpu.vector_store %arg12[%c0_52, %c0_53], %67 {strides = array<i32>} : memref<1x32xf32, #tpu.memory_space<vmem>>, vector<1x32xf32>,
      %cst_54 = arith.constant 0.000000e+00 : f32
      %69 = vector.broadcast %cst_54 : f32 to vector<1x32xf32>
      %c0_55 = arith.constant 0 : index
      %c0_56 = arith.constant 0 : index
      %70 = vector.load %arg13[%c0_55, %c0_56] : memref<1x32xf32, #tpu.memory_space<vmem>>, vector<1x32xf32>
      tpu.vector_store %arg13[%c0_55, %c0_56], %69 {strides = array<i32>} : memref<1x32xf32, #tpu.memory_space<vmem>>, vector<1x32xf32>,
    } else {
    }
    %c0_39 = arith.constant 0 : index
    %c0_40 = arith.constant 0 : index
    %53 = vector.load %arg12[%c0_39, %c0_40] : memref<1x32xf32, #tpu.memory_space<vmem>>, vector<1x32xf32>
    %cst_41 = arith.constant dense<0.000000e+00> : vector<32xf32>
    %54 = vector.multi_reduction <add>, %46, %cst_41 [0] : vector<256x32xf32> to vector<32xf32>
    %55 = vector.shape_cast %54 : vector<32xf32> to vector<1x32xf32>
    %56 = arith.addf %53, %55 : vector<1x32xf32>
    %c0_42 = arith.constant 0 : index
    %c0_43 = arith.constant 0 : index
    %57 = vector.load %arg12[%c0_42, %c0_43] : memref<1x32xf32, #tpu.memory_space<vmem>>, vector<1x32xf32>
    tpu.vector_store %arg12[%c0_42, %c0_43], %56 {strides = array<i32>} : memref<1x32xf32, #tpu.memory_space<vmem>>, vector<1x32xf32>,
    %c0_44 = arith.constant 0 : index
    %c0_45 = arith.constant 0 : index
    %58 = vector.load %arg13[%c0_44, %c0_45] : memref<1x32xf32, #tpu.memory_space<vmem>>, vector<1x32xf32>
    %59 = arith.mulf %46, %46 : vector<256x32xf32>
    %cst_46 = arith.constant dense<0.000000e+00> : vector<32xf32>
    %60 = vector.multi_reduction <add>, %59, %cst_46 [0] : vector<256x32xf32> to vector<32xf32>
    %61 = vector.shape_cast %60 : vector<32xf32> to vector<1x32xf32>
    %62 = arith.addf %58, %61 : vector<1x32xf32>
    %c0_47 = arith.constant 0 : index
    %c0_48 = arith.constant 0 : index
    %63 = vector.load %arg13[%c0_47, %c0_48] : memref<1x32xf32, #tpu.memory_space<vmem>>, vector<1x32xf32>
    tpu.vector_store %arg13[%c0_47, %c0_48], %62 {strides = array<i32>} : memref<1x32xf32, #tpu.memory_space<vmem>>, vector<1x32xf32>,
    %c0_i32_49 = arith.constant 0 : i32
    %64 = arith.cmpi eq, %arg1, %c0_i32_49 : i32
    %65 = arith.extui %64 : i1 to i32
    %c0_i32_50 = arith.constant 0 : i32
    %66 = arith.cmpi ne, %65, %c0_i32_50 : i32
    scf.if %66 {
      %c0_51 = arith.constant 0 : index
      %c0_52 = arith.constant 0 : index
      %67 = vector.load %arg12[%c0_51, %c0_52] : memref<1x32xf32, #tpu.memory_space<vmem>>, vector<1x32xf32>
      %cst_53 = arith.constant 3.906250e-03 : f32
      %68 = vector.broadcast %cst_53 : f32 to vector<1x32xf32>
      %69 = arith.mulf %67, %68 : vector<1x32xf32>
      %c0_54 = arith.constant 0 : index
      %c0_55 = arith.constant 0 : index
      %70 = vector.load %arg13[%c0_54, %c0_55] : memref<1x32xf32, #tpu.memory_space<vmem>>, vector<1x32xf32>
      %cst_56 = arith.constant 3.906250e-03 : f32
      %71 = vector.broadcast %cst_56 : f32 to vector<1x32xf32>
      %72 = arith.mulf %70, %71 : vector<1x32xf32>
      %73 = arith.mulf %69, %69 : vector<1x32xf32>
      %74 = arith.subf %72, %73 : vector<1x32xf32>
      %cst_57 = arith.constant 0.000000e+00 : f32
      %75 = vector.broadcast %cst_57 : f32 to vector<1x32xf32>
      %76 = arith.maximumf %74, %75 : vector<1x32xf32>
      %77 = math.sqrt %76 : vector<1x32xf32>
      %78 = arith.addf %69, %77 : vector<1x32xf32>
      %79 = vector.shape_cast %78 : vector<1x32xf32> to vector<1x1x32xf32>
      %c0_58 = arith.constant 0 : index
      %c0_59 = arith.constant 0 : index
      %c0_60 = arith.constant 0 : index
      %80 = vector.load %arg11[%c0_58, %c0_59, %c0_60] : memref<1x1x32xf32, #tpu.memory_space<vmem>>, vector<1x1x32xf32>
      tpu.vector_store %arg11[%c0_58, %c0_59, %c0_60], %79 {strides = array<i32>} : memref<1x1x32xf32, #tpu.memory_space<vmem>>, vector<1x1x32xf32>,
    } else {
    }
    return
  }
  func.func @transform_0(%arg0: i32, %arg1: i32) -> (i32, i32, i32, i32) {
    %c16_i32 = arith.constant 16 : i32
    %0 = arith.muli %arg1, %c16_i32 : i32
    %c1_i32 = arith.constant 1 : i32
    %1 = arith.subi %0, %c1_i32 : i32
    %c0_i32 = arith.constant 0 : i32
    %2 = arith.maxsi %1, %c0_i32 : i32
    %c0_i32_0 = arith.constant 0 : i32
    %c0_i32_1 = arith.constant 0 : i32
    %c0_i32_2 = arith.constant 0 : i32
    return %arg0, %2, %c0_i32_0, %c0_i32_1 : i32, i32, i32, i32
  }
  func.func @transform_1(%arg0: i32, %arg1: i32) -> (i32, i32, i32, i32) {
    %c0_i32 = arith.constant 0 : i32
    %c0_i32_0 = arith.constant 0 : i32
    %c0_i32_1 = arith.constant 0 : i32
    return %arg0, %arg1, %c0_i32, %c0_i32_0 : i32, i32, i32, i32
  }
  func.func @transform_2(%arg0: i32, %arg1: i32) -> (i32, i32, i32, i32) {
    %c16_i32 = arith.constant 16 : i32
    %0 = arith.muli %arg1, %c16_i32 : i32
    %c16_i32_0 = arith.constant 16 : i32
    %1 = arith.addi %0, %c16_i32_0 : i32
    %c15_i32 = arith.constant 15 : i32
    %2 = arith.minsi %1, %c15_i32 : i32
    %c0_i32 = arith.constant 0 : i32
    %c0_i32_1 = arith.constant 0 : i32
    %c0_i32_2 = arith.constant 0 : i32
    return %arg0, %2, %c0_i32, %c0_i32_1 : i32, i32, i32, i32
  }
  func.func @transform_3(%arg0: i32, %arg1: i32) -> (i32, i32) {
    %c0_i32 = arith.constant 0 : i32
    %c0_i32_0 = arith.constant 0 : i32
    %c0_i32_1 = arith.constant 0 : i32
    return %c0_i32, %c0_i32_0 : i32, i32
  }
  func.func @transform_4(%arg0: i32, %arg1: i32) -> (i32, i32) {
    %c0_i32 = arith.constant 0 : i32
    %c0_i32_0 = arith.constant 0 : i32
    %c0_i32_1 = arith.constant 0 : i32
    return %c0_i32, %c0_i32_0 : i32, i32
  }
  func.func @transform_5(%arg0: i32, %arg1: i32) -> (i32, i32, i32, i32) {
    %c0_i32 = arith.constant 0 : i32
    %c0_i32_0 = arith.constant 0 : i32
    %c0_i32_1 = arith.constant 0 : i32
    return %arg0, %arg1, %c0_i32, %c0_i32_0 : i32, i32, i32, i32
  }
  func.func @transform_6(%arg0: i32, %arg1: i32) -> (i32, i32, i32, i32) {
    %c0_i32 = arith.constant 0 : i32
    %c0_i32_0 = arith.constant 0 : i32
    %c0_i32_1 = arith.constant 0 : i32
    return %arg0, %arg1, %c0_i32, %c0_i32_0 : i32, i32, i32, i32
  }
  func.func @transform_7(%arg0: i32, %arg1: i32) -> (i32, i32, i32, i32) {
    %c0_i32 = arith.constant 0 : i32
    %c0_i32_0 = arith.constant 0 : i32
    %c0_i32_1 = arith.constant 0 : i32
    return %arg0, %arg1, %c0_i32, %c0_i32_0 : i32, i32, i32, i32
  }
  func.func @transform_8(%arg0: i32, %arg1: i32) -> (i32, i32, i32, i32) {
    %c0_i32 = arith.constant 0 : i32
    %c0_i32_0 = arith.constant 0 : i32
    %c0_i32_1 = arith.constant 0 : i32
    return %arg0, %arg1, %c0_i32, %c0_i32_0 : i32, i32, i32, i32
  }
  func.func @transform_9(%arg0: i32, %arg1: i32) -> (i32, i32, i32) {
    %c0_i32 = arith.constant 0 : i32
    %c0_i32_0 = arith.constant 0 : i32
    %c0_i32_1 = arith.constant 0 : i32
    return %arg0, %c0_i32, %c0_i32_0 : i32, i32, i32
  }
}

module attributes {stable_mosaic.version = 11 : i64} {
  func.func @_conv3x3_kernel(%arg0: i32, %arg1: i32, %arg2: memref<1x1x16x24xbf16, #tpu.memory_space<vmem>>, %arg3: memref<1x16x16x24xbf16, #tpu.memory_space<vmem>>, %arg4: memref<1x1x16x24xbf16, #tpu.memory_space<vmem>>, %arg5: memref<216x32xbf16, #tpu.memory_space<vmem>>, %arg6: memref<1x32xf32, #tpu.memory_space<vmem>>, %arg7: memref<1x16x16x8xbf16, #tpu.memory_space<vmem>>, %arg8: memref<1x16x16x24xbf16, #tpu.memory_space<vmem>>) attributes {dimension_semantics = [#tpu.dimension_semantics<parallel>, #tpu.dimension_semantics<parallel>], iteration_bounds = array<i64: 2, 1>, scalar_prefetch = 0 : i64, scratch_operands = 0 : i64, tpu.core_type = #tpu.core_type<tc>, window_params = [{transform_indices = @transform_0, window_bounds = array<i64: 1, 1, 16, 24>}, {transform_indices = @transform_1, window_bounds = array<i64: 1, 16, 16, 24>}, {transform_indices = @transform_2, window_bounds = array<i64: 1, 1, 16, 24>}, {pipeline_mode = #tpu.pipeline_mode<synchronous>, transform_indices = @transform_3, window_bounds = array<i64: 216, 32>}, {pipeline_mode = #tpu.pipeline_mode<synchronous>, transform_indices = @transform_4, window_bounds = array<i64: 1, 32>}, {transform_indices = @transform_5, window_bounds = array<i64: 1, 16, 16, 8>}, {transform_indices = @transform_6, window_bounds = array<i64: 1, 16, 16, 24>}]} {
    %c0 = arith.constant 0 : index
    %c0_0 = arith.constant 0 : index
    %c0_1 = arith.constant 0 : index
    %c0_2 = arith.constant 0 : index
    %0 = vector.load %arg3[%c0, %c0_0, %c0_1, %c0_2] : memref<1x16x16x24xbf16, #tpu.memory_space<vmem>>, vector<1x16x16x24xbf16>
    %1 = vector.shape_cast %0 : vector<1x16x16x24xbf16> to vector<16x16x24xbf16>
    %c0_i32 = arith.constant 0 : i32
    %2 = arith.cmpi sgt, %arg1, %c0_i32 : i32
    %cst = arith.constant 1.000000e+00 : f32
    %cst_3 = arith.constant 0.000000e+00 : f32
    %3 = arith.select %2, %cst, %cst_3 : f32
    %c0_i32_4 = arith.constant 0 : i32
    %4 = arith.cmpi slt, %arg1, %c0_i32_4 : i32
    %cst_5 = arith.constant 1.000000e+00 : f32
    %cst_6 = arith.constant 0.000000e+00 : f32
    %5 = arith.select %4, %cst_5, %cst_6 : f32
    %c0_7 = arith.constant 0 : index
    %c0_8 = arith.constant 0 : index
    %c0_9 = arith.constant 0 : index
    %c0_10 = arith.constant 0 : index
    %6 = vector.load %arg2[%c0_7, %c0_8, %c0_9, %c0_10] : memref<1x1x16x24xbf16, #tpu.memory_space<vmem>>, vector<1x1x16x24xbf16>
    %7 = vector.shape_cast %6 : vector<1x1x16x24xbf16> to vector<1x16x24xbf16>
    %8 = arith.extf %7 : vector<1x16x24xbf16> to vector<1x16x24xf32>
    %9 = vector.broadcast %3 : f32 to vector<1x16x24xf32>
    %10 = arith.mulf %8, %9 : vector<1x16x24xf32>
    %11 = arith.truncf %10 : vector<1x16x24xf32> to vector<1x16x24xbf16>
    %c0_11 = arith.constant 0 : index
    %c0_12 = arith.constant 0 : index
    %c0_13 = arith.constant 0 : index
    %c0_14 = arith.constant 0 : index
    %12 = vector.load %arg4[%c0_11, %c0_12, %c0_13, %c0_14] : memref<1x1x16x24xbf16, #tpu.memory_space<vmem>>, vector<1x1x16x24xbf16>
    %13 = vector.shape_cast %12 : vector<1x1x16x24xbf16> to vector<1x16x24xbf16>
    %14 = arith.extf %13 : vector<1x16x24xbf16> to vector<1x16x24xf32>
    %15 = vector.broadcast %5 : f32 to vector<1x16x24xf32>
    %16 = arith.mulf %14, %15 : vector<1x16x24xf32>
    %17 = arith.truncf %16 : vector<1x16x24xf32> to vector<1x16x24xbf16>
    %18 = tpu.concatenate %11, %1, %17 in 0 : vector<1x16x24xbf16>, vector<16x16x24xbf16>, vector<1x16x24xbf16> -> vector<18x16x24xbf16>
    %cst_15 = arith.constant 0.000000e+00 : bf16
    %19 = vector.broadcast %cst_15 : bf16 to vector<18x1x24xbf16>
    %20 = tpu.concatenate %19, %18, %19 in 1 : vector<18x1x24xbf16>, vector<18x16x24xbf16>, vector<18x1x24xbf16> -> vector<18x18x24xbf16>
    %21 = vector.extract_strided_slice %20 {offsets = [0, 0, 0], sizes = [18, 16, 24], strides = [1, 1, 1]} : vector<18x18x24xbf16> to vector<18x16x24xbf16>
    %22 = vector.extract_strided_slice %20 {offsets = [0, 1, 0], sizes = [18, 16, 24], strides = [1, 1, 1]} : vector<18x18x24xbf16> to vector<18x16x24xbf16>
    %23 = vector.extract_strided_slice %20 {offsets = [0, 2, 0], sizes = [18, 16, 24], strides = [1, 1, 1]} : vector<18x18x24xbf16> to vector<18x16x24xbf16>
    %24 = tpu.concatenate %21, %22, %23 in 2 : vector<18x16x24xbf16>, vector<18x16x24xbf16>, vector<18x16x24xbf16> -> vector<18x16x72xbf16>
    %25 = vector.extract_strided_slice %24 {offsets = [0, 0, 0], sizes = [16, 16, 72], strides = [1, 1, 1]} : vector<18x16x72xbf16> to vector<16x16x72xbf16>
    %26 = vector.shape_cast %25 : vector<16x16x72xbf16> to vector<256x72xbf16>
    %27 = vector.extract_strided_slice %24 {offsets = [1, 0, 0], sizes = [16, 16, 72], strides = [1, 1, 1]} : vector<18x16x72xbf16> to vector<16x16x72xbf16>
    %28 = vector.shape_cast %27 : vector<16x16x72xbf16> to vector<256x72xbf16>
    %29 = vector.extract_strided_slice %24 {offsets = [2, 0, 0], sizes = [16, 16, 72], strides = [1, 1, 1]} : vector<18x16x72xbf16> to vector<16x16x72xbf16>
    %30 = vector.shape_cast %29 : vector<16x16x72xbf16> to vector<256x72xbf16>
    %31 = tpu.concatenate %26, %28, %30 in 1 : vector<256x72xbf16>, vector<256x72xbf16>, vector<256x72xbf16> -> vector<256x216xbf16>
    %c0_16 = arith.constant 0 : index
    %c0_17 = arith.constant 0 : index
    %32 = vector.load %arg5[%c0_16, %c0_17] : memref<216x32xbf16, #tpu.memory_space<vmem>>, vector<216x32xbf16>
    %cst_18 = arith.constant dense<0.000000e+00> : vector<256x32xf32>
    %33 = tpu.matmul %31, %32, %cst_18 {dimension_numbers = #tpu.dot_dimension_numbers<[1], [0], [0], [1], [0, 0, 1, 1], [], []>} : vector<256x216xbf16>, vector<216x32xbf16>, vector<256x32xf32> -> vector<256x32xf32>
    %c0_19 = arith.constant 0 : index
    %c0_20 = arith.constant 0 : index
    %34 = vector.load %arg6[%c0_19, %c0_20] : memref<1x32xf32, #tpu.memory_space<vmem>>, vector<1x32xf32>
    %35 = vector.broadcast %34 : vector<1x32xf32> to vector<256x32xf32>
    %36 = arith.addf %33, %35 : vector<256x32xf32>
    %cst_21 = arith.constant 0.000000e+00 : f32
    %37 = vector.broadcast %cst_21 : f32 to vector<256x32xf32>
    %38 = arith.cmpf oge, %36, %37 : vector<256x32xf32>
    %cst_22 = arith.constant 5.000000e-02 : f32
    %39 = vector.broadcast %cst_22 : f32 to vector<256x32xf32>
    %40 = arith.mulf %39, %36 : vector<256x32xf32>
    %41 = arith.select %38, %36, %40 : vector<256x32xi1>, vector<256x32xf32>
    %42 = vector.extract_strided_slice %41 {offsets = [0, 0], sizes = [256, 8], strides = [1, 1]} : vector<256x32xf32> to vector<256x8xf32>
    %43 = vector.shape_cast %42 : vector<256x8xf32> to vector<1x16x16x8xf32>
    %44 = arith.truncf %43 : vector<1x16x16x8xf32> to vector<1x16x16x8xbf16>
    %c0_23 = arith.constant 0 : index
    %c0_24 = arith.constant 0 : index
    %c0_25 = arith.constant 0 : index
    %c0_26 = arith.constant 0 : index
    %45 = vector.load %arg7[%c0_23, %c0_24, %c0_25, %c0_26] : memref<1x16x16x8xbf16, #tpu.memory_space<vmem>>, vector<1x16x16x8xbf16>
    tpu.vector_store %arg7[%c0_23, %c0_24, %c0_25, %c0_26], %44 {strides = array<i32>} : memref<1x16x16x8xbf16, #tpu.memory_space<vmem>>, vector<1x16x16x8xbf16>,
    %46 = vector.extract_strided_slice %41 {offsets = [0, 8], sizes = [256, 24], strides = [1, 1]} : vector<256x32xf32> to vector<256x24xf32>
    %47 = vector.shape_cast %46 : vector<256x24xf32> to vector<1x16x16x24xf32>
    %48 = arith.truncf %47 : vector<1x16x16x24xf32> to vector<1x16x16x24xbf16>
    %c0_27 = arith.constant 0 : index
    %c0_28 = arith.constant 0 : index
    %c0_29 = arith.constant 0 : index
    %c0_30 = arith.constant 0 : index
    %49 = vector.load %arg8[%c0_27, %c0_28, %c0_29, %c0_30] : memref<1x16x16x24xbf16, #tpu.memory_space<vmem>>, vector<1x16x16x24xbf16>
    tpu.vector_store %arg8[%c0_27, %c0_28, %c0_29, %c0_30], %48 {strides = array<i32>} : memref<1x16x16x24xbf16, #tpu.memory_space<vmem>>, vector<1x16x16x24xbf16>,
    return
  }
  func.func @transform_0(%arg0: i32, %arg1: i32) -> (i32, i32, i32, i32) {
    %c16_i32 = arith.constant 16 : i32
    %0 = arith.muli %arg1, %c16_i32 : i32
    %c1_i32 = arith.constant 1 : i32
    %1 = arith.subi %0, %c1_i32 : i32
    %c0_i32 = arith.constant 0 : i32
    %2 = arith.maxsi %1, %c0_i32 : i32
    %c0_i32_0 = arith.constant 0 : i32
    %c0_i32_1 = arith.constant 0 : i32
    %c0_i32_2 = arith.constant 0 : i32
    return %arg0, %2, %c0_i32_0, %c0_i32_1 : i32, i32, i32, i32
  }
  func.func @transform_1(%arg0: i32, %arg1: i32) -> (i32, i32, i32, i32) {
    %c0_i32 = arith.constant 0 : i32
    %c0_i32_0 = arith.constant 0 : i32
    %c0_i32_1 = arith.constant 0 : i32
    return %arg0, %arg1, %c0_i32, %c0_i32_0 : i32, i32, i32, i32
  }
  func.func @transform_2(%arg0: i32, %arg1: i32) -> (i32, i32, i32, i32) {
    %c16_i32 = arith.constant 16 : i32
    %0 = arith.muli %arg1, %c16_i32 : i32
    %c16_i32_0 = arith.constant 16 : i32
    %1 = arith.addi %0, %c16_i32_0 : i32
    %c15_i32 = arith.constant 15 : i32
    %2 = arith.minsi %1, %c15_i32 : i32
    %c0_i32 = arith.constant 0 : i32
    %c0_i32_1 = arith.constant 0 : i32
    %c0_i32_2 = arith.constant 0 : i32
    return %arg0, %2, %c0_i32, %c0_i32_1 : i32, i32, i32, i32
  }
  func.func @transform_3(%arg0: i32, %arg1: i32) -> (i32, i32) {
    %c0_i32 = arith.constant 0 : i32
    %c0_i32_0 = arith.constant 0 : i32
    %c0_i32_1 = arith.constant 0 : i32
    return %c0_i32, %c0_i32_0 : i32, i32
  }
  func.func @transform_4(%arg0: i32, %arg1: i32) -> (i32, i32) {
    %c0_i32 = arith.constant 0 : i32
    %c0_i32_0 = arith.constant 0 : i32
    %c0_i32_1 = arith.constant 0 : i32
    return %c0_i32, %c0_i32_0 : i32, i32
  }
  func.func @transform_5(%arg0: i32, %arg1: i32) -> (i32, i32, i32, i32) {
    %c0_i32 = arith.constant 0 : i32
    %c0_i32_0 = arith.constant 0 : i32
    %c0_i32_1 = arith.constant 0 : i32
    return %arg0, %arg1, %c0_i32, %c0_i32_0 : i32, i32, i32, i32
  }
  func.func @transform_6(%arg0: i32, %arg1: i32) -> (i32, i32, i32, i32) {
    %c0_i32 = arith.constant 0 : i32
    %c0_i32_0 = arith.constant 0 : i32
    %c0_i32_1 = arith.constant 0 : i32
    return %arg0, %arg1, %c0_i32, %c0_i32_0 : i32, i32, i32, i32
  }
}

module attributes {stable_mosaic.version = 11 : i64} {
  func.func @_conv1x1_res_kernel(%arg0: i32, %arg1: i32, %arg2: memref<1x16x16x32xbf16, #tpu.memory_space<vmem>>, %arg3: memref<1x32x32xbf16, #tpu.memory_space<vmem>>, %arg4: memref<1x32xf32, #tpu.memory_space<vmem>>, %arg5: memref<1x16x16x32xbf16, #tpu.memory_space<vmem>>, %arg6: memref<1x16x16x32xbf16, #tpu.memory_space<vmem>>) attributes {dimension_semantics = [#tpu.dimension_semantics<parallel>, #tpu.dimension_semantics<parallel>], iteration_bounds = array<i64: 2, 1>, scalar_prefetch = 0 : i64, scratch_operands = 0 : i64, tpu.core_type = #tpu.core_type<tc>, window_params = [{transform_indices = @transform_0, window_bounds = array<i64: 1, 16, 16, 32>}, {transform_indices = @transform_1, window_bounds = array<i64: 1, 32, 32>}, {pipeline_mode = #tpu.pipeline_mode<synchronous>, transform_indices = @transform_2, window_bounds = array<i64: 1, 32>}, {transform_indices = @transform_3, window_bounds = array<i64: 1, 16, 16, 32>}, {transform_indices = @transform_4, window_bounds = array<i64: 1, 16, 16, 32>}]} {
    %c0 = arith.constant 0 : index
    %c0_0 = arith.constant 0 : index
    %c0_1 = arith.constant 0 : index
    %c0_2 = arith.constant 0 : index
    %0 = vector.load %arg2[%c0, %c0_0, %c0_1, %c0_2] : memref<1x16x16x32xbf16, #tpu.memory_space<vmem>>, vector<1x16x16x32xbf16>
    %1 = vector.shape_cast %0 : vector<1x16x16x32xbf16> to vector<256x32xbf16>
    %c0_3 = arith.constant 0 : index
    %c0_4 = arith.constant 0 : index
    %c0_5 = arith.constant 0 : index
    %2 = vector.load %arg3[%c0_3, %c0_4, %c0_5] : memref<1x32x32xbf16, #tpu.memory_space<vmem>>, vector<1x32x32xbf16>
    %3 = vector.shape_cast %2 : vector<1x32x32xbf16> to vector<32x32xbf16>
    %cst = arith.constant dense<0.000000e+00> : vector<256x32xf32>
    %4 = tpu.matmul %1, %3, %cst {dimension_numbers = #tpu.dot_dimension_numbers<[1], [0], [0], [1], [0, 0, 1, 1], [], []>} : vector<256x32xbf16>, vector<32x32xbf16>, vector<256x32xf32> -> vector<256x32xf32>
    %c0_6 = arith.constant 0 : index
    %c0_7 = arith.constant 0 : index
    %5 = vector.load %arg4[%c0_6, %c0_7] : memref<1x32xf32, #tpu.memory_space<vmem>>, vector<1x32xf32>
    %6 = vector.broadcast %5 : vector<1x32xf32> to vector<256x32xf32>
    %7 = arith.addf %4, %6 : vector<256x32xf32>
    %c0_8 = arith.constant 0 : index
    %c0_9 = arith.constant 0 : index
    %c0_10 = arith.constant 0 : index
    %c0_11 = arith.constant 0 : index
    %8 = vector.load %arg5[%c0_8, %c0_9, %c0_10, %c0_11] : memref<1x16x16x32xbf16, #tpu.memory_space<vmem>>, vector<1x16x16x32xbf16>
    %9 = vector.shape_cast %8 : vector<1x16x16x32xbf16> to vector<256x32xbf16>
    %10 = arith.extf %9 : vector<256x32xbf16> to vector<256x32xf32>
    %11 = arith.addf %7, %10 : vector<256x32xf32>
    %12 = vector.shape_cast %11 : vector<256x32xf32> to vector<1x16x16x32xf32>
    %13 = arith.truncf %12 : vector<1x16x16x32xf32> to vector<1x16x16x32xbf16>
    %c0_12 = arith.constant 0 : index
    %c0_13 = arith.constant 0 : index
    %c0_14 = arith.constant 0 : index
    %c0_15 = arith.constant 0 : index
    %14 = vector.load %arg6[%c0_12, %c0_13, %c0_14, %c0_15] : memref<1x16x16x32xbf16, #tpu.memory_space<vmem>>, vector<1x16x16x32xbf16>
    tpu.vector_store %arg6[%c0_12, %c0_13, %c0_14, %c0_15], %13 {strides = array<i32>} : memref<1x16x16x32xbf16, #tpu.memory_space<vmem>>, vector<1x16x16x32xbf16>,
    return
  }
  func.func @transform_0(%arg0: i32, %arg1: i32) -> (i32, i32, i32, i32) {
    %c0_i32 = arith.constant 0 : i32
    %c0_i32_0 = arith.constant 0 : i32
    %c0_i32_1 = arith.constant 0 : i32
    return %arg0, %arg1, %c0_i32, %c0_i32_0 : i32, i32, i32, i32
  }
  func.func @transform_1(%arg0: i32, %arg1: i32) -> (i32, i32, i32) {
    %c0_i32 = arith.constant 0 : i32
    %c0_i32_0 = arith.constant 0 : i32
    %c0_i32_1 = arith.constant 0 : i32
    return %arg0, %c0_i32, %c0_i32_0 : i32, i32, i32
  }
  func.func @transform_2(%arg0: i32, %arg1: i32) -> (i32, i32) {
    %c0_i32 = arith.constant 0 : i32
    %c0_i32_0 = arith.constant 0 : i32
    %c0_i32_1 = arith.constant 0 : i32
    return %c0_i32, %c0_i32_0 : i32, i32
  }
  func.func @transform_3(%arg0: i32, %arg1: i32) -> (i32, i32, i32, i32) {
    %c0_i32 = arith.constant 0 : i32
    %c0_i32_0 = arith.constant 0 : i32
    %c0_i32_1 = arith.constant 0 : i32
    return %arg0, %arg1, %c0_i32, %c0_i32_0 : i32, i32, i32, i32
  }
  func.func @transform_4(%arg0: i32, %arg1: i32) -> (i32, i32, i32, i32) {
    %c0_i32 = arith.constant 0 : i32
    %c0_i32_0 = arith.constant 0 : i32
    %c0_i32_1 = arith.constant 0 : i32
    return %arg0, %arg1, %c0_i32, %c0_i32_0 : i32, i32, i32, i32
  }
}

module attributes {stable_mosaic.version = 11 : i64} {
  func.func @_conv3x3_kernel(%arg0: i32, %arg1: i32, %arg2: memref<1x1x16x32xbf16, #tpu.memory_space<vmem>>, %arg3: memref<1x16x16x32xbf16, #tpu.memory_space<vmem>>, %arg4: memref<1x1x16x32xbf16, #tpu.memory_space<vmem>>, %arg5: memref<288x32xbf16, #tpu.memory_space<vmem>>, %arg6: memref<1x32xf32, #tpu.memory_space<vmem>>, %arg7: memref<1x16x16x32xbf16, #tpu.memory_space<vmem>>, %arg8: memref<1x16x16x32xbf16, #tpu.memory_space<vmem>>) attributes {dimension_semantics = [#tpu.dimension_semantics<parallel>, #tpu.dimension_semantics<parallel>], iteration_bounds = array<i64: 2, 1>, scalar_prefetch = 0 : i64, scratch_operands = 0 : i64, tpu.core_type = #tpu.core_type<tc>, window_params = [{transform_indices = @transform_0, window_bounds = array<i64: 1, 1, 16, 32>}, {transform_indices = @transform_1, window_bounds = array<i64: 1, 16, 16, 32>}, {transform_indices = @transform_2, window_bounds = array<i64: 1, 1, 16, 32>}, {pipeline_mode = #tpu.pipeline_mode<synchronous>, transform_indices = @transform_3, window_bounds = array<i64: 288, 32>}, {pipeline_mode = #tpu.pipeline_mode<synchronous>, transform_indices = @transform_4, window_bounds = array<i64: 1, 32>}, {transform_indices = @transform_5, window_bounds = array<i64: 1, 16, 16, 32>}, {transform_indices = @transform_6, window_bounds = array<i64: 1, 16, 16, 32>}]} {
    %c0 = arith.constant 0 : index
    %c0_0 = arith.constant 0 : index
    %c0_1 = arith.constant 0 : index
    %c0_2 = arith.constant 0 : index
    %0 = vector.load %arg3[%c0, %c0_0, %c0_1, %c0_2] : memref<1x16x16x32xbf16, #tpu.memory_space<vmem>>, vector<1x16x16x32xbf16>
    %1 = vector.shape_cast %0 : vector<1x16x16x32xbf16> to vector<16x16x32xbf16>
    %c0_i32 = arith.constant 0 : i32
    %2 = arith.cmpi sgt, %arg1, %c0_i32 : i32
    %cst = arith.constant 1.000000e+00 : f32
    %cst_3 = arith.constant 0.000000e+00 : f32
    %3 = arith.select %2, %cst, %cst_3 : f32
    %c0_i32_4 = arith.constant 0 : i32
    %4 = arith.cmpi slt, %arg1, %c0_i32_4 : i32
    %cst_5 = arith.constant 1.000000e+00 : f32
    %cst_6 = arith.constant 0.000000e+00 : f32
    %5 = arith.select %4, %cst_5, %cst_6 : f32
    %c0_7 = arith.constant 0 : index
    %c0_8 = arith.constant 0 : index
    %c0_9 = arith.constant 0 : index
    %c0_10 = arith.constant 0 : index
    %6 = vector.load %arg2[%c0_7, %c0_8, %c0_9, %c0_10] : memref<1x1x16x32xbf16, #tpu.memory_space<vmem>>, vector<1x1x16x32xbf16>
    %7 = vector.shape_cast %6 : vector<1x1x16x32xbf16> to vector<1x16x32xbf16>
    %8 = arith.extf %7 : vector<1x16x32xbf16> to vector<1x16x32xf32>
    %9 = vector.broadcast %3 : f32 to vector<1x16x32xf32>
    %10 = arith.mulf %8, %9 : vector<1x16x32xf32>
    %11 = arith.truncf %10 : vector<1x16x32xf32> to vector<1x16x32xbf16>
    %c0_11 = arith.constant 0 : index
    %c0_12 = arith.constant 0 : index
    %c0_13 = arith.constant 0 : index
    %c0_14 = arith.constant 0 : index
    %12 = vector.load %arg4[%c0_11, %c0_12, %c0_13, %c0_14] : memref<1x1x16x32xbf16, #tpu.memory_space<vmem>>, vector<1x1x16x32xbf16>
    %13 = vector.shape_cast %12 : vector<1x1x16x32xbf16> to vector<1x16x32xbf16>
    %14 = arith.extf %13 : vector<1x16x32xbf16> to vector<1x16x32xf32>
    %15 = vector.broadcast %5 : f32 to vector<1x16x32xf32>
    %16 = arith.mulf %14, %15 : vector<1x16x32xf32>
    %17 = arith.truncf %16 : vector<1x16x32xf32> to vector<1x16x32xbf16>
    %18 = tpu.concatenate %11, %1, %17 in 0 : vector<1x16x32xbf16>, vector<16x16x32xbf16>, vector<1x16x32xbf16> -> vector<18x16x32xbf16>
    %cst_15 = arith.constant 0.000000e+00 : bf16
    %19 = vector.broadcast %cst_15 : bf16 to vector<18x1x32xbf16>
    %20 = tpu.concatenate %19, %18, %19 in 1 : vector<18x1x32xbf16>, vector<18x16x32xbf16>, vector<18x1x32xbf16> -> vector<18x18x32xbf16>
    %21 = vector.extract_strided_slice %20 {offsets = [0, 0, 0], sizes = [18, 16, 32], strides = [1, 1, 1]} : vector<18x18x32xbf16> to vector<18x16x32xbf16>
    %22 = vector.extract_strided_slice %20 {offsets = [0, 1, 0], sizes = [18, 16, 32], strides = [1, 1, 1]} : vector<18x18x32xbf16> to vector<18x16x32xbf16>
    %23 = vector.extract_strided_slice %20 {offsets = [0, 2, 0], sizes = [18, 16, 32], strides = [1, 1, 1]} : vector<18x18x32xbf16> to vector<18x16x32xbf16>
    %24 = tpu.concatenate %21, %22, %23 in 2 : vector<18x16x32xbf16>, vector<18x16x32xbf16>, vector<18x16x32xbf16> -> vector<18x16x96xbf16>
    %25 = vector.extract_strided_slice %24 {offsets = [0, 0, 0], sizes = [16, 16, 96], strides = [1, 1, 1]} : vector<18x16x96xbf16> to vector<16x16x96xbf16>
    %26 = vector.shape_cast %25 : vector<16x16x96xbf16> to vector<256x96xbf16>
    %27 = vector.extract_strided_slice %24 {offsets = [1, 0, 0], sizes = [16, 16, 96], strides = [1, 1, 1]} : vector<18x16x96xbf16> to vector<16x16x96xbf16>
    %28 = vector.shape_cast %27 : vector<16x16x96xbf16> to vector<256x96xbf16>
    %29 = vector.extract_strided_slice %24 {offsets = [2, 0, 0], sizes = [16, 16, 96], strides = [1, 1, 1]} : vector<18x16x96xbf16> to vector<16x16x96xbf16>
    %30 = vector.shape_cast %29 : vector<16x16x96xbf16> to vector<256x96xbf16>
    %31 = tpu.concatenate %26, %28, %30 in 1 : vector<256x96xbf16>, vector<256x96xbf16>, vector<256x96xbf16> -> vector<256x288xbf16>
    %c0_16 = arith.constant 0 : index
    %c0_17 = arith.constant 0 : index
    %32 = vector.load %arg5[%c0_16, %c0_17] : memref<288x32xbf16, #tpu.memory_space<vmem>>, vector<288x32xbf16>
    %cst_18 = arith.constant dense<0.000000e+00> : vector<256x32xf32>
    %33 = tpu.matmul %31, %32, %cst_18 {dimension_numbers = #tpu.dot_dimension_numbers<[1], [0], [0], [1], [0, 0, 1, 1], [], []>} : vector<256x288xbf16>, vector<288x32xbf16>, vector<256x32xf32> -> vector<256x32xf32>
    %c0_19 = arith.constant 0 : index
    %c0_20 = arith.constant 0 : index
    %34 = vector.load %arg6[%c0_19, %c0_20] : memref<1x32xf32, #tpu.memory_space<vmem>>, vector<1x32xf32>
    %35 = vector.broadcast %34 : vector<1x32xf32> to vector<256x32xf32>
    %36 = arith.addf %33, %35 : vector<256x32xf32>
    %c0_21 = arith.constant 0 : index
    %c0_22 = arith.constant 0 : index
    %c0_23 = arith.constant 0 : index
    %c0_24 = arith.constant 0 : index
    %37 = vector.load %arg7[%c0_21, %c0_22, %c0_23, %c0_24] : memref<1x16x16x32xbf16, #tpu.memory_space<vmem>>, vector<1x16x16x32xbf16>
    %38 = vector.shape_cast %37 : vector<1x16x16x32xbf16> to vector<256x32xbf16>
    %39 = arith.extf %38 : vector<256x32xbf16> to vector<256x32xf32>
    %40 = arith.addf %36, %39 : vector<256x32xf32>
    %41 = vector.shape_cast %40 : vector<256x32xf32> to vector<1x16x16x32xf32>
    %42 = arith.truncf %41 : vector<1x16x16x32xf32> to vector<1x16x16x32xbf16>
    %c0_25 = arith.constant 0 : index
    %c0_26 = arith.constant 0 : index
    %c0_27 = arith.constant 0 : index
    %c0_28 = arith.constant 0 : index
    %43 = vector.load %arg8[%c0_25, %c0_26, %c0_27, %c0_28] : memref<1x16x16x32xbf16, #tpu.memory_space<vmem>>, vector<1x16x16x32xbf16>
    tpu.vector_store %arg8[%c0_25, %c0_26, %c0_27, %c0_28], %42 {strides = array<i32>} : memref<1x16x16x32xbf16, #tpu.memory_space<vmem>>, vector<1x16x16x32xbf16>,
    return
  }
  func.func @transform_0(%arg0: i32, %arg1: i32) -> (i32, i32, i32, i32) {
    %c16_i32 = arith.constant 16 : i32
    %0 = arith.muli %arg1, %c16_i32 : i32
    %c1_i32 = arith.constant 1 : i32
    %1 = arith.subi %0, %c1_i32 : i32
    %c0_i32 = arith.constant 0 : i32
    %2 = arith.maxsi %1, %c0_i32 : i32
    %c0_i32_0 = arith.constant 0 : i32
    %c0_i32_1 = arith.constant 0 : i32
    %c0_i32_2 = arith.constant 0 : i32
    return %arg0, %2, %c0_i32_0, %c0_i32_1 : i32, i32, i32, i32
  }
  func.func @transform_1(%arg0: i32, %arg1: i32) -> (i32, i32, i32, i32) {
    %c0_i32 = arith.constant 0 : i32
    %c0_i32_0 = arith.constant 0 : i32
    %c0_i32_1 = arith.constant 0 : i32
    return %arg0, %arg1, %c0_i32, %c0_i32_0 : i32, i32, i32, i32
  }
  func.func @transform_2(%arg0: i32, %arg1: i32) -> (i32, i32, i32, i32) {
    %c16_i32 = arith.constant 16 : i32
    %0 = arith.muli %arg1, %c16_i32 : i32
    %c16_i32_0 = arith.constant 16 : i32
    %1 = arith.addi %0, %c16_i32_0 : i32
    %c15_i32 = arith.constant 15 : i32
    %2 = arith.minsi %1, %c15_i32 : i32
    %c0_i32 = arith.constant 0 : i32
    %c0_i32_1 = arith.constant 0 : i32
    %c0_i32_2 = arith.constant 0 : i32
    return %arg0, %2, %c0_i32, %c0_i32_1 : i32, i32, i32, i32
  }
  func.func @transform_3(%arg0: i32, %arg1: i32) -> (i32, i32) {
    %c0_i32 = arith.constant 0 : i32
    %c0_i32_0 = arith.constant 0 : i32
    %c0_i32_1 = arith.constant 0 : i32
    return %c0_i32, %c0_i32_0 : i32, i32
  }
  func.func @transform_4(%arg0: i32, %arg1: i32) -> (i32, i32) {
    %c0_i32 = arith.constant 0 : i32
    %c0_i32_0 = arith.constant 0 : i32
    %c0_i32_1 = arith.constant 0 : i32
    return %c0_i32, %c0_i32_0 : i32, i32
  }
  func.func @transform_5(%arg0: i32, %arg1: i32) -> (i32, i32, i32, i32) {
    %c0_i32 = arith.constant 0 : i32
    %c0_i32_0 = arith.constant 0 : i32
    %c0_i32_1 = arith.constant 0 : i32
    return %arg0, %arg1, %c0_i32, %c0_i32_0 : i32, i32, i32, i32
  }
  func.func @transform_6(%arg0: i32, %arg1: i32) -> (i32, i32, i32, i32) {
    %c0_i32 = arith.constant 0 : i32
    %c0_i32_0 = arith.constant 0 : i32
    %c0_i32_1 = arith.constant 0 : i32
    return %arg0, %arg1, %c0_i32, %c0_i32_0 : i32, i32, i32, i32
  }
}

module attributes {stable_mosaic.version = 11 : i64} {
  func.func @_conv3x3_kernel(%arg0: i32, %arg1: i32, %arg2: memref<1x1x16x32xbf16, #tpu.memory_space<vmem>>, %arg3: memref<1x16x16x32xbf16, #tpu.memory_space<vmem>>, %arg4: memref<1x1x16x32xbf16, #tpu.memory_space<vmem>>, %arg5: memref<288x3xbf16, #tpu.memory_space<vmem>>, %arg6: memref<1x3xf32, #tpu.memory_space<vmem>>, %arg7: memref<1x16x16x3xf32, #tpu.memory_space<vmem>>) attributes {dimension_semantics = [#tpu.dimension_semantics<parallel>, #tpu.dimension_semantics<parallel>], iteration_bounds = array<i64: 2, 1>, scalar_prefetch = 0 : i64, scratch_operands = 0 : i64, tpu.core_type = #tpu.core_type<tc>, window_params = [{transform_indices = @transform_0, window_bounds = array<i64: 1, 1, 16, 32>}, {transform_indices = @transform_1, window_bounds = array<i64: 1, 16, 16, 32>}, {transform_indices = @transform_2, window_bounds = array<i64: 1, 1, 16, 32>}, {pipeline_mode = #tpu.pipeline_mode<synchronous>, transform_indices = @transform_3, window_bounds = array<i64: 288, 3>}, {pipeline_mode = #tpu.pipeline_mode<synchronous>, transform_indices = @transform_4, window_bounds = array<i64: 1, 3>}, {transform_indices = @transform_5, window_bounds = array<i64: 1, 16, 16, 3>}]} {
    %c0 = arith.constant 0 : index
    %c0_0 = arith.constant 0 : index
    %c0_1 = arith.constant 0 : index
    %c0_2 = arith.constant 0 : index
    %0 = vector.load %arg3[%c0, %c0_0, %c0_1, %c0_2] : memref<1x16x16x32xbf16, #tpu.memory_space<vmem>>, vector<1x16x16x32xbf16>
    %1 = vector.shape_cast %0 : vector<1x16x16x32xbf16> to vector<16x16x32xbf16>
    %c0_i32 = arith.constant 0 : i32
    %2 = arith.cmpi sgt, %arg1, %c0_i32 : i32
    %cst = arith.constant 1.000000e+00 : f32
    %cst_3 = arith.constant 0.000000e+00 : f32
    %3 = arith.select %2, %cst, %cst_3 : f32
    %c0_i32_4 = arith.constant 0 : i32
    %4 = arith.cmpi slt, %arg1, %c0_i32_4 : i32
    %cst_5 = arith.constant 1.000000e+00 : f32
    %cst_6 = arith.constant 0.000000e+00 : f32
    %5 = arith.select %4, %cst_5, %cst_6 : f32
    %c0_7 = arith.constant 0 : index
    %c0_8 = arith.constant 0 : index
    %c0_9 = arith.constant 0 : index
    %c0_10 = arith.constant 0 : index
    %6 = vector.load %arg2[%c0_7, %c0_8, %c0_9, %c0_10] : memref<1x1x16x32xbf16, #tpu.memory_space<vmem>>, vector<1x1x16x32xbf16>
    %7 = vector.shape_cast %6 : vector<1x1x16x32xbf16> to vector<1x16x32xbf16>
    %8 = arith.extf %7 : vector<1x16x32xbf16> to vector<1x16x32xf32>
    %9 = vector.broadcast %3 : f32 to vector<1x16x32xf32>
    %10 = arith.mulf %8, %9 : vector<1x16x32xf32>
    %11 = arith.truncf %10 : vector<1x16x32xf32> to vector<1x16x32xbf16>
    %c0_11 = arith.constant 0 : index
    %c0_12 = arith.constant 0 : index
    %c0_13 = arith.constant 0 : index
    %c0_14 = arith.constant 0 : index
    %12 = vector.load %arg4[%c0_11, %c0_12, %c0_13, %c0_14] : memref<1x1x16x32xbf16, #tpu.memory_space<vmem>>, vector<1x1x16x32xbf16>
    %13 = vector.shape_cast %12 : vector<1x1x16x32xbf16> to vector<1x16x32xbf16>
    %14 = arith.extf %13 : vector<1x16x32xbf16> to vector<1x16x32xf32>
    %15 = vector.broadcast %5 : f32 to vector<1x16x32xf32>
    %16 = arith.mulf %14, %15 : vector<1x16x32xf32>
    %17 = arith.truncf %16 : vector<1x16x32xf32> to vector<1x16x32xbf16>
    %18 = tpu.concatenate %11, %1, %17 in 0 : vector<1x16x32xbf16>, vector<16x16x32xbf16>, vector<1x16x32xbf16> -> vector<18x16x32xbf16>
    %cst_15 = arith.constant 0.000000e+00 : bf16
    %19 = vector.broadcast %cst_15 : bf16 to vector<18x1x32xbf16>
    %20 = tpu.concatenate %19, %18, %19 in 1 : vector<18x1x32xbf16>, vector<18x16x32xbf16>, vector<18x1x32xbf16> -> vector<18x18x32xbf16>
    %21 = vector.extract_strided_slice %20 {offsets = [0, 0, 0], sizes = [18, 16, 32], strides = [1, 1, 1]} : vector<18x18x32xbf16> to vector<18x16x32xbf16>
    %22 = vector.extract_strided_slice %20 {offsets = [0, 1, 0], sizes = [18, 16, 32], strides = [1, 1, 1]} : vector<18x18x32xbf16> to vector<18x16x32xbf16>
    %23 = vector.extract_strided_slice %20 {offsets = [0, 2, 0], sizes = [18, 16, 32], strides = [1, 1, 1]} : vector<18x18x32xbf16> to vector<18x16x32xbf16>
    %24 = tpu.concatenate %21, %22, %23 in 2 : vector<18x16x32xbf16>, vector<18x16x32xbf16>, vector<18x16x32xbf16> -> vector<18x16x96xbf16>
    %25 = vector.extract_strided_slice %24 {offsets = [0, 0, 0], sizes = [16, 16, 96], strides = [1, 1, 1]} : vector<18x16x96xbf16> to vector<16x16x96xbf16>
    %26 = vector.shape_cast %25 : vector<16x16x96xbf16> to vector<256x96xbf16>
    %27 = vector.extract_strided_slice %24 {offsets = [1, 0, 0], sizes = [16, 16, 96], strides = [1, 1, 1]} : vector<18x16x96xbf16> to vector<16x16x96xbf16>
    %28 = vector.shape_cast %27 : vector<16x16x96xbf16> to vector<256x96xbf16>
    %29 = vector.extract_strided_slice %24 {offsets = [2, 0, 0], sizes = [16, 16, 96], strides = [1, 1, 1]} : vector<18x16x96xbf16> to vector<16x16x96xbf16>
    %30 = vector.shape_cast %29 : vector<16x16x96xbf16> to vector<256x96xbf16>
    %31 = tpu.concatenate %26, %28, %30 in 1 : vector<256x96xbf16>, vector<256x96xbf16>, vector<256x96xbf16> -> vector<256x288xbf16>
    %c0_16 = arith.constant 0 : index
    %c0_17 = arith.constant 0 : index
    %32 = vector.load %arg5[%c0_16, %c0_17] : memref<288x3xbf16, #tpu.memory_space<vmem>>, vector<288x3xbf16>
    %cst_18 = arith.constant dense<0.000000e+00> : vector<256x3xf32>
    %33 = tpu.matmul %31, %32, %cst_18 {dimension_numbers = #tpu.dot_dimension_numbers<[1], [0], [0], [1], [0, 0, 1, 1], [], []>} : vector<256x288xbf16>, vector<288x3xbf16>, vector<256x3xf32> -> vector<256x3xf32>
    %c0_19 = arith.constant 0 : index
    %c0_20 = arith.constant 0 : index
    %34 = vector.load %arg6[%c0_19, %c0_20] : memref<1x3xf32, #tpu.memory_space<vmem>>, vector<1x3xf32>
    %35 = vector.broadcast %34 : vector<1x3xf32> to vector<256x3xf32>
    %36 = arith.addf %33, %35 : vector<256x3xf32>
    %37 = vector.shape_cast %36 : vector<256x3xf32> to vector<1x16x16x3xf32>
    %c0_21 = arith.constant 0 : index
    %c0_22 = arith.constant 0 : index
    %c0_23 = arith.constant 0 : index
    %c0_24 = arith.constant 0 : index
    %38 = vector.load %arg7[%c0_21, %c0_22, %c0_23, %c0_24] : memref<1x16x16x3xf32, #tpu.memory_space<vmem>>, vector<1x16x16x3xf32>
    tpu.vector_store %arg7[%c0_21, %c0_22, %c0_23, %c0_24], %37 {strides = array<i32>} : memref<1x16x16x3xf32, #tpu.memory_space<vmem>>, vector<1x16x16x3xf32>,
    return
  }
  func.func @transform_0(%arg0: i32, %arg1: i32) -> (i32, i32, i32, i32) {
    %c16_i32 = arith.constant 16 : i32
    %0 = arith.muli %arg1, %c16_i32 : i32
    %c1_i32 = arith.constant 1 : i32
    %1 = arith.subi %0, %c1_i32 : i32
    %c0_i32 = arith.constant 0 : i32
    %2 = arith.maxsi %1, %c0_i32 : i32
    %c0_i32_0 = arith.constant 0 : i32
    %c0_i32_1 = arith.constant 0 : i32
    %c0_i32_2 = arith.constant 0 : i32
    return %arg0, %2, %c0_i32_0, %c0_i32_1 : i32, i32, i32, i32
  }
  func.func @transform_1(%arg0: i32, %arg1: i32) -> (i32, i32, i32, i32) {
    %c0_i32 = arith.constant 0 : i32
    %c0_i32_0 = arith.constant 0 : i32
    %c0_i32_1 = arith.constant 0 : i32
    return %arg0, %arg1, %c0_i32, %c0_i32_0 : i32, i32, i32, i32
  }
  func.func @transform_2(%arg0: i32, %arg1: i32) -> (i32, i32, i32, i32) {
    %c16_i32 = arith.constant 16 : i32
    %0 = arith.muli %arg1, %c16_i32 : i32
    %c16_i32_0 = arith.constant 16 : i32
    %1 = arith.addi %0, %c16_i32_0 : i32
    %c15_i32 = arith.constant 15 : i32
    %2 = arith.minsi %1, %c15_i32 : i32
    %c0_i32 = arith.constant 0 : i32
    %c0_i32_1 = arith.constant 0 : i32
    %c0_i32_2 = arith.constant 0 : i32
    return %arg0, %2, %c0_i32, %c0_i32_1 : i32, i32, i32, i32
  }
  func.func @transform_3(%arg0: i32, %arg1: i32) -> (i32, i32) {
    %c0_i32 = arith.constant 0 : i32
    %c0_i32_0 = arith.constant 0 : i32
    %c0_i32_1 = arith.constant 0 : i32
    return %c0_i32, %c0_i32_0 : i32, i32
  }
  func.func @transform_4(%arg0: i32, %arg1: i32) -> (i32, i32) {
    %c0_i32 = arith.constant 0 : i32
    %c0_i32_0 = arith.constant 0 : i32
    %c0_i32_1 = arith.constant 0 : i32
    return %c0_i32, %c0_i32_0 : i32, i32
  }
  func.func @transform_5(%arg0: i32, %arg1: i32) -> (i32, i32, i32, i32) {
    %c0_i32 = arith.constant 0 : i32
    %c0_i32_0 = arith.constant 0 : i32
    %c0_i32_1 = arith.constant 0 : i32
    return %arg0, %arg1, %c0_i32, %c0_i32_0 : i32, i32, i32, i32
  }
}

</mosaic_0001>

<bundles_post_ra>
// kernel: colornet_forward.23
= control target key start
LH: loop header
LB: loop body
LE: loop exit
PB: predicated region body
PF: predicated region fallthrough
CT: control target
= control target key end

     0   :  { %s2142_s18 = smov 0   ;;  %s2144_s19 = smov 0   ;;  %s2775_s0 = inlined_call_operand.vmem [shape: bf16[2,16,16,3], index: 0, kind: input, shape index: {}, may-alias: {0,1,2}]   ;;  %s2776_s1 = inlined_call_operand.vmem [shape: bf16[2,16,16,3], index: 1, kind: input, shape index: {}, may-alias: {0,1,2}]   ;;  %s2777_s2 = inlined_call_operand.vmem [shape: bf16[2,16,16,3], index: 2, kind: input, shape index: {}, may-alias: {0,1,2}]   ;;  %s2778_s3 = inlined_call_operand.vmem [shape: bf16[27,32], index: 3, kind: input, shape index: {}]   ;;  %s2779_s4 = inlined_call_operand.vmem [shape: f32[1,32], index: 4, kind: input, shape index: {}]   ;;  %s2780_s5 = inlined_call_operand.vmem [shape: bf16[2,16,16,32], index: 5, kind: output, shape index: {}]  }
   0x1   :  { %s2146_s20 = smov 0  }
   0x2 LB: > { %s27_s21 = sadd.s32 1, %s2101_s19  ;;  %p1854_p0 = scmp.ge.s32.totalorder %s2105_s20, 1  ;;  %s2105_s20 = sphi %s2146_s20, %s15_s20   ;;  %s2101_s19 = sphi %s2144_s19, %s2784_s19   ;;  %s2097_s18 = sphi %s2142_s18, %s2783_s18  }
   0x3   : > { %p29_p1 = scmp.ge.s32.totalorder %s27_s21, 2  ;;  %p273_p2 = scmp.lt.s32.totalorder %s2105_s20, 3 }
   0x5   : > { %s2786_s21 = smov (%p29_p1, %s27_s21), 0  ;;  %p274_p3 = pnand %p1854_p0, %p273_p2 }
   0x6   : > { %p341_p4 = scmp.lt.s32.totalorder (!%p274_p3), %s2097_s18, 1  ;;  %vm688_vm0 = vcmask (!%p274_p3), 1040384   ;;  %vm689_vm1 = vsmask.f32 (!%p274_p3), 256  ;;  %vm1016_vm2 = vcmask (!%p274_p3), 1046528   ;;  %s2107_s26 = smov (!%p274_p3), 6  }
   0x7   : > { %277 = sbr.rel (%p274_p3) target bundleno = 560 (0x230), region = 40  ;;  %vm2170_vm3 = vmand (!%p274_p3), %vm688_vm0, %vm689_vm1  ;;  %vm727_vm4 = vsmask.f32 (!%p274_p3), 7424  ;;  %s2108_s27 = smov (!%p274_p3), 3   ;;  %vm1107_vm5 = vcmask (!%p274_p3), 23552   ;;  %vm1383_vm6 = vcmask (!%p274_p3), 1044480  }
   0x8   : > { %vm1384_vm7 = vcmask (!%p274_p3), 1045504   ;;  %vm1144_vm8 = vcmask (!%p274_p3), 48128   ;;  %s2110_s14 = smov (!%p274_p3), 9   ;;  %s2111_s15 = smov (!%p274_p3), 18   ;;  %vm1262_vm9 = vcmask (!%p274_p3), 72704   ;;  %vm1295_vm10 = vcmask (!%p274_p3), 146432  }
   0x9   : > { %vm1350_vm11 = vcmask (!%p274_p3), 220160   ;;  %vm1679_vm12 = vcmask (!%p274_p3), 257024  }
   0xe   : > { %s2788_s18 = smov (!%p341_p4, %s2097_s18), 1 }
   0xf   : > { %s2160_s22 = sshll.u32 %s2788_s18, 7 }
  0x10   : > { %s2166_s25 = scalar_lea.vmem %s2776_s1, %s2160_s22  ;;  %s1935_s28 = sadd.s32 120, %s2160_s22 }
  0x11   : > { %v2065_v0 = vld [vmem:[%s2166_s25 + $0x40] sm:$0xff]   ;;  %v2067_v7 = vld [vmem:[%s2166_s25 + $0x48] sm:$0xff]   ;;  %v2069_v10 = vld [vmem:[%s2166_s25 + $0x50] sm:$0xff]   ;;  %s377_s6 = scalar_lea.vmem %s2777_s2, %s1935_s28  ;;  %s349_s9 = scalar_lea.vmem %s2775_s0, %s2160_s22 }
  0x12   : > { %v2066_v1 = vld [vmem:[%s2166_s25] sm:$0xff]   ;;  %v590_v2 = vshrl.u32 %v2065_v0, 16  ;;  %v593_v3 = vshll.u32 %v2065_v0, 16  ;;  %v2068_v8 = vld [vmem:[%s2166_s25 + $0x8] sm:$0xff]   ;;  %v597_v12 = vshrl.u32 %v2067_v7, 16  ;;  %v600_v13 = vshll.u32 %v2067_v7, 16  ;;  %s2669_s24 = scalar_lea.vmem %s2780_s5, %s2160_s22 }
  0x13   : > { %v534_v5 = vshrl.u32 %v2066_v1, 16  ;;  %v537_v6 = vshll.u32 %v2066_v1, 16  ;;  %v541_v14 = vshrl.u32 %v2068_v8, 16  ;;  %v544_v17 = vshll.u32 %v2068_v8, 16  ;;  %v2070_v31 = vld [vmem:[%s2166_s25 + $0x10] sm:$0xff]  }
  0x14   : > { %v592_v9 = vrot.slane %v590_v2, 7  ;;  %v604_v18 = vshrl.u32 %v2069_v10, 16  ;;  %v599_v22 = vrot.slane %v597_v12, 7  ;;  %v607_v39 = vshll.u32 %v2069_v10, 16 }
  0x15   : > { %v536_v11 = vrot.slane %v534_v5, 7  ;;  %v543_v25 = vrot.slane %v541_v14, 7  ;;  %v548_v47 = vshrl.u32 %v2070_v31, 16  ;;  %v551_v49 = vshll.u32 %v2070_v31, 16 }
  0x16   : > { %v595_v15 = vor.u32 %v593_v3, %v592_v9  ;;  %v2179_v16 = vsel %vm2170_vm3, %v592_v9, 0  ;;  %v606_v26 = vrot.slane %v604_v18, 7  ;;  %v602_v29 = vor.u32 %v600_v13, %v599_v22  ;;  %v2071_v9 = vld [vmem:[%s2166_s25 + $0x58] sm:$0xff]  }
  0x17   : > { %v1045_v19 = vrot.slane %v2179_v16, 1  ;;  %v539_v20 = vor.u32 %v537_v6, %v536_v11  ;;  %v710_v21 = vsel %vm2170_vm3, %v536_v11, 0  ;;  %v719_v30 = vsel %vm2170_vm3, %v599_v22, 0 }
  0x18   : > { %v2186_v23 = vsel %vm2170_vm3, 0, %v595_v15  ;;  %v1021_v24 = vrot.slane %v710_v21, 1  ;;  %v1048_v33 = vrot.slane %v719_v30, 1  ;;  %v546_v34 = vor.u32 %v544_v17, %v543_v25 }
  0x19   : > { %v1044_v27 = vrot.slane %v2186_v23, 1  ;;  %v2191_v28 = vsel %vm2170_vm3, 0, %v539_v20  ;;  %v711_v35 = vsel %vm2170_vm3, %v543_v25, 0  ;;  %v2202_v37 = vsel %vm2170_vm3, 0, %v602_v29 }
  0x1a   : > { %v1020_v32 = vrot.slane %v2191_v28, 1  ;;  %v1024_v38 = vrot.slane %v711_v35, 1  ;;  %v1047_v41 = vrot.slane %v2202_v37, 1  ;;  %v2209_v42 = vsel %vm2170_vm3, 0, %v546_v34 }
  0x1b   : > { %v1046_v36 = vsel %vm1016_vm2, %v1044_v27, %v1045_v19  ;;  %v2213_v43 = vsel %vm2170_vm3, %v606_v26, 0  ;;  %v1023_v44 = vrot.slane %v2209_v42, 1  ;;  %v609_v45 = vor.u32 %v607_v39, %v606_v26  ;;  %v2072_v19 = vld [vmem:[%s2166_s25 + $0x18] sm:$0xff]  }
  0x1c   : > { %1089 = vrot.lane.b32.xlu1 %v1046_v36, %s2107_s26  ;;  %v1022_v40 = vsel %vm1016_vm2, %v1020_v32, %v1021_v24  ;;  %v1051_v46 = vrot.slane %v2213_v43, 1  ;;  %v1049_v48 = vsel %vm1016_vm2, %v1047_v41, %v1048_v33  ;;  %v753_v50 = vshrl.u32 %v2209_v42, 16 }
  0x1d   : > { %1073 = vrot.lane.b32.xlu0 %v1022_v40, %s2107_s26  ;;  %v755_v51 = vshll.u32 %v2209_v42, 16  ;;  %v1025_v52 = vsel %vm1016_vm2, %v1023_v44, %v1024_v38  ;;  %v2224_v53 = vsel %vm2170_vm3, 0, %v609_v45  ;;  %v550_v54 = vrot.slane %v548_v47, 7  ;;  %v2074_v45 = vld [vmem:[%s2166_s25 + $0x20] sm:$0xff]  }
  0x1e   : > { %v760_v55 = vshll.u32 %v711_v35, 16  ;;  %v1050_v56 = vrot.slane %v2224_v53, 1  ;;  %v741_v58 = vshrl.u32 %v2191_v28, 16  ;;  %v743_v59 = vshll.u32 %v2191_v28, 16 }
  0x1f   : > { %v757_v57 = vrot.slane %v755_v51, 1  ;;  %v553_v60 = vor.u32 %v551_v49, %v550_v54  ;;  %v712_v61 = vsel %vm2170_vm3, %v550_v54, 0  ;;  %v748_v63 = vshll.u32 %v710_v21, 16 }
  0x20   : > { %1091 = vrot.lane.b32.xlu1 %v1049_v48, %s2107_s26  ;;  %v762_v62 = vrot.slane %v760_v55, 1  ;;  %v1052_v0 = vsel %vm1016_vm2, %v1050_v56, %v1051_v46  ;;  %v1027_v1 = vrot.slane %v712_v61, 1  ;;  %v745_v3 = vrot.slane %v743_v59, 1 }
  0x21   : > { %1075 = vrot.lane.b32.xlu0 %v1025_v52, %s2107_s26  ;;  %v758_v2 = vor.u32 %v757_v57, %v753_v50  ;;  %v2236_v5 = vsel %vm2170_vm3, 0, %v553_v60  ;;  %v750_v6 = vrot.slane %v748_v63, 1  ;;  %v849_v7 = vshrl.u32 %v2202_v37, 16 }
  0x22   : > { %v851_v8 = vshll.u32 %v2202_v37, 16  ;;  %v1026_v10 = vrot.slane %v2236_v5, 1  ;;  %v746_v12 = vor.u32 %v745_v3, %v741_v58  ;;  %v856_v13 = vshll.u32 %v719_v30, 16  ;;  %v2073_v30 = vld [vmem:[%s2166_s25 + $0x60] sm:$0xff]  }
  0x23   : > { %v763_v11 = vsel %vm727_vm4, %v758_v2, %v762_v62  ;;  %v837_v15 = vshrl.u32 %v2186_v23, 16  ;;  %v839_v17 = vshll.u32 %v2186_v23, 16  ;;  %v844_v18 = vshll.u32 %v2179_v16, 16 }
  0x24   : > { %1093 = vrot.lane.b32.xlu1 %v1052_v0, %s2107_s26  ;;  %v853_v14 = vrot.slane %v851_v8, 1  ;;  %v1028_v20 = vsel %vm1016_vm2, %v1026_v10, %v1027_v1  ;;  %v751_v21 = vsel %vm727_vm4, %v746_v12, %v750_v6  ;;  %v858_v22 = vrot.slane %v856_v13, 1 }
  0x25   : > { %v861_v24 = vshrl.u32 %v2224_v53, 16  ;;  %1077 = vrot.lane.b32.xlu0 %v1028_v20, %s2107_s26  ;;  %v841_v26 = vrot.slane %v839_v17, 1  ;;  %v846_v27 = vrot.slane %v844_v18, 1  ;;  %v863_v29 = vshll.u32 %v2224_v53, 16 }
  0x26   : > { %v854_v25 = vor.u32 %v853_v14, %v849_v7  ;;  %v868_v16 = vshll.u32 %v2213_v43, 16  ;;  %v765_v31 = vshrl.u32 %v2236_v5, 16  ;;  %v767_v32 = vshll.u32 %v2236_v5, 16 }
  0x27   : > { %v772_v33 = vshll.u32 %v712_v61, 16  ;;  %v842_v35 = vor.u32 %v841_v26, %v837_v15  ;;  %v865_v36 = vrot.slane %v863_v29, 1  ;;  %v611_v38 = vshrl.u32 %v2071_v9, 16 }
  0x28   : > { %948 = vrot.lane.b32.xlu1 %v763_v11, %s2108_s27  ;;  %v859_v34 = vsel %vm727_vm4, %v854_v25, %v858_v22  ;;  %v870_v39 = vrot.slane %v868_v16, 1  ;;  %v769_v40 = vrot.slane %v767_v32, 1  ;;  %v614_v44 = vshll.u32 %v2071_v9, 16 }
  0x29   : > { %v774_v41 = vrot.slane %v772_v33, 1  ;;  %946 = vrot.lane.b32.xlu0 %v751_v21, %s2108_s27  ;;  %v847_v46 = vsel %vm727_vm4, %v842_v35, %v846_v27  ;;  %v866_v43 = vor.u32 %v865_v36, %v861_v24  ;;  %v613_v47 = vrot.slane %v611_v38, 7 }
  0x2a   : > { %v555_v48 = vshrl.u32 %v2072_v19, 16  ;;  %v770_v49 = vor.u32 %v769_v40, %v765_v31  ;;  %v558_v50 = vshll.u32 %v2072_v19, 16  ;;  %v618_v51 = vshrl.u32 %v2073_v30, 16  ;;  %v2076_v40 = vld [vmem:[%s2166_s25 + $0x28] sm:$0xff]  }
  0x2b   : > { %v621_v52 = vshll.u32 %v2073_v30, 16  ;;  %v871_v54 = vsel %vm727_vm4, %v866_v43, %v870_v39  ;;  %v616_v55 = vor.u32 %v614_v44, %v613_v47  ;;  %v721_v56 = vsel %vm2170_vm3, %v613_v47, 0  ;;  %v2077_v43 = vld [vmem:[%s2166_s25 + $0x70] sm:$0xff]  }
  0x2c   : > { %964 = vrot.lane.b32.xlu1 %v859_v34, %s2108_s27  ;;  %v557_v57 = vrot.slane %v555_v48, 7  ;;  %v775_v58 = vsel %vm727_vm4, %v770_v49, %v774_v41  ;;  %v880_v59 = vshll.u32 %v721_v56, 16  ;;  %v620_v60 = vrot.slane %v618_v51, 7  ;;  %v2075_v34 = vld [vmem:[%s2166_s25 + $0x68] sm:$0xff]   ;;  %v2078_v51 = vld [vmem:[%s2166_s25 + $0x30] sm:$0xff]  }
  0x2d   : > { %v562_v61 = vshrl.u32 %v2074_v45, 16  ;;  %962 = vrot.lane.b32.xlu0 %v847_v46, %s2108_s27  ;;  %v2270_v62 = vsel %vm2170_vm3, 0, %v616_v55  ;;  %v565_v1 = vshll.u32 %v2074_v45, 16  ;;  %v1054_v38 = vrot.slane %v721_v56, 1 }
  0x2e   : > { %v560_v63 = vor.u32 %v558_v50, %v557_v57  ;;  %v713_v0 = vsel %vm2170_vm3, %v557_v57, 0  ;;  %v873_v2 = vshrl.u32 %v2270_v62, 16  ;;  %v875_v3 = vshll.u32 %v2270_v62, 16 }
  0x2f   : > { %v882_v6 = vrot.slane %v880_v59, 1  ;;  %v784_v7 = vshll.u32 %v713_v0, 16  ;;  %v623_v9 = vor.u32 %v621_v52, %v620_v60  ;;  %v722_v10 = vsel %vm2170_vm3, %v620_v60, 0 }
  0x30   : > { %966 = vrot.lane.b32.xlu1 %v871_v54, %s2108_s27  ;;  %v2279_v8 = vsel %vm2170_vm3, 0, %v560_v63  ;;  %v564_v11 = vrot.slane %v562_v61, 7  ;;  %v877_v12 = vrot.slane %v875_v3, 1  ;;  %v892_v18 = vshll.u32 %v722_v10, 16 }
  0x31   : > { %v777_v13 = vshrl.u32 %v2279_v8, 16  ;;  %v779_v14 = vshll.u32 %v2279_v8, 16  ;;  %v786_v15 = vrot.slane %v784_v7, 1  ;;  %950 = vrot.lane.b32.xlu0 %v775_v58, %s2108_s27  ;;  %v2288_v17 = vsel %vm2170_vm3, 0, %v623_v9 }
  0x32   : > { %v567_v19 = vor.u32 %v565_v1, %v564_v11  ;;  %v714_v20 = vsel %vm2170_vm3, %v564_v11, 0  ;;  %v878_v21 = vor.u32 %v877_v12, %v873_v2  ;;  %v885_v24 = vshrl.u32 %v2288_v17, 16 }
  0x33   : > { %v781_v22 = vrot.slane %v779_v14, 1  ;;  %v887_v25 = vshll.u32 %v2288_v17, 16  ;;  %v894_v26 = vrot.slane %v892_v18, 1  ;;  %v796_v29 = vshll.u32 %v714_v20, 16 }
  0x34   : > { %v2296_v27 = vsel %vm2170_vm3, 0, %v567_v19  ;;  %v1053_v30 = vrot.slane %v2270_v62, 1  ;;  %v883_v16 = vsel %vm727_vm4, %v878_v21, %v882_v6  ;;  %v1029_v39 = vrot.slane %v2279_v8, 1 }
  0x35   : > { %v782_v31 = vor.u32 %v781_v22, %v777_v13  ;;  %v889_v32 = vrot.slane %v887_v25, 1  ;;  %v789_v33 = vshrl.u32 %v2296_v27, 16  ;;  %968 = vrot.lane.b32.xlu1 %v883_v16, %s2108_s27  ;;  %v791_v35 = vshll.u32 %v2296_v27, 16 }
  0x36   : > { %v798_v36 = vrot.slane %v796_v29, 1  ;;  %v1030_v45 = vrot.slane %v713_v0, 1  ;;  %v1056_v46 = vrot.slane %v2288_v17, 1  ;;  %v1055_v48 = vsel %vm1016_vm2, %v1053_v30, %v1054_v38 }
  0x37   : > { %v787_v41 = vsel %vm727_vm4, %v782_v31, %v786_v15  ;;  %v890_v44 = vor.u32 %v889_v32, %v885_v24  ;;  %v793_v47 = vrot.slane %v791_v35, 1  ;;  %v1057_v49 = vrot.slane %v722_v10, 1 }
  0x38   : > { %952 = vrot.lane.b32.xlu0 %v787_v41, %s2108_s27  ;;  %v1032_v50 = vrot.slane %v2296_v27, 1  ;;  %v1031_v54 = vsel %vm1016_vm2, %v1029_v39, %v1030_v45  ;;  %v1033_v55 = vrot.slane %v714_v20, 1  ;;  %v625_v56 = vshrl.u32 %v2075_v34, 16 }
  0x39   : > { %v895_v52 = vsel %vm727_vm4, %v890_v44, %v894_v26  ;;  %v794_v57 = vor.u32 %v793_v47, %v789_v33  ;;  %v1058_v58 = vsel %vm1016_vm2, %v1056_v46, %v1057_v49  ;;  %v628_v59 = vshll.u32 %v2075_v34, 16 }
  0x3a   : > { %970 = vrot.lane.b32.xlu1 %v895_v52, %s2108_s27  ;;  %v569_v60 = vshrl.u32 %v2076_v40, 16  ;;  %v1034_v61 = vsel %vm1016_vm2, %v1032_v50, %v1033_v55  ;;  %v627_v63 = vrot.slane %v625_v56, 7  ;;  %v572_v0 = vshll.u32 %v2076_v40, 16 }
  0x3b   : > { %v632_v1 = vshrl.u32 %v2077_v43, 16  ;;  %v799_v2 = vsel %vm727_vm4, %v794_v57, %v798_v36  ;;  %v635_v6 = vshll.u32 %v2077_v43, 16  ;;  %v576_v7 = vshrl.u32 %v2078_v51, 16  ;;  %v2080_v57 = vld [vmem:[%s2166_s25 + $0x38] sm:$0xff]  }
  0x3c   : > { %v571_v3 = vrot.slane %v569_v60, 7  ;;  %954 = vrot.lane.b32.xlu0 %v799_v2, %s2108_s27  ;;  %v630_v9 = vor.u32 %v628_v59, %v627_v63  ;;  %v723_v10 = vsel %vm2170_vm3, %v627_v63, 0  ;;  %v579_v12 = vshll.u32 %v2078_v51, 16  ;;  %v2079_v51 = vld [vmem:[%s2166_s25 + $0x78] sm:$0xff]  }
  0x3d   : > { %v634_v11 = vrot.slane %v632_v1, 7  ;;  %v904_v13 = vshll.u32 %v723_v10, 16  ;;  %v578_v18 = vrot.slane %v576_v7, 7  ;;  %v1060_v49 = vrot.slane %v723_v10, 1 }
  0x3e   : > { %1095 = vrot.lane.b32.xlu1 %v1055_v48, %s2107_s26  ;;  %v574_v14 = vor.u32 %v572_v0, %v571_v3  ;;  %v715_v15 = vsel %vm2170_vm3, %v571_v3, 0  ;;  %v2327_v19 = vsel %vm2170_vm3, 0, %v630_v9  ;;  %v1974_v0 = vld [vmem:[%s377_s6] sm:$0xff]   ;;  %v642_v10 = vshll.u32 %v2079_v51, 16 }
  0x3f   : > { %v808_v20 = vshll.u32 %v715_v15, 16  ;;  %v637_v21 = vor.u32 %v635_v6, %v634_v11  ;;  %v2331_v22 = vsel %vm2170_vm3, %v634_v11, 0  ;;  %v897_v24 = vshrl.u32 %v2327_v19, 16 }
  0x40   : > { %v899_v25 = vshll.u32 %v2327_v19, 16  ;;  %v906_v26 = vrot.slane %v904_v13, 1  ;;  %v2337_v29 = vsel %vm2170_vm3, 0, %v574_v14  ;;  %1079 = vrot.lane.b32.xlu0 %v1031_v54, %s2107_s26  ;;  %v916_v36 = vshll.u32 %v2331_v22, 16 }
  0x41   : > { %v801_v30 = vshrl.u32 %v2337_v29, 16  ;;  %v803_v16 = vshll.u32 %v2337_v29, 16  ;;  %v810_v31 = vrot.slane %v808_v20, 1  ;;  %v2344_v32 = vsel %vm2170_vm3, 0, %v637_v21 }
  0x42   : > { %1097 = vrot.lane.b32.xlu1 %v1058_v58, %s2107_s26  ;;  %v901_v33 = vrot.slane %v899_v25, 1  ;;  %v909_v34 = vshrl.u32 %v2344_v32, 16  ;;  %v911_v35 = vshll.u32 %v2344_v32, 16  ;;  %v581_v39 = vor.u32 %v579_v12, %v578_v18  ;;  %v1970_v12 = vld [vmem:[%s349_s9] sm:$0xff]  }
  0x43   : > { %v805_v38 = vrot.slane %v803_v16, 1  ;;  %v2353_v40 = vsel %vm2170_vm3, %v578_v18, 0  ;;  %v1059_v41 = vrot.slane %v2327_v19, 1  ;;  %v918_v46 = vrot.slane %v916_v36, 1 }
  0x44   : > { %v902_v44 = vor.u32 %v901_v33, %v897_v24  ;;  %v913_v45 = vrot.slane %v911_v35, 1  ;;  %v820_v43 = vshll.u32 %v2353_v40, 16  ;;  %1081 = vrot.lane.b32.xlu0 %v1034_v61, %s2107_s26  ;;  %v2360_v48 = vsel %vm2170_vm3, 0, %v581_v39 }
  0x45   : > { %v806_v47 = vor.u32 %v805_v38, %v801_v30  ;;  %v1035_v50 = vrot.slane %v2337_v29, 1  ;;  %v813_v55 = vshrl.u32 %v2360_v48, 16  ;;  %v815_v56 = vshll.u32 %v2360_v48, 16 }
  0x46   : > { %v907_v52 = vsel %vm727_vm4, %v902_v44, %v906_v26  ;;  %v914_v54 = vor.u32 %v913_v45, %v909_v34  ;;  %v1036_v59 = vrot.slane %v715_v15, 1  ;;  %v822_v63 = vrot.slane %v820_v43, 1 }
  0x47   : > { %972 = vrot.lane.b32.xlu1 %v907_v52, %s2108_s27  ;;  %v811_v58 = vsel %vm727_vm4, %v806_v47, %v810_v31  ;;  %v817_v61 = vrot.slane %v815_v56, 1  ;;  %v1061_v1 = vsel %vm1016_vm2, %v1059_v41, %v1060_v49  ;;  %v1062_v2 = vrot.slane %v2344_v32, 1 }
  0x48   : > { %v919_v60 = vsel %vm727_vm4, %v914_v54, %v918_v46  ;;  %956 = vrot.lane.b32.xlu0 %v811_v58, %s2108_s27  ;;  %v1063_v3 = vrot.slane %v2331_v22, 1  ;;  %v639_v6 = vshrl.u32 %v2079_v51, 16  ;;  %v1037_v9 = vsel %vm1016_vm2, %v1035_v50, %v1036_v59 }
  0x49   : > { %v818_v7 = vor.u32 %v817_v61, %v813_v55  ;;  %v583_v11 = vshrl.u32 %v2080_v57, 16  ;;  %v1038_v13 = vrot.slane %v2360_v48, 1  ;;  %v586_v15 = vshll.u32 %v2080_v57, 16 }
  0x4a   : > { %v641_v14 = vrot.slane %v639_v6, 7  ;;  %v1975_v18 = vunpack.c.l.bf16 %v1974_v0  ;;  %v1039_v21 = vrot.slane %v2353_v40, 1  ;;  %v1976_v22 = vunpack.c.h.bf16 %v1974_v0 }
  0x4b   : > { %974 = vrot.lane.b32.xlu1 %v919_v60, %s2108_s27  ;;  %v823_v20 = vsel %vm727_vm4, %v818_v7, %v822_v63  ;;  %v585_v24 = vrot.slane %v583_v11, 7  ;;  %v1971_v16 = vunpack.c.l.bf16 %v1970_v12  ;;  %v1972_v39 = vunpack.c.h.bf16 %v1970_v12 }
  0x4c   : > { %958 = vrot.lane.b32.xlu0 %v823_v20, %s2108_s27  ;;  %v644_v25 = vor.u32 %v642_v10, %v641_v14  ;;  %v2390_v26 = vsel %vm2170_vm3, %v641_v14, 0  ;;  %v443_v30 = vmul.f32 0.0, %v1975_v18  ;;  %v444_v35 = vmul.f32 0.0, %v1976_v22 }
  0x4d   : > { %v928_v31 = vshll.u32 %v2390_v26, 16  ;;  %v588_v33 = vor.u32 %v586_v15, %v585_v24  ;;  %v717_v34 = vsel %vm2170_vm3, %v585_v24, 0  ;;  %v1064_v40 = vsel %vm1016_vm2, %v1062_v2, %v1063_v3 }
  0x4e   : > { %v2398_v36 = vsel %vm2170_vm3, 0, %v644_v25  ;;  %v832_v38 = vshll.u32 %v717_v34, 16  ;;  %v1040_v46 = vsel %vm1016_vm2, %v1038_v13, %v1039_v21  ;;  %v445_v51 = vpack.c.bf16 %v444_v35, %v443_v30 }
  0x4f   : > { %1099 = vrot.lane.b32.xlu1 %v1061_v1, %s2107_s26  ;;  %v921_v41 = vshrl.u32 %v2398_v36, 16  ;;  %v923_v44 = vshll.u32 %v2398_v36, 16  ;;  %v2405_v45 = vsel %vm2170_vm3, 0, %v588_v33  ;;  %v930_v50 = vrot.slane %v928_v31, 1 }
  0x50   : > { %1083 = vrot.lane.b32.xlu0 %v1037_v9, %s2107_s26  ;;  %v825_v43 = vshrl.u32 %v2405_v45, 16  ;;  %v827_v47 = vshll.u32 %v2405_v45, 16  ;;  %v435_v52 = vmul.f32 0.0, %v1971_v16  ;;  %v834_v55 = vrot.slane %v832_v38, 1 }
  0x51   : > { %v925_v49 = vrot.slane %v923_v44, 1  ;;  %v1042_v56 = vrot.slane %v717_v34, 1  ;;  %v436_v57 = vmul.f32 0.0, %v1972_v39  ;;  %v1041_v59 = vrot.slane %v2405_v45, 1 }
  0x52   : > { %v829_v54 = vrot.slane %v827_v47, 1  ;;  %v646_v60 = vshrl.u32 %v445_v51, 16  ;;  %v649_v61 = vshll.u32 %v445_v51, 16  ;;  %v1065_v31 = vrot.slane %v2398_v36, 1 }
  0x53   : > { %1101 = vrot.lane.b32.xlu1 %v1064_v40, %s2107_s26  ;;  %v926_v58 = vor.u32 %v925_v49, %v921_v41  ;;  %v437_v0 = vpack.c.bf16 %v436_v57, %v435_v52  ;;  %v1043_v7 = vsel %vm1016_vm2, %v1041_v59, %v1042_v56  ;;  %v1066_v33 = vrot.slane %v2390_v26, 1  ;;  %v2081_v57 = vld [vmem:[%s2778_s3] sm:$0xff]  }
  0x54   : > { %1085 = vrot.lane.b32.xlu0 %v1040_v46, %s2107_s26  ;;  %v830_v63 = vor.u32 %v829_v54, %v825_v43  ;;  %v648_v2 = vrot.slane %v646_v60, 7  ;;  %1996 = vmatprep.subr.bf16.mxu0 %v2081_v57  ;;  %v2082_v60 = vld [vmem:[%s2778_s3 + $0x8] sm:$0x3f]  }
  0x55   : > { %v931_v1 = vsel %vm727_vm4, %v926_v58, %v930_v50  ;;  %v527_v6 = vshrl.u32 %v437_v0, 16  ;;  %v530_v11 = vshll.u32 %v437_v0, 16  ;;  %v1067_v26 = vsel %vm1016_vm2, %v1065_v31, %v1066_v33  ;;  %2032 = vmatprep.subr.bf16.mxu1 %v2081_v57  ;;  %1997 = vmatpush3.bf16.msra.mxu0 %v2081_v57 }
  0x56   : > { %v835_v3 = vsel %vm727_vm4, %v830_v63, %v834_v55  ;;  %v651_v9 = vor.u32 %v649_v61, %v648_v2  ;;  %v726_v10 = vsel %vm2170_vm3, %v648_v2, 0  ;;  %2034 = vmatpush3.bf16.msra.mxu1 %v2081_v57  ;;  %v2109_v61 = vmov 65535  }
  0x57   : > { %976 = vrot.lane.b32.xlu1 %v931_v1, %s2108_s27  ;;  %v940_v12 = vshll.u32 %v726_v10, 16  ;;  %v1069_v13 = vrot.slane %v726_v10, 1  ;;  %v529_v14 = vrot.slane %v527_v6, 7  ;;  %v1385_v63 = vsel %vm1383_vm6, 4294967295, %v2109_v61 }
  0x58   : > { %960 = vrot.lane.b32.xlu0 %v835_v3, %s2108_s27  ;;  %v2423_v15 = vsel %vm2170_vm3, 0, %v651_v9  ;;  %v1386_v1 = vsel %vm1384_vm7, %v1385_v63, 0 }
  0x59   : > { %v933_v18 = vshrl.u32 %v2423_v15, 16  ;;  %v935_v20 = vshll.u32 %v2423_v15, 16  ;;  %v1068_v21 = vrot.slane %v2423_v15, 1  ;;  %v532_v24 = vor.u32 %v530_v11, %v529_v14 }
  0x5a   : > { %v709_v22 = vsel %vm2170_vm3, %v529_v14, 0  ;;  %v942_v30 = vrot.slane %v940_v12, 1  ;;  %v1388_v6 = vand.u32 %v2082_v60, %v1386_v1 }
  0x5b   : > { %1087 = vrot.lane.b32.xlu1 %v1043_v7, %s2107_s26  ;;  %v937_v25 = vrot.slane %v935_v20, 1  ;;  %v1070_v16 = vsel %vm1016_vm2, %v1068_v21, %v1069_v13  ;;  %v2436_v34 = vsel %vm2170_vm3, 0, %v532_v24  ;;  %v1018_v35 = vrot.slane %v709_v22, 1 }
  0x5c   : > { %v729_v39 = vshrl.u32 %v2436_v34, 16  ;;  %v731_v40 = vshll.u32 %v2436_v34, 16  ;;  %v736_v41 = vshll.u32 %v709_v22, 16  ;;  %v1017_v44 = vrot.slane %v2436_v34, 1  ;;  %1998 = vmatprep.subr.bf16.mxu0 %v1388_v6  ;;  %2033 = vmatprep.subr.bf16.mxu1 %v1388_v6 }
  0x5d   : > { %v938_v38 = vor.u32 %v937_v25, %v933_v18  ;;  %1999 = vmatpush3.bf16.msra.mxu0 %v1388_v6  ;;  %2035 = vmatpush3.bf16.msra.mxu1 %v1388_v6 }
  0x5e   : > { %v733_v43 = vrot.slane %v731_v40, 1  ;;  %v1019_v4 = vsel %vm1016_vm2, %v1017_v44, %v1018_v35  ;;  %v738_v49 = vrot.slane %v736_v41, 1 }
  0x5f   : > { %1105 = vrot.lane.b32.xlu1 %v1070_v16, %s2107_s26  ;;  %v943_v46 = vsel %vm727_vm4, %v938_v38, %v942_v30 }
  0x60   : > { %978 = vrot.lane.b32.xlu0 %v943_v46, %s2108_s27  ;;  %v734_v47 = vor.u32 %v733_v43, %v729_v39 }
  0x62   : > { %v739_v50 = vsel %vm727_vm4, %v734_v47, %v738_v49 }
  0x63   : > { %1071 = vrot.lane.b32.xlu1 %v1019_v4, %s2107_s26 }
  0x64   : > { %1103 = vrot.lane.b32.xlu0 %v1067_v26, %s2107_s26 }
  0x68   : > { %944 = vrot.lane.b32.xlu0 %v739_v50, %s2108_s27 }
  0x8e   : > { %v1090_v51 = vpop.permute.xlu1 %1089 }
  0x8f   : > { %v1074_v52 = vpop.permute.xlu0 %1073 }
  0x92   : > { %v1092_v54 = vpop.permute.xlu1 %1091 }
  0x93   : > { %v1076_v55 = vpop.permute.xlu0 %1075 }
  0x96   : > { %v1094_v56 = vpop.permute.xlu1 %1093 }
  0x97   : > { %v1078_v58 = vpop.permute.xlu0 %1077 }
  0x9a   : > { %v949_v59 = vpop.permute.xlu1 %948 }
  0x9b   : > { %v947_v0 = vpop.permute.xlu0 %946  ;;  %v1113_v9 = vsel %vm1107_vm5, %v2209_v42, %v949_v59 }
  0x9c   : > { %v1111_v2 = vsel %vm1107_vm5, %v2191_v28, %v947_v0  ;;  %v2471_v12 = vsel %vm1144_vm8, %v1113_v9, %v1076_v55 }
  0x9d   : > { %v2459_v7 = vsel %vm1144_vm8, %v1111_v2, %v1074_v52 }
  0x9e   : > { %v965_v3 = vpop.permute.xlu1 %964  ;;  %1197 = vrot.lane.b32.xlu0 %v2459_v7, %s2110_s14 }
  0x9f   : > { %v963_v10 = vpop.permute.xlu0 %962  ;;  %v1129_v42 = vsel %vm1107_vm5, %v2202_v37, %v965_v3 }
  0xa0   : > { %v1127_v11 = vsel %vm1107_vm5, %v2186_v23, %v963_v10  ;;  %v2480_v23 = vsel %vm1144_vm8, %v1129_v42, %v1092_v54 }
  0xa1   : > { %v2468_v28 = vsel %vm1144_vm8, %v1127_v11, %v1090_v51 }
  0xa2   : > { %v967_v13 = vpop.permute.xlu1 %966  ;;  %1213 = vrot.lane.b32.xlu1 %v2468_v28, %s2110_s14  ;;  %1199 = vrot.lane.b32.xlu0 %v2471_v12, %s2110_s14 }
  0xa3   : > { %v951_v14 = vpop.permute.xlu0 %950  ;;  %v1131_v24 = vsel %vm1107_vm5, %v2224_v53, %v967_v13 }
  0xa4   : > { %v1115_v18 = vsel %vm1107_vm5, %v2236_v5, %v951_v14  ;;  %v2498_v22 = vsel %vm1144_vm8, %v1131_v24, %v1094_v56 }
  0xa5   : > { %v2489_v21 = vsel %vm1144_vm8, %v1115_v18, %v1078_v58 }
  0xa6   : > { %1215 = vrot.lane.b32.xlu1 %v2480_v23, %s2110_s14  ;;  %1230 = vrot.lane.b32.xlu0 %v2471_v12, %s2111_s15 }
  0xa7   : > { %v969_v37 = vpop.permute.xlu1 %968 }
  0xa8   : > { %v1133_v35 = vsel %vm1107_vm5, %v2270_v62, %v969_v37 }
  0xaa   : > { %v953_v20 = vpop.permute.xlu0 %952  ;;  %1246 = vrot.lane.b32.xlu1 %v2480_v23, %s2111_s15  ;;  %1232 = vrot.lane.b32.xlu0 %v2489_v21, %s2111_s15 }
  0xab   : > { %v1117_v53 = vsel %vm1107_vm5, %v2279_v8, %v953_v20 }
  0xac   : > { %v971_v5 = vpop.permute.xlu1 %970 }
  0xad   : > { %v1135_v44 = vsel %vm1107_vm5, %v2288_v17, %v971_v5 }
  0xae   : > { %v955_v25 = vpop.permute.xlu0 %954  ;;  %1248 = vrot.lane.b32.xlu1 %v2498_v22, %s2111_s15  ;;  %1201 = vrot.lane.b32.xlu0 %v2489_v21, %s2110_s14 }
  0xaf   : > { %v1119_v40 = vsel %vm1107_vm5, %v2296_v27, %v955_v25 }
  0xb0   : > { %v1096_v30 = vpop.permute.xlu1 %1095 }
  0xb1   : > { %v2516_v38 = vsel %vm1144_vm8, %v1133_v35, %v1096_v30 }
  0xb2   : > { %v1080_v16 = vpop.permute.xlu0 %1079  ;;  %1217 = vrot.lane.b32.xlu1 %v2498_v22, %s2110_s14 }
  0xb3   : > { %v2509_v31 = vsel %vm1144_vm8, %v1117_v53, %v1080_v16 }
  0xb4   : > { %v1098_v33 = vpop.permute.xlu1 %1097  ;;  %1203 = vrot.lane.b32.xlu0 %v2509_v31, %s2110_s14 }
  0xb5   : > { %v2534_v43 = vsel %vm1144_vm8, %v1135_v44, %v1098_v33 }
  0xb6   : > { %v1082_v39 = vpop.permute.xlu0 %1081  ;;  %1219 = vrot.lane.b32.xlu1 %v2516_v38, %s2110_s14 }
  0xb7   : > { %v2527_v62 = vsel %vm1144_vm8, %v1119_v40, %v1082_v39 }
  0xb8   : > { %1234 = vrot.lane.b32.xlu0 %v2509_v31, %s2111_s15 }
  0xb9   : > { %v973_v8 = vpop.permute.xlu1 %972 }
  0xba   : > { %v957_v41 = vpop.permute.xlu0 %956  ;;  %1250 = vrot.lane.b32.xlu1 %v2516_v38, %s2111_s15  ;;  %v1137_v49 = vsel %vm1107_vm5, %v2327_v19, %v973_v8 }
  0xbb   : > { %v1121_v26 = vsel %vm1107_vm5, %v2337_v29, %v957_v41 }
  0xbc   : > { %1236 = vrot.lane.b32.xlu0 %v2527_v62, %s2111_s15 }
  0xbd   : > { %v975_v46 = vpop.permute.xlu1 %974 }
  0xbe   : > { %v959_v4 = vpop.permute.xlu0 %958  ;;  %1252 = vrot.lane.b32.xlu1 %v2534_v43, %s2111_s15  ;;  %v1139_v55 = vsel %vm1107_vm5, %v2344_v32, %v975_v46 }
  0xbf   : > { %v1123_v52 = vsel %vm1107_vm5, %v2360_v48, %v959_v4 }
  0xc0   : > { %1205 = vrot.lane.b32.xlu0 %v2527_v62, %s2110_s14 }
  0xc1   : > { %v1100_v27 = vpop.permute.xlu1 %1099 }
  0xc2   : > { %v1084_v47 = vpop.permute.xlu0 %1083  ;;  %1221 = vrot.lane.b32.xlu1 %v2534_v43, %s2110_s14  ;;  %v2552_v50 = vsel %vm1144_vm8, %v1137_v49, %v1100_v27 }
  0xc3   : > { %v2545_v17 = vsel %vm1144_vm8, %v1121_v26, %v1084_v47 }
  0xc4   : > { %1207 = vrot.lane.b32.xlu0 %v2545_v17, %s2110_s14 }
  0xc5   : > { %v1102_v51 = vpop.permute.xlu1 %1101 }
  0xc6   : > { %1223 = vrot.lane.b32.xlu1 %v2552_v50, %s2110_s14  ;;  %v1086_v29 = vpop.permute.xlu0 %1085  ;;  %v2570_v57 = vsel %vm1144_vm8, %v1139_v55, %v1102_v51 }
  0xc7   : > { %v2563_v19 = vsel %vm1144_vm8, %v1123_v52, %v1086_v29 }
  0xc8   : > { %1238 = vrot.lane.b32.xlu0 %v2545_v17, %s2111_s15 }
  0xc9   : > { %v977_v54 = vpop.permute.xlu1 %976 }
  0xca   : > { %1254 = vrot.lane.b32.xlu1 %v2552_v50, %s2111_s15  ;;  %v961_v56 = vpop.permute.xlu0 %960  ;;  %v1141_v60 = vsel %vm1107_vm5, %v2398_v36, %v977_v54 }
  0xcb   : > { %v1125_v48 = vsel %vm1107_vm5, %v2405_v45, %v961_v56 }
  0xcc   : > { %1240 = vrot.lane.b32.xlu0 %v2563_v19, %s2111_s15 }
  0xcd   : > { %v1088_v58 = vpop.permute.xlu1 %1087 }
  0xce   : > { %1256 = vrot.lane.b32.xlu1 %v2570_v57, %s2111_s15  ;;  %v1162_v59 = vsel %vm1144_vm8, %v1125_v48, %v1088_v58 }
  0xd0   : > { %1209 = vrot.lane.b32.xlu0 %v2563_v19, %s2110_s14 }
  0xd1   : > { %v1106_v0 = vpop.permute.xlu1 %1105 }
  0xd2   : > { %1225 = vrot.lane.b32.xlu1 %v2570_v57, %s2110_s14  ;;  %v979_v32 = vpop.permute.xlu0 %978 }
  0xd3   : > { %v1143_v45 = vsel %vm1107_vm5, %v2423_v15, %v979_v32 }
  0xd4   : > { %1211 = vrot.lane.b32.xlu0 %v1162_v59, %s2110_s14  ;;  %v1180_v1 = vsel %vm1144_vm8, %v1143_v45, %v1106_v0 }
  0xd5   : > { %v1072_v2 = vpop.permute.xlu1 %1071 }
  0xd6   : > { %v1104_v61 = vpop.permute.xlu0 %1103 }
  0xd7   : > { %v1178_v63 = vsel %vm1144_vm8, %v1141_v60, %v1104_v61 }
  0xd8   : > { %1242 = vrot.lane.b32.xlu0 %v1162_v59, %s2111_s15  ;;  %1227 = vrot.lane.b32.xlu1 %v1178_v63, %s2110_s14 }
  0xda   : > { %v945_v36 = vpop.permute.xlu0 %944 }
  0xdb   : > { %v1109_v6 = vsel %vm1107_vm5, %v2436_v34, %v945_v36 }
  0xdc   : > { %1244 = vrot.lane.b32.xlu0 %v2468_v28, %s2111_s15  ;;  %1258 = vrot.lane.b32.xlu1 %v1178_v63, %s2111_s15  ;;  %v1146_v11 = vsel %vm1144_vm8, %v1109_v6, %v1072_v2 }
  0xe0   : > { %1260 = vrot.lane.b32.xlu1 %v1180_v1, %s2111_s15 }
 0x110   : > { %v1198_v3 = vpop.permute.xlu0 %1197 }
 0x111   : > { %v1264_v15 = vsel %vm1262_vm9, %v1146_v11, %v1198_v3 }
 0x114   : > { %v1214_v9 = vpop.permute.xlu1 %1213  ;;  %v1200_v10 = vpop.permute.xlu0 %1199 }
 0x115   : > { %v1280_v18 = vsel %vm1262_vm9, %v1162_v59, %v1214_v9  ;;  %v1266_v34 = vsel %vm1262_vm9, %v2459_v7, %v1200_v10 }
 0x118   : > { %v1216_v13 = vpop.permute.xlu1 %1215  ;;  %v1231_v42 = vpop.permute.xlu0 %1230 }
 0x119   : > { %v1297_v14 = vsel %vm1295_vm10, %v1264_v15, %v1231_v42  ;;  %v1282_v25 = vsel %vm1262_vm9, %v2468_v28, %v1216_v13 }
 0x11a   : > { %2000 = vmatprep.mubr.msk.bf16.mxu0 %vm1350_vm11, %v1297_v14 }
 0x11c   : > { %v1247_v37 = vpop.permute.xlu1 %1246  ;;  %v1233_v20 = vpop.permute.xlu0 %1232 }
 0x11d   : > { %v1299_v24 = vsel %vm1295_vm10, %v1266_v34, %v1233_v20  ;;  %v1313_v5 = vsel %vm1295_vm10, %v1280_v18, %v1247_v37 }
 0x11e   : > { %2001 = vmatmul.mubr.msk.bf16.vlgmr.msra.gmra.mrb[0].mxu0 %vm1350_vm11, %v1299_v24  ;;  %2016 = vmatprep.mubr.msk.bf16.mxu1 %vm1350_vm11, %v1313_v5 }
 0x120   : > { %v1249_v30 = vpop.permute.xlu1 %1248  ;;  %v1202_v53 = vpop.permute.xlu0 %1201 }
 0x121   : > { %v1315_v16 = vsel %vm1295_vm10, %v1282_v25, %v1249_v30  ;;  %v1268_v39 = vsel %vm1262_vm9, %v2471_v12, %v1202_v53 }
 0x122   : > { %2017 = vmatmul.mubr.msk.bf16.vlgmr.msra.gmra.mrb[0].mxu1 %vm1350_vm11, %v1315_v16 }
 0x124   : > { %v1218_v7 = vpop.permute.xlu1 %1217 }
 0x125   : > { %v1284_v41 = vsel %vm1262_vm9, %v2480_v23, %v1218_v7 }
 0x126   : > { %v1204_v33 = vpop.permute.xlu0 %1203 }
 0x127   : > { %v1270_v46 = vsel %vm1262_vm9, %v2489_v21, %v1204_v33 }
 0x128   : > { %v1220_v35 = vpop.permute.xlu1 %1219 }
 0x129   : > { %v1286_v12 = vsel %vm1262_vm9, %v2498_v22, %v1220_v35 }
 0x12a   : > { %v1235_v8 = vpop.permute.xlu0 %1234 }
 0x12b   : > { %v1301_v40 = vsel %vm1295_vm10, %v1268_v39, %v1235_v8 }
 0x12c   : > { %2004 = vmatprep.mubr.msk.bf16.mxu0 %vm1350_vm11, %v1301_v40  ;;  %v1251_v28 = vpop.permute.xlu1 %1250 }
 0x12d   : > { %v1317_v44 = vsel %vm1295_vm10, %v1284_v41, %v1251_v28 }
 0x12e   : > { %v1237_v4 = vpop.permute.xlu0 %1236  ;;  %2020 = vmatprep.mubr.msk.bf16.mxu1 %vm1350_vm11, %v1317_v44 }
 0x12f   : > { %v1303_v27 = vsel %vm1295_vm10, %v1270_v46, %v1237_v4 }
 0x130   : > { %2005 = vmatmul.mubr.msk.bf16.gmra.mrb[4].mxu0 %vm1350_vm11, %v1303_v27  ;;  %v1253_v26 = vpop.permute.xlu1 %1252 }
 0x131   : > { %v1319_v23 = vsel %vm1295_vm10, %v1286_v12, %v1253_v26 }
 0x132   : > { %v1206_v47 = vpop.permute.xlu0 %1205  ;;  %2021 = vmatmul.mubr.msk.bf16.gmra.mrb[4].mxu1 %vm1350_vm11, %v1319_v23 }
 0x133   : > { %v1272_v21 = vsel %vm1262_vm9, %v2509_v31, %v1206_v47 }
 0x134   : > { %v1222_v49 = vpop.permute.xlu1 %1221 }
 0x135   : > { %v1288_v22 = vsel %vm1262_vm9, %v2516_v38, %v1222_v49 }
 0x136   : > { %v1208_v51 = vpop.permute.xlu0 %1207 }
 0x137   : > { %v1274_v48 = vsel %vm1262_vm9, %v2527_v62, %v1208_v51 }
 0x138   : > { %v1224_v29 = vpop.permute.xlu1 %1223 }
 0x139   : > { %v1290_v31 = vsel %vm1262_vm9, %v2534_v43, %v1224_v29 }
 0x13a   : > { %v1239_v52 = vpop.permute.xlu0 %1238 }
 0x13b   : > { %v1305_v54 = vsel %vm1295_vm10, %v1272_v21, %v1239_v52 }
 0x13c   : > { %2008 = vmatprep.mubr.msk.bf16.mxu0 %vm1350_vm11, %v1305_v54  ;;  %v1255_v55 = vpop.permute.xlu1 %1254 }
 0x13d   : > { %v1321_v56 = vsel %vm1295_vm10, %v1288_v22, %v1255_v55 }
 0x13e   : > { %v1241_v58 = vpop.permute.xlu0 %1240  ;;  %2024 = vmatprep.mubr.msk.bf16.mxu1 %vm1350_vm11, %v1321_v56 }
 0x13f   : > { %v1307_v32 = vsel %vm1295_vm10, %v1274_v48, %v1241_v58 }
 0x140   : > { %2009 = vmatmul.mubr.msk.bf16.gmra.mrb[8].mxu0 %vm1350_vm11, %v1307_v32  ;;  %v1257_v59 = vpop.permute.xlu1 %1256 }
 0x141   : > { %v1323_v38 = vsel %vm1295_vm10, %v1290_v31, %v1257_v59 }
 0x142   : > { %v1210_v60 = vpop.permute.xlu0 %1209  ;;  %2025 = vmatmul.mubr.msk.bf16.gmra.mrb[8].mxu1 %vm1350_vm11, %v1323_v38 }
 0x143   : > { %v1276_v62 = vsel %vm1262_vm9, %v2545_v17, %v1210_v60 }
 0x144   : > { %v1226_v61 = vpop.permute.xlu1 %1225 }
 0x145   : > { %v1292_v2 = vsel %vm1262_vm9, %v2552_v50, %v1226_v61  ;;  %v2662_v50 = vld [vmem:[%s2779_s4] ss:$0 sm:$0xff] }
 0x146   : > { %v1212_v63 = vpop.permute.xlu0 %1211 }
 0x147   : > { %v1278_v43 = vsel %vm1262_vm9, %v2563_v19, %v1212_v63 }
 0x14a   : > { %v1243_v45 = vpop.permute.xlu0 %1242  ;;  %v1228_v0 = vpop.permute.xlu1 %1227 }
 0x14b   : > { %v1309_v1 = vsel %vm1295_vm10, %v1276_v62, %v1243_v45  ;;  %v1294_v17 = vsel %vm1262_vm9, %v2570_v57, %v1228_v0 }
 0x14c   : > { %2012 = vmatprep.mubr.msk.bf16.mxu0 %vm1350_vm11, %v1309_v1 }
 0x14e   : > { %v1245_v36 = vpop.permute.xlu0 %1244  ;;  %v1259_v3 = vpop.permute.xlu1 %1258 }
 0x14f   : > { %v1311_v6 = vsel %vm1295_vm10, %v1278_v43, %v1245_v36  ;;  %v1325_v9 = vsel %vm1295_vm10, %v1292_v2, %v1259_v3 }
 0x150   : > { %2013 = vmatmul.mubr.msk.bf16.gmra.mrb[12].mxu0 %vm1350_vm11, %v1311_v6  ;;  %2028 = vmatprep.mubr.msk.bf16.mxu1 %vm1350_vm11, %v1325_v9 }
 0x152   : > { %v1261_v10 = vpop.permute.xlu1 %1260 }
 0x153   : > { %v1327_v19 = vsel %vm1295_vm10, %v1294_v17, %v1261_v10 }
 0x154   : > { %2029 = vmatmul.mubr.msk.bf16.gmra.mrb[12].mxu1 %vm1350_vm11, %v1327_v19 }
 0x1f1   : > { %v2002_v11 = vpop.f32.mrb[0].mxu0 }
 0x1f2   : > { %v1433_v15 = vadd.f32 %v2002_v11, %v2662_v50  ;;  %v1424_v13 = vpop.f32.mrb[1].mxu0 }
 0x1f3   : > { %v1425_v57 = vadd.f32 %v2662_v50, %v1424_v13  ;;  %v2003_v42 = vpop.f32.mrb[2].mxu0 }
 0x1f4   : > { %v1939_v14 = vpack.c.bf16 %v1433_v15, %v1433_v15  ;;  %v1436_v18 = vadd.f32 %v2003_v42, %v2662_v50  ;;  %v1427_v34 = vpop.f32.mrb[3].mxu0 }
 0x1f5   : > { %v1937_v37 = vpack.c.bf16 %v1425_v57, %v1425_v57  ;;  %v1428_v20 = vadd.f32 %v2662_v50, %v1427_v34  ;;  %v2018_v24 = vpop.f32.mrb[0].mxu1 }
 0x1f6   : > { %1682 = vst.msk [vmem:[%s2669_s24 + $0x8] sm:$0xf] %vm1679_vm12, %v1939_v14  ;;  %v1940_v5 = vpack.c.bf16 %v1436_v18, %v1436_v18  ;;  %v1497_v25 = vadd.f32 %v2018_v24, %v2662_v50  ;;  %v1488_v30 = vpop.f32.mrb[1].mxu1 }
 0x1f7   : > { %1680 = vst.msk [vmem:[%s2669_s24] sm:$0xf] %vm1679_vm12, %v1937_v37  ;;  %v1938_v53 = vpack.c.bf16 %v1428_v20, %v1428_v20  ;;  %v1489_v16 = vadd.f32 %v2662_v50, %v1488_v30  ;;  %v2019_v7 = vpop.f32.mrb[2].mxu1 }
 0x1f8   : > { %1683 = vst.msk [vmem:[%s2669_s24 + $0xc] sm:$0xf] %vm1679_vm12, %v1940_v5  ;;  %v1955_v33 = vpack.c.bf16 %v1497_v25, %v1497_v25  ;;  %v1500_v35 = vadd.f32 %v2019_v7, %v2662_v50  ;;  %v1491_v39 = vpop.f32.mrb[3].mxu1 }
 0x1f9   : > { %1681 = vst.msk [vmem:[%s2669_s24 + $0x4] sm:$0xf] %vm1679_vm12, %v1938_v53  ;;  %v1953_v8 = vpack.c.bf16 %v1489_v16, %v1489_v16  ;;  %v1492_v40 = vadd.f32 %v2662_v50, %v1491_v39 }
 0x1fa   : > { %1698 = vst.msk [vmem:[%s2669_s24 + $0x48] sm:$0xf] %vm1679_vm12, %v1955_v33  ;;  %v1956_v41 = vpack.c.bf16 %v1500_v35, %v1500_v35 }
 0x1fb   : > { %1696 = vst.msk [vmem:[%s2669_s24 + $0x40] sm:$0xf] %vm1679_vm12, %v1953_v8  ;;  %v1954_v28 = vpack.c.bf16 %v1492_v40, %v1492_v40 }
 0x1fc   : > { %1699 = vst.msk [vmem:[%s2669_s24 + $0x4c] sm:$0xf] %vm1679_vm12, %v1956_v41 }
 0x1fd   : > { %1697 = vst.msk [vmem:[%s2669_s24 + $0x44] sm:$0xf] %vm1679_vm12, %v1954_v28 }
 0x203   : > { %v2006_v44 = vpop.f32.mrb[4].mxu0 }
 0x204   : > { %v1449_v46 = vadd.f32 %v2006_v44, %v2662_v50  ;;  %v1440_v4 = vpop.f32.mrb[5].mxu0 }
 0x205   : > { %v1441_v27 = vadd.f32 %v2662_v50, %v1440_v4  ;;  %v2007_v12 = vpop.f32.mrb[6].mxu0  ;;  %v2022_v26 = vpop.f32.mrb[4].mxu1 }
 0x206   : > { %v1943_v23 = vpack.c.bf16 %v1449_v46, %v1449_v46  ;;  %v1452_v47 = vadd.f32 %v2007_v12, %v2662_v50  ;;  %v1443_v49 = vpop.f32.mrb[7].mxu0  ;;  %v1513_v51 = vadd.f32 %v2022_v26, %v2662_v50  ;;  %v1504_v29 = vpop.f32.mrb[5].mxu1 }
 0x207   : > { %v1941_v21 = vpack.c.bf16 %v1441_v27, %v1441_v27  ;;  %v1444_v52 = vadd.f32 %v2662_v50, %v1443_v49  ;;  %v1505_v54 = vadd.f32 %v2662_v50, %v1504_v29  ;;  %v2023_v22 = vpop.f32.mrb[6].mxu1 }
 0x208   : > { %1686 = vst.msk [vmem:[%s2669_s24 + $0x18] sm:$0xf] %vm1679_vm12, %v1943_v23  ;;  %v1944_v55 = vpack.c.bf16 %v1452_v47, %v1452_v47  ;;  %v1959_v56 = vpack.c.bf16 %v1513_v51, %v1513_v51  ;;  %v1516_v48 = vadd.f32 %v2023_v22, %v2662_v50  ;;  %v1507_v58 = vpop.f32.mrb[7].mxu1 }
 0x209   : > { %1684 = vst.msk [vmem:[%s2669_s24 + $0x10] sm:$0xf] %vm1679_vm12, %v1941_v21  ;;  %v1942_v32 = vpack.c.bf16 %v1444_v52, %v1444_v52  ;;  %v1957_v31 = vpack.c.bf16 %v1505_v54, %v1505_v54  ;;  %v1508_v59 = vadd.f32 %v2662_v50, %v1507_v58 }
 0x20a   : > { %1687 = vst.msk [vmem:[%s2669_s24 + $0x1c] sm:$0xf] %vm1679_vm12, %v1944_v55  ;;  %1702 = vst.msk [vmem:[%s2669_s24 + $0x58] sm:$0xf] %vm1679_vm12, %v1959_v56  ;;  %v1960_v38 = vpack.c.bf16 %v1516_v48, %v1516_v48 }
 0x20b   : > { %1685 = vst.msk [vmem:[%s2669_s24 + $0x14] sm:$0xf] %vm1679_vm12, %v1942_v32  ;;  %1700 = vst.msk [vmem:[%s2669_s24 + $0x50] sm:$0xf] %vm1679_vm12, %v1957_v31  ;;  %v1958_v60 = vpack.c.bf16 %v1508_v59, %v1508_v59 }
 0x20c   : > { %1703 = vst.msk [vmem:[%s2669_s24 + $0x5c] sm:$0xf] %vm1679_vm12, %v1960_v38 }
 0x20d   : > { %1701 = vst.msk [vmem:[%s2669_s24 + $0x54] sm:$0xf] %vm1679_vm12, %v1958_v60 }
 0x213   : > { %v2010_v61 = vpop.f32.mrb[8].mxu0 }
 0x214   : > { %v1465_v63 = vadd.f32 %v2010_v61, %v2662_v50  ;;  %v1456_v62 = vpop.f32.mrb[9].mxu0 }
 0x215   : > { %v1457_v45 = vadd.f32 %v2662_v50, %v1456_v62  ;;  %v2011_v0 = vpop.f32.mrb[10].mxu0  ;;  %v2026_v1 = vpop.f32.mrb[8].mxu1 }
 0x216   : > { %v1947_v43 = vpack.c.bf16 %v1465_v63, %v1465_v63  ;;  %v1468_v36 = vadd.f32 %v2011_v0, %v2662_v50  ;;  %v1459_v2 = vpop.f32.mrb[11].mxu0  ;;  %v1529_v3 = vadd.f32 %v2026_v1, %v2662_v50  ;;  %v1520_v6 = vpop.f32.mrb[9].mxu1 }
 0x217   : > { %v1945_v9 = vpack.c.bf16 %v1457_v45, %v1457_v45  ;;  %v1460_v17 = vadd.f32 %v2662_v50, %v1459_v2  ;;  %v1521_v10 = vadd.f32 %v2662_v50, %v1520_v6  ;;  %v2027_v19 = vpop.f32.mrb[10].mxu1 }
 0x218   : > { %1690 = vst.msk [vmem:[%s2669_s24 + $0x28] sm:$0xf] %vm1679_vm12, %v1947_v43  ;;  %v1948_v11 = vpack.c.bf16 %v1468_v36, %v1468_v36  ;;  %v1963_v15 = vpack.c.bf16 %v1529_v3, %v1529_v3  ;;  %v1532_v13 = vadd.f32 %v2027_v19, %v2662_v50  ;;  %v1523_v57 = vpop.f32.mrb[11].mxu1 }
 0x219   : > { %1688 = vst.msk [vmem:[%s2669_s24 + $0x20] sm:$0xf] %vm1679_vm12, %v1945_v9  ;;  %v1946_v42 = vpack.c.bf16 %v1460_v17, %v1460_v17  ;;  %v1961_v14 = vpack.c.bf16 %v1521_v10, %v1521_v10  ;;  %v1524_v18 = vadd.f32 %v2662_v50, %v1523_v57 }
 0x21a   : > { %1691 = vst.msk [vmem:[%s2669_s24 + $0x2c] sm:$0xf] %vm1679_vm12, %v1948_v11  ;;  %1706 = vst.msk [vmem:[%s2669_s24 + $0x68] sm:$0xf] %vm1679_vm12, %v1963_v15  ;;  %v1964_v34 = vpack.c.bf16 %v1532_v13, %v1532_v13 }
 0x21b   : > { %1689 = vst.msk [vmem:[%s2669_s24 + $0x24] sm:$0xf] %vm1679_vm12, %v1946_v42  ;;  %1704 = vst.msk [vmem:[%s2669_s24 + $0x60] sm:$0xf] %vm1679_vm12, %v1961_v14  ;;  %v1962_v37 = vpack.c.bf16 %v1524_v18, %v1524_v18 }
 0x21c   : > { %1707 = vst.msk [vmem:[%s2669_s24 + $0x6c] sm:$0xf] %vm1679_vm12, %v1964_v34 }
 0x21d   : > { %1705 = vst.msk [vmem:[%s2669_s24 + $0x64] sm:$0xf] %vm1679_vm12, %v1962_v37 }
 0x223   : > { %v2014_v20 = vpop.f32.mrb[12].mxu0 }
 0x224   : > { %v1481_v24 = vadd.f32 %v2014_v20, %v2662_v50  ;;  %v1472_v5 = vpop.f32.mrb[13].mxu0 }
 0x225   : > { %v1473_v25 = vadd.f32 %v2662_v50, %v1472_v5  ;;  %v2015_v30 = vpop.f32.mrb[14].mxu0 }
 0x226   : > { %v1951_v53 = vpack.c.bf16 %v1481_v24, %v1481_v24  ;;  %v1484_v16 = vadd.f32 %v2015_v30, %v2662_v50  ;;  %v1475_v7 = vpop.f32.mrb[15].mxu0 }
 0x227   : > { %v1949_v33 = vpack.c.bf16 %v1473_v25, %v1473_v25  ;;  %v1476_v35 = vadd.f32 %v2662_v50, %v1475_v7  ;;  %v2030_v8 = vpop.f32.mrb[12].mxu1 }
 0x228   : > { %1694 = vst.msk [vmem:[%s2669_s24 + $0x38] sm:$0xf] %vm1679_vm12, %v1951_v53  ;;  %v1952_v39 = vpack.c.bf16 %v1484_v16, %v1484_v16  ;;  %v1545_v41 = vadd.f32 %v2030_v8, %v2662_v50  ;;  %v1536_v28 = vpop.f32.mrb[13].mxu1 }
 0x229   : > { %1692 = vst.msk [vmem:[%s2669_s24 + $0x30] sm:$0xf] %vm1679_vm12, %v1949_v33  ;;  %v1950_v40 = vpack.c.bf16 %v1476_v35, %v1476_v35  ;;  %v1537_v44 = vadd.f32 %v2662_v50, %v1536_v28  ;;  %v2031_v46 = vpop.f32.mrb[14].mxu1 }
 0x22a   : > { %1695 = vst.msk [vmem:[%s2669_s24 + $0x3c] sm:$0xf] %vm1679_vm12, %v1952_v39  ;;  %v1967_v4 = vpack.c.bf16 %v1545_v41, %v1545_v41  ;;  %v1548_v27 = vadd.f32 %v2031_v46, %v2662_v50  ;;  %v1539_v12 = vpop.f32.mrb[15].mxu1 }
 0x22b   : > { %1693 = vst.msk [vmem:[%s2669_s24 + $0x34] sm:$0xf] %vm1679_vm12, %v1950_v40  ;;  %v1965_v26 = vpack.c.bf16 %v1537_v44, %v1537_v44  ;;  %v1540_v23 = vadd.f32 %v2662_v50, %v1539_v12 }
 0x22c   : > { %1710 = vst.msk [vmem:[%s2669_s24 + $0x78] sm:$0xf] %vm1679_vm12, %v1967_v4  ;;  %v1968_v47 = vpack.c.bf16 %v1548_v27, %v1548_v27 }
 0x22d   : > { %1708 = vst.msk [vmem:[%s2669_s24 + $0x70] sm:$0xf] %vm1679_vm12, %v1965_v26  ;;  %v1966_v49 = vpack.c.bf16 %v1540_v23, %v1540_v23 }
 0x22e   : > { %1711 = vst.msk [vmem:[%s2669_s24 + $0x7c] sm:$0xf] %vm1679_vm12, %v1968_v47 }
 0x22f   : > { %1709 = vst.msk [vmem:[%s2669_s24 + $0x74] sm:$0xf] %vm1679_vm12, %v1966_v49 }
 0x230 PF: > { %s15_s20 = sadd.s32 1, %s2105_s20   ;;  %s2783_s18 = smov %s2101_s19 }
 0x231   : > { %p12_p5 = scmp.ge.s32.totalorder %s15_s20, 4   ;;  %s2784_s19 = smov %s2786_s21 }
 0x233   :  { %14 = sbr.rel (!%p12_p5) target bundleno = 2 (0x2), region = 76 }

// kernel: colornet_forward.24
= control target key start
LH: loop header
LB: loop body
LE: loop exit
PB: predicated region body
PF: predicated region fallthrough
CT: control target
= control target key end

     0   :  { %s2951_s21 = smov 0   ;;  %s2953_s22 = smov 0   ;;  %s3788_s0 = inlined_call_operand.vmem [shape: bf16[2,16,16,32], index: 0, kind: input, shape index: {}, may-alias: {0,1,2}]   ;;  %s3789_s1 = inlined_call_operand.vmem [shape: bf16[2,16,16,32], index: 1, kind: input, shape index: {}, may-alias: {0,1,2}]   ;;  %s3790_s2 = inlined_call_operand.vmem [shape: bf16[2,16,16,32], index: 2, kind: input, shape index: {}, may-alias: {0,1,2}]   ;;  %s3791_s3 = inlined_call_operand.vmem [shape: bf16[288,32], index: 3, kind: input, shape index: {}]   ;;  %s3792_s4 = inlined_call_operand.vmem [shape: f32[1,32], index: 4, kind: input, shape index: {}]   ;;  %s3793_s5 = inlined_call_operand.vmem [shape: bf16[2,16,16,8], index: 5, kind: output, shape index: {0}]   ;;  %s3794_s6 = inlined_call_operand.vmem [shape: bf16[2,16,16,24], index: 6, kind: output, shape index: {1}]  }
   0x1   :  { %s2955_s23 = smov 0  }
   0x2 LB: > { %s29_s24 = sadd.s32 1, %s2906_s22  ;;  %p2501_p0 = scmp.ge.s32.totalorder %s2910_s23, 1  ;;  %s2910_s23 = sphi %s2955_s23, %s17_s23   ;;  %s2906_s22 = sphi %s2953_s22, %s3798_s22   ;;  %s2902_s21 = sphi %s2951_s21, %s3797_s21  }
   0x3   : > { %p31_p1 = scmp.ge.s32.totalorder %s29_s24, 2  ;;  %p303_p2 = scmp.lt.s32.totalorder %s2910_s23, 3 }
   0x5   : > { %s3800_s24 = smov (%p31_p1, %s29_s24), 0  ;;  %p304_p3 = pnand %p2501_p0, %p303_p2 }
   0x6   : > { %p383_p4 = scmp.lt.s32.totalorder (!%p304_p3), %s2902_s21, 1  ;;  %vm741_vm0 = vcmask (!%p304_p3), 1040384   ;;  %vm742_vm1 = vsmask.f32 (!%p304_p3), 256  ;;  %vm1069_vm2 = vcmask (!%p304_p3), 1046528   ;;  %s2912_s29 = smov (!%p304_p3), 64  }
   0x7   : > { %307 = sbr.rel (%p304_p3) target bundleno = 718 (0x2ce), region = 40  ;;  %vm2979_vm3 = vmand (!%p304_p3), %vm741_vm0, %vm742_vm1  ;;  %vm780_vm4 = vsmask.f32 (!%p304_p3), 7424  ;;  %s2913_s30 = smov (!%p304_p3), 32   ;;  %vm1160_vm5 = vcmask (!%p304_p3), 261120   ;;  %vm1197_vm6 = vcmask (!%p304_p3), 523264  }
   0x8   : > { %s2914_s8 = smov (!%p304_p3), 96   ;;  %vm1315_vm7 = vcmask (!%p304_p3), 785408   ;;  %vm2141_vm11 = vcmask (!%p304_p3), 60416   ;;  %s2915_s17 = smov (!%p304_p3), 120  }
   0xe   : > { %s3802_s21 = smov (!%p383_p4, %s2902_s21), 1 }
   0xf   : > { %s2969_s25 = sshll.u32 %s3802_s21, 7 }
  0x10   : > { %s2975_s28 = scalar_lea.vmem %s3789_s1, %s2969_s25  ;;  %s2600_s7 = sadd.s32 120, %s2969_s25 }
  0x11   : > { %v2854_v0 = vld [vmem:[%s2975_s28 + $0x60] sm:$0xff]   ;;  %v2856_v7 = vld [vmem:[%s2975_s28 + $0x8] sm:$0xff]   ;;  %v2858_v10 = vld [vmem:[%s2975_s28 + $0x10] sm:$0xff]   ;;  %s419_s10 = scalar_lea.vmem %s3790_s2, %s2600_s7  ;;  %s391_s13 = scalar_lea.vmem %s3788_s0, %s2969_s25 }
  0x12   : > { %v2855_v1 = vld [vmem:[%s2975_s28] sm:$0xff]   ;;  %v671_v2 = vshrl.u32 %v2854_v0, 16  ;;  %v674_v3 = vshll.u32 %v2854_v0, 16  ;;  %v2857_v8 = vld [vmem:[%s2975_s28 + $0x68] sm:$0xff]   ;;  %v594_v12 = vshrl.u32 %v2856_v7, 16  ;;  %v597_v13 = vshll.u32 %v2856_v7, 16  ;;  %s3555_s16 = scalar_lea.vmem %s3793_s5, %s2969_s25  ;;  %s3713_s20 = scalar_lea.vmem %s3794_s6, %s2969_s25 }
  0x13   : > { %v587_v5 = vshrl.u32 %v2855_v1, 16  ;;  %v590_v6 = vshll.u32 %v2855_v1, 16  ;;  %v678_v14 = vshrl.u32 %v2857_v8, 16  ;;  %v681_v17 = vshll.u32 %v2857_v8, 16  ;;  %v2859_v59 = vld [vmem:[%s2975_s28 + $0x70] sm:$0xff]  }
  0x14   : > { %v673_v9 = vrot.slane %v671_v2, 7  ;;  %v601_v18 = vshrl.u32 %v2858_v10, 16  ;;  %v596_v22 = vrot.slane %v594_v12, 7  ;;  %v604_v53 = vshll.u32 %v2858_v10, 16 }
  0x15   : > { %v589_v11 = vrot.slane %v587_v5, 7  ;;  %v680_v26 = vrot.slane %v678_v14, 7  ;;  %v2861_v14 = vld [vmem:[%s2975_s28 + $0x78] sm:$0xff]  }
  0x16   : > { %v676_v15 = vor.u32 %v674_v3, %v673_v9  ;;  %v775_v16 = vsel %vm2979_vm3, %v673_v9, 0  ;;  %v599_v29 = vor.u32 %v597_v13, %v596_v22  ;;  %v764_v30 = vsel %vm2979_vm3, %v596_v22, 0  ;;  %v2860_v9 = vld [vmem:[%s2975_s28 + $0x18] sm:$0xff]  }
  0x17   : > { %v1110_v19 = vrot.slane %v775_v16, 1  ;;  %v592_v20 = vor.u32 %v590_v6, %v589_v11  ;;  %v763_v21 = vsel %vm2979_vm3, %v589_v11, 0  ;;  %v1077_v32 = vrot.slane %v764_v30, 1 }
  0x18   : > { %v2992_v23 = vsel %vm2979_vm3, 0, %v676_v15  ;;  %v1074_v24 = vrot.slane %v763_v21, 1  ;;  %v801_v25 = vshll.u32 %v763_v21, 16  ;;  %v3007_v36 = vsel %vm2979_vm3, 0, %v599_v29 }
  0x19   : > { %v1109_v27 = vrot.slane %v2992_v23, 1  ;;  %v2997_v28 = vsel %vm2979_vm3, 0, %v592_v20  ;;  %v683_v38 = vor.u32 %v681_v17, %v680_v26  ;;  %v1076_v40 = vrot.slane %v3007_v36, 1 }
  0x1a   : > { %v1073_v31 = vrot.slane %v2997_v28, 1  ;;  %v794_v33 = vshrl.u32 %v2997_v28, 16  ;;  %v796_v34 = vshll.u32 %v2997_v28, 16  ;;  %v803_v37 = vrot.slane %v801_v25, 1 }
  0x1b   : > { %v1111_v35 = vsel %vm1069_vm2, %v1109_v27, %v1110_v19  ;;  %v776_v42 = vsel %vm2979_vm3, %v680_v26, 0  ;;  %v3017_v43 = vsel %vm2979_vm3, 0, %v683_v38  ;;  %v806_v45 = vshrl.u32 %v3007_v36, 16 }
  0x1c   : > { %1150 = vrot.lane.b32.xlu0 %v1111_v35, %s2912_s29  ;;  %v1075_v39 = vsel %vm1069_vm2, %v1073_v31, %v1074_v24  ;;  %v798_v41 = vrot.slane %v796_v34, 1  ;;  %v1113_v44 = vrot.slane %v776_v42, 1  ;;  %v808_v46 = vshll.u32 %v3007_v36, 16  ;;  %v3049_v24 = vld [vmem:[%s2975_s28 + $0x20] sm:$0xff]  }
  0x1d   : > { %1126 = vrot.lane.b32.xlu1 %v1075_v39, %s2912_s29  ;;  %v1078_v47 = vsel %vm1069_vm2, %v1076_v40, %v1077_v32  ;;  %v1112_v49 = vrot.slane %v3017_v43, 1  ;;  %v813_v50 = vshll.u32 %v764_v30, 16  ;;  %v603_v52 = vrot.slane %v601_v18, 7 }
  0x1e   : > { %v799_v48 = vor.u32 %v798_v41, %v794_v33  ;;  %v810_v51 = vrot.slane %v808_v46, 1  ;;  %v938_v54 = vshrl.u32 %v2992_v23, 16  ;;  %v940_v58 = vshll.u32 %v2992_v23, 16 }
  0x1f   : > { %v1114_v56 = vsel %vm1069_vm2, %v1112_v49, %v1113_v44  ;;  %v815_v57 = vrot.slane %v813_v50, 1  ;;  %v606_v61 = vor.u32 %v604_v53, %v603_v52  ;;  %v765_v62 = vsel %vm2979_vm3, %v603_v52, 0 }
  0x20   : > { %v804_v55 = vsel %vm780_vm4, %v799_v48, %v803_v37  ;;  %v811_v60 = vor.u32 %v810_v51, %v806_v45  ;;  %v945_v63 = vshll.u32 %v775_v16, 16  ;;  %v1080_v0 = vrot.slane %v765_v62, 1 }
  0x21   : > { %1128 = vrot.lane.b32.xlu1 %v1078_v47, %s2912_s29  ;;  %999 = vrot.lane.b32.xlu0 %v804_v55, %s2913_s30  ;;  %v942_v1 = vrot.slane %v940_v58, 1  ;;  %v950_v2 = vshrl.u32 %v3017_v43, 16  ;;  %v952_v3 = vshll.u32 %v3017_v43, 16  ;;  %v3037_v6 = vsel %vm2979_vm3, 0, %v606_v61  ;;  %v2863_v61 = vld [vmem:[%s2975_s28 + $0x28] sm:$0xff]  }
  0x22   : > { %v816_v5 = vsel %vm780_vm4, %v811_v60, %v815_v57  ;;  %v947_v7 = vrot.slane %v945_v63, 1  ;;  %v957_v8 = vshll.u32 %v776_v42, 16  ;;  %v1079_v10 = vrot.slane %v3037_v6, 1  ;;  %v2640_v60 = vld [vmem:[%s419_s10] sm:$0xff]  }
  0x23   : > { %v943_v11 = vor.u32 %v942_v1, %v938_v54  ;;  %v954_v12 = vrot.slane %v952_v3, 1  ;;  %v818_v13 = vshrl.u32 %v3037_v6, 16  ;;  %v820_v16 = vshll.u32 %v3037_v6, 16 }
  0x24   : > { %v959_v15 = vrot.slane %v957_v8, 1  ;;  %v825_v17 = vshll.u32 %v765_v62, 16  ;;  %v685_v18 = vshrl.u32 %v2859_v59, 16  ;;  %v1081_v19 = vsel %vm1069_vm2, %v1079_v10, %v1080_v0 }
  0x25   : > { %1152 = vrot.lane.b32.xlu1 %v1114_v56, %s2912_s29  ;;  %1001 = vrot.lane.b32.xlu0 %v816_v5, %s2913_s30  ;;  %v948_v20 = vsel %vm780_vm4, %v943_v11, %v947_v7  ;;  %v955_v21 = vor.u32 %v954_v12, %v950_v2  ;;  %v688_v22 = vshll.u32 %v2859_v59, 16  ;;  %v822_v25 = vrot.slane %v820_v16, 1 }
  0x26   : > { %v827_v26 = vrot.slane %v825_v17, 1  ;;  %v687_v27 = vrot.slane %v685_v18, 7  ;;  %v608_v29 = vshrl.u32 %v2860_v9, 16  ;;  %v611_v31 = vshll.u32 %v2860_v9, 16 }
  0x27   : > { %v960_v30 = vsel %vm780_vm4, %v955_v21, %v959_v15  ;;  %v692_v32 = vshrl.u32 %v2861_v14, 16  ;;  %v695_v33 = vshll.u32 %v2861_v14, 16  ;;  %v823_v34 = vor.u32 %v822_v25, %v818_v13 }
  0x28   : > { %v690_v35 = vor.u32 %v688_v22, %v687_v27  ;;  %v777_v37 = vsel %vm2979_vm3, %v687_v27, 0  ;;  %v610_v38 = vrot.slane %v608_v29, 7  ;;  %v615_v42 = vshrl.u32 %v3049_v24, 16 }
  0x29   : > { %1130 = vrot.lane.b32.xlu1 %v1081_v19, %s2912_s29  ;;  %1023 = vrot.lane.b32.xlu0 %v948_v20, %s2913_s30  ;;  %v1116_v39 = vrot.slane %v777_v37, 1  ;;  %v969_v40 = vshll.u32 %v777_v37, 16  ;;  %v694_v41 = vrot.slane %v692_v32, 7  ;;  %v828_v44 = vsel %vm780_vm4, %v823_v34, %v827_v26  ;;  %v2864_v26 = vld [vmem:[%s2975_s28 + $0x30] sm:$0xff]  }
  0x2a   : > { %v3061_v45 = vsel %vm2979_vm3, 0, %v690_v35  ;;  %v613_v46 = vor.u32 %v611_v31, %v610_v38  ;;  %v766_v47 = vsel %vm2979_vm3, %v610_v38, 0  ;;  %v617_v14 = vrot.slane %v615_v42, 7 }
  0x2b   : > { %v1115_v48 = vrot.slane %v3061_v45, 1  ;;  %v962_v49 = vshrl.u32 %v3061_v45, 16  ;;  %v964_v50 = vshll.u32 %v3061_v45, 16  ;;  %v971_v51 = vrot.slane %v969_v40, 1 }
  0x2c   : > { %v3075_v52 = vsel %vm2979_vm3, 0, %v613_v46  ;;  %v1083_v53 = vrot.slane %v766_v47, 1  ;;  %v837_v54 = vshll.u32 %v766_v47, 16  ;;  %v697_v55 = vor.u32 %v695_v33, %v694_v41 }
  0x2d   : > { %1025 = vrot.lane.b32.xlu1 %v960_v30, %s2913_s30  ;;  %1003 = vrot.lane.b32.xlu0 %v828_v44, %s2913_s30  ;;  %v1117_v56 = vsel %vm1069_vm2, %v1115_v48, %v1116_v39  ;;  %v966_v57 = vrot.slane %v964_v50, 1  ;;  %v1082_v58 = vrot.slane %v3075_v52, 1  ;;  %v830_v59 = vshrl.u32 %v3075_v52, 16  ;;  %v2865_v44 = vld [vmem:[%s2975_s28 + $0x38] sm:$0xff]  }
  0x2e   : > { %v832_v62 = vshll.u32 %v3075_v52, 16  ;;  %v839_v63 = vrot.slane %v837_v54, 1  ;;  %v3084_v0 = vsel %vm2979_vm3, 0, %v697_v55  ;;  %v778_v1 = vsel %vm2979_vm3, %v694_v41, 0 }
  0x2f   : > { %v967_v2 = vor.u32 %v966_v57, %v962_v49  ;;  %v1084_v3 = vsel %vm1069_vm2, %v1082_v58, %v1083_v53  ;;  %v1118_v5 = vrot.slane %v3084_v0, 1  ;;  %v1119_v7 = vrot.slane %v778_v1, 1 }
  0x30   : > { %v834_v8 = vrot.slane %v832_v62, 1  ;;  %v974_v9 = vshrl.u32 %v3084_v0, 16  ;;  %v976_v10 = vshll.u32 %v3084_v0, 16  ;;  %v981_v11 = vshll.u32 %v778_v1, 16 }
  0x31   : > { %1154 = vrot.lane.b32.xlu1 %v1117_v56, %s2912_s29  ;;  %v972_v12 = vsel %vm780_vm4, %v967_v2, %v971_v51  ;;  %v1120_v13 = vsel %vm1069_vm2, %v1118_v5, %v1119_v7  ;;  %v618_v15 = vshll.u32 %v3049_v24, 16  ;;  %v2641_v19 = vunpack.c.l.bf16 %v2640_v60 }
  0x32   : > { %1027 = vrot.lane.b32.xlu0 %v972_v12, %s2913_s30  ;;  %v835_v16 = vor.u32 %v834_v8, %v830_v59  ;;  %v978_v17 = vrot.slane %v976_v10, 1  ;;  %v983_v18 = vrot.slane %v981_v11, 1  ;;  %v767_v21 = vsel %vm2979_vm3, %v617_v14, 0 }
  0x33   : > { %v620_v20 = vor.u32 %v618_v15, %v617_v14  ;;  %v2642_v22 = vunpack.c.h.bf16 %v2640_v60  ;;  %v622_v25 = vshrl.u32 %v2863_v61, 16  ;;  %v1086_v24 = vrot.slane %v767_v21, 1 }
  0x34   : > { %v840_v27 = vsel %vm780_vm4, %v835_v16, %v839_v63  ;;  %v979_v29 = vor.u32 %v978_v17, %v974_v9  ;;  %v849_v30 = vshll.u32 %v767_v21, 16  ;;  %v496_v32 = vmul.f32 0.0, %v2641_v19 }
  0x35   : > { %1132 = vrot.lane.b32.xlu1 %v1084_v3, %s2912_s29  ;;  %v3104_v31 = vsel %vm2979_vm3, 0, %v620_v20  ;;  %v497_v33 = vmul.f32 0.0, %v2642_v22  ;;  %v624_v34 = vrot.slane %v622_v25, 7  ;;  %v625_v41 = vshll.u32 %v2863_v61, 16 }
  0x36   : > { %1005 = vrot.lane.b32.xlu0 %v840_v27, %s2913_s30  ;;  %v1085_v35 = vrot.slane %v3104_v31, 1  ;;  %v842_v37 = vshrl.u32 %v3104_v31, 16  ;;  %v844_v38 = vshll.u32 %v3104_v31, 16  ;;  %v984_v39 = vsel %vm780_vm4, %v979_v29, %v983_v18  ;;  %v2866_v18 = vld [vmem:[%s2975_s28 + $0x40] sm:$0xff]  }
  0x37   : > { %v498_v40 = vpack.c.bf16 %v497_v33, %v496_v32  ;;  %v768_v42 = vsel %vm2979_vm3, %v624_v34, 0  ;;  %v851_v48 = vrot.slane %v849_v30, 1  ;;  %v627_v53 = vor.u32 %v625_v41, %v624_v34 }
  0x38   : > { %v1087_v46 = vsel %vm1069_vm2, %v1085_v35, %v1086_v24  ;;  %v846_v47 = vrot.slane %v844_v38, 1  ;;  %v861_v49 = vshll.u32 %v768_v42, 16  ;;  %v629_v54 = vshrl.u32 %v2864_v26, 16 }
  0x39   : > { %1156 = vrot.lane.b32.xlu1 %v1120_v13, %s2912_s29  ;;  %v699_v50 = vshrl.u32 %v498_v40, 16  ;;  %v702_v51 = vshll.u32 %v498_v40, 16  ;;  %v1089_v56 = vrot.slane %v768_v42, 1  ;;  %v632_v58 = vshll.u32 %v2864_v26, 16 }
  0x3a   : > { %1029 = vrot.lane.b32.xlu0 %v984_v39, %s2913_s30  ;;  %v847_v55 = vor.u32 %v846_v47, %v842_v37  ;;  %v863_v57 = vrot.slane %v861_v49, 1  ;;  %v3119_v60 = vsel %vm2979_vm3, 0, %v627_v53  ;;  %v631_v61 = vrot.slane %v629_v54, 7  ;;  %v2636_v39 = vld [vmem:[%s391_s13] sm:$0xff]  }
  0x3b   : > { %v701_v59 = vrot.slane %v699_v50, 7  ;;  %v636_v62 = vshrl.u32 %v2865_v44, 16  ;;  %v1088_v1 = vrot.slane %v3119_v60, 1  ;;  %v854_v2 = vshrl.u32 %v3119_v60, 16 }
  0x3c   : > { %v852_v63 = vsel %vm780_vm4, %v847_v55, %v851_v48  ;;  %v856_v3 = vshll.u32 %v3119_v60, 16  ;;  %v634_v8 = vor.u32 %v632_v58, %v631_v61  ;;  %v769_v9 = vsel %vm2979_vm3, %v631_v61, 0  ;;  %v2867_v55 = vld [vmem:[%s2975_s28 + $0x48] sm:$0xff]  }
  0x3d   : > { %1134 = vrot.lane.b32.xlu1 %v1087_v46, %s2912_s29  ;;  %v704_v5 = vor.u32 %v702_v51, %v701_v59  ;;  %v779_v7 = vsel %vm2979_vm3, %v701_v59, 0  ;;  %v639_v13 = vshll.u32 %v2865_v44, 16  ;;  %v1090_v15 = vsel %vm1069_vm2, %v1088_v1, %v1089_v56 }
  0x3e   : > { %1007 = vrot.lane.b32.xlu0 %v852_v63, %s2913_s30  ;;  %v1122_v10 = vrot.slane %v779_v7, 1  ;;  %v993_v11 = vshll.u32 %v779_v7, 16  ;;  %v858_v12 = vrot.slane %v856_v3, 1  ;;  %v3138_v16 = vsel %vm2979_vm3, 0, %v634_v8 }
  0x3f   : > { %v3133_v14 = vsel %vm2979_vm3, 0, %v704_v5  ;;  %v873_v17 = vshll.u32 %v769_v9, 16  ;;  %v1092_v22 = vrot.slane %v769_v9, 1  ;;  %v866_v27 = vshrl.u32 %v3138_v16, 16 }
  0x40   : > { %v1121_v19 = vrot.slane %v3133_v14, 1  ;;  %v986_v20 = vshrl.u32 %v3133_v14, 16  ;;  %v988_v21 = vshll.u32 %v3133_v14, 16  ;;  %v995_v25 = vrot.slane %v993_v11, 1 }
  0x41   : > { %v859_v26 = vor.u32 %v858_v12, %v854_v2  ;;  %v868_v29 = vshll.u32 %v3138_v16, 16  ;;  %v1091_v32 = vrot.slane %v3138_v16, 1  ;;  %v638_v33 = vrot.slane %v636_v62, 7  ;;  %v2868_v2 = vld [vmem:[%s2975_s28 + $0x58] sm:$0xff]  }
  0x42   : > { %v1123_v24 = vsel %vm1069_vm2, %v1121_v19, %v1122_v10  ;;  %v990_v30 = vrot.slane %v988_v21, 1  ;;  %v875_v37 = vrot.slane %v873_v17, 1  ;;  %v643_v38 = vshrl.u32 %v2866_v18, 16 }
  0x43   : > { %1158 = vrot.lane.b32.xlu1 %v1123_v24, %s2912_s29  ;;  %v864_v34 = vsel %vm780_vm4, %v859_v26, %v863_v57  ;;  %v870_v35 = vrot.slane %v868_v29, 1  ;;  %v641_v41 = vor.u32 %v639_v13, %v638_v33  ;;  %v770_v42 = vsel %vm2979_vm3, %v638_v33, 0 }
  0x44   : > { %v991_v40 = vor.u32 %v990_v30, %v986_v20  ;;  %v646_v44 = vshll.u32 %v2866_v18, 16  ;;  %v1095_v47 = vrot.slane %v770_v42, 1  ;;  %v885_v48 = vshll.u32 %v770_v42, 16 }
  0x45   : > { %v871_v46 = vor.u32 %v870_v35, %v866_v27  ;;  %v645_v49 = vrot.slane %v643_v38, 7  ;;  %v3159_v51 = vsel %vm2979_vm3, 0, %v641_v41  ;;  %v2637_v53 = vunpack.c.l.bf16 %v2636_v39 }
  0x46   : > { %v996_v50 = vsel %vm780_vm4, %v991_v40, %v995_v25  ;;  %v2638_v54 = vunpack.c.h.bf16 %v2636_v39  ;;  %v1093_v56 = vsel %vm1069_vm2, %v1091_v32, %v1092_v22  ;;  %v1094_v57 = vrot.slane %v3159_v51, 1 }
  0x47   : > { %1031 = vrot.lane.b32.xlu0 %v996_v50, %s2913_s30  ;;  %1136 = vrot.lane.b32.xlu1 %v1090_v15, %s2912_s29  ;;  %v878_v58 = vshrl.u32 %v3159_v51, 16  ;;  %v880_v59 = vshll.u32 %v3159_v51, 16  ;;  %v876_v61 = vsel %vm780_vm4, %v871_v46, %v875_v37  ;;  %v648_v62 = vor.u32 %v646_v44, %v645_v49  ;;  %v2869_v37 = vld [vmem:[%s2975_s28 + $0x50] sm:$0xff]  }
  0x48   : > { %v771_v63 = vsel %vm2979_vm3, %v645_v49, 0  ;;  %v488_v1 = vmul.f32 0.0, %v2637_v53  ;;  %v1096_v3 = vsel %vm1069_vm2, %v1094_v57, %v1095_v47  ;;  %v887_v7 = vrot.slane %v885_v48, 1 }
  0x49   : > { %v882_v5 = vrot.slane %v880_v59, 1  ;;  %v1098_v8 = vrot.slane %v771_v63, 1  ;;  %v3175_v9 = vsel %vm2979_vm3, 0, %v648_v62  ;;  %v489_v10 = vmul.f32 0.0, %v2638_v54 }
  0x4a   : > { %v650_v11 = vshrl.u32 %v2867_v55, 16  ;;  %v653_v12 = vshll.u32 %v2867_v55, 16  ;;  %v1097_v15 = vrot.slane %v3175_v9, 1  ;;  %v892_v17 = vshll.u32 %v3175_v9, 16 }
  0x4b   : > { %1009 = vrot.lane.b32.xlu0 %v864_v34, %s2913_s30  ;;  %1138 = vrot.lane.b32.xlu1 %v1093_v56, %s2912_s29  ;;  %v883_v13 = vor.u32 %v882_v5, %v878_v58  ;;  %v897_v18 = vshll.u32 %v771_v63, 16  ;;  %v890_v19 = vshrl.u32 %v3175_v9, 16  ;;  %v490_v20 = vpack.c.bf16 %v489_v10, %v488_v1 }
  0x4c   : > { %v652_v21 = vrot.slane %v650_v11, 7  ;;  %v664_v22 = vshrl.u32 %v2868_v2, 16  ;;  %v894_v25 = vrot.slane %v892_v17, 1  ;;  %v667_v26 = vshll.u32 %v2868_v2, 16 }
  0x4d   : > { %v580_v27 = vshrl.u32 %v490_v20, 16  ;;  %v583_v29 = vshll.u32 %v490_v20, 16  ;;  %v888_v32 = vsel %vm780_vm4, %v883_v13, %v887_v7  ;;  %v1099_v33 = vsel %vm1069_vm2, %v1097_v15, %v1098_v8 }
  0x4e   : > { %v655_v24 = vor.u32 %v653_v12, %v652_v21  ;;  %v772_v30 = vsel %vm2979_vm3, %v652_v21, 0  ;;  %v899_v34 = vrot.slane %v897_v18, 1  ;;  %v666_v35 = vrot.slane %v664_v22, 7 }
  0x4f   : > { %1011 = vrot.lane.b32.xlu0 %v876_v61, %s2913_s30  ;;  %1140 = vrot.lane.b32.xlu1 %v1096_v3, %s2912_s29  ;;  %v895_v38 = vor.u32 %v894_v25, %v890_v19  ;;  %v582_v39 = vrot.slane %v580_v27, 7  ;;  %v909_v41 = vshll.u32 %v772_v30, 16  ;;  %v1101_v46 = vrot.slane %v772_v30, 1 }
  0x50   : > { %v3191_v40 = vsel %vm2979_vm3, 0, %v655_v24  ;;  %v669_v49 = vor.u32 %v667_v26, %v666_v35  ;;  %v774_v50 = vsel %vm2979_vm3, %v666_v35, 0  ;;  %v657_v56 = vshrl.u32 %v2869_v37, 16 }
  0x51   : > { %v902_v42 = vshrl.u32 %v3191_v40, 16  ;;  %v904_v44 = vshll.u32 %v3191_v40, 16  ;;  %v585_v47 = vor.u32 %v583_v29, %v582_v39  ;;  %v762_v48 = vsel %vm2979_vm3, %v582_v39, 0 }
  0x52   : > { %v1071_v53 = vrot.slane %v762_v48, 1  ;;  %v789_v54 = vshll.u32 %v762_v48, 16  ;;  %v900_v57 = vsel %vm780_vm4, %v895_v38, %v899_v34  ;;  %v911_v59 = vrot.slane %v909_v41, 1  ;;  %v2871_v48 = vld [vmem:[%s3791_s3] sm:$0xff]  }
  0x53   : > { %1013 = vrot.lane.b32.xlu0 %v888_v32, %s2913_s30  ;;  %1142 = vrot.lane.b32.xlu1 %v1099_v33, %s2912_s29  ;;  %v906_v55 = vrot.slane %v904_v44, 1  ;;  %v3204_v58 = vsel %vm2979_vm3, 0, %v585_v47  ;;  %v3208_v61 = vsel %vm2979_vm3, 0, %v669_v49  ;;  %v933_v2 = vshll.u32 %v774_v50, 16  ;;  %v2870_v47 = vld [vmem:[%s3791_s3 + $0x40] sm:$0xff]   ;;  %v2872_v49 = vld [vmem:[%s3791_s3 + $0x48] sm:$0xff]  }
  0x54   : > { %v1070_v62 = vrot.slane %v3204_v58, 1  ;;  %v782_v63 = vshrl.u32 %v3204_v58, 16  ;;  %v784_v1 = vshll.u32 %v3204_v58, 16  ;;  %v926_v5 = vshrl.u32 %v3208_v61, 16  ;;  %2644 = vmatprep.subr.bf16.mxu0 %v2870_v47  ;;  %2810 = vmatprep.subr.bf16.mxu1 %v2870_v47 }
  0x55   : > { %v907_v3 = vor.u32 %v906_v55, %v902_v42  ;;  %v928_v7 = vshll.u32 %v3208_v61, 16  ;;  %v660_v8 = vshll.u32 %v2869_v37, 16  ;;  %v791_v12 = vrot.slane %v789_v54, 1  ;;  %2645 = vmatpush3.bf16.msra.mxu0 %v2871_v48  ;;  %2818 = vmatpush3.bf16.msra.mxu1 %v2871_v48  ;;  %v2875_v54 = vld [vmem:[%s3791_s3 + $0x10] sm:$0xff]   ;;  %v2876_v55 = vld [vmem:[%s3791_s3 + $0x58] sm:$0xff]  }
  0x56   : > { %v1072_v10 = vsel %vm1069_vm2, %v1070_v62, %v1071_v53  ;;  %v786_v11 = vrot.slane %v784_v1, 1  ;;  %v1100_v13 = vrot.slane %v3191_v40, 1  ;;  %v659_v17 = vrot.slane %v657_v56, 7  ;;  %2646 = vmatprep.subr.bf16.mxu0 %v2872_v49  ;;  %v2874_v53 = vld [vmem:[%s3791_s3 + $0x50] sm:$0xff]   ;;  %2811 = vmatprep.subr.bf16.mxu1 %v2872_v49  ;;  %v2877_v56 = vld [vmem:[%s3791_s3 + $0x18] sm:$0xff]   ;;  %v2880_v62 = vld [vmem:[%s3791_s3 + $0x68] sm:$0xff]  }
  0x57   : > { %1015 = vrot.lane.b32.xlu0 %v900_v57, %s2913_s30  ;;  %1124 = vrot.lane.b32.xlu1 %v1072_v10, %s2912_s29  ;;  %v930_v15 = vrot.slane %v928_v7, 1  ;;  %v912_v19 = vsel %vm780_vm4, %v907_v3, %v911_v59  ;;  %v935_v20 = vrot.slane %v933_v2, 1  ;;  %v1107_v29 = vrot.slane %v774_v50, 1  ;;  %v2873_v50 = vld [vmem:[%s3791_s3 + $0x8] sm:$0xff]   ;;  %v2878_v57 = vld [vmem:[%s3791_s3 + $0x60] sm:$0xff]  }
  0x58   : > { %v787_v18 = vor.u32 %v786_v11, %v782_v63  ;;  %v662_v22 = vor.u32 %v660_v8, %v659_v17  ;;  %v773_v25 = vsel %vm2979_vm3, %v659_v17, 0  ;;  %v1102_v27 = vsel %vm1069_vm2, %v1100_v13, %v1101_v46  ;;  %v2879_v59 = vld [vmem:[%s3791_s3 + $0x20] sm:$0xff]   ;;  %v2881_v63 = vld [vmem:[%s3791_s3 + $0x28] sm:$0xff]   ;;  %v2882_v1 = vld [vmem:[%s3791_s3 + $0x70] sm:$0xff]  }
  0x59   : > { %v931_v21 = vor.u32 %v930_v15, %v926_v5  ;;  %v1106_v24 = vrot.slane %v3208_v61, 1  ;;  %v921_v32 = vshll.u32 %v773_v25, 16  ;;  %v1104_v33 = vrot.slane %v773_v25, 1  ;;  %2647 = vmatpush3.bf16.msra.mxu0 %v2873_v50  ;;  %2819 = vmatpush3.bf16.msra.mxu1 %v2873_v50  ;;  %v2883_v2 = vld [vmem:[%s3791_s3 + $0x30] sm:$0xff]   ;;  %v2884_v3 = vld [vmem:[%s3791_s3 + $0x78] sm:$0xff]   ;;  %v3301_v15 = vld [vmem:[%s3791_s3 + $0x80] sm:$0xff]  }
  0x5a   : > { %v792_v26 = vsel %vm780_vm4, %v787_v18, %v791_v12  ;;  %v3229_v30 = vsel %vm2979_vm3, 0, %v662_v22  ;;  %2648 = vmatprep.subr.bf16.mxu0 %v2874_v53  ;;  %2812 = vmatprep.subr.bf16.mxu1 %v2874_v53  ;;  %v2885_v5 = vld [vmem:[%s3791_s3 + $0x38] sm:$0xff]  }
  0x5b   : > { %997 = vrot.lane.b32.xlu0 %v792_v26, %s2913_s30  ;;  %1017 = vrot.lane.b32.xlu1 %v912_v19, %s2913_s30  ;;  %v936_v34 = vsel %vm780_vm4, %v931_v21, %v935_v20  ;;  %v914_v35 = vshrl.u32 %v3229_v30, 16  ;;  %v916_v37 = vshll.u32 %v3229_v30, 16  ;;  %v1103_v38 = vrot.slane %v3229_v30, 1 }
  0x5c   : > { %v1108_v41 = vsel %vm1069_vm2, %v1106_v24, %v1107_v29  ;;  %v923_v42 = vrot.slane %v921_v32, 1 }
  0x5d   : > { %v918_v39 = vrot.slane %v916_v37, 1  ;;  %v1105_v44 = vsel %vm1069_vm2, %v1103_v38, %v1104_v33  ;;  %2649 = vmatpush3.bf16.msra.mxu0 %v2875_v54  ;;  %2820 = vmatpush3.bf16.msra.mxu1 %v2875_v54 }
  0x5e   : > { %2650 = vmatprep.subr.bf16.mxu0 %v2876_v55  ;;  %2813 = vmatprep.subr.bf16.mxu1 %v2876_v55 }
  0x5f   : > { %1021 = vrot.lane.b32.xlu0 %v936_v34, %s2913_s30  ;;  %1144 = vrot.lane.b32.xlu1 %v1102_v27, %s2912_s29  ;;  %v919_v4 = vor.u32 %v918_v39, %v914_v35 }
  0x61   : > { %v924_v46 = vsel %vm780_vm4, %v919_v4, %v923_v42  ;;  %2651 = vmatpush3.bf16.msra.mxu0 %v2877_v56  ;;  %2821 = vmatpush3.bf16.msra.mxu1 %v2877_v56 }
  0x62   : > { %2652 = vmatprep.subr.bf16.mxu0 %v2878_v57  ;;  %2814 = vmatprep.subr.bf16.mxu1 %v2878_v57 }
  0x63   : > { %1148 = vrot.lane.b32.xlu0 %v1108_v41, %s2912_s29  ;;  %1146 = vrot.lane.b32.xlu1 %v1105_v44, %s2912_s29 }
  0x65   : > { %2653 = vmatpush3.bf16.msra.mxu0 %v2879_v59  ;;  %2822 = vmatpush3.bf16.msra.mxu1 %v2879_v59 }
  0x66   : > { %2654 = vmatprep.subr.bf16.mxu0 %v2880_v62  ;;  %2815 = vmatprep.subr.bf16.mxu1 %v2880_v62 }
  0x67   : > { %1019 = vrot.lane.b32.xlu0 %v924_v46, %s2913_s30 }
  0x69   : > { %2655 = vmatpush3.bf16.msra.mxu0 %v2881_v63  ;;  %2823 = vmatpush3.bf16.msra.mxu1 %v2881_v63 }
  0x6a   : > { %2656 = vmatprep.subr.bf16.mxu0 %v2882_v1  ;;  %2816 = vmatprep.subr.bf16.mxu1 %v2882_v1 }
  0x6d   : > { %2657 = vmatpush3.bf16.msra.mxu0 %v2883_v2  ;;  %2824 = vmatpush3.bf16.msra.mxu1 %v2883_v2 }
  0x6e   : > { %2658 = vmatprep.subr.bf16.mxu0 %v2884_v3  ;;  %2817 = vmatprep.subr.bf16.mxu1 %v2884_v3 }
  0x71   : > { %2659 = vmatpush3.bf16.msra.mxu0 %v2885_v5  ;;  %2825 = vmatpush3.bf16.msra.mxu1 %v2885_v5 }
  0x72   : > { %2774 = vmatprep.subr.bf16.mxu1 %v3301_v15 }
  0x8e   : > { %v1151_v7 = vpop.permute.xlu0 %1150 }
  0x8f   : > { %v1127_v8 = vpop.permute.xlu1 %1126 }
  0x93   : > { %v1129_v10 = vpop.permute.xlu1 %1128  ;;  %v1000_v11 = vpop.permute.xlu0 %999 }
  0x94   : > { %v1164_v12 = vsel %vm1160_vm5, %v2997_v28, %v1000_v11 }
  0x95   : > { %v3294_v13 = vsel %vm1197_vm6, %v1164_v12, %v1127_v8 }
  0x96   : > { %1250 = vrot.lane.b32.xlu0 %v3294_v13, %s2914_s8 }
  0x97   : > { %v1153_v17 = vpop.permute.xlu1 %1152  ;;  %v1002_v18 = vpop.permute.xlu0 %1001 }
  0x98   : > { %v1166_v19 = vsel %vm1160_vm5, %v3007_v36, %v1002_v18 }
  0x99   : > { %v3307_v28 = vsel %vm1197_vm6, %v1166_v19, %v1129_v10 }
  0x9a   : > { %1283 = vrot.lane.b32.xlu1 %v3307_v28, %s2912_s29 }
  0x9b   : > { %v1131_v20 = vpop.permute.xlu1 %1130  ;;  %v1024_v21 = vpop.permute.xlu0 %1023 }
  0x9c   : > { %v1188_v22 = vsel %vm1160_vm5, %v2992_v23, %v1024_v21 }
  0x9d   : > { %v3314_v25 = vsel %vm1197_vm6, %v1188_v22, %v1151_v7 }
  0x9e   : > { %1274 = vrot.lane.b32.xlu1 %v3314_v25, %s2914_s8 }
  0x9f   : > { %v1026_v36 = vpop.permute.xlu1 %1025  ;;  %v1004_v26 = vpop.permute.xlu0 %1003 }
  0xa0   : > { %v1190_v27 = vsel %vm1160_vm5, %v3017_v43, %v1026_v36  ;;  %v1168_v29 = vsel %vm1160_vm5, %v3037_v6, %v1004_v26 }
  0xa1   : > { %v3323_v24 = vsel %vm1197_vm6, %v1168_v29, %v1131_v20  ;;  %v3326_v32 = vsel %vm1197_vm6, %v1190_v27, %v1153_v17 }
  0xa2   : > { %1285 = vrot.lane.b32.xlu1 %v3323_v24, %s2912_s29  ;;  %1307 = vrot.lane.b32.xlu0 %v3326_v32, %s2912_s29 }
  0xa3   : > { %v1155_v23 = vpop.permute.xlu1 %1154 }
  0xa4   : > { %v1028_v33 = vpop.permute.xlu0 %1027 }
  0xa5   : > { %v1192_v43 = vsel %vm1160_vm5, %v3061_v45, %v1028_v33 }
  0xa6   : > { %1252 = vrot.lane.b32.xlu0 %v3307_v28, %s2914_s8  ;;  %v3337_v34 = vsel %vm1197_vm6, %v1192_v43, %v1155_v23 }
  0xa7   : > { %v1133_v6 = vpop.permute.xlu1 %1132  ;;  %1309 = vrot.lane.b32.xlu1 %v3337_v34, %s2912_s29 }
  0xa8   : > { %v1006_v35 = vpop.permute.xlu0 %1005 }
  0xa9   : > { %v1170_v37 = vsel %vm1160_vm5, %v3075_v52, %v1006_v35 }
  0xaa   : > { %1276 = vrot.lane.b32.xlu0 %v3326_v32, %s2914_s8  ;;  %v3346_v45 = vsel %vm1197_vm6, %v1170_v37, %v1133_v6 }
  0xab   : > { %v1157_v38 = vpop.permute.xlu1 %1156  ;;  %1287 = vrot.lane.b32.xlu1 %v3346_v45, %s2912_s29 }
  0xac   : > { %v1030_v39 = vpop.permute.xlu0 %1029 }
  0xad   : > { %v1194_v41 = vsel %vm1160_vm5, %v3084_v0, %v1030_v39 }
  0xae   : > { %1254 = vrot.lane.b32.xlu0 %v3323_v24, %s2914_s8  ;;  %v1231_v4 = vsel %vm1197_vm6, %v1194_v41, %v1157_v38 }
  0xaf   : > { %v1135_v52 = vpop.permute.xlu1 %1134  ;;  %1311 = vrot.lane.b32.xlu1 %v1231_v4, %s2912_s29 }
  0xb0   : > { %v1008_v42 = vpop.permute.xlu0 %1007 }
  0xb1   : > { %v1172_v44 = vsel %vm1160_vm5, %v3104_v31, %v1008_v42 }
  0xb2   : > { %1278 = vrot.lane.b32.xlu0 %v3337_v34, %s2914_s8  ;;  %v3361_v46 = vsel %vm1197_vm6, %v1172_v44, %v1135_v52 }
  0xb3   : > { %1289 = vrot.lane.b32.xlu1 %v3361_v46, %s2912_s29 }
  0xb5   : > { %v1159_v0 = vpop.permute.xlu1 %1158 }
  0xb6   : > { %1256 = vrot.lane.b32.xlu0 %v3346_v45, %s2914_s8 }
  0xb9   : > { %v1032_v47 = vpop.permute.xlu0 %1031  ;;  %v1137_v48 = vpop.permute.xlu1 %1136 }
  0xba   : > { %1280 = vrot.lane.b32.xlu0 %v1231_v4, %s2914_s8  ;;  %v1196_v31 = vsel %vm1160_vm5, %v3133_v14, %v1032_v47 }
  0xbb   : > { %v1233_v49 = vsel %vm1197_vm6, %v1196_v31, %v1159_v0 }
  0xbc   : > { %1313 = vrot.lane.b32.xlu1 %v1233_v49, %s2912_s29 }
  0xbd   : > { %v1010_v50 = vpop.permute.xlu0 %1009  ;;  %v1139_v53 = vpop.permute.xlu1 %1138 }
  0xbe   : > { %1258 = vrot.lane.b32.xlu0 %v3361_v46, %s2914_s8  ;;  %v1174_v54 = vsel %vm1160_vm5, %v3119_v60, %v1010_v50 }
  0xbf   : > { %v3377_v55 = vsel %vm1197_vm6, %v1174_v54, %v1137_v48 }
  0xc0   : > { %1291 = vrot.lane.b32.xlu1 %v3377_v55, %s2912_s29 }
  0xc1   : > { %v1012_v56 = vpop.permute.xlu0 %1011  ;;  %v1141_v14 = vpop.permute.xlu1 %1140 }
  0xc2   : > { %1260 = vrot.lane.b32.xlu0 %v3377_v55, %s2914_s8  ;;  %v1176_v57 = vsel %vm1160_vm5, %v3138_v16, %v1012_v56 }
  0xc3   : > { %v3386_v59 = vsel %vm1197_vm6, %v1176_v57, %v1139_v53 }
  0xc4   : > { %1293 = vrot.lane.b32.xlu1 %v3386_v59, %s2912_s29 }
  0xc5   : > { %v1014_v60 = vpop.permute.xlu0 %1013  ;;  %v1143_v62 = vpop.permute.xlu1 %1142 }
  0xc6   : > { %1262 = vrot.lane.b32.xlu0 %v3386_v59, %s2914_s8  ;;  %v1178_v63 = vsel %vm1160_vm5, %v3159_v51, %v1014_v60 }
  0xc7   : > { %v3395_v1 = vsel %vm1197_vm6, %v1178_v63, %v1141_v14 }
  0xc8   : > { %1295 = vrot.lane.b32.xlu1 %v3395_v1, %s2912_s29 }
  0xc9   : > { %v1016_v16 = vpop.permute.xlu0 %1015  ;;  %v1125_v3 = vpop.permute.xlu1 %1124 }
  0xca   : > { %1264 = vrot.lane.b32.xlu0 %v3395_v1, %s2914_s8  ;;  %v1180_v2 = vsel %vm1160_vm5, %v3175_v9, %v1016_v16 }
  0xcb   : > { %v3404_v5 = vsel %vm1197_vm6, %v1180_v2, %v1143_v62 }
  0xcc   : > { %1297 = vrot.lane.b32.xlu1 %v3404_v5, %s2912_s29 }
  0xcd   : > { %v998_v51 = vpop.permute.xlu0 %997  ;;  %v1018_v7 = vpop.permute.xlu1 %1017 }
  0xce   : > { %1266 = vrot.lane.b32.xlu0 %v3404_v5, %s2914_s8  ;;  %v1182_v8 = vsel %vm1160_vm5, %v3191_v40, %v1018_v7 }
  0xd1   : > { %v1022_v10 = vpop.permute.xlu0 %1021  ;;  %v1145_v11 = vpop.permute.xlu1 %1144 }
  0xd2   : > { %v3413_v12 = vsel %vm1197_vm6, %v1182_v8, %v1145_v11  ;;  %v1186_v19 = vsel %vm1160_vm5, %v3208_v61, %v1022_v10  ;;  %v1162_v61 = vsel %vm1160_vm5, %v3204_v58, %v998_v51  ;;  %v2887_v58 = vld [vmem:[%s3791_s3 + $0x88] sm:$0xff]  }
  0xd3   : > { %1299 = vrot.lane.b32.xlu1 %v3413_v12, %s2912_s29  ;;  %v1199_v26 = vsel %vm1197_vm6, %v1162_v61, %v1125_v3 }
  0xd5   : > { %v1149_v9 = vpop.permute.xlu0 %1148  ;;  %v1147_v17 = vpop.permute.xlu1 %1146 }
  0xd6   : > { %v1223_v21 = vsel %vm1197_vm6, %v1186_v19, %v1149_v9 }
  0xd7   : > { %1268 = vrot.lane.b32.xlu1 %v3413_v12, %s2914_s8 }
  0xd9   : > { %v1020_v18 = vpop.permute.xlu0 %1019 }
  0xda   : > { %v1184_v40 = vsel %vm1160_vm5, %v3229_v30, %v1020_v18 }
  0xdb   : > { %v3424_v20 = vsel %vm1197_vm6, %v1184_v40, %v1147_v17  ;;  %1305 = vrot.lane.b32.xlu1 %v3314_v25, %s2912_s29 }
  0xdc   : > { %1301 = vrot.lane.b32.xlu0 %v3424_v20, %s2912_s29 }
  0xdf   : > { %1272 = vrot.lane.b32.xlu1 %v1223_v21, %s2914_s8 }
  0xe0   : > { %1303 = vrot.lane.b32.xlu0 %v1223_v21, %s2912_s29 }
  0xe4   : > { %1270 = vrot.lane.b32.xlu0 %v3424_v20, %s2914_s8 }
 0x108   : > { %v1251_v30 = vpop.permute.xlu0 %1250 }
 0x109   : > { %v1317_v27 = vsel %vm1315_vm7, %v1199_v26, %v1251_v30 }
 0x10c   : > { %v1284_v22 = vpop.permute.xlu1 %1283 }
 0x10d   : > { %v1365_v36 = vsel %vm1197_vm6, %v1251_v30, %v1284_v22 }
 0x10e   : > { %1627 = vmatprep.mubr.bf16.mxu0 %v1365_v36 }
 0x10f   : > { %1628 = vmatmul.mubr.bf16.vlgmr.msra.gmra.mrb[0].mxu0 %v1317_v27 }
 0x110   : > { %v1275_v29 = vpop.permute.xlu1 %1274 }
 0x111   : > { %v1353_v6 = vsel %vm1315_vm7, %v1223_v21, %v1275_v29 }
 0x114   : > { %v3440_v23 = vpop.permute.xlu0 %1307  ;;  %v1286_v43 = vpop.permute.xlu1 %1285 }
 0x115   : > { %v1401_v33 = vsel %vm1197_vm6, %v1275_v29, %v3440_v23 }
 0x116   : > { %1723 = vmatprep.mubr.bf16.mxu1 %v1401_v33 }
 0x117   : > { %1724 = vmatmul.mubr.bf16.vlgmr.msra.gmra.mrb[0].mxu1 %v1353_v6 }
 0x118   : > { %2775 = vmatpush3.bf16.msra.mxu1 %v3301_v15  ;;  %v1253_v35 = vpop.permute.xlu0 %1252 }
 0x119   : > { %v1368_v37 = vsel %vm1197_vm6, %v1253_v35, %v1286_v43  ;;  %v1320_v38 = vsel %vm1315_vm7, %v3294_v13, %v1253_v35  ;;  %2776 = vmatprep.subr.bf16.mxu1 %v2887_v58  ;;  %v3452_v39 = vpop.permute.xlu1 %1309 }
 0x11a   : > { %1635 = vmatprep.mubr.bf16.mxu0 %v1368_v37 }
 0x11b   : > { %1636 = vmatmul.mubr.bf16.gmra.mrb[4].mxu0 %v1320_v38 }
 0x11c   : > { %v1277_v41 = vpop.permute.xlu0 %1276  ;;  %2777 = vmatpush3.bf16.msra.mxu1 %v2887_v58 }
 0x11d   : > { %v1404_v4 = vsel %vm1197_vm6, %v1277_v41, %v3452_v39  ;;  %v1356_v52 = vsel %vm1315_vm7, %v3314_v25, %v1277_v41  ;;  %v1288_v15 = vpop.permute.xlu1 %1287 }
 0x11e   : > { %1731 = vmatprep.mubr.bf16.mxu1 %v1404_v4 }
 0x11f   : > { %1732 = vmatmul.mubr.bf16.gmra.mrb[4].mxu1 %v1356_v52 }
 0x120   : > { %v1255_v42 = vpop.permute.xlu0 %1254 }
 0x121   : > { %v1371_v44 = vsel %vm1197_vm6, %v1255_v42, %v1288_v15  ;;  %v1323_v13 = vsel %vm1315_vm7, %v3307_v28, %v1255_v42  ;;  %v3461_v0 = vpop.permute.xlu1 %1311 }
 0x122   : > { %1643 = vmatprep.mubr.bf16.mxu0 %v1371_v44 }
 0x123   : > { %1644 = vmatmul.mubr.bf16.gmra.mrb[8].mxu0 %v1323_v13 }
 0x124   : > { %v1279_v47 = vpop.permute.xlu0 %1278 }
 0x125   : > { %v1407_v48 = vsel %vm1197_vm6, %v1279_v47, %v3461_v0  ;;  %v1359_v25 = vsel %vm1315_vm7, %v3326_v32, %v1279_v47  ;;  %v1290_v31 = vpop.permute.xlu1 %1289 }
 0x126   : > { %1739 = vmatprep.mubr.bf16.mxu1 %v1407_v48 }
 0x127   : > { %1740 = vmatmul.mubr.bf16.gmra.mrb[8].mxu1 %v1359_v25 }
 0x128   : > { %v1257_v49 = vpop.permute.xlu0 %1256 }
 0x129   : > { %v1374_v50 = vsel %vm1197_vm6, %v1257_v49, %v1290_v31  ;;  %v1326_v28 = vsel %vm1315_vm7, %v3323_v24, %v1257_v49 }
 0x12a   : > { %1651 = vmatprep.mubr.bf16.mxu0 %v1374_v50 }
 0x12b   : > { %1652 = vmatmul.mubr.bf16.gmra.mrb[12].mxu0 %v1326_v28 }
 0x12c   : > { %v1281_v53 = vpop.permute.xlu0 %1280 }
 0x12d   : > { %v1362_v56 = vsel %vm1315_vm7, %v3337_v34, %v1281_v53 }
 0x12e   : > { %v3470_v54 = vpop.permute.xlu1 %1313 }
 0x12f   : > { %v1410_v32 = vsel %vm1197_vm6, %v1281_v53, %v3470_v54 }
 0x130   : > { %v1259_v14 = vpop.permute.xlu0 %1258  ;;  %1747 = vmatprep.mubr.bf16.mxu1 %v1410_v32 }
 0x131   : > { %1748 = vmatmul.mubr.bf16.gmra.mrb[12].mxu1 %v1362_v56  ;;  %v1329_v24 = vsel %vm1315_vm7, %v3346_v45, %v1259_v14 }
 0x132   : > { %v1292_v57 = vpop.permute.xlu1 %1291  ;;  %2778 = vmatprep.mubr.msk.bf16.mxu1 %vm1160_vm5, %v1284_v22 }
 0x133   : > { %v1377_v60 = vsel %vm1197_vm6, %v1259_v14, %v1292_v57 }
 0x134   : > { %1659 = vmatprep.mubr.bf16.mxu0 %v1377_v60  ;;  %v1261_v62 = vpop.permute.xlu0 %1260 }
 0x135   : > { %1660 = vmatmul.mubr.bf16.gmra.mrb[16].mxu0 %v1329_v24  ;;  %v1332_v45 = vsel %vm1315_vm7, %v3361_v46, %v1261_v62 }
 0x136   : > { %v1294_v63 = vpop.permute.xlu1 %1293 }
 0x137   : > { %v1380_v34 = vsel %vm1197_vm6, %v1261_v62, %v1294_v63 }
 0x138   : > { %1667 = vmatprep.mubr.bf16.mxu0 %v1380_v34  ;;  %v1263_v16 = vpop.permute.xlu0 %1262 }
 0x139   : > { %2779 = vmatmul.mubr.msk.bf16.vlgmr.msra.gmra.mrb[16].mxu1 %vm1160_vm5, %v1286_v43  ;;  %v1335_v10 = vsel %vm1315_vm7, %v3377_v55, %v1263_v16 }
 0x13a   : > { %2782 = vmatprep.mubr.msk.bf16.mxu1 %vm1160_vm5, %v1288_v15  ;;  %v1296_v2 = vpop.permute.xlu1 %1295 }
 0x13b   : > { %v1383_v3 = vsel %vm1197_vm6, %v1263_v16, %v1296_v2 }
 0x13c   : > { %v1265_v51 = vpop.permute.xlu0 %1264 }
 0x13d   : > { %1668 = vmatmul.mubr.bf16.gmra.mrb[20].mxu0 %v1332_v45  ;;  %v1338_v9 = vsel %vm1315_vm7, %v3386_v59, %v1265_v51 }
 0x13e   : > { %1675 = vmatprep.mubr.bf16.mxu0 %v1383_v3  ;;  %v1298_v7 = vpop.permute.xlu1 %1297 }
 0x13f   : > { %v1386_v8 = vsel %vm1197_vm6, %v1265_v51, %v1298_v7 }
 0x140   : > { %v1267_v46 = vpop.permute.xlu0 %1266 }
 0x141   : > { %2783 = vmatmul.mubr.msk.bf16.gmra.mrb[20].mxu1 %vm1160_vm5, %v1290_v31  ;;  %v1341_v40 = vsel %vm1315_vm7, %v3395_v1, %v1267_v46 }
 0x142   : > { %2786 = vmatprep.mubr.msk.bf16.mxu1 %vm1160_vm5, %v1292_v57 }
 0x145   : > { %1676 = vmatmul.mubr.bf16.gmra.mrb[24].mxu0 %v1335_v10  ;;  %v1300_v11 = vpop.permute.xlu1 %1299 }
 0x146   : > { %1683 = vmatprep.mubr.bf16.mxu0 %v1386_v8  ;;  %v1389_v17 = vsel %vm1197_vm6, %v1267_v46, %v1300_v11 }
 0x149   : > { %2787 = vmatmul.mubr.msk.bf16.gmra.mrb[24].mxu1 %vm1160_vm5, %v1294_v63  ;;  %v1269_v55 = vpop.permute.xlu1 %1268 }
 0x14a   : > { %2790 = vmatprep.mubr.msk.bf16.mxu1 %vm1160_vm5, %v1296_v2  ;;  %v1344_v30 = vsel %vm1315_vm7, %v3404_v5, %v1269_v55 }
 0x14d   : > { %1684 = vmatmul.mubr.bf16.gmra.mrb[28].mxu0 %v1338_v9  ;;  %v1306_v61 = vpop.permute.xlu1 %1305 }
 0x14e   : > { %1691 = vmatprep.mubr.bf16.mxu0 %v1389_v17  ;;  %v1302_v18 = vpop.permute.xlu0 %1301  ;;  %v3541_v17 = vld [vmem:[%s3792_s4] ss:$0 sm:$0xff] }
 0x14f   : > { %v1392_v21 = vsel %vm1197_vm6, %v1269_v55, %v1302_v18 }
 0x151   : > { %2791 = vmatmul.mubr.msk.bf16.gmra.mrb[28].mxu1 %vm1160_vm5, %v1298_v7  ;;  %v1273_v1 = vpop.permute.xlu1 %1272 }
 0x152   : > { %2794 = vmatprep.mubr.msk.bf16.mxu1 %vm1160_vm5, %v1300_v11  ;;  %v1304_v19 = vpop.permute.xlu0 %1303  ;;  %v1398_v26 = vsel %vm1197_vm6, %v1273_v1, %v1306_v61  ;;  %v1350_v5 = vsel %vm1315_vm7, %v3424_v20, %v1273_v1 }
 0x155   : > { %1692 = vmatmul.mubr.bf16.gmra.mrb[32].mxu0 %v1341_v40 }
 0x156   : > { %1699 = vmatprep.mubr.bf16.mxu0 %v1392_v21  ;;  %v1271_v59 = vpop.permute.xlu0 %1270 }
 0x157   : > { %v1395_v22 = vsel %vm1197_vm6, %v1271_v59, %v1304_v19  ;;  %v1347_v36 = vsel %vm1315_vm7, %v3413_v12, %v1271_v59 }
 0x159   : > { %2795 = vmatmul.mubr.msk.bf16.gmra.mrb[32].mxu1 %vm1160_vm5, %v1302_v18 }
 0x15a   : > { %2798 = vmatprep.mubr.msk.bf16.mxu1 %vm1160_vm5, %v1304_v19 }
 0x15d   : > { %1700 = vmatmul.mubr.bf16.gmra.mrb[36].mxu0 %v1344_v30 }
 0x15e   : > { %1707 = vmatprep.mubr.bf16.mxu0 %v1395_v22 }
 0x161   : > { %2799 = vmatmul.mubr.msk.bf16.gmra.mrb[36].mxu1 %vm1160_vm5, %v1306_v61 }
 0x162   : > { %2802 = vmatprep.mubr.msk.bf16.mxu1 %vm1160_vm5, %v3440_v23 }
 0x165   : > { %1708 = vmatmul.mubr.bf16.gmra.mrb[40].mxu0 %v1347_v36 }
 0x166   : > { %1715 = vmatprep.mubr.bf16.mxu0 %v1398_v26 }
 0x169   : > { %2803 = vmatmul.mubr.msk.bf16.gmra.mrb[40].mxu1 %vm1160_vm5, %v3452_v39 }
 0x16a   : > { %2806 = vmatprep.mubr.msk.bf16.mxu1 %vm1160_vm5, %v3461_v0 }
 0x16d   : > { %1716 = vmatmul.mubr.bf16.gmra.mrb[44].mxu0 %v1350_v5 }
 0x171   : > { %2807 = vmatmul.mubr.msk.bf16.gmra.mrb[44].mxu1 %vm1160_vm5, %v3470_v54 }
 0x1e2   : > { %v2660_v27 = vpop.f32.mrb[0].mxu0 }
 0x1e3   : > { %v2661_v29 = vpop.f32.mrb[1].mxu0 }
 0x1e4   : > { %v2662_v12 = vadd.f32 %v2661_v29, %v2660_v27  ;;  %v2663_v23 = vpop.f32.mrb[2].mxu0 }
 0x1e5   : > { %v2664_v33 = vpop.f32.mrb[3].mxu0 }
 0x1e6   : > { %v2665_v58 = vadd.f32 %v2664_v33, %v2663_v23  ;;  %v1630_v61 = vadd.f32 %v2662_v12, %v3541_v17 }
 0x1e8   : > { %v1633_v5 = vadd.f32 %v2665_v58, %v3541_v17 }
 0x1ea   : > { %v2732_v43 = vpop.f32.mrb[0].mxu1 }
 0x1eb   : > { %v2733_v6 = vpop.f32.mrb[1].mxu1 }
 0x1ec   : > { %v3520_v35 = vadd.f32 %v2733_v6, %v2732_v43  ;;  %v2735_v37 = vpop.f32.mrb[2].mxu1 }
 0x1ed   : > { %v2736_v38 = vpop.f32.mrb[3].mxu1 }
 0x1ee   : > { %v3522_v39 = vadd.f32 %v2736_v38, %v2735_v37  ;;  %v2666_v41 = vpop.f32.mrb[4].mxu0 }
 0x1ef   : > { %v2667_v20 = vpop.f32.mrb[5].mxu0 }
 0x1f0   : > { %v2668_v4 = vadd.f32 %v2667_v20, %v2666_v41  ;;  %v2669_v52 = vpop.f32.mrb[6].mxu0 }
 0x1f1   : > { %v2670_v15 = vpop.f32.mrb[7].mxu0 }
 0x1f2   : > { %v2671_v42 = vadd.f32 %v2670_v15, %v2669_v52  ;;  %v2738_v44 = vpop.f32.mrb[4].mxu1  ;;  %v1638_v40 = vadd.f32 %v2668_v4, %v3541_v17 }
 0x1f3   : > { %v2739_v13 = vpop.f32.mrb[5].mxu1 }
 0x1f4   : > { %v3524_v0 = vadd.f32 %v2739_v13, %v2738_v44  ;;  %v2741_v47 = vpop.f32.mrb[6].mxu1  ;;  %v1641_v1 = vadd.f32 %v2671_v42, %v3541_v17 }
 0x1f5   : > { %v2742_v48 = vpop.f32.mrb[7].mxu1 }
 0x1f6   : > { %v3526_v25 = vadd.f32 %v2742_v48, %v2741_v47  ;;  %v2672_v31 = vpop.f32.mrb[8].mxu0 }
 0x1f7   : > { %v2673_v49 = vpop.f32.mrb[9].mxu0 }
 0x1f8   : > { %v2674_v50 = vadd.f32 %v2673_v49, %v2672_v31  ;;  %v2675_v28 = vpop.f32.mrb[10].mxu0 }
 0x1f9   : > { %v2676_v53 = vpop.f32.mrb[11].mxu0 }
 0x1fa   : > { %v3528_v54 = vadd.f32 %v2676_v53, %v2675_v28  ;;  %v2744_v56 = vpop.f32.mrb[8].mxu1  ;;  %v1646_v42 = vadd.f32 %v2674_v50, %v3541_v17 }
 0x1fb   : > { %v2745_v32 = vpop.f32.mrb[9].mxu1 }
 0x1fc   : > { %v3530_v14 = vadd.f32 %v2745_v32, %v2744_v56  ;;  %v2747_v57 = vpop.f32.mrb[10].mxu1 }
 0x1fd   : > { %v2748_v24 = vpop.f32.mrb[11].mxu1 }
 0x1fe   : > { %v3532_v60 = vadd.f32 %v2748_v24, %v2747_v57  ;;  %v2678_v62 = vpop.f32.mrb[12].mxu0 }
 0x1ff   : > { %v2679_v63 = vpop.f32.mrb[13].mxu0 }
 0x200   : > { %v2680_v34 = vadd.f32 %v2679_v63, %v2678_v62  ;;  %v2681_v16 = vpop.f32.mrb[14].mxu0  ;;  %v1649_v62 = vadd.f32 %v3528_v54, %v3541_v17 }
 0x201   : > { %v2682_v2 = vpop.f32.mrb[15].mxu0 }
 0x202   : > { %v2683_v3 = vadd.f32 %v2682_v2, %v2681_v16  ;;  %v1654_v15 = vadd.f32 %v2680_v34, %v3541_v17 }
 0x204   : > { %v2750_v45 = vpop.f32.mrb[12].mxu1  ;;  %v1657_v50 = vadd.f32 %v2683_v3, %v3541_v17 }
 0x205   : > { %v2751_v51 = vpop.f32.mrb[13].mxu1 }
 0x206   : > { %v3534_v7 = vadd.f32 %v2751_v51, %v2750_v45  ;;  %v2753_v8 = vpop.f32.mrb[14].mxu1 }
 0x207   : > { %v2754_v10 = vpop.f32.mrb[15].mxu1 }
 0x208   : > { %v3536_v46 = vadd.f32 %v2754_v10, %v2753_v8  ;;  %v2684_v11 = vpop.f32.mrb[16].mxu0 }
 0x209   : > { %v2685_v9 = vpop.f32.mrb[17].mxu0 }
 0x20a   : > { %v3543_v18 = vadd.f32 %v2685_v9, %v2684_v11  ;;  %v2687_v55 = vpop.f32.mrb[18].mxu0 }
 0x20b   : > { %v2688_v19 = vpop.f32.mrb[19].mxu0 }
 0x20c   : > { %v3546_v21 = vadd.f32 %v2688_v19, %v2687_v55  ;;  %v2780_v59 = vpop.f32.mrb[16].mxu1 }
 0x20d   : > { %v1799_v30 = vadd.f32 %v2780_v59, %v1638_v40  ;;  %v1790_v22 = vpop.f32.mrb[17].mxu1  ;;  %v1662_v59 = vadd.f32 %v3543_v18, %v3541_v17 }
 0x20e   : > { %v1791_v36 = vadd.f32 %v1790_v22, %v1630_v61  ;;  %v2781_v26 = vpop.f32.mrb[18].mxu1 }
 0x20f   : > { %vm1919_vm8 = vcmp.ge.f32.partialorder %v1799_v30, 0.0  ;;  %v1951_v27 = vmul.f32 0.05, %v1799_v30  ;;  %v1802_v29 = vadd.f32 %v2781_v26, %v1641_v1  ;;  %v1793_v23 = vpop.f32.mrb[19].mxu1 }
 0x210   : > { %vm1917_vm9 = vcmp.ge.f32.partialorder %v1791_v36, 0.0  ;;  %v1949_v33 = vmul.f32 0.05, %v1791_v36  ;;  %v1794_v43 = vadd.f32 %v1793_v23, %v1633_v5  ;;  %v2690_v6 = vpop.f32.mrb[20].mxu0 }
 0x211   : > { %vm1920_vm10 = vcmp.ge.f32.partialorder %v1802_v29, 0.0  ;;  %v1952_v37 = vmul.f32 0.05, %v1802_v29  ;;  %v2691_v12 = vpop.f32.mrb[21].mxu0  ;;  %v1983_v38 = vsel %vm1919_vm8, %v1799_v30, %v1951_v27 }
 0x212   : > { %vm1918_vm12 = vcmp.ge.f32.partialorder %v1794_v43, 0.0  ;;  %v1950_v58 = vmul.f32 0.05, %v1794_v43  ;;  %v2692_v41 = vadd.f32 %v2691_v12, %v2690_v6  ;;  %v2693_v20 = vpop.f32.mrb[22].mxu0  ;;  %v2605_v4 = vpack.c.bf16 %v1983_v38, %v1983_v38 }
 0x213   : > { %v2694_v52 = vpop.f32.mrb[23].mxu0  ;;  %v1984_v44 = vsel %vm1920_vm10, %v1802_v29, %v1952_v37  ;;  %v1981_v13 = vsel %vm1917_vm9, %v1791_v36, %v1949_v33  ;;  %v1665_v6 = vadd.f32 %v3546_v21, %v3541_v17 }
 0x214   : > { %v2695_v47 = vadd.f32 %v2694_v52, %v2693_v20  ;;  %2178 = vrot.lane.b32.xlu0 %v2605_v4, %s2915_s17  ;;  %2144 = vst.msk [vmem:[%s3555_s16 + $0x8] sm:$0xf] %vm2141_vm11, %v2605_v4  ;;  %v2784_v48 = vpop.f32.mrb[20].mxu1  ;;  %v2606_v31 = vpack.c.bf16 %v1984_v44, %v1984_v44  ;;  %v2603_v49 = vpack.c.bf16 %v1981_v13, %v1981_v13 }
 0x215   : > { %v1982_v28 = vsel %vm1918_vm12, %v1794_v43, %v1950_v58  ;;  %v1815_v53 = vadd.f32 %v2784_v48, %v1654_v15  ;;  %v1806_v56 = vpop.f32.mrb[21].mxu1  ;;  %v1670_v40 = vadd.f32 %v2692_v41, %v3541_v17 }
 0x216   : > { %v2604_v32 = vpack.c.bf16 %v1982_v28, %v1982_v28  ;;  %v1807_v57 = vadd.f32 %v1806_v56, %v1646_v42  ;;  %2180 = vrot.lane.b32.xlu1 %v2606_v31, %s2915_s17  ;;  %2145 = vst.msk [vmem:[%s3555_s16 + $0xc] sm:$0xf] %vm2141_vm11, %v2606_v31  ;;  %v2785_v24 = vpop.f32.mrb[22].mxu1  ;;  %2142 = vst.msk [vmem:[%s3555_s16] sm:$0xf] %vm2141_vm11, %v2603_v49  ;;  %v1673_v18 = vadd.f32 %v2695_v47, %v3541_v17 }
 0x217   : > { %vm1923_vm13 = vcmp.ge.f32.partialorder %v1815_v53, 0.0  ;;  %v1955_v63 = vmul.f32 0.05, %v1815_v53  ;;  %v1818_v34 = vadd.f32 %v2785_v24, %v1657_v50  ;;  %v1809_v16 = vpop.f32.mrb[23].mxu1 }
 0x218   : > { %2143 = vst.msk [vmem:[%s3555_s16 + $0x4] sm:$0xf] %vm2141_vm11, %v2604_v32  ;;  %vm1921_vm14 = vcmp.ge.f32.partialorder %v1807_v57, 0.0  ;;  %v1953_v2 = vmul.f32 0.05, %v1807_v57  ;;  %v1810_v3 = vadd.f32 %v1809_v16, %v1649_v62  ;;  %2174 = vrot.lane.b32.xlu0 %v2603_v49, %s2915_s17  ;;  %v2696_v45 = vpop.f32.mrb[24].mxu0 }
 0x219   : > { %vm1924_vm15 = vcmp.ge.f32.partialorder %v1818_v34, 0.0  ;;  %v1956_v51 = vmul.f32 0.05, %v1818_v34  ;;  %v2697_v8 = vpop.f32.mrb[25].mxu0  ;;  %v1987_v10 = vsel %vm1923_vm13, %v1815_v53, %v1955_v63 }
 0x21a   : > { %vm1922_vm0 = vcmp.ge.f32.partialorder %v1810_v3, 0.0  ;;  %v1954_v54 = vmul.f32 0.05, %v1810_v3  ;;  %v2698_v11 = vadd.f32 %v2697_v8, %v2696_v45  ;;  %2176 = vrot.lane.b32.xlu1 %v2604_v32, %s2915_s17  ;;  %v2699_v9 = vpop.f32.mrb[26].mxu0  ;;  %v2609_v55 = vpack.c.bf16 %v1987_v10, %v1987_v10 }
 0x21b   : > { %v2700_v19 = vpop.f32.mrb[27].mxu0  ;;  %v1988_v61 = vsel %vm1924_vm15, %v1818_v34, %v1956_v51  ;;  %v1985_v30 = vsel %vm1921_vm14, %v1807_v57, %v1953_v2 }
 0x21c   : > { %v2701_v22 = vadd.f32 %v2700_v19, %v2699_v9  ;;  %v2788_v1 = vpop.f32.mrb[24].mxu1  ;;  %2148 = vst.msk [vmem:[%s3555_s16 + $0x18] sm:$0xf] %vm2141_vm11, %v2609_v55  ;;  %2186 = vrot.lane.b32.xlu0 %v2609_v55, %s2915_s17  ;;  %v2610_v36 = vpack.c.bf16 %v1988_v61, %v1988_v61  ;;  %v2607_v26 = vpack.c.bf16 %v1985_v30, %v1985_v30 }
 0x21d   : > { %v1986_v5 = vsel %vm1922_vm0, %v1810_v3, %v1954_v54  ;;  %v1831_v27 = vadd.f32 %v2788_v1, %v1670_v40  ;;  %v1822_v29 = vpop.f32.mrb[25].mxu1  ;;  %v1678_v48 = vadd.f32 %v2698_v11, %v3541_v17 }
 0x21e   : > { %v2608_v23 = vpack.c.bf16 %v1986_v5, %v1986_v5  ;;  %v1823_v33 = vadd.f32 %v1822_v29, %v1662_v59  ;;  %v2789_v43 = vpop.f32.mrb[26].mxu1  ;;  %2149 = vst.msk [vmem:[%s3555_s16 + $0x1c] sm:$0xf] %vm2141_vm11, %v2610_v36  ;;  %2188 = vrot.lane.b32.xlu1 %v2610_v36, %s2915_s17  ;;  %2146 = vst.msk [vmem:[%s3555_s16 + $0x10] sm:$0xf] %vm2141_vm11, %v2607_v26  ;;  %v1681_v3 = vadd.f32 %v2701_v22, %v3541_v17 }
 0x21f   : > { %vm1927_vm1 = vcmp.ge.f32.partialorder %v1831_v27, 0.0  ;;  %v1959_v37 = vmul.f32 0.05, %v1831_v27  ;;  %v1834_v12 = vadd.f32 %v2789_v43, %v1673_v18  ;;  %v1825_v38 = vpop.f32.mrb[27].mxu1 }
 0x220   : > { %2147 = vst.msk [vmem:[%s3555_s16 + $0x14] sm:$0xf] %vm2141_vm11, %v2608_v23  ;;  %vm1925_vm2 = vcmp.ge.f32.partialorder %v1823_v33, 0.0  ;;  %v1957_v58 = vmul.f32 0.05, %v1823_v33  ;;  %v1826_v41 = vadd.f32 %v1825_v38, %v1665_v6  ;;  %2182 = vrot.lane.b32.xlu0 %v2607_v26, %s2915_s17  ;;  %v2702_v20 = vpop.f32.mrb[28].mxu0 }
 0x221   : > { %vm1928_vm3 = vcmp.ge.f32.partialorder %v1834_v12, 0.0  ;;  %v1960_v4 = vmul.f32 0.05, %v1834_v12  ;;  %v2703_v52 = vpop.f32.mrb[29].mxu0  ;;  %v1991_v15 = vsel %vm1927_vm1, %v1831_v27, %v1959_v37 }
 0x222   : > { %vm1926_vm4 = vcmp.ge.f32.partialorder %v1826_v41, 0.0  ;;  %v1958_v21 = vmul.f32 0.05, %v1826_v41  ;;  %v2704_v42 = vadd.f32 %v2703_v52, %v2702_v20  ;;  %2184 = vrot.lane.b32.xlu1 %v2608_v23, %s2915_s17  ;;  %v2705_v44 = vpop.f32.mrb[30].mxu0  ;;  %v2613_v13 = vpack.c.bf16 %v1991_v15, %v1991_v15 }
 0x223   : > { %v2706_v47 = vpop.f32.mrb[31].mxu0  ;;  %v1992_v31 = vsel %vm1928_vm3, %v1834_v12, %v1960_v4  ;;  %v1989_v49 = vsel %vm1925_vm2, %v1823_v33, %v1957_v58 }
 0x224   : > { %v2707_v28 = vadd.f32 %v2706_v47, %v2705_v44  ;;  %v1686_v53 = vadd.f32 %v2704_v42, %v3541_v17  ;;  %v2792_v56 = vpop.f32.mrb[28].mxu1  ;;  %2194 = vrot.lane.b32.xlu0 %v2613_v13, %s2915_s17  ;;  %2152 = vst.msk [vmem:[%s3555_s16 + $0x28] sm:$0xf] %vm2141_vm11, %v2613_v13  ;;  %v2614_v50 = vpack.c.bf16 %v1992_v31, %v1992_v31 }
 0x225   : > { %v2611_v32 = vpack.c.bf16 %v1989_v49, %v1989_v49  ;;  %v1838_v57 = vpop.f32.mrb[29].mxu1  ;;  %v1990_v24 = vsel %vm1926_vm4, %v1826_v41, %v1958_v21 }
 0x226   : > { %v1847_v62 = vadd.f32 %v2792_v56, %v1686_v53  ;;  %v1839_v63 = vadd.f32 %v1838_v57, %v1678_v48  ;;  %v1689_v34 = vadd.f32 %v2707_v28, %v3541_v17  ;;  %v2793_v16 = vpop.f32.mrb[30].mxu1  ;;  %2196 = vrot.lane.b32.xlu1 %v2614_v50, %s2915_s17  ;;  %2153 = vst.msk [vmem:[%s3555_s16 + $0x2c] sm:$0xf] %vm2141_vm11, %v2614_v50 }
 0x227   : > { %2150 = vst.msk [vmem:[%s3555_s16 + $0x20] sm:$0xf] %vm2141_vm11, %v2611_v32  ;;  %v2612_v2 = vpack.c.bf16 %v1990_v24, %v1990_v24  ;;  %v1841_v45 = vpop.f32.mrb[31].mxu1 }
 0x228   : > { %vm1931_vm5 = vcmp.ge.f32.partialorder %v1847_v62, 0.0  ;;  %v1963_v51 = vmul.f32 0.05, %v1847_v62  ;;  %vm1929_vm6 = vcmp.ge.f32.partialorder %v1839_v63, 0.0  ;;  %v1961_v8 = vmul.f32 0.05, %v1839_v63  ;;  %2190 = vrot.lane.b32.xlu0 %v2611_v32, %s2915_s17 }
 0x229   : > { %2151 = vst.msk [vmem:[%s3555_s16 + $0x24] sm:$0xf] %vm2141_vm11, %v2612_v2  ;;  %v1850_v10 = vadd.f32 %v2793_v16, %v1689_v34  ;;  %v1842_v54 = vadd.f32 %v1841_v45, %v1681_v3  ;;  %v2708_v11 = vpop.f32.mrb[32].mxu0 }
 0x22a   : > { %v2709_v9 = vpop.f32.mrb[33].mxu0  ;;  %2192 = vrot.lane.b32.xlu1 %v2612_v2, %s2915_s17  ;;  %v1993_v55 = vsel %vm1929_vm6, %v1839_v63, %v1961_v8  ;;  %v1995_v19 = vsel %vm1931_vm5, %v1847_v62, %v1963_v51  ;;  %v1734_v8 = vadd.f32 %v3524_v0, %v3541_v17 }
 0x22b   : > { %vm1932_vm7 = vcmp.ge.f32.partialorder %v1850_v10, 0.0  ;;  %v1964_v40 = vmul.f32 0.05, %v1850_v10  ;;  %vm1930_vm8 = vcmp.ge.f32.partialorder %v1842_v54, 0.0  ;;  %v1962_v59 = vmul.f32 0.05, %v1842_v54 }
 0x22c   : > { %v2710_v61 = vadd.f32 %v2709_v9, %v2708_v11  ;;  %v2711_v30 = vpop.f32.mrb[34].mxu0  ;;  %v2796_v22 = vpop.f32.mrb[32].mxu1  ;;  %v2615_v1 = vpack.c.bf16 %v1993_v55, %v1993_v55  ;;  %v2617_v36 = vpack.c.bf16 %v1995_v19, %v1995_v19  ;;  %v1729_v11 = vadd.f32 %v3522_v39, %v3541_v17 }
 0x22d   : > { %v2712_v26 = vpop.f32.mrb[35].mxu0  ;;  %v1854_v5 = vpop.f32.mrb[33].mxu1  ;;  %v1994_v27 = vsel %vm1930_vm8, %v1842_v54, %v1962_v59  ;;  %v1996_v29 = vsel %vm1932_vm7, %v1850_v10, %v1964_v40  ;;  %v1726_v54 = vadd.f32 %v3520_v35, %v3541_v17  ;;  %v1737_v40 = vadd.f32 %v3526_v25, %v3541_v17 }
 0x22e   : > { %v2713_v18 = vadd.f32 %v2712_v26, %v2711_v30  ;;  %2198 = vrot.lane.b32.xlu0 %v2615_v1, %s2915_s17  ;;  %2154 = vst.msk [vmem:[%s3555_s16 + $0x30] sm:$0xf] %vm2141_vm11, %v2615_v1  ;;  %v1694_v23 = vadd.f32 %v2710_v61, %v3541_v17  ;;  %v2797_v33 = vpop.f32.mrb[34].mxu1  ;;  %v2616_v43 = vpack.c.bf16 %v1994_v27, %v1994_v27  ;;  %2156 = vst.msk [vmem:[%s3555_s16 + $0x38] sm:$0xf] %vm2141_vm11, %v2617_v36 }
 0x22f   : > { %v2618_v6 = vpack.c.bf16 %v1996_v29, %v1996_v29  ;;  %v1857_v37 = vpop.f32.mrb[35].mxu1  ;;  %v1742_v35 = vadd.f32 %v3530_v14, %v3541_v17  ;;  %v1745_v39 = vadd.f32 %v3532_v60, %v3541_v17  ;;  %v1750_v26 = vadd.f32 %v3534_v7, %v3541_v17 }
 0x230   : > { %v1855_v12 = vadd.f32 %v1854_v5, %v1694_v23  ;;  %2200 = vrot.lane.b32.xlu1 %v2616_v43, %s2915_s17  ;;  %2155 = vst.msk [vmem:[%s3555_s16 + $0x34] sm:$0xf] %vm2141_vm11, %v2616_v43  ;;  %v1697_v38 = vadd.f32 %v2713_v18, %v3541_v17  ;;  %v2714_v58 = vpop.f32.mrb[36].mxu0  ;;  %v1753_v14 = vadd.f32 %v3536_v46, %v3541_v17 }
 0x231   : > { %2157 = vst.msk [vmem:[%s3555_s16 + $0x3c] sm:$0xf] %vm2141_vm11, %v2618_v6  ;;  %v2715_v41 = vpop.f32.mrb[37].mxu0 }
 0x232   : > { %vm1933_vm9 = vcmp.ge.f32.partialorder %v1855_v12, 0.0  ;;  %v1965_v20 = vmul.f32 0.05, %v1855_v12  ;;  %v1858_v4 = vadd.f32 %v1857_v37, %v1697_v38  ;;  %2202 = vrot.lane.b32.xlu0 %v2617_v36, %s2915_s17  ;;  %v2716_v52 = vadd.f32 %v2715_v41, %v2714_v58  ;;  %v2717_v15 = vpop.f32.mrb[38].mxu0 }
 0x233   : > { %v2718_v21 = vpop.f32.mrb[39].mxu0 }
 0x234   : > { %vm1934_vm10 = vcmp.ge.f32.partialorder %v1858_v4, 0.0  ;;  %v1966_v42 = vmul.f32 0.05, %v1858_v4  ;;  %v1702_v44 = vadd.f32 %v2716_v52, %v3541_v17  ;;  %2204 = vrot.lane.b32.xlu1 %v2618_v6, %s2915_s17  ;;  %v2719_v13 = vadd.f32 %v2718_v21, %v2717_v15  ;;  %v3629_v47 = vpop.f32.mrb[36].mxu1 }
 0x235   : > { %v1997_v48 = vsel %vm1933_vm9, %v1855_v12, %v1965_v20  ;;  %v1870_v31 = vpop.f32.mrb[37].mxu1 }
 0x236   : > { %v1863_v49 = vadd.f32 %v2796_v22, %v1702_v44  ;;  %v1705_v28 = vadd.f32 %v2719_v13, %v3541_v17  ;;  %v2619_v53 = vpack.c.bf16 %v1997_v48, %v1997_v48  ;;  %v3632_v56 = vpop.f32.mrb[38].mxu1  ;;  %v1998_v50 = vsel %vm1934_vm10, %v1858_v4, %v1966_v42 }
 0x237   : > { %v2620_v32 = vpack.c.bf16 %v1998_v50, %v1998_v50  ;;  %v1873_v57 = vpop.f32.mrb[39].mxu1 }
 0x238   : > { %v1866_v24 = vadd.f32 %v2797_v33, %v1705_v28  ;;  %2206 = vrot.lane.b32.xlu0 %v2619_v53, %s2915_s17  ;;  %2158 = vst.msk [vmem:[%s3555_s16 + $0x40] sm:$0xf] %vm2141_vm11, %v2619_v53  ;;  %v2720_v62 = vpop.f32.mrb[40].mxu0  ;;  %vm1935_vm12 = vcmp.ge.f32.partialorder %v1863_v49, 0.0  ;;  %v1967_v63 = vmul.f32 0.05, %v1863_v49 }
 0x239   : > { %2208 = vrot.lane.b32.xlu1 %v2620_v32, %s2915_s17  ;;  %2159 = vst.msk [vmem:[%s3555_s16 + $0x44] sm:$0xf] %vm2141_vm11, %v2620_v32  ;;  %v2721_v34 = vpop.f32.mrb[41].mxu0 }
 0x23a   : > { %v2722_v16 = vadd.f32 %v2721_v34, %v2720_v62  ;;  %v2723_v2 = vpop.f32.mrb[42].mxu0  ;;  %v1999_v3 = vsel %vm1935_vm12, %v1863_v49, %v1967_v63  ;;  %vm1936_vm13 = vcmp.ge.f32.partialorder %v1866_v24, 0.0  ;;  %v1968_v45 = vmul.f32 0.05, %v1866_v24 }
 0x23b   : > { %v2724_v51 = vpop.f32.mrb[43].mxu0  ;;  %v2621_v10 = vpack.c.bf16 %v1999_v3, %v1999_v3 }
 0x23c   : > { %v1710_v9 = vadd.f32 %v2722_v16, %v3541_v17  ;;  %v2725_v55 = vadd.f32 %v2724_v51, %v2723_v2  ;;  %v2804_v19 = vpop.f32.mrb[40].mxu1  ;;  %v2000_v59 = vsel %vm1936_vm13, %v1866_v24, %v1968_v45 }
 0x23d   : > { %v1895_v61 = vadd.f32 %v2804_v19, %v1734_v8  ;;  %2210 = vrot.lane.b32.xlu0 %v2621_v10, %s2915_s17  ;;  %2160 = vst.msk [vmem:[%s3555_s16 + $0x48] sm:$0xf] %vm2141_vm11, %v2621_v10  ;;  %v1886_v0 = vpop.f32.mrb[41].mxu1  ;;  %v2622_v30 = vpack.c.bf16 %v2000_v59, %v2000_v59 }
 0x23e   : > { %v1871_v22 = vadd.f32 %v1870_v31, %v1710_v9  ;;  %v1713_v1 = vadd.f32 %v2725_v55, %v3541_v17  ;;  %v1887_v36 = vadd.f32 %v1886_v0, %v1726_v54  ;;  %v2805_v25 = vpop.f32.mrb[42].mxu1 }
 0x23f   : > { %vm1943_vm14 = vcmp.ge.f32.partialorder %v1895_v61, 0.0  ;;  %v1975_v5 = vmul.f32 0.05, %v1895_v61  ;;  %v1898_v27 = vadd.f32 %v2805_v25, %v1737_v40  ;;  %2212 = vrot.lane.b32.xlu1 %v2622_v30, %s2915_s17  ;;  %2161 = vst.msk [vmem:[%s3555_s16 + $0x4c] sm:$0xf] %vm2141_vm11, %v2622_v30  ;;  %v1889_v29 = vpop.f32.mrb[43].mxu1 }
 0x240   : > { %v1874_v60 = vadd.f32 %v1873_v57, %v1713_v1  ;;  %vm1941_vm15 = vcmp.ge.f32.partialorder %v1887_v36, 0.0  ;;  %v1973_v18 = vmul.f32 0.05, %v1887_v36  ;;  %v1890_v23 = vadd.f32 %v1889_v29, %v1729_v11  ;;  %v2726_v33 = vpop.f32.mrb[44].mxu0 }
 0x241   : > { %vm1944_vm0 = vcmp.ge.f32.partialorder %v1898_v27, 0.0  ;;  %v1976_v43 = vmul.f32 0.05, %v1898_v27  ;;  %v2727_v6 = vpop.f32.mrb[45].mxu0  ;;  %v2007_v7 = vsel %vm1943_vm14, %v1895_v61, %v1975_v5  ;;  %vm1937_vm1 = vcmp.ge.f32.partialorder %v1871_v22, 0.0 }
 0x242   : > { %vm1942_vm2 = vcmp.ge.f32.partialorder %v1890_v23, 0.0  ;;  %v1974_v37 = vmul.f32 0.05, %v1890_v23  ;;  %v2728_v12 = vadd.f32 %v2727_v6, %v2726_v33  ;;  %v2729_v38 = vpop.f32.mrb[46].mxu0  ;;  %v2629_v58 = vpack.c.bf16 %v2007_v7, %v2007_v7 }
 0x243   : > { %v2730_v41 = vpop.f32.mrb[47].mxu0  ;;  %v2008_v20 = vsel %vm1944_vm0, %v1898_v27, %v1976_v43  ;;  %v2005_v46 = vsel %vm1941_vm15, %v1887_v36, %v1973_v18  ;;  %v1969_v4 = vmul.f32 0.05, %v1871_v22  ;;  %vm1938_vm3 = vcmp.ge.f32.partialorder %v1874_v60, 0.0 }
 0x244   : > { %v1718_v52 = vadd.f32 %v2728_v12, %v3541_v17  ;;  %v2731_v15 = vadd.f32 %v2730_v41, %v2729_v38  ;;  %2226 = vrot.lane.b32.xlu0 %v2629_v58, %s2915_s17  ;;  %2168 = vst.msk [vmem:[%s3555_s16 + $0x68] sm:$0xf] %vm2141_vm11, %v2629_v58  ;;  %v2808_v21 = vpop.f32.mrb[44].mxu1  ;;  %v2630_v42 = vpack.c.bf16 %v2008_v20, %v2008_v20  ;;  %v1970_v28 = vmul.f32 0.05, %v1874_v60 }
 0x245   : > { %v2627_v44 = vpack.c.bf16 %v2005_v46, %v2005_v46  ;;  %v1911_v13 = vadd.f32 %v2808_v21, %v1750_v26  ;;  %v1902_v48 = vpop.f32.mrb[45].mxu1  ;;  %v2006_v31 = vsel %vm1942_vm2, %v1890_v23, %v1974_v37  ;;  %v2001_v49 = vsel %vm1937_vm1, %v1871_v22, %v1969_v4 }
 0x246   : > { %v1879_v53 = vadd.f32 %v3629_v47, %v1718_v52  ;;  %v1721_v50 = vadd.f32 %v2731_v15, %v3541_v17  ;;  %v1903_v32 = vadd.f32 %v1902_v48, %v1742_v35  ;;  %2228 = vrot.lane.b32.xlu1 %v2630_v42, %s2915_s17  ;;  %2169 = vst.msk [vmem:[%s3555_s16 + $0x6c] sm:$0xf] %vm2141_vm11, %v2630_v42  ;;  %v2809_v57 = vpop.f32.mrb[46].mxu1 }
 0x247   : > { %2166 = vst.msk [vmem:[%s3555_s16 + $0x60] sm:$0xf] %vm2141_vm11, %v2627_v44  ;;  %v2628_v24 = vpack.c.bf16 %v2006_v31, %v2006_v31  ;;  %vm1947_vm4 = vcmp.ge.f32.partialorder %v1911_v13, 0.0  ;;  %v1979_v62 = vmul.f32 0.05, %v1911_v13  ;;  %v1914_v63 = vadd.f32 %v2809_v57, %v1753_v14  ;;  %v1905_v34 = vpop.f32.mrb[47].mxu1 }
 0x248   : > { %v2623_v16 = vpack.c.bf16 %v2001_v49, %v2001_v49  ;;  %v1882_v47 = vadd.f32 %v3632_v56, %v1721_v50  ;;  %vm1945_vm5 = vcmp.ge.f32.partialorder %v1903_v32, 0.0  ;;  %v1977_v17 = vmul.f32 0.05, %v1903_v32  ;;  %2222 = vrot.lane.b32.xlu0 %v2627_v44, %s2915_s17 }
 0x249   : > { %v1906_v2 = vadd.f32 %v1905_v34, %v1745_v39  ;;  %2167 = vst.msk [vmem:[%s3555_s16 + $0x64] sm:$0xf] %vm2141_vm11, %v2628_v24  ;;  %v2011_v3 = vsel %vm1947_vm4, %v1911_v13, %v1979_v62  ;;  %vm1948_vm6 = vcmp.ge.f32.partialorder %v1914_v63, 0.0  ;;  %v1980_v45 = vmul.f32 0.05, %v1914_v63 }
 0x24a   : > { %2162 = vst.msk [vmem:[%s3555_s16 + $0x50] sm:$0xf] %vm2141_vm11, %v2623_v16  ;;  %v2002_v51 = vsel %vm1938_vm3, %v1874_v60, %v1970_v28  ;;  %v2633_v8 = vpack.c.bf16 %v2011_v3, %v2011_v3  ;;  %2224 = vrot.lane.b32.xlu1 %v2628_v24, %s2915_s17  ;;  %v2009_v11 = vsel %vm1945_vm5, %v1903_v32, %v1977_v17  ;;  %vm1939_vm8 = vcmp.ge.f32.partialorder %v1879_v53, 0.0 }
 0x24b   : > { %vm1946_vm7 = vcmp.ge.f32.partialorder %v1906_v2, 0.0  ;;  %v1978_v10 = vmul.f32 0.05, %v1906_v2  ;;  %v2624_v56 = vpack.c.bf16 %v2002_v51, %v2002_v51  ;;  %v2012_v54 = vsel %vm1948_vm6, %v1914_v63, %v1980_v45 }
 0x24c   : > { %v1971_v9 = vmul.f32 0.05, %v1879_v53  ;;  %2172 = vst.msk [vmem:[%s3555_s16 + $0x78] sm:$0xf] %vm2141_vm11, %v2633_v8  ;;  %v2634_v55 = vpack.c.bf16 %v2012_v54, %v2012_v54  ;;  %2214 = vrot.lane.b32.xlu0 %v2623_v16, %s2915_s17  ;;  %v2631_v19 = vpack.c.bf16 %v2009_v11, %v2009_v11  ;;  %vm1940_vm9 = vcmp.ge.f32.partialorder %v1882_v47, 0.0 }
 0x24d   : > { %2163 = vst.msk [vmem:[%s3555_s16 + $0x54] sm:$0xf] %vm2141_vm11, %v2624_v56  ;;  %v2010_v40 = vsel %vm1946_vm7, %v1906_v2, %v1978_v10  ;;  %v1972_v0 = vmul.f32 0.05, %v1882_v47 }
 0x24e   : > { %v2632_v59 = vpack.c.bf16 %v2010_v40, %v2010_v40  ;;  %v2003_v61 = vsel %vm1939_vm8, %v1879_v53, %v1971_v9  ;;  %2173 = vst.msk [vmem:[%s3555_s16 + $0x7c] sm:$0xf] %vm2141_vm11, %v2634_v55  ;;  %2216 = vrot.lane.b32.xlu1 %v2624_v56, %s2915_s17  ;;  %2170 = vst.msk [vmem:[%s3555_s16 + $0x70] sm:$0xf] %vm2141_vm11, %v2631_v19 }
 0x24f   : > { %v2625_v30 = vpack.c.bf16 %v2003_v61, %v2003_v61  ;;  %v2004_v35 = vsel %vm1940_vm9, %v1882_v47, %v1972_v0 }
 0x250   : > { %2171 = vst.msk [vmem:[%s3555_s16 + $0x74] sm:$0xf] %vm2141_vm11, %v2632_v59  ;;  %2230 = vrot.lane.b32.xlu0 %v2631_v19, %s2915_s17  ;;  %v2626_v39 = vpack.c.bf16 %v2004_v35, %v2004_v35 }
 0x251   : > { %2164 = vst.msk [vmem:[%s3555_s16 + $0x58] sm:$0xf] %vm2141_vm11, %v2625_v30 }
 0x252   : > { %2232 = vrot.lane.b32.xlu1 %v2632_v59, %s2915_s17  ;;  %2165 = vst.msk [vmem:[%s3555_s16 + $0x5c] sm:$0xf] %vm2141_vm11, %v2626_v39  ;;  %vm2270_vm11 = vcmask 191488  }
 0x254   : > { %2218 = vrot.lane.b32.xlu0 %v2625_v30, %s2915_s17 }
 0x256   : > { %2220 = vrot.lane.b32.xlu1 %v2626_v39, %s2915_s17 }
 0x258   : > { %2234 = vrot.lane.b32.xlu0 %v2633_v8, %s2915_s17 }
 0x25a   : > { %2236 = vrot.lane.b32.xlu1 %v2634_v55, %s2915_s17 }
 0x286   : > { %v2179_v22 = vpop.permute.xlu0 %2178 }
 0x287   : > { %2273 = vst.msk [vmem:[%s3713_s20 + $0x8] sm:$0xf] %vm2270_vm11, %v2179_v22 }
 0x288   : > { %v2181_v1 = vpop.permute.xlu1 %2180 }
 0x289   : > { %2274 = vst.msk [vmem:[%s3713_s20 + $0xc] sm:$0xf] %vm2270_vm11, %v2181_v1 }
 0x28a   : > { %v2175_v36 = vpop.permute.xlu0 %2174 }
 0x28b   : > { %2271 = vst.msk [vmem:[%s3713_s20] sm:$0xf] %vm2270_vm11, %v2175_v36 }
 0x28c   : > { %v2177_v25 = vpop.permute.xlu1 %2176 }
 0x28d   : > { %2272 = vst.msk [vmem:[%s3713_s20 + $0x4] sm:$0xf] %vm2270_vm11, %v2177_v25 }
 0x28e   : > { %v2187_v26 = vpop.permute.xlu0 %2186 }
 0x28f   : > { %2277 = vst.msk [vmem:[%s3713_s20 + $0x18] sm:$0xf] %vm2270_vm11, %v2187_v26 }
 0x290   : > { %v2189_v5 = vpop.permute.xlu1 %2188 }
 0x291   : > { %2278 = vst.msk [vmem:[%s3713_s20 + $0x1c] sm:$0xf] %vm2270_vm11, %v2189_v5 }
 0x292   : > { %v2183_v27 = vpop.permute.xlu0 %2182 }
 0x293   : > { %2275 = vst.msk [vmem:[%s3713_s20 + $0x10] sm:$0xf] %vm2270_vm11, %v2183_v27 }
 0x294   : > { %v2185_v29 = vpop.permute.xlu1 %2184 }
 0x295   : > { %2276 = vst.msk [vmem:[%s3713_s20 + $0x14] sm:$0xf] %vm2270_vm11, %v2185_v29 }
 0x296   : > { %v2195_v14 = vpop.permute.xlu0 %2194 }
 0x297   : > { %2281 = vst.msk [vmem:[%s3713_s20 + $0x28] sm:$0xf] %vm2270_vm11, %v2195_v14 }
 0x298   : > { %v2197_v60 = vpop.permute.xlu1 %2196 }
 0x299   : > { %2282 = vst.msk [vmem:[%s3713_s20 + $0x2c] sm:$0xf] %vm2270_vm11, %v2197_v60 }
 0x29a   : > { %v2191_v18 = vpop.permute.xlu0 %2190 }
 0x29b   : > { %2279 = vst.msk [vmem:[%s3713_s20 + $0x20] sm:$0xf] %vm2270_vm11, %v2191_v18 }
 0x29c   : > { %v2193_v23 = vpop.permute.xlu1 %2192 }
 0x29d   : > { %2280 = vst.msk [vmem:[%s3713_s20 + $0x24] sm:$0xf] %vm2270_vm11, %v2193_v23 }
 0x2a0   : > { %v2199_v33 = vpop.permute.xlu0 %2198 }
 0x2a1   : > { %2283 = vst.msk [vmem:[%s3713_s20 + $0x30] sm:$0xf] %vm2270_vm11, %v2199_v33 }
 0x2a2   : > { %v2201_v43 = vpop.permute.xlu1 %2200 }
 0x2a3   : > { %2284 = vst.msk [vmem:[%s3713_s20 + $0x34] sm:$0xf] %vm2270_vm11, %v2201_v43 }
 0x2a4   : > { %v2203_v6 = vpop.permute.xlu0 %2202 }
 0x2a5   : > { %2285 = vst.msk [vmem:[%s3713_s20 + $0x38] sm:$0xf] %vm2270_vm11, %v2203_v6 }
 0x2a6   : > { %v2205_v7 = vpop.permute.xlu1 %2204 }
 0x2a7   : > { %2286 = vst.msk [vmem:[%s3713_s20 + $0x3c] sm:$0xf] %vm2270_vm11, %v2205_v7 }
 0x2aa   : > { %v2207_v37 = vpop.permute.xlu0 %2206 }
 0x2ab   : > { %2287 = vst.msk [vmem:[%s3713_s20 + $0x40] sm:$0xf] %vm2270_vm11, %v2207_v37  ;;  %v2209_v12 = vpop.permute.xlu1 %2208 }
 0x2ac   : > { %2288 = vst.msk [vmem:[%s3713_s20 + $0x44] sm:$0xf] %vm2270_vm11, %v2209_v12 }
 0x2af   : > { %v2211_v38 = vpop.permute.xlu0 %2210 }
 0x2b0   : > { %2289 = vst.msk [vmem:[%s3713_s20 + $0x48] sm:$0xf] %vm2270_vm11, %v2211_v38 }
 0x2b1   : > { %v2213_v58 = vpop.permute.xlu1 %2212 }
 0x2b2   : > { %2290 = vst.msk [vmem:[%s3713_s20 + $0x4c] sm:$0xf] %vm2270_vm11, %v2213_v58 }
 0x2b6   : > { %v2227_v41 = vpop.permute.xlu0 %2226 }
 0x2b7   : > { %2297 = vst.msk [vmem:[%s3713_s20 + $0x68] sm:$0xf] %vm2270_vm11, %v2227_v41 }
 0x2b8   : > { %v2229_v20 = vpop.permute.xlu1 %2228 }
 0x2b9   : > { %2298 = vst.msk [vmem:[%s3713_s20 + $0x6c] sm:$0xf] %vm2270_vm11, %v2229_v20 }
 0x2ba   : > { %v2223_v46 = vpop.permute.xlu0 %2222 }
 0x2bb   : > { %2295 = vst.msk [vmem:[%s3713_s20 + $0x60] sm:$0xf] %vm2270_vm11, %v2223_v46 }
 0x2bc   : > { %v2225_v4 = vpop.permute.xlu1 %2224 }
 0x2bd   : > { %2296 = vst.msk [vmem:[%s3713_s20 + $0x64] sm:$0xf] %vm2270_vm11, %v2225_v4 }
 0x2be   : > { %v2215_v52 = vpop.permute.xlu0 %2214 }
 0x2bf   : > { %2291 = vst.msk [vmem:[%s3713_s20 + $0x50] sm:$0xf] %vm2270_vm11, %v2215_v52 }
 0x2c0   : > { %v2217_v15 = vpop.permute.xlu1 %2216 }
 0x2c1   : > { %2292 = vst.msk [vmem:[%s3713_s20 + $0x54] sm:$0xf] %vm2270_vm11, %v2217_v15 }
 0x2c2   : > { %v2231_v21 = vpop.permute.xlu0 %2230 }
 0x2c3   : > { %2299 = vst.msk [vmem:[%s3713_s20 + $0x70] sm:$0xf] %vm2270_vm11, %v2231_v21 }
 0x2c4   : > { %v2233_v42 = vpop.permute.xlu1 %2232 }
 0x2c5   : > { %2300 = vst.msk [vmem:[%s3713_s20 + $0x74] sm:$0xf] %vm2270_vm11, %v2233_v42 }
 0x2c6   : > { %v2219_v44 = vpop.permute.xlu0 %2218 }
 0x2c7   : > { %2293 = vst.msk [vmem:[%s3713_s20 + $0x58] sm:$0xf] %vm2270_vm11, %v2219_v44 }
 0x2c8   : > { %v2221_v13 = vpop.permute.xlu1 %2220 }
 0x2c9   : > { %2294 = vst.msk [vmem:[%s3713_s20 + $0x5c] sm:$0xf] %vm2270_vm11, %v2221_v13 }
 0x2ca   : > { %v2235_v48 = vpop.permute.xlu0 %2234 }
 0x2cb   : > { %2301 = vst.msk [vmem:[%s3713_s20 + $0x78] sm:$0xf] %vm2270_vm11, %v2235_v48 }
 0x2cc   : > { %v2237_v31 = vpop.permute.xlu1 %2236 }
 0x2cd   : > { %2302 = vst.msk [vmem:[%s3713_s20 + $0x7c] sm:$0xf] %vm2270_vm11, %v2237_v31 }
 0x2ce PF: > { %s17_s23 = sadd.s32 1, %s2910_s23   ;;  %s3797_s21 = smov %s2906_s22 }
 0x2cf   : > { %p14_p5 = scmp.ge.s32.totalorder %s17_s23, 4   ;;  %s3798_s22 = smov %s3800_s24 }
 0x2d1   :  { %16 = sbr.rel (!%p14_p5) target bundleno = 2 (0x2), region = 88 }

// kernel: colornet_forward.25
= control target key start
LH: loop header
LB: loop body
LE: loop exit
PB: predicated region body
PF: predicated region fallthrough
CT: control target
= control target key end

     0   :  { %s2586_s21 = smov 0   ;;  %s2588_s22 = smov 0   ;;  %s3378_s0 = inlined_call_operand.vmem [shape: bf16[2,16,16,24], index: 0, kind: input, shape index: {}, may-alias: {0,1,2}]   ;;  %s3379_s1 = inlined_call_operand.vmem [shape: bf16[2,16,16,24], index: 1, kind: input, shape index: {}, may-alias: {0,1,2}]   ;;  %s3380_s2 = inlined_call_operand.vmem [shape: bf16[2,16,16,24], index: 2, kind: input, shape index: {}, may-alias: {0,1,2}]   ;;  %s3381_s3 = inlined_call_operand.vmem [shape: bf16[216,32], index: 3, kind: input, shape index: {}]   ;;  %s3382_s4 = inlined_call_operand.vmem [shape: f32[1,32], index: 4, kind: input, shape index: {}]   ;;  %s3383_s5 = inlined_call_operand.vmem [shape: bf16[2,16,16,8], index: 5, kind: output, shape index: {0}]   ;;  %s3384_s6 = inlined_call_operand.vmem [shape: bf16[2,16,16,24], index: 6, kind: output, shape index: {1}]  }
   0x1   :  { %s2590_s23 = smov 0  }
   0x2 LB: > { %s29_s24 = sadd.s32 1, %s2539_s22  ;;  %p2294_p0 = scmp.ge.s32.totalorder %s2543_s23, 1  ;;  %s2543_s23 = sphi %s2590_s23, %s17_s23   ;;  %s2539_s22 = sphi %s2588_s22, %s3388_s22   ;;  %s2535_s21 = sphi %s2586_s21, %s3387_s21  }
   0x3   : > { %p31_p1 = scmp.ge.s32.totalorder %s29_s24, 2  ;;  %p303_p2 = scmp.lt.s32.totalorder %s2543_s23, 3 }
   0x5   : > { %s3390_s24 = smov (%p31_p1, %s29_s24), 0  ;;  %p304_p3 = pnand %p2294_p0, %p303_p2 }
   0x6   : > { %p383_p4 = scmp.lt.s32.totalorder (!%p304_p3), %s2535_s21, 1  ;;  %vm741_vm0 = vcmask (!%p304_p3), 1040384   ;;  %vm742_vm1 = vsmask.f32 (!%p304_p3), 256  ;;  %vm1069_vm2 = vcmask (!%p304_p3), 1046528   ;;  %s2545_s29 = smov (!%p304_p3), 48  }
   0x7   : > { %307 = sbr.rel (%p304_p3) target bundleno = 677 (0x2a5), region = 40  ;;  %vm2614_vm3 = vmand (!%p304_p3), %vm741_vm0, %vm742_vm1  ;;  %vm780_vm4 = vsmask.f32 (!%p304_p3), 7424  ;;  %s2546_s30 = smov (!%p304_p3), 24   ;;  %vm1545_vm5 = vcmask (!%p304_p3), 1043456   ;;  %vm1160_vm6 = vcmask (!%p304_p3), 195584  }
   0x8   : > { %vm1197_vm7 = vcmask (!%p304_p3), 392192   ;;  %s2548_s26 = smov (!%p304_p3), 72   ;;  %s2549_s27 = smov (!%p304_p3), 16   ;;  %vm1364_vm8 = vcmask (!%p304_p3), 130048   ;;  %vm1512_vm9 = vcmask (!%p304_p3), 719872   ;;  %vm1315_vm10 = vcmask (!%p304_p3), 588800  }
   0x9   : > { %vm1934_vm13 = vcmask (!%p304_p3), 60416   ;;  %s2550_s9 = smov (!%p304_p3), 120  }
   0xe   : > { %s3392_s21 = smov (!%p383_p4, %s2535_s21), 1 }
   0xf   : > { %s2604_s25 = sshll.u32 %s3392_s21, 7 }
  0x10   : > { %s2610_s28 = scalar_lea.vmem %s3379_s1, %s2604_s25  ;;  %s2389_s7 = sadd.s32 120, %s2604_s25 }
  0x11   : > { %v2491_v0 = vld [vmem:[%s2610_s28 + $0x8] sm:$0xff]   ;;  %v2492_v1 = vld [vmem:[%s2610_s28] sm:$0xff]   ;;  %v2495_v10 = vld [vmem:[%s2610_s28 + $0x50] sm:$0xff]   ;;  %s419_s10 = scalar_lea.vmem %s3380_s2, %s2389_s7  ;;  %s391_s13 = scalar_lea.vmem %s3378_s0, %s2604_s25 }
  0x12   : > { %v594_v2 = vshrl.u32 %v2491_v0, 16  ;;  %v597_v3 = vshll.u32 %v2491_v0, 16  ;;  %v587_v5 = vshrl.u32 %v2492_v1, 16  ;;  %v590_v6 = vshll.u32 %v2492_v1, 16  ;;  %v2493_v7 = vld [vmem:[%s2610_s28 + $0x48] sm:$0xff]   ;;  %v2494_v8 = vld [vmem:[%s2610_s28 + $0x40] sm:$0xff]   ;;  %s3171_s8 = scalar_lea.vmem %s3383_s5, %s2604_s25  ;;  %s3303_s12 = scalar_lea.vmem %s3384_s6, %s2604_s25 }
  0x13   : > { %v650_v12 = vshrl.u32 %v2493_v7, 16  ;;  %v653_v13 = vshll.u32 %v2493_v7, 16  ;;  %v643_v14 = vshrl.u32 %v2494_v8, 16  ;;  %v646_v17 = vshll.u32 %v2494_v8, 16  ;;  %v2496_v31 = vld [vmem:[%s2610_s28 + $0x10] sm:$0xff]  }
  0x14   : > { %v596_v9 = vrot.slane %v594_v2, 7  ;;  %v589_v11 = vrot.slane %v587_v5, 7  ;;  %v657_v18 = vshrl.u32 %v2495_v10, 16  ;;  %v660_v39 = vshll.u32 %v2495_v10, 16 }
  0x15   : > { %v652_v22 = vrot.slane %v650_v12, 7  ;;  %v645_v25 = vrot.slane %v643_v14, 7  ;;  %v601_v47 = vshrl.u32 %v2496_v31, 16  ;;  %v604_v49 = vshll.u32 %v2496_v31, 16 }
  0x16   : > { %v599_v15 = vor.u32 %v597_v3, %v596_v9  ;;  %v2623_v16 = vsel %vm2614_vm3, %v596_v9, 0  ;;  %v592_v20 = vor.u32 %v590_v6, %v589_v11  ;;  %v763_v21 = vsel %vm2614_vm3, %v589_v11, 0  ;;  %v2497_v9 = vld [vmem:[%s2610_s28 + $0x18] sm:$0xff]  }
  0x17   : > { %v1077_v19 = vrot.slane %v2623_v16, 1  ;;  %v1074_v24 = vrot.slane %v763_v21, 1  ;;  %v659_v26 = vrot.slane %v657_v18, 7  ;;  %v655_v29 = vor.u32 %v653_v13, %v652_v22 }
  0x18   : > { %v2630_v23 = vsel %vm2614_vm3, 0, %v599_v15  ;;  %v2635_v28 = vsel %vm2614_vm3, 0, %v592_v20  ;;  %v772_v30 = vsel %vm2614_vm3, %v652_v22, 0  ;;  %v648_v34 = vor.u32 %v646_v17, %v645_v25 }
  0x19   : > { %v1076_v27 = vrot.slane %v2630_v23, 1  ;;  %v1073_v32 = vrot.slane %v2635_v28, 1  ;;  %v1101_v33 = vrot.slane %v772_v30, 1  ;;  %v771_v35 = vsel %vm2614_vm3, %v645_v25, 0 }
  0x1a   : > { %v2646_v37 = vsel %vm2614_vm3, 0, %v655_v29  ;;  %v1098_v38 = vrot.slane %v771_v35, 1  ;;  %v2653_v42 = vsel %vm2614_vm3, 0, %v648_v34  ;;  %v2657_v43 = vsel %vm2614_vm3, %v659_v26, 0 }
  0x1b   : > { %v1078_v36 = vsel %vm1069_vm2, %v1076_v27, %v1077_v19  ;;  %v1075_v40 = vsel %vm1069_vm2, %v1073_v32, %v1074_v24  ;;  %v1100_v41 = vrot.slane %v2646_v37, 1  ;;  %v1097_v44 = vrot.slane %v2653_v42, 1  ;;  %v2498_v19 = vld [vmem:[%s2610_s28 + $0x58] sm:$0xff]  }
  0x1c   : > { %1128 = vrot.lane.b32.xlu1 %v1078_v36, %s2545_s29  ;;  %1126 = vrot.lane.b32.xlu0 %v1075_v40, %s2545_s29  ;;  %v662_v45 = vor.u32 %v660_v39, %v659_v26  ;;  %v1104_v46 = vrot.slane %v2657_v43, 1  ;;  %v890_v50 = vshrl.u32 %v2653_v42, 16  ;;  %v892_v51 = vshll.u32 %v2653_v42, 16 }
  0x1d   : > { %v1102_v48 = vsel %vm1069_vm2, %v1100_v41, %v1101_v33  ;;  %v1099_v52 = vsel %vm1069_vm2, %v1097_v44, %v1098_v38  ;;  %v603_v54 = vrot.slane %v601_v47, 7  ;;  %v897_v55 = vshll.u32 %v771_v35, 16 }
  0x1e   : > { %v2668_v53 = vsel %vm2614_vm3, 0, %v662_v45  ;;  %v894_v57 = vrot.slane %v892_v51, 1  ;;  %v794_v58 = vshrl.u32 %v2635_v28, 16  ;;  %v796_v59 = vshll.u32 %v2635_v28, 16 }
  0x1f   : > { %v1103_v56 = vrot.slane %v2668_v53, 1  ;;  %v606_v60 = vor.u32 %v604_v49, %v603_v54  ;;  %v765_v61 = vsel %vm2614_vm3, %v603_v54, 0  ;;  %v899_v62 = vrot.slane %v897_v55, 1 }
  0x20   : > { %1144 = vrot.lane.b32.xlu1 %v1102_v48, %s2545_s29  ;;  %1142 = vrot.lane.b32.xlu0 %v1099_v52, %s2545_s29  ;;  %v801_v63 = vshll.u32 %v763_v21, 16  ;;  %v1080_v1 = vrot.slane %v765_v61, 1  ;;  %v895_v2 = vor.u32 %v894_v57, %v890_v50  ;;  %v798_v3 = vrot.slane %v796_v59, 1  ;;  %v2500_v52 = vld [vmem:[%s2610_s28 + $0x60] sm:$0xff]  }
  0x21   : > { %v1105_v0 = vsel %vm1069_vm2, %v1103_v56, %v1104_v46  ;;  %v2680_v5 = vsel %vm2614_vm3, 0, %v606_v60  ;;  %v902_v7 = vshrl.u32 %v2646_v37, 16  ;;  %v904_v8 = vshll.u32 %v2646_v37, 16 }
  0x22   : > { %v803_v6 = vrot.slane %v801_v63, 1  ;;  %v1079_v10 = vrot.slane %v2680_v5, 1  ;;  %v900_v11 = vsel %vm780_vm4, %v895_v2, %v899_v62  ;;  %v799_v12 = vor.u32 %v798_v3, %v794_v58 }
  0x23   : > { %v909_v13 = vshll.u32 %v772_v30, 16  ;;  %v906_v14 = vrot.slane %v904_v8, 1  ;;  %v806_v15 = vshrl.u32 %v2630_v23, 16  ;;  %v808_v17 = vshll.u32 %v2630_v23, 16  ;;  %v2499_v30 = vld [vmem:[%s2610_s28 + $0x20] sm:$0xff]  }
  0x24   : > { %1146 = vrot.lane.b32.xlu1 %v1105_v0, %s2545_s29  ;;  %v813_v18 = vshll.u32 %v2623_v16, 16  ;;  %v1081_v20 = vsel %vm1069_vm2, %v1079_v10, %v1080_v1  ;;  %v804_v21 = vsel %vm780_vm4, %v799_v12, %v803_v6  ;;  %v914_v24 = vshrl.u32 %v2668_v53, 16 }
  0x25   : > { %v911_v22 = vrot.slane %v909_v13, 1  ;;  %1130 = vrot.lane.b32.xlu0 %v1081_v20, %s2545_s29  ;;  %v907_v25 = vor.u32 %v906_v14, %v902_v7  ;;  %v810_v26 = vrot.slane %v808_v17, 1  ;;  %v916_v29 = vshll.u32 %v2668_v53, 16 }
  0x26   : > { %v815_v27 = vrot.slane %v813_v18, 1  ;;  %v921_v16 = vshll.u32 %v2657_v43, 16  ;;  %v818_v31 = vshrl.u32 %v2680_v5, 16  ;;  %v820_v32 = vshll.u32 %v2680_v5, 16 }
  0x27   : > { %v825_v33 = vshll.u32 %v765_v61, 16  ;;  %v912_v34 = vsel %vm780_vm4, %v907_v25, %v911_v22  ;;  %v811_v35 = vor.u32 %v810_v26, %v806_v15  ;;  %v918_v36 = vrot.slane %v916_v29, 1 }
  0x28   : > { %1015 = vrot.lane.b32.xlu1 %v900_v11, %s2546_s30  ;;  %v608_v38 = vshrl.u32 %v2497_v9, 16  ;;  %v923_v39 = vrot.slane %v921_v16, 1  ;;  %v822_v40 = vrot.slane %v820_v32, 1  ;;  %v611_v44 = vshll.u32 %v2497_v9, 16 }
  0x29   : > { %v827_v41 = vrot.slane %v825_v33, 1  ;;  %999 = vrot.lane.b32.xlu0 %v804_v21, %s2546_s30  ;;  %v816_v45 = vsel %vm780_vm4, %v811_v35, %v815_v27  ;;  %v919_v43 = vor.u32 %v918_v36, %v914_v24  ;;  %v664_v47 = vshrl.u32 %v2498_v19, 16  ;;  %v2501_v24 = vld [vmem:[%s2610_s28 + $0x28] sm:$0xff]  }
  0x2a   : > { %v610_v46 = vrot.slane %v608_v38, 7  ;;  %v823_v48 = vor.u32 %v822_v40, %v818_v31  ;;  %v667_v49 = vshll.u32 %v2498_v19, 16  ;;  %v615_v50 = vshrl.u32 %v2499_v30, 16  ;;  %v2502_v38 = vld [vmem:[%s2610_s28 + $0x68] sm:$0xff]  }
  0x2b   : > { %v618_v51 = vshll.u32 %v2499_v30, 16  ;;  %v924_v54 = vsel %vm780_vm4, %v919_v43, %v923_v39  ;;  %v666_v57 = vrot.slane %v664_v47, 7  ;;  %v671_v9 = vshrl.u32 %v2500_v52, 16 }
  0x2c   : > { %1017 = vrot.lane.b32.xlu1 %v912_v34, %s2546_s30  ;;  %v613_v55 = vor.u32 %v611_v44, %v610_v46  ;;  %v766_v56 = vsel %vm2614_vm3, %v610_v46, 0  ;;  %v617_v59 = vrot.slane %v615_v50, 7  ;;  %v828_v60 = vsel %vm780_vm4, %v823_v48, %v827_v41 }
  0x2d   : > { %v837_v58 = vshll.u32 %v766_v56, 16  ;;  %1001 = vrot.lane.b32.xlu0 %v816_v45, %s2546_s30  ;;  %v669_v62 = vor.u32 %v667_v49, %v666_v57  ;;  %v774_v63 = vsel %vm2614_vm3, %v666_v57, 0  ;;  %v1083_v3 = vrot.slane %v766_v56, 1  ;;  %v2503_v45 = vld [vmem:[%s2610_s28 + $0x30] sm:$0xff]  }
  0x2e   : > { %v2714_v61 = vsel %vm2614_vm3, 0, %v613_v55  ;;  %v933_v2 = vshll.u32 %v774_v63, 16  ;;  %v620_v8 = vor.u32 %v618_v51, %v617_v59  ;;  %v1107_v15 = vrot.slane %v774_v63, 1  ;;  %v2755_v49 = vld [vmem:[%s2610_s28 + $0x70] sm:$0xff]  }
  0x2f   : > { %v830_v0 = vshrl.u32 %v2714_v61, 16  ;;  %v832_v1 = vshll.u32 %v2714_v61, 16  ;;  %v839_v6 = vrot.slane %v837_v58, 1  ;;  %v2723_v7 = vsel %vm2614_vm3, 0, %v669_v62 }
  0x30   : > { %1019 = vrot.lane.b32.xlu1 %v924_v54, %s2546_s30  ;;  %v926_v11 = vshrl.u32 %v2723_v7, 16  ;;  %v928_v12 = vshll.u32 %v2723_v7, 16  ;;  %v1082_v13 = vrot.slane %v2714_v61, 1  ;;  %v935_v14 = vrot.slane %v933_v2, 1 }
  0x31   : > { %v834_v10 = vrot.slane %v832_v1, 1  ;;  %1003 = vrot.lane.b32.xlu0 %v828_v60, %s2546_s30  ;;  %v2731_v17 = vsel %vm2614_vm3, 0, %v620_v8  ;;  %v767_v18 = vsel %vm2614_vm3, %v617_v59, 0  ;;  %v1106_v25 = vrot.slane %v2723_v7, 1 }
  0x32   : > { %v930_v20 = vrot.slane %v928_v12, 1  ;;  %v842_v21 = vshrl.u32 %v2731_v17, 16  ;;  %v844_v22 = vshll.u32 %v2731_v17, 16  ;;  %v849_v26 = vshll.u32 %v767_v18, 16 }
  0x33   : > { %v835_v19 = vor.u32 %v834_v10, %v830_v0  ;;  %v673_v27 = vrot.slane %v671_v9, 7  ;;  %v674_v29 = vshll.u32 %v2500_v52, 16  ;;  %v1085_v32 = vrot.slane %v2731_v17, 1 }
  0x34   : > { %v931_v16 = vor.u32 %v930_v20, %v926_v11  ;;  %v846_v31 = vrot.slane %v844_v22, 1  ;;  %v1084_v33 = vsel %vm1069_vm2, %v1082_v13, %v1083_v3  ;;  %v1086_v36 = vrot.slane %v767_v18, 1 }
  0x35   : > { %v840_v30 = vsel %vm780_vm4, %v835_v19, %v839_v6  ;;  %v676_v34 = vor.u32 %v674_v29, %v673_v27  ;;  %v775_v35 = vsel %vm2614_vm3, %v673_v27, 0  ;;  %v851_v41 = vrot.slane %v849_v26, 1 }
  0x36   : > { %1005 = vrot.lane.b32.xlu0 %v840_v30, %s2546_s30  ;;  %v936_v39 = vsel %vm780_vm4, %v931_v16, %v935_v14  ;;  %v847_v40 = vor.u32 %v846_v31, %v842_v21  ;;  %v945_v44 = vshll.u32 %v775_v35, 16  ;;  %v1108_v43 = vsel %vm1069_vm2, %v1106_v25, %v1107_v15 }
  0x37   : > { %1021 = vrot.lane.b32.xlu1 %v936_v39, %s2546_s30  ;;  %v2752_v46 = vsel %vm2614_vm3, 0, %v676_v34  ;;  %v622_v47 = vshrl.u32 %v2501_v24, 16  ;;  %v625_v48 = vshll.u32 %v2501_v24, 16  ;;  %v1087_v52 = vsel %vm1069_vm2, %v1085_v32, %v1086_v36  ;;  %v2505_v39 = vld [vmem:[%s2610_s28 + $0x38] sm:$0xff]  }
  0x38   : > { %v938_v50 = vshrl.u32 %v2752_v46, 16  ;;  %v940_v51 = vshll.u32 %v2752_v46, 16  ;;  %v1110_v54 = vrot.slane %v775_v35, 1  ;;  %v1109_v55 = vrot.slane %v2752_v46, 1 }
  0x39   : > { %v624_v56 = vrot.slane %v622_v47, 7  ;;  %v678_v57 = vshrl.u32 %v2502_v38, 16  ;;  %v681_v58 = vshll.u32 %v2502_v38, 16  ;;  %v852_v59 = vsel %vm780_vm4, %v847_v40, %v851_v41 }
  0x3a   : > { %1132 = vrot.lane.b32.xlu0 %v1084_v33, %s2545_s29  ;;  %v942_v60 = vrot.slane %v940_v51, 1  ;;  %v947_v62 = vrot.slane %v945_v44, 1  ;;  %v629_v63 = vshrl.u32 %v2503_v45, 16  ;;  %v685_v3 = vshrl.u32 %v2755_v49, 16 }
  0x3b   : > { %1148 = vrot.lane.b32.xlu1 %v1108_v43, %s2545_s29  ;;  %v627_v0 = vor.u32 %v625_v48, %v624_v56  ;;  %v768_v1 = vsel %vm2614_vm3, %v624_v56, 0  ;;  %v680_v2 = vrot.slane %v678_v57, 7  ;;  %v1111_v8 = vsel %vm1069_vm2, %v1109_v55, %v1110_v54  ;;  %v2506_v54 = vld [vmem:[%s2610_s28 + $0x78] sm:$0xff]  }
  0x3c   : > { %v943_v6 = vor.u32 %v942_v60, %v938_v50  ;;  %v861_v9 = vshll.u32 %v768_v1, 16  ;;  %v632_v10 = vshll.u32 %v2503_v45, 16  ;;  %v631_v14 = vrot.slane %v629_v63, 7 }
  0x3d   : > { %v2771_v11 = vsel %vm2614_vm3, 0, %v627_v0  ;;  %v683_v12 = vor.u32 %v681_v58, %v680_v2  ;;  %v776_v13 = vsel %vm2614_vm3, %v680_v2, 0  ;;  %v1089_v20 = vrot.slane %v768_v1, 1 }
  0x3e   : > { %1007 = vrot.lane.b32.xlu0 %v852_v59, %s2546_s30  ;;  %v948_v15 = vsel %vm780_vm4, %v943_v6, %v947_v62  ;;  %v854_v18 = vshrl.u32 %v2771_v11, 16  ;;  %v856_v19 = vshll.u32 %v2771_v11, 16  ;;  %v863_v21 = vrot.slane %v861_v9, 1  ;;  %v2429_v59 = vld [vmem:[%s419_s10] sm:$0xff]  }
  0x3f   : > { %1023 = vrot.lane.b32.xlu1 %v948_v15, %s2546_s30  ;;  %v2781_v22 = vsel %vm2614_vm3, 0, %v683_v12  ;;  %v957_v24 = vshll.u32 %v776_v13, 16  ;;  %v687_v25 = vrot.slane %v685_v3, 7  ;;  %v1088_v30 = vrot.slane %v2771_v11, 1 }
  0x40   : > { %v858_v26 = vrot.slane %v856_v19, 1  ;;  %v950_v27 = vshrl.u32 %v2781_v22, 16  ;;  %v952_v29 = vshll.u32 %v2781_v22, 16  ;;  %v1112_v16 = vrot.slane %v2781_v22, 1 }
  0x41   : > { %v1113_v31 = vrot.slane %v776_v13, 1  ;;  %v634_v32 = vor.u32 %v632_v10, %v631_v14  ;;  %v769_v33 = vsel %vm2614_vm3, %v631_v14, 0  ;;  %v959_v36 = vrot.slane %v957_v24, 1 }
  0x42   : > { %1134 = vrot.lane.b32.xlu0 %v1087_v52, %s2545_s29  ;;  %v859_v34 = vor.u32 %v858_v26, %v854_v18  ;;  %v954_v35 = vrot.slane %v952_v29, 1  ;;  %v873_v38 = vshll.u32 %v769_v33, 16  ;;  %v688_v41 = vshll.u32 %v2755_v49, 16 }
  0x43   : > { %1150 = vrot.lane.b32.xlu1 %v1111_v8, %s2545_s29  ;;  %v2795_v40 = vsel %vm2614_vm3, 0, %v634_v32  ;;  %v777_v44 = vsel %vm2614_vm3, %v687_v25, 0  ;;  %v1090_v50 = vsel %vm1069_vm2, %v1088_v30, %v1089_v20  ;;  %v1114_v49 = vsel %vm1069_vm2, %v1112_v16, %v1113_v31 }
  0x44   : > { %v864_v45 = vsel %vm780_vm4, %v859_v34, %v863_v21  ;;  %v955_v43 = vor.u32 %v954_v35, %v950_v27  ;;  %v866_v47 = vshrl.u32 %v2795_v40, 16  ;;  %v868_v48 = vshll.u32 %v2795_v40, 16 }
  0x45   : > { %v875_v51 = vrot.slane %v873_v38, 1  ;;  %v690_v52 = vor.u32 %v688_v41, %v687_v25  ;;  %v969_v57 = vshll.u32 %v777_v44, 16  ;;  %v636_v58 = vshrl.u32 %v2505_v39, 16  ;;  %v2425_v25 = vld [vmem:[%s391_s13] sm:$0xff]  }
  0x46   : > { %1009 = vrot.lane.b32.xlu0 %v864_v45, %s2546_s30  ;;  %v960_v55 = vsel %vm780_vm4, %v955_v43, %v959_v36  ;;  %v870_v56 = vrot.slane %v868_v48, 1  ;;  %v1091_v62 = vrot.slane %v2795_v40, 1  ;;  %v1092_v63 = vrot.slane %v769_v33, 1 }
  0x47   : > { %1025 = vrot.lane.b32.xlu1 %v960_v55, %s2546_s30  ;;  %v2814_v60 = vsel %vm2614_vm3, 0, %v690_v52  ;;  %v639_v0 = vshll.u32 %v2505_v39, 16  ;;  %v1116_v6 = vrot.slane %v777_v44, 1  ;;  %v638_v8 = vrot.slane %v636_v58, 7 }
  0x48   : > { %v871_v1 = vor.u32 %v870_v56, %v866_v47  ;;  %v962_v2 = vshrl.u32 %v2814_v60, 16  ;;  %v964_v3 = vshll.u32 %v2814_v60, 16  ;;  %v692_v9 = vshrl.u32 %v2506_v54, 16 }
  0x49   : > { %v695_v10 = vshll.u32 %v2506_v54, 16  ;;  %v2430_v12 = vunpack.c.l.bf16 %v2429_v59  ;;  %v971_v15 = vrot.slane %v969_v57, 1  ;;  %v2431_v18 = vunpack.c.h.bf16 %v2429_v59 }
  0x4a   : > { %1136 = vrot.lane.b32.xlu0 %v1090_v50, %s2545_s29  ;;  %v876_v13 = vsel %vm780_vm4, %v871_v1, %v875_v51  ;;  %v966_v14 = vrot.slane %v964_v3, 1  ;;  %v1115_v19 = vrot.slane %v2814_v60, 1  ;;  %v641_v20 = vor.u32 %v639_v0, %v638_v8 }
  0x4b   : > { %1152 = vrot.lane.b32.xlu1 %v1114_v49, %s2545_s29  ;;  %v770_v21 = vsel %vm2614_vm3, %v638_v8, 0  ;;  %v694_v24 = vrot.slane %v692_v9, 7  ;;  %v1093_v27 = vsel %vm1069_vm2, %v1091_v62, %v1092_v63  ;;  %v496_v30 = vmul.f32 0.0, %v2430_v12 }
  0x4c   : > { %v967_v26 = vor.u32 %v966_v14, %v962_v2  ;;  %v885_v29 = vshll.u32 %v770_v21, 16  ;;  %v2833_v16 = vsel %vm2614_vm3, 0, %v641_v20  ;;  %v497_v33 = vmul.f32 0.0, %v2431_v18 }
  0x4d   : > { %v697_v31 = vor.u32 %v695_v10, %v694_v24  ;;  %v778_v32 = vsel %vm2614_vm3, %v694_v24, 0  ;;  %v878_v35 = vshrl.u32 %v2833_v16, 16  ;;  %v880_v36 = vshll.u32 %v2833_v16, 16 }
  0x4e   : > { %1011 = vrot.lane.b32.xlu0 %v876_v13, %s2546_s30  ;;  %v972_v34 = vsel %vm780_vm4, %v967_v26, %v971_v15  ;;  %v2426_v38 = vunpack.c.l.bf16 %v2425_v25  ;;  %v1117_v39 = vsel %vm1069_vm2, %v1115_v19, %v1116_v6  ;;  %v981_v44 = vshll.u32 %v778_v32, 16 }
  0x4f   : > { %1027 = vrot.lane.b32.xlu1 %v972_v34, %s2546_s30  ;;  %v2844_v41 = vsel %vm2614_vm3, 0, %v697_v31  ;;  %v882_v45 = vrot.slane %v880_v36, 1  ;;  %v887_v43 = vrot.slane %v885_v29, 1  ;;  %v1094_v50 = vrot.slane %v2833_v16, 1 }
  0x50   : > { %v974_v47 = vshrl.u32 %v2844_v41, 16  ;;  %v976_v48 = vshll.u32 %v2844_v41, 16  ;;  %v1095_v49 = vrot.slane %v770_v21, 1  ;;  %v498_v51 = vpack.c.bf16 %v497_v33, %v496_v30 }
  0x51   : > { %v2427_v52 = vunpack.c.h.bf16 %v2425_v25  ;;  %v883_v54 = vor.u32 %v882_v45, %v878_v35  ;;  %v983_v56 = vrot.slane %v981_v44, 1  ;;  %v488_v57 = vmul.f32 0.0, %v2426_v38 }
  0x52   : > { %1138 = vrot.lane.b32.xlu0 %v1093_v27, %s2545_s29  ;;  %v978_v55 = vrot.slane %v976_v48, 1  ;;  %v699_v58 = vshrl.u32 %v498_v51, 16  ;;  %v702_v59 = vshll.u32 %v498_v51, 16  ;;  %v1118_v1 = vrot.slane %v2844_v41, 1  ;;  %v2507_v27 = vld [vmem:[%s3381_s3] sm:$0xff]   ;;  %v2509_v51 = vld [vmem:[%s3381_s3 + $0x10] sm:$0xff]  }
  0x53   : > { %1154 = vrot.lane.b32.xlu1 %v1117_v39, %s2545_s29  ;;  %v489_v62 = vmul.f32 0.0, %v2427_v52  ;;  %v888_v63 = vsel %vm780_vm4, %v883_v54, %v887_v43  ;;  %v1119_v2 = vrot.slane %v778_v32, 1  ;;  %v1096_v9 = vsel %vm1069_vm2, %v1094_v50, %v1095_v49  ;;  %v2508_v39 = vld [vmem:[%s3381_s3 + $0x8] sm:$0xff]  }
  0x54   : > { %v979_v0 = vor.u32 %v978_v55, %v974_v47  ;;  %v701_v3 = vrot.slane %v699_v58, 7  ;;  %v2547_v36 = vmov 0   ;;  %v2510_v55 = vld [vmem:[%s3381_s3 + $0x18] sm:$0xff]   ;;  %v2513_v58 = vld [vmem:[%s3381_s3 + $0x30] sm:$0xff]  }
  0x55   : > { %v490_v6 = vpack.c.bf16 %v489_v62, %v488_v57  ;;  %v1120_v15 = vsel %vm1069_vm2, %v1118_v1, %v1119_v2  ;;  %1549 = vmatprep.subr.bf16.mxu0 %v2547_v36  ;;  %2433 = vmatprep.subr.bf16.mxu1 %v2547_v36  ;;  %v2512_v57 = vld [vmem:[%s3381_s3 + $0x28] sm:$0xff]   ;;  %v2515_v62 = vld [vmem:[%s3381_s3 + $0x40] sm:$0xff]   ;;  %v2518_v1 = vld [vmem:[%s3381_s3 + $0x58] sm:$0xff]  }
  0x56   : > { %1013 = vrot.lane.b32.xlu0 %v888_v63, %s2546_s30  ;;  %v984_v8 = vsel %vm780_vm4, %v979_v0, %v983_v56  ;;  %v704_v10 = vor.u32 %v702_v59, %v701_v3  ;;  %v779_v12 = vsel %vm2614_vm3, %v701_v3, 0  ;;  %1550 = vmatpush1.bf16.msra.mxu0 %v2507_v27  ;;  %v2511_v56 = vld [vmem:[%s3381_s3 + $0x20] sm:$0xff]   ;;  %v2514_v59 = vld [vmem:[%s3381_s3 + $0x38] sm:$0xff]   ;;  %v2516_v63 = vld [vmem:[%s3381_s3 + $0x48] sm:$0xff]  }
  0x57   : > { %1029 = vrot.lane.b32.xlu1 %v984_v8, %s2546_s30  ;;  %v580_v13 = vshrl.u32 %v490_v6, 16  ;;  %v583_v14 = vshll.u32 %v490_v6, 16  ;;  %v993_v18 = vshll.u32 %v779_v12, 16  ;;  %v1122_v19 = vrot.slane %v779_v12, 1  ;;  %2447 = vmatpush1.bf16.msra.mxu1 %v2507_v27  ;;  %v2517_v0 = vld [vmem:[%s3381_s3 + $0x50] sm:$0xff]   ;;  %v2519_v2 = vld [vmem:[%s3381_s3 + $0x60] sm:$0xff]  }
  0x58   : > { %v2863_v20 = vsel %vm2614_vm3, 0, %v704_v10  ;;  %1551 = vmatprep.subr.bf16.mxu0 %v2547_v36  ;;  %2434 = vmatprep.subr.bf16.mxu1 %v2547_v36 }
  0x59   : > { %v582_v21 = vrot.slane %v580_v13, 7  ;;  %v986_v24 = vshrl.u32 %v2863_v20, 16  ;;  %v988_v25 = vshll.u32 %v2863_v20, 16  ;;  %v1121_v26 = vrot.slane %v2863_v20, 1 }
  0x5a   : > { %1140 = vrot.lane.b32.xlu0 %v1096_v9, %s2545_s29  ;;  %v995_v29 = vrot.slane %v993_v18, 1  ;;  %1552 = vmatpush1.bf16.msra.mxu0 %v2508_v39  ;;  %v2520_v9 = vld [vmem:[%s3381_s3 + $0x68] ss:$0 sps:$4 sm:$0xff]  }
  0x5b   : > { %1156 = vrot.lane.b32.xlu1 %v1120_v15, %s2545_s29  ;;  %v585_v30 = vor.u32 %v583_v14, %v582_v21  ;;  %v762_v31 = vsel %vm2614_vm3, %v582_v21, 0  ;;  %v990_v32 = vrot.slane %v988_v25, 1  ;;  %v1123_v33 = vsel %vm1069_vm2, %v1121_v26, %v1122_v19  ;;  %2448 = vmatpush1.bf16.msra.mxu1 %v2508_v39 }
  0x5c   : > { %v1071_v34 = vrot.slane %v762_v31, 1  ;;  %v789_v35 = vshll.u32 %v762_v31, 16  ;;  %1553 = vmatprep.subr.bf16.mxu0 %v2547_v36  ;;  %2435 = vmatprep.subr.bf16.mxu1 %v2547_v36  ;;  %v1547_v12 = vsel %vm1545_vm5, %v2520_v9, 0 }
  0x5d   : > { %v2879_v38 = vsel %vm2614_vm3, 0, %v585_v30  ;;  %v991_v44 = vor.u32 %v990_v32, %v986_v24 }
  0x5e   : > { %v1070_v45 = vrot.slane %v2879_v38, 1  ;;  %v782_v43 = vshrl.u32 %v2879_v38, 16  ;;  %v784_v47 = vshll.u32 %v2879_v38, 16  ;;  %v791_v49 = vrot.slane %v789_v35, 1  ;;  %1554 = vmatpush1.bf16.msra.mxu0 %v2509_v51 }
  0x5f   : > { %1158 = vrot.lane.b32.xlu1 %v1123_v33, %s2545_s29  ;;  %v996_v4 = vsel %vm780_vm4, %v991_v44, %v995_v29  ;;  %2449 = vmatpush1.bf16.msra.mxu1 %v2509_v51 }
  0x60   : > { %v1072_v48 = vsel %vm1069_vm2, %v1070_v45, %v1071_v34  ;;  %v786_v50 = vrot.slane %v784_v47, 1  ;;  %1031 = vrot.lane.b32.xlu0 %v996_v4, %s2546_s30  ;;  %1555 = vmatprep.subr.bf16.mxu0 %v2547_v36 }
  0x61   : > { %2436 = vmatprep.subr.bf16.mxu1 %v2547_v36 }
  0x62   : > { %v787_v52 = vor.u32 %v786_v50, %v782_v43  ;;  %1556 = vmatpush1.bf16.msra.mxu0 %v2510_v55 }
  0x63   : > { %1124 = vrot.lane.b32.xlu1 %v1072_v48, %s2545_s29  ;;  %2450 = vmatpush1.bf16.msra.mxu1 %v2510_v55 }
  0x64   : > { %v792_v54 = vsel %vm780_vm4, %v787_v52, %v791_v49  ;;  %1557 = vmatprep.subr.bf16.mxu0 %v2547_v36  ;;  %2437 = vmatprep.subr.bf16.mxu1 %v2547_v36 }
  0x65   : > { %997 = vrot.lane.b32.xlu0 %v792_v54, %s2546_s30 }
  0x66   : > { %1558 = vmatpush1.bf16.msra.mxu0 %v2511_v56 }
  0x67   : > { %2451 = vmatpush1.bf16.msra.mxu1 %v2511_v56  ;;  %1559 = vmatprep.subr.bf16.mxu0 %v2547_v36 }
  0x68   : > { %2438 = vmatprep.subr.bf16.mxu1 %v2547_v36 }
  0x6a   : > { %1560 = vmatpush1.bf16.msra.mxu0 %v2512_v57 }
  0x6b   : > { %2452 = vmatpush1.bf16.msra.mxu1 %v2512_v57  ;;  %1561 = vmatprep.subr.bf16.mxu0 %v2547_v36 }
  0x6c   : > { %2439 = vmatprep.subr.bf16.mxu1 %v2547_v36 }
  0x6e   : > { %1562 = vmatpush1.bf16.msra.mxu0 %v2513_v58 }
  0x6f   : > { %2453 = vmatpush1.bf16.msra.mxu1 %v2513_v58  ;;  %1563 = vmatprep.subr.bf16.mxu0 %v2547_v36 }
  0x70   : > { %2440 = vmatprep.subr.bf16.mxu1 %v2547_v36 }
  0x72   : > { %1564 = vmatpush1.bf16.msra.mxu0 %v2514_v59 }
  0x73   : > { %2454 = vmatpush1.bf16.msra.mxu1 %v2514_v59  ;;  %1565 = vmatprep.subr.bf16.mxu0 %v2547_v36 }
  0x74   : > { %2441 = vmatprep.subr.bf16.mxu1 %v2547_v36 }
  0x76   : > { %1566 = vmatpush1.bf16.msra.mxu0 %v2515_v62 }
  0x77   : > { %2455 = vmatpush1.bf16.msra.mxu1 %v2515_v62  ;;  %1567 = vmatprep.subr.bf16.mxu0 %v2547_v36 }
  0x78   : > { %2442 = vmatprep.subr.bf16.mxu1 %v2547_v36 }
  0x7a   : > { %1568 = vmatpush1.bf16.msra.mxu0 %v2516_v63 }
  0x7b   : > { %2456 = vmatpush1.bf16.msra.mxu1 %v2516_v63  ;;  %1569 = vmatprep.subr.bf16.mxu0 %v2547_v36 }
  0x7c   : > { %2443 = vmatprep.subr.bf16.mxu1 %v2547_v36 }
  0x7e   : > { %1570 = vmatpush1.bf16.msra.mxu0 %v2517_v0 }
  0x7f   : > { %2457 = vmatpush1.bf16.msra.mxu1 %v2517_v0  ;;  %1571 = vmatprep.subr.bf16.mxu0 %v2547_v36 }
  0x80   : > { %2444 = vmatprep.subr.bf16.mxu1 %v2547_v36 }
  0x82   : > { %1572 = vmatpush1.bf16.msra.mxu0 %v2518_v1 }
  0x83   : > { %2458 = vmatpush1.bf16.msra.mxu1 %v2518_v1  ;;  %1573 = vmatprep.subr.bf16.mxu0 %v2547_v36 }
  0x84   : > { %2445 = vmatprep.subr.bf16.mxu1 %v2547_v36 }
  0x86   : > { %1574 = vmatpush1.bf16.msra.mxu0 %v2519_v2 }
  0x87   : > { %2459 = vmatpush1.bf16.msra.mxu1 %v2519_v2  ;;  %1575 = vmatprep.subr.bf16.mxu0 %v2547_v36 }
  0x88   : > { %2446 = vmatprep.subr.bf16.mxu1 %v2547_v36 }
  0x8a   : > { %1576 = vmatpush1.bf16.msra.mxu0 %v1547_v12 }
  0x8b   : > { %2460 = vmatpush1.bf16.msra.mxu1 %v1547_v12 }
  0x8e   : > { %v1129_v3 = vpop.permute.xlu1 %1128  ;;  %v1127_v6 = vpop.permute.xlu0 %1126 }
  0x92   : > { %v1145_v8 = vpop.permute.xlu1 %1144  ;;  %v1143_v10 = vpop.permute.xlu0 %1142 }
  0x96   : > { %v1147_v13 = vpop.permute.xlu1 %1146 }
  0x97   : > { %v1131_v14 = vpop.permute.xlu0 %1130 }
  0x9a   : > { %v1016_v15 = vpop.permute.xlu1 %1015 }
  0x9b   : > { %v1180_v18 = vsel %vm1160_vm6, %v2653_v42, %v1016_v15  ;;  %v1000_v21 = vpop.permute.xlu0 %999 }
  0x9c   : > { %v2959_v19 = vsel %vm1197_vm7, %v1180_v18, %v1143_v10  ;;  %v1164_v24 = vsel %vm1160_vm6, %v2635_v28, %v1000_v21 }
  0x9d   : > { %1266 = vrot.lane.b32.xlu1 %v2959_v19, %s2548_s26  ;;  %v2966_v26 = vsel %vm1197_vm7, %v1164_v24, %v1127_v6 }
  0x9e   : > { %v1018_v25 = vpop.permute.xlu1 %1017  ;;  %1250 = vrot.lane.b32.xlu0 %v2966_v26, %s2548_s26 }
  0x9f   : > { %v1182_v27 = vsel %vm1160_vm6, %v2646_v37, %v1018_v25  ;;  %v1002_v29 = vpop.permute.xlu0 %1001 }
  0xa0   : > { %v2973_v42 = vsel %vm1197_vm7, %v1182_v27, %v1145_v8  ;;  %v1166_v28 = vsel %vm1160_vm6, %v2630_v23, %v1002_v29 }
  0xa1   : > { %1299 = vrot.lane.b32.xlu1 %v2973_v42, %s2549_s27  ;;  %v2980_v31 = vsel %vm1197_vm7, %v1166_v28, %v1129_v3 }
  0xa2   : > { %v1020_v30 = vpop.permute.xlu1 %1019  ;;  %1283 = vrot.lane.b32.xlu0 %v2980_v31, %s2549_s27 }
  0xa3   : > { %v1184_v37 = vsel %vm1160_vm6, %v2668_v53, %v1020_v30  ;;  %v1004_v32 = vpop.permute.xlu0 %1003 }
  0xa4   : > { %v1168_v33 = vsel %vm1160_vm6, %v2680_v5, %v1004_v32  ;;  %v2993_v23 = vsel %vm1197_vm7, %v1184_v37, %v1147_v13 }
  0xa5   : > { %1268 = vrot.lane.b32.xlu1 %v2973_v42, %s2548_s26  ;;  %v2998_v35 = vsel %vm1197_vm7, %v1168_v33, %v1131_v14 }
  0xa6   : > { %1252 = vrot.lane.b32.xlu0 %v2980_v31, %s2548_s26 }
  0xa8   : > { %v1006_v34 = vpop.permute.xlu0 %1005 }
  0xa9   : > { %1301 = vrot.lane.b32.xlu1 %v2993_v23, %s2549_s27  ;;  %v1022_v53 = vpop.permute.xlu1 %1021  ;;  %v1170_v44 = vsel %vm1160_vm6, %v2714_v61, %v1006_v34 }
  0xaa   : > { %1285 = vrot.lane.b32.xlu0 %v2998_v35, %s2549_s27  ;;  %v1186_v5 = vsel %vm1160_vm6, %v2723_v7, %v1022_v53 }
  0xac   : > { %v1133_v36 = vpop.permute.xlu0 %1132 }
  0xad   : > { %1270 = vrot.lane.b32.xlu1 %v2993_v23, %s2548_s26  ;;  %v1149_v39 = vpop.permute.xlu1 %1148  ;;  %v3016_v7 = vsel %vm1197_vm7, %v1170_v44, %v1133_v36 }
  0xae   : > { %1254 = vrot.lane.b32.xlu0 %v2998_v35, %s2548_s26  ;;  %v3011_v45 = vsel %vm1197_vm7, %v1186_v5, %v1149_v39 }
  0xb0   : > { %v1008_v43 = vpop.permute.xlu0 %1007 }
  0xb1   : > { %1303 = vrot.lane.b32.xlu1 %v3011_v45, %s2549_s27  ;;  %v1024_v47 = vpop.permute.xlu1 %1023  ;;  %v1172_v50 = vsel %vm1160_vm6, %v2731_v17, %v1008_v43 }
  0xb2   : > { %1287 = vrot.lane.b32.xlu0 %v3016_v7, %s2549_s27  ;;  %v1188_v61 = vsel %vm1160_vm6, %v2752_v46, %v1024_v47 }
  0xb4   : > { %v1135_v4 = vpop.permute.xlu0 %1134 }
  0xb5   : > { %1272 = vrot.lane.b32.xlu1 %v3011_v45, %s2548_s26  ;;  %v1151_v48 = vpop.permute.xlu1 %1150  ;;  %v3034_v46 = vsel %vm1197_vm7, %v1172_v50, %v1135_v4 }
  0xb6   : > { %1256 = vrot.lane.b32.xlu0 %v3016_v7, %s2548_s26  ;;  %v3029_v49 = vsel %vm1197_vm7, %v1188_v61, %v1151_v48 }
  0xb8   : > { %v1010_v51 = vpop.permute.xlu0 %1009 }
  0xb9   : > { %1305 = vrot.lane.b32.xlu1 %v3029_v49, %s2549_s27  ;;  %v1026_v52 = vpop.permute.xlu1 %1025  ;;  %v1174_v56 = vsel %vm1160_vm6, %v2771_v11, %v1010_v51 }
  0xba   : > { %1289 = vrot.lane.b32.xlu0 %v3034_v46, %s2549_s27  ;;  %v1190_v17 = vsel %vm1160_vm6, %v2781_v22, %v1026_v52 }
  0xbc   : > { %v1137_v54 = vpop.permute.xlu0 %1136 }
  0xbd   : > { %1274 = vrot.lane.b32.xlu1 %v3029_v49, %s2548_s26  ;;  %v1153_v55 = vpop.permute.xlu1 %1152  ;;  %v3052_v22 = vsel %vm1197_vm7, %v1174_v56, %v1137_v54 }
  0xbe   : > { %1258 = vrot.lane.b32.xlu0 %v3034_v46, %s2548_s26  ;;  %v3047_v57 = vsel %vm1197_vm7, %v1190_v17, %v1153_v55 }
  0xc0   : > { %v1012_v58 = vpop.permute.xlu0 %1011 }
  0xc1   : > { %1307 = vrot.lane.b32.xlu1 %v3047_v57, %s2549_s27  ;;  %v1028_v59 = vpop.permute.xlu1 %1027  ;;  %v1176_v0 = vsel %vm1160_vm6, %v2795_v40, %v1012_v58 }
  0xc2   : > { %1291 = vrot.lane.b32.xlu0 %v3052_v22, %s2549_s27  ;;  %v1192_v11 = vsel %vm1160_vm6, %v2814_v60, %v1028_v59 }
  0xc4   : > { %v1139_v62 = vpop.permute.xlu0 %1138 }
  0xc5   : > { %1276 = vrot.lane.b32.xlu1 %v3047_v57, %s2548_s26  ;;  %v1155_v63 = vpop.permute.xlu1 %1154  ;;  %v3070_v60 = vsel %vm1197_vm7, %v1176_v0, %v1139_v62 }
  0xc6   : > { %1260 = vrot.lane.b32.xlu0 %v3052_v22, %s2548_s26  ;;  %v3065_v1 = vsel %vm1197_vm7, %v1192_v11, %v1155_v63 }
  0xc8   : > { %v1014_v2 = vpop.permute.xlu0 %1013 }
  0xc9   : > { %1309 = vrot.lane.b32.xlu1 %v3065_v1, %s2549_s27  ;;  %v1030_v3 = vpop.permute.xlu1 %1029  ;;  %v1178_v8 = vsel %vm1160_vm6, %v2833_v16, %v1014_v2 }
  0xca   : > { %1293 = vrot.lane.b32.xlu0 %v3070_v60, %s2549_s27  ;;  %v1194_v40 = vsel %vm1160_vm6, %v2844_v41, %v1030_v3 }
  0xcc   : > { %v1141_v9 = vpop.permute.xlu0 %1140 }
  0xcd   : > { %1278 = vrot.lane.b32.xlu1 %v3065_v1, %s2548_s26  ;;  %v1157_v6 = vpop.permute.xlu1 %1156  ;;  %v1215_v12 = vsel %vm1197_vm7, %v1178_v8, %v1141_v9 }
  0xce   : > { %1262 = vrot.lane.b32.xlu0 %v3070_v60, %s2548_s26  ;;  %v1231_v10 = vsel %vm1197_vm7, %v1194_v40, %v1157_v6 }
  0xd1   : > { %1311 = vrot.lane.b32.xlu1 %v1231_v10, %s2549_s27  ;;  %v1159_v41 = vpop.permute.xlu1 %1158 }
  0xd2   : > { %1295 = vrot.lane.b32.xlu0 %v1215_v12, %s2549_s27  ;;  %v1032_v13 = vpop.permute.xlu0 %1031 }
  0xd3   : > { %v1196_v14 = vsel %vm1160_vm6, %v2863_v20, %v1032_v13 }
  0xd4   : > { %v1233_v16 = vsel %vm1197_vm7, %v1196_v14, %v1159_v41 }
  0xd5   : > { %1280 = vrot.lane.b32.xlu1 %v1231_v10, %s2548_s26  ;;  %v1125_v15 = vpop.permute.xlu1 %1124 }
  0xd6   : > { %1264 = vrot.lane.b32.xlu0 %v1215_v12, %s2548_s26 }
  0xd7   : > { %v998_v18 = vpop.permute.xlu0 %997 }
  0xd8   : > { %v1162_v21 = vsel %vm1160_vm6, %v2879_v38, %v998_v18 }
  0xd9   : > { %1313 = vrot.lane.b32.xlu1 %v1233_v16, %s2549_s27  ;;  %v1199_v24 = vsel %vm1197_vm7, %v1162_v21, %v1125_v15 }
  0xda   : > { %1297 = vrot.lane.b32.xlu0 %v2959_v19, %s2549_s27 }
 0x10f   : > { %v1267_v25 = vpop.permute.xlu1 %1266 }
 0x110   : > { %v1251_v27 = vpop.permute.xlu0 %1250  ;;  %v1341_v28 = vsel %vm1315_vm10, %v1215_v12, %v1267_v25 }
 0x111   : > { %v1317_v32 = vsel %vm1315_vm10, %v1199_v24, %v1251_v27 }
 0x113   : > { %v1300_v20 = vpop.permute.xlu1 %1299 }
 0x114   : > { %v1382_v29 = vsel %vm1364_vm8, %v1267_v25, %v1300_v20  ;;  %v1284_v30 = vpop.permute.xlu0 %1283 }
 0x115   : > { %2344 = vmatprep.mubr.msk.bf16.mxu1 %vm1512_vm9, %v1382_v29  ;;  %v1366_v38 = vsel %vm1364_vm8, %v1251_v27, %v1284_v30 }
 0x116   : > { %1646 = vmatmul.mubr.bf16.vlgmr.msra.gmra.mrb[0].mxu1 %v1341_v28  ;;  %2336 = vmatprep.mubr.msk.bf16.mxu0 %vm1512_vm9, %v1366_v38 }
 0x117   : > { %v1269_v37 = vpop.permute.xlu1 %1268  ;;  %1582 = vmatmul.mubr.bf16.vlgmr.msra.gmra.mrb[0].mxu0 %v1317_v32 }
 0x118   : > { %v1253_v33 = vpop.permute.xlu0 %1252  ;;  %v1344_v5 = vsel %vm1315_vm10, %v2959_v19, %v1269_v37 }
 0x119   : > { %v1320_v43 = vsel %vm1315_vm10, %v2966_v26, %v1253_v33 }
 0x11b   : > { %v1302_v34 = vpop.permute.xlu1 %1301 }
 0x11c   : > { %v1384_v53 = vsel %vm1364_vm8, %v1269_v37, %v1302_v34  ;;  %v1286_v36 = vpop.permute.xlu0 %1285 }
 0x11d   : > { %2345 = vmatprep.mubr.msk.bf16.mxu1 %vm1512_vm9, %v1384_v53  ;;  %v1368_v39 = vsel %vm1364_vm8, %v1253_v33, %v1286_v36 }
 0x11e   : > { %1654 = vmatmul.mubr.bf16.gmra.mrb[4].mxu1 %v1344_v5  ;;  %2337 = vmatprep.mubr.msk.bf16.mxu0 %vm1512_vm9, %v1368_v39 }
 0x11f   : > { %v1271_v44 = vpop.permute.xlu1 %1270  ;;  %1590 = vmatmul.mubr.bf16.gmra.mrb[4].mxu0 %v1320_v43 }
 0x120   : > { %v1255_v47 = vpop.permute.xlu0 %1254  ;;  %v1347_v19 = vsel %vm1315_vm10, %v2973_v42, %v1271_v44 }
 0x121   : > { %v1323_v26 = vsel %vm1315_vm10, %v2980_v31, %v1255_v47 }
 0x123   : > { %v1304_v61 = vpop.permute.xlu1 %1303 }
 0x124   : > { %v1386_v4 = vsel %vm1364_vm8, %v1271_v44, %v1304_v61  ;;  %v1288_v48 = vpop.permute.xlu0 %1287 }
 0x125   : > { %2346 = vmatprep.mubr.msk.bf16.mxu1 %vm1512_vm9, %v1386_v4  ;;  %v1370_v50 = vsel %vm1364_vm8, %v1255_v47, %v1288_v48 }
 0x126   : > { %1662 = vmatmul.mubr.bf16.gmra.mrb[8].mxu1 %v1347_v19  ;;  %2338 = vmatprep.mubr.msk.bf16.mxu0 %vm1512_vm9, %v1370_v50 }
 0x127   : > { %v1273_v51 = vpop.permute.xlu1 %1272  ;;  %1598 = vmatmul.mubr.bf16.gmra.mrb[8].mxu0 %v1323_v26 }
 0x128   : > { %v1257_v52 = vpop.permute.xlu0 %1256  ;;  %v1350_v42 = vsel %vm1315_vm10, %v2993_v23, %v1273_v51 }
 0x129   : > { %v1326_v31 = vsel %vm1315_vm10, %v2998_v35, %v1257_v52 }
 0x12b   : > { %v1306_v17 = vpop.permute.xlu1 %1305 }
 0x12c   : > { %v1388_v54 = vsel %vm1364_vm8, %v1273_v51, %v1306_v17  ;;  %v1290_v55 = vpop.permute.xlu0 %1289 }
 0x12d   : > { %2347 = vmatprep.mubr.msk.bf16.mxu1 %vm1512_vm9, %v1388_v54  ;;  %v1372_v56 = vsel %vm1364_vm8, %v1257_v52, %v1290_v55 }
 0x12e   : > { %1670 = vmatmul.mubr.bf16.gmra.mrb[12].mxu1 %v1350_v42  ;;  %2339 = vmatprep.mubr.msk.bf16.mxu0 %vm1512_vm9, %v1372_v56 }
 0x12f   : > { %v1275_v58 = vpop.permute.xlu1 %1274  ;;  %1606 = vmatmul.mubr.bf16.gmra.mrb[12].mxu0 %v1326_v31 }
 0x130   : > { %v1259_v59 = vpop.permute.xlu0 %1258  ;;  %v1353_v23 = vsel %vm1315_vm10, %v3011_v45, %v1275_v58 }
 0x131   : > { %v1329_v35 = vsel %vm1315_vm10, %v3016_v7, %v1259_v59 }
 0x133   : > { %v1308_v11 = vpop.permute.xlu1 %1307 }
 0x134   : > { %v1390_v62 = vsel %vm1364_vm8, %v1275_v58, %v1308_v11  ;;  %v1292_v63 = vpop.permute.xlu0 %1291 }
 0x135   : > { %2348 = vmatprep.mubr.msk.bf16.mxu1 %vm1512_vm9, %v1390_v62  ;;  %v1374_v0 = vsel %vm1364_vm8, %v1259_v59, %v1292_v63 }
 0x136   : > { %1678 = vmatmul.mubr.bf16.gmra.mrb[16].mxu1 %v1353_v23  ;;  %2340 = vmatprep.mubr.msk.bf16.mxu0 %vm1512_vm9, %v1374_v0 }
 0x137   : > { %v1277_v2 = vpop.permute.xlu1 %1276  ;;  %1614 = vmatmul.mubr.bf16.gmra.mrb[16].mxu0 %v1329_v35 }
 0x138   : > { %v1261_v3 = vpop.permute.xlu0 %1260  ;;  %v1356_v45 = vsel %vm1315_vm10, %v3029_v49, %v1277_v2 }
 0x139   : > { %v1332_v7 = vsel %vm1315_vm10, %v3034_v46, %v1261_v3 }
 0x13b   : > { %v1310_v40 = vpop.permute.xlu1 %1309 }
 0x13c   : > { %v1392_v6 = vsel %vm1364_vm8, %v1277_v2, %v1310_v40  ;;  %v1294_v8 = vpop.permute.xlu0 %1293 }
 0x13d   : > { %2349 = vmatprep.mubr.msk.bf16.mxu1 %vm1512_vm9, %v1392_v6  ;;  %v1376_v9 = vsel %vm1364_vm8, %v1261_v3, %v1294_v8 }
 0x13e   : > { %1686 = vmatmul.mubr.bf16.gmra.mrb[20].mxu1 %v1356_v45  ;;  %2341 = vmatprep.mubr.msk.bf16.mxu0 %vm1512_vm9, %v1376_v9 }
 0x13f   : > { %v1279_v10 = vpop.permute.xlu1 %1278  ;;  %1622 = vmatmul.mubr.bf16.gmra.mrb[20].mxu0 %v1332_v7 }
 0x140   : > { %v1263_v12 = vpop.permute.xlu0 %1262  ;;  %v1359_v49 = vsel %vm1315_vm10, %v3047_v57, %v1279_v10 }
 0x141   : > { %v1335_v46 = vsel %vm1315_vm10, %v3052_v22, %v1263_v12  ;;  %v3162_v22 = vld [vmem:[%s3382_s4] ss:$0 sm:$0xff] }
 0x143   : > { %v1312_v41 = vpop.permute.xlu1 %1311 }
 0x144   : > { %v1394_v13 = vsel %vm1364_vm8, %v1279_v10, %v1312_v41  ;;  %v1296_v14 = vpop.permute.xlu0 %1295 }
 0x145   : > { %2350 = vmatprep.mubr.msk.bf16.mxu1 %vm1512_vm9, %v1394_v13  ;;  %v1378_v16 = vsel %vm1364_vm8, %v1263_v12, %v1296_v14 }
 0x146   : > { %1694 = vmatmul.mubr.bf16.gmra.mrb[24].mxu1 %v1359_v49  ;;  %2342 = vmatprep.mubr.msk.bf16.mxu0 %vm1512_vm9, %v1378_v16 }
 0x147   : > { %v1281_v15 = vpop.permute.xlu1 %1280  ;;  %1630 = vmatmul.mubr.bf16.gmra.mrb[24].mxu0 %v1335_v46 }
 0x148   : > { %v1265_v18 = vpop.permute.xlu0 %1264  ;;  %v1362_v57 = vsel %vm1315_vm10, %v3065_v1, %v1281_v15 }
 0x149   : > { %v1338_v20 = vsel %vm1315_vm10, %v3070_v60, %v1265_v18 }
 0x14b   : > { %v1314_v21 = vpop.permute.xlu1 %1313 }
 0x14c   : > { %v1396_v24 = vsel %vm1364_vm8, %v1281_v15, %v1314_v21  ;;  %v1298_v25 = vpop.permute.xlu0 %1297 }
 0x14d   : > { %2351 = vmatprep.mubr.msk.bf16.mxu1 %vm1512_vm9, %v1396_v24  ;;  %v1380_v27 = vsel %vm1364_vm8, %v1265_v18, %v1298_v25 }
 0x14e   : > { %1702 = vmatmul.mubr.bf16.gmra.mrb[28].mxu1 %v1362_v57  ;;  %2343 = vmatprep.mubr.msk.bf16.mxu0 %vm1512_vm9, %v1380_v27 }
 0x14f   : > { %1638 = vmatmul.mubr.bf16.gmra.mrb[28].mxu0 %v1338_v20 }
 0x1e9   : > { %v1647_v29 = vpop.f32.mrb[0].mxu1 }
 0x1ea   : > { %v1648_v28 = vadd.f32 %v3162_v22, %v1647_v29  ;;  %v1649_v1 = vpop.f32.mrb[1].mxu1  ;;  %v1583_v38 = vpop.f32.mrb[0].mxu0 }
 0x1eb   : > { %v1650_v30 = vpop.f32.mrb[2].mxu1  ;;  %v1584_v60 = vadd.f32 %v3162_v22, %v1583_v38  ;;  %v1585_v34 = vpop.f32.mrb[1].mxu0 }
 0x1ec   : > { %vm1726_vm11 = vcmp.ge.f32.partialorder %v1648_v28, 0.0  ;;  %v1758_v37 = vmul.f32 0.05, %v1648_v28  ;;  %v1651_v32 = vadd.f32 %v3162_v22, %v1650_v30  ;;  %v1652_v33 = vpop.f32.mrb[3].mxu1  ;;  %v1586_v53 = vpop.f32.mrb[2].mxu0 }
 0x1ed   : > { %vm1710_vm14 = vcmp.ge.f32.partialorder %v1584_v60, 0.0  ;;  %v1742_v39 = vmul.f32 0.05, %v1584_v60  ;;  %v1587_v44 = vadd.f32 %v3162_v22, %v1586_v53  ;;  %v1588_v43 = vpop.f32.mrb[3].mxu0 }
 0x1ee   : > { %vm1727_vm12 = vcmp.ge.f32.partialorder %v1651_v32, 0.0  ;;  %v1759_v5 = vmul.f32 0.05, %v1651_v32  ;;  %v1790_v36 = vsel %vm1726_vm11, %v1648_v28, %v1758_v37 }
 0x1ef   : > { %v2408_v47 = vpack.c.bf16 %v1790_v36, %v1790_v36  ;;  %vm1711_vm15 = vcmp.ge.f32.partialorder %v1587_v44, 0.0  ;;  %v1743_v4 = vmul.f32 0.05, %v1587_v44  ;;  %v1774_v48 = vsel %vm1710_vm14, %v1584_v60, %v1742_v39 }
 0x1f0   : > { %v1791_v61 = vsel %vm1727_vm12, %v1651_v32, %v1759_v5  ;;  %v2392_v26 = vpack.c.bf16 %v1774_v48, %v1774_v48 }
 0x1f1   : > { %v1655_v19 = vpop.f32.mrb[4].mxu1  ;;  %1951 = vst.msk [vmem:[%s3171_s8 + $0x40] sm:$0xf] %vm1934_vm13, %v2408_v47  ;;  %v2409_v50 = vpack.c.bf16 %v1791_v61, %v1791_v61  ;;  %v1775_v54 = vsel %vm1711_vm15, %v1587_v44, %v1743_v4 }
 0x1f2   : > { %v1656_v51 = vadd.f32 %v3162_v22, %v1655_v19  ;;  %v1657_v52 = vpop.f32.mrb[5].mxu1  ;;  %1967 = vrot.lane.b32.xlu0 %v2392_v26, %s2550_s9  ;;  %1935 = vst.msk [vmem:[%s3171_s8] sm:$0xf] %vm1934_vm13, %v2392_v26  ;;  %v1591_v55 = vpop.f32.mrb[4].mxu0  ;;  %v2393_v58 = vpack.c.bf16 %v1775_v54, %v1775_v54 }
 0x1f3   : > { %v1658_v17 = vpop.f32.mrb[6].mxu1  ;;  %1952 = vst.msk [vmem:[%s3171_s8 + $0x44] sm:$0xf] %vm1934_vm13, %v2409_v50  ;;  %v1592_v59 = vadd.f32 %v3162_v22, %v1591_v55  ;;  %v1593_v11 = vpop.f32.mrb[5].mxu0 }
 0x1f4   : > { %vm1728_vm0 = vcmp.ge.f32.partialorder %v1656_v51, 0.0  ;;  %v1760_v42 = vmul.f32 0.05, %v1656_v51  ;;  %v1659_v56 = vadd.f32 %v3162_v22, %v1658_v17  ;;  %v1660_v31 = vpop.f32.mrb[7].mxu1  ;;  %1969 = vrot.lane.b32.xlu1 %v2393_v58, %s2550_s9  ;;  %1936 = vst.msk [vmem:[%s3171_s8 + $0x4] sm:$0xf] %vm1934_vm13, %v2393_v58 }
 0x1f5   : > { %v1594_v23 = vpop.f32.mrb[6].mxu0  ;;  %vm1712_vm2 = vcmp.ge.f32.partialorder %v1592_v59, 0.0  ;;  %v1744_v0 = vmul.f32 0.05, %v1592_v59 }
 0x1f6   : > { %vm1729_vm1 = vcmp.ge.f32.partialorder %v1659_v56, 0.0  ;;  %v1761_v62 = vmul.f32 0.05, %v1659_v56  ;;  %v1792_v63 = vsel %vm1728_vm0, %v1656_v51, %v1760_v42  ;;  %v1595_v2 = vadd.f32 %v3162_v22, %v1594_v23  ;;  %v1596_v35 = vpop.f32.mrb[7].mxu0  ;;  %1999 = vrot.lane.b32.xlu0 %v2408_v47, %s2550_s9 }
 0x1f7   : > { %v2410_v3 = vpack.c.bf16 %v1792_v63, %v1792_v63  ;;  %v1776_v8 = vsel %vm1712_vm2, %v1592_v59, %v1744_v0 }
 0x1f8   : > { %v1793_v40 = vsel %vm1729_vm1, %v1659_v56, %v1761_v62  ;;  %vm1713_vm3 = vcmp.ge.f32.partialorder %v1595_v2, 0.0  ;;  %v1745_v6 = vmul.f32 0.05, %v1595_v2  ;;  %2001 = vrot.lane.b32.xlu1 %v2409_v50, %s2550_s9  ;;  %v2394_v7 = vpack.c.bf16 %v1776_v8, %v1776_v8 }
 0x1f9   : > { %v1663_v45 = vpop.f32.mrb[8].mxu1  ;;  %1953 = vst.msk [vmem:[%s3171_s8 + $0x48] sm:$0xf] %vm1934_vm13, %v2410_v3  ;;  %v2411_v9 = vpack.c.bf16 %v1793_v40, %v1793_v40 }
 0x1fa   : > { %v1664_v10 = vadd.f32 %v3162_v22, %v1663_v45  ;;  %v1665_v12 = vpop.f32.mrb[9].mxu1  ;;  %v1777_v13 = vsel %vm1713_vm3, %v1595_v2, %v1745_v6  ;;  %1971 = vrot.lane.b32.xlu0 %v2394_v7, %s2550_s9  ;;  %1937 = vst.msk [vmem:[%s3171_s8 + $0x8] sm:$0xf] %vm1934_vm13, %v2394_v7  ;;  %v1599_v14 = vpop.f32.mrb[8].mxu0 }
 0x1fb   : > { %v1666_v41 = vpop.f32.mrb[10].mxu1  ;;  %1954 = vst.msk [vmem:[%s3171_s8 + $0x4c] sm:$0xf] %vm1934_vm13, %v2411_v9  ;;  %v2395_v15 = vpack.c.bf16 %v1777_v13, %v1777_v13  ;;  %v1600_v18 = vadd.f32 %v3162_v22, %v1599_v14  ;;  %v1601_v21 = vpop.f32.mrb[9].mxu0 }
 0x1fc   : > { %vm1730_vm4 = vcmp.ge.f32.partialorder %v1664_v10, 0.0  ;;  %v1762_v49 = vmul.f32 0.05, %v1664_v10  ;;  %v1667_v16 = vadd.f32 %v3162_v22, %v1666_v41  ;;  %v1668_v46 = vpop.f32.mrb[11].mxu1  ;;  %v1602_v57 = vpop.f32.mrb[10].mxu0 }
 0x1fd   : > { %1973 = vrot.lane.b32.xlu1 %v2395_v15, %s2550_s9  ;;  %1938 = vst.msk [vmem:[%s3171_s8 + $0xc] sm:$0xf] %vm1934_vm13, %v2395_v15  ;;  %vm1714_vm6 = vcmp.ge.f32.partialorder %v1600_v18, 0.0  ;;  %v1746_v27 = vmul.f32 0.05, %v1600_v18  ;;  %v1603_v20 = vadd.f32 %v3162_v22, %v1602_v57  ;;  %v1604_v29 = vpop.f32.mrb[11].mxu0 }
 0x1fe   : > { %vm1731_vm5 = vcmp.ge.f32.partialorder %v1667_v16, 0.0  ;;  %v1763_v24 = vmul.f32 0.05, %v1667_v16  ;;  %v1794_v25 = vsel %vm1730_vm4, %v1664_v10, %v1762_v49  ;;  %2003 = vrot.lane.b32.xlu0 %v2410_v3, %s2550_s9 }
 0x1ff   : > { %v2412_v28 = vpack.c.bf16 %v1794_v25, %v1794_v25  ;;  %vm1715_vm7 = vcmp.ge.f32.partialorder %v1603_v20, 0.0  ;;  %v1747_v30 = vmul.f32 0.05, %v1603_v20  ;;  %v1778_v37 = vsel %vm1714_vm6, %v1600_v18, %v1746_v27 }
 0x200   : > { %v1795_v1 = vsel %vm1731_vm5, %v1667_v16, %v1763_v24  ;;  %v2396_v60 = vpack.c.bf16 %v1778_v37, %v1778_v37 }
 0x201   : > { %v1671_v38 = vpop.f32.mrb[12].mxu1  ;;  %1955 = vst.msk [vmem:[%s3171_s8 + $0x50] sm:$0xf] %vm1934_vm13, %v2412_v28  ;;  %v2413_v32 = vpack.c.bf16 %v1795_v1, %v1795_v1  ;;  %2005 = vrot.lane.b32.xlu1 %v2411_v9, %s2550_s9  ;;  %v1779_v5 = vsel %vm1715_vm7, %v1603_v20, %v1747_v30 }
 0x202   : > { %v1672_v33 = vadd.f32 %v3162_v22, %v1671_v38  ;;  %v1673_v34 = vpop.f32.mrb[13].mxu1  ;;  %1975 = vrot.lane.b32.xlu0 %v2396_v60, %s2550_s9  ;;  %1939 = vst.msk [vmem:[%s3171_s8 + $0x10] sm:$0xf] %vm1934_vm13, %v2396_v60  ;;  %v1607_v39 = vpop.f32.mrb[12].mxu0  ;;  %v2397_v43 = vpack.c.bf16 %v1779_v5, %v1779_v5 }
 0x203   : > { %v1674_v53 = vpop.f32.mrb[14].mxu1  ;;  %1956 = vst.msk [vmem:[%s3171_s8 + $0x54] sm:$0xf] %vm1934_vm13, %v2413_v32  ;;  %v1608_v61 = vadd.f32 %v3162_v22, %v1607_v39  ;;  %v1609_v4 = vpop.f32.mrb[13].mxu0 }
 0x204   : > { %vm1732_vm8 = vcmp.ge.f32.partialorder %v1672_v33, 0.0  ;;  %v1764_v36 = vmul.f32 0.05, %v1672_v33  ;;  %v1675_v44 = vadd.f32 %v3162_v22, %v1674_v53  ;;  %v1676_v47 = vpop.f32.mrb[15].mxu1  ;;  %1940 = vst.msk [vmem:[%s3171_s8 + $0x14] sm:$0xf] %vm1934_vm13, %v2397_v43 }
 0x205   : > { %1977 = vrot.lane.b32.xlu1 %v2397_v43, %s2550_s9  ;;  %v1610_v48 = vpop.f32.mrb[14].mxu0  ;;  %vm1716_vm10 = vcmp.ge.f32.partialorder %v1608_v61, 0.0  ;;  %v1748_v51 = vmul.f32 0.05, %v1608_v61 }
 0x206   : > { %vm1733_vm9 = vcmp.ge.f32.partialorder %v1675_v44, 0.0  ;;  %v1765_v19 = vmul.f32 0.05, %v1675_v44  ;;  %v1796_v50 = vsel %vm1732_vm8, %v1672_v33, %v1764_v36  ;;  %v1611_v26 = vadd.f32 %v3162_v22, %v1610_v48  ;;  %v1612_v52 = vpop.f32.mrb[15].mxu0  ;;  %2007 = vrot.lane.b32.xlu0 %v2412_v28, %s2550_s9 }
 0x207   : > { %v2414_v17 = vpack.c.bf16 %v1796_v50, %v1796_v50  ;;  %v1780_v56 = vsel %vm1716_vm10, %v1608_v61, %v1748_v51 }
 0x208   : > { %v1797_v54 = vsel %vm1733_vm9, %v1675_v44, %v1765_v19  ;;  %vm1717_vm11 = vcmp.ge.f32.partialorder %v1611_v26, 0.0  ;;  %v1749_v42 = vmul.f32 0.05, %v1611_v26  ;;  %v2398_v59 = vpack.c.bf16 %v1780_v56, %v1780_v56 }
 0x209   : > { %v1679_v55 = vpop.f32.mrb[16].mxu1  ;;  %1957 = vst.msk [vmem:[%s3171_s8 + $0x58] sm:$0xf] %vm1934_vm13, %v2414_v17  ;;  %v2415_v58 = vpack.c.bf16 %v1797_v54, %v1797_v54  ;;  %2009 = vrot.lane.b32.xlu1 %v2413_v32, %s2550_s9 }
 0x20a   : > { %v1680_v31 = vadd.f32 %v3162_v22, %v1679_v55  ;;  %v1681_v11 = vpop.f32.mrb[17].mxu1  ;;  %v1781_v23 = vsel %vm1717_vm11, %v1611_v26, %v1749_v42  ;;  %1979 = vrot.lane.b32.xlu0 %v2398_v59, %s2550_s9  ;;  %1941 = vst.msk [vmem:[%s3171_s8 + $0x18] sm:$0xf] %vm1934_vm13, %v2398_v59  ;;  %v1615_v0 = vpop.f32.mrb[16].mxu0 }
 0x20b   : > { %v1682_v62 = vpop.f32.mrb[18].mxu1  ;;  %1958 = vst.msk [vmem:[%s3171_s8 + $0x5c] sm:$0xf] %vm1934_vm13, %v2415_v58  ;;  %v2399_v35 = vpack.c.bf16 %v1781_v23, %v1781_v23  ;;  %v1616_v40 = vadd.f32 %v3162_v22, %v1615_v0  ;;  %v1617_v6 = vpop.f32.mrb[17].mxu0 }
 0x20c   : > { %vm1734_vm12 = vcmp.ge.f32.partialorder %v1680_v31, 0.0  ;;  %v1766_v63 = vmul.f32 0.05, %v1680_v31  ;;  %v1683_v2 = vadd.f32 %v3162_v22, %v1682_v62  ;;  %v1684_v3 = vpop.f32.mrb[19].mxu1  ;;  %v1618_v8 = vpop.f32.mrb[18].mxu0 }
 0x20d   : > { %1981 = vrot.lane.b32.xlu1 %v2399_v35, %s2550_s9  ;;  %1942 = vst.msk [vmem:[%s3171_s8 + $0x1c] sm:$0xf] %vm1934_vm13, %v2399_v35  ;;  %vm1718_vm15 = vcmp.ge.f32.partialorder %v1616_v40, 0.0  ;;  %v1750_v10 = vmul.f32 0.05, %v1616_v40  ;;  %v1619_v7 = vadd.f32 %v3162_v22, %v1618_v8  ;;  %v1620_v12 = vpop.f32.mrb[19].mxu0 }
 0x20e   : > { %vm1735_vm14 = vcmp.ge.f32.partialorder %v1683_v2, 0.0  ;;  %v1767_v45 = vmul.f32 0.05, %v1683_v2  ;;  %v1798_v9 = vsel %vm1734_vm12, %v1680_v31, %v1766_v63  ;;  %2011 = vrot.lane.b32.xlu0 %v2414_v17, %s2550_s9 }
 0x20f   : > { %v2416_v41 = vpack.c.bf16 %v1798_v9, %v1798_v9  ;;  %vm1719_vm0 = vcmp.ge.f32.partialorder %v1619_v7, 0.0  ;;  %v1751_v49 = vmul.f32 0.05, %v1619_v7  ;;  %v1782_v16 = vsel %vm1718_vm15, %v1616_v40, %v1750_v10 }
 0x210   : > { %v1799_v13 = vsel %vm1735_vm14, %v1683_v2, %v1767_v45  ;;  %v2400_v18 = vpack.c.bf16 %v1782_v16, %v1782_v16  ;;  %vm2063_vm14 = vcmask 191488  }
 0x211   : > { %v1687_v14 = vpop.f32.mrb[20].mxu1  ;;  %1959 = vst.msk [vmem:[%s3171_s8 + $0x60] sm:$0xf] %vm1934_vm13, %v2416_v41  ;;  %v2417_v15 = vpack.c.bf16 %v1799_v13, %v1799_v13  ;;  %2013 = vrot.lane.b32.xlu1 %v2415_v58, %s2550_s9  ;;  %v1783_v57 = vsel %vm1719_vm0, %v1619_v7, %v1751_v49 }
 0x212   : > { %v1688_v46 = vadd.f32 %v3162_v22, %v1687_v14  ;;  %v1689_v21 = vpop.f32.mrb[21].mxu1  ;;  %1983 = vrot.lane.b32.xlu0 %v2400_v18, %s2550_s9  ;;  %1943 = vst.msk [vmem:[%s3171_s8 + $0x20] sm:$0xf] %vm1934_vm13, %v2400_v18  ;;  %v1623_v27 = vpop.f32.mrb[20].mxu0  ;;  %v2401_v29 = vpack.c.bf16 %v1783_v57, %v1783_v57 }
 0x213   : > { %v1690_v24 = vpop.f32.mrb[22].mxu1  ;;  %1960 = vst.msk [vmem:[%s3171_s8 + $0x64] sm:$0xf] %vm1934_vm13, %v2417_v15  ;;  %v1624_v1 = vadd.f32 %v3162_v22, %v1623_v27  ;;  %v1625_v30 = vpop.f32.mrb[21].mxu0 }
 0x214   : > { %vm1736_vm1 = vcmp.ge.f32.partialorder %v1688_v46, 0.0  ;;  %v1768_v25 = vmul.f32 0.05, %v1688_v46  ;;  %v1691_v20 = vadd.f32 %v3162_v22, %v1690_v24  ;;  %v1692_v28 = vpop.f32.mrb[23].mxu1  ;;  %1944 = vst.msk [vmem:[%s3171_s8 + $0x24] sm:$0xf] %vm1934_vm13, %v2401_v29 }
 0x215   : > { %1985 = vrot.lane.b32.xlu1 %v2401_v29, %s2550_s9  ;;  %v1626_v37 = vpop.f32.mrb[22].mxu0  ;;  %vm1720_vm3 = vcmp.ge.f32.partialorder %v1624_v1, 0.0  ;;  %v1752_v33 = vmul.f32 0.05, %v1624_v1 }
 0x216   : > { %vm1737_vm2 = vcmp.ge.f32.partialorder %v1691_v20, 0.0  ;;  %v1769_v38 = vmul.f32 0.05, %v1691_v20  ;;  %v1800_v32 = vsel %vm1736_vm1, %v1688_v46, %v1768_v25  ;;  %v1627_v60 = vadd.f32 %v3162_v22, %v1626_v37  ;;  %v1628_v34 = vpop.f32.mrb[23].mxu0  ;;  %2015 = vrot.lane.b32.xlu0 %v2416_v41, %s2550_s9 }
 0x217   : > { %v2418_v53 = vpack.c.bf16 %v1800_v32, %v1800_v32  ;;  %v1784_v44 = vsel %vm1720_vm3, %v1624_v1, %v1752_v33 }
 0x218   : > { %v1801_v5 = vsel %vm1737_vm2, %v1691_v20, %v1769_v38  ;;  %vm1721_vm4 = vcmp.ge.f32.partialorder %v1627_v60, 0.0  ;;  %v1753_v36 = vmul.f32 0.05, %v1627_v60  ;;  %v2402_v61 = vpack.c.bf16 %v1784_v44, %v1784_v44 }
 0x219   : > { %v1695_v39 = vpop.f32.mrb[24].mxu1  ;;  %1961 = vst.msk [vmem:[%s3171_s8 + $0x68] sm:$0xf] %vm1934_vm13, %v2418_v53  ;;  %v2419_v43 = vpack.c.bf16 %v1801_v5, %v1801_v5  ;;  %2017 = vrot.lane.b32.xlu1 %v2417_v15, %s2550_s9 }
 0x21a   : > { %v1696_v47 = vadd.f32 %v3162_v22, %v1695_v39  ;;  %v1697_v4 = vpop.f32.mrb[25].mxu1  ;;  %v1785_v48 = vsel %vm1721_vm4, %v1627_v60, %v1753_v36  ;;  %1987 = vrot.lane.b32.xlu0 %v2402_v61, %s2550_s9  ;;  %1945 = vst.msk [vmem:[%s3171_s8 + $0x28] sm:$0xf] %vm1934_vm13, %v2402_v61  ;;  %v1631_v51 = vpop.f32.mrb[24].mxu0 }
 0x21b   : > { %v1698_v19 = vpop.f32.mrb[26].mxu1  ;;  %1962 = vst.msk [vmem:[%s3171_s8 + $0x6c] sm:$0xf] %vm1934_vm13, %v2419_v43  ;;  %v2403_v52 = vpack.c.bf16 %v1785_v48, %v1785_v48  ;;  %v1632_v54 = vadd.f32 %v3162_v22, %v1631_v51  ;;  %v1633_v42 = vpop.f32.mrb[25].mxu0 }
 0x21c   : > { %vm1738_vm5 = vcmp.ge.f32.partialorder %v1696_v47, 0.0  ;;  %v1770_v50 = vmul.f32 0.05, %v1696_v47  ;;  %v1699_v26 = vadd.f32 %v3162_v22, %v1698_v19  ;;  %v1700_v17 = vpop.f32.mrb[27].mxu1  ;;  %v1634_v56 = vpop.f32.mrb[26].mxu0 }
 0x21d   : > { %1989 = vrot.lane.b32.xlu1 %v2403_v52, %s2550_s9  ;;  %1946 = vst.msk [vmem:[%s3171_s8 + $0x2c] sm:$0xf] %vm1934_vm13, %v2403_v52  ;;  %vm1722_vm7 = vcmp.ge.f32.partialorder %v1632_v54, 0.0  ;;  %v1754_v31 = vmul.f32 0.05, %v1632_v54  ;;  %v1635_v59 = vadd.f32 %v3162_v22, %v1634_v56  ;;  %v1636_v11 = vpop.f32.mrb[27].mxu0 }
 0x21e   : > { %vm1739_vm6 = vcmp.ge.f32.partialorder %v1699_v26, 0.0  ;;  %v1771_v55 = vmul.f32 0.05, %v1699_v26  ;;  %v1802_v58 = vsel %vm1738_vm5, %v1696_v47, %v1770_v50  ;;  %2019 = vrot.lane.b32.xlu0 %v2418_v53, %s2550_s9 }
 0x21f   : > { %v2420_v62 = vpack.c.bf16 %v1802_v58, %v1802_v58  ;;  %vm1723_vm8 = vcmp.ge.f32.partialorder %v1635_v59, 0.0  ;;  %v1755_v63 = vmul.f32 0.05, %v1635_v59  ;;  %v1786_v2 = vsel %vm1722_vm7, %v1632_v54, %v1754_v31 }
 0x220   : > { %v1803_v23 = vsel %vm1739_vm6, %v1699_v26, %v1771_v55  ;;  %v2404_v40 = vpack.c.bf16 %v1786_v2, %v1786_v2 }
 0x221   : > { %v1703_v0 = vpop.f32.mrb[28].mxu1  ;;  %1963 = vst.msk [vmem:[%s3171_s8 + $0x70] sm:$0xf] %vm1934_vm13, %v2420_v62  ;;  %v2421_v35 = vpack.c.bf16 %v1803_v23, %v1803_v23  ;;  %2021 = vrot.lane.b32.xlu1 %v2419_v43, %s2550_s9  ;;  %v1787_v8 = vsel %vm1723_vm8, %v1635_v59, %v1755_v63 }
 0x222   : > { %v1704_v3 = vadd.f32 %v3162_v22, %v1703_v0  ;;  %v1705_v6 = vpop.f32.mrb[29].mxu1  ;;  %1991 = vrot.lane.b32.xlu0 %v2404_v40, %s2550_s9  ;;  %1947 = vst.msk [vmem:[%s3171_s8 + $0x30] sm:$0xf] %vm1934_vm13, %v2404_v40  ;;  %v1639_v10 = vpop.f32.mrb[28].mxu0  ;;  %v2405_v12 = vpack.c.bf16 %v1787_v8, %v1787_v8 }
 0x223   : > { %v1706_v45 = vpop.f32.mrb[30].mxu1  ;;  %1964 = vst.msk [vmem:[%s3171_s8 + $0x74] sm:$0xf] %vm1934_vm13, %v2421_v35  ;;  %v1640_v13 = vadd.f32 %v3162_v22, %v1639_v10  ;;  %v1641_v49 = vpop.f32.mrb[29].mxu0 }
 0x224   : > { %vm1740_vm9 = vcmp.ge.f32.partialorder %v1704_v3, 0.0  ;;  %v1772_v9 = vmul.f32 0.05, %v1704_v3  ;;  %v1707_v7 = vadd.f32 %v3162_v22, %v1706_v45  ;;  %v1708_v41 = vpop.f32.mrb[31].mxu1  ;;  %1948 = vst.msk [vmem:[%s3171_s8 + $0x34] sm:$0xf] %vm1934_vm13, %v2405_v12 }
 0x225   : > { %1993 = vrot.lane.b32.xlu1 %v2405_v12, %s2550_s9  ;;  %v1642_v15 = vpop.f32.mrb[30].mxu0  ;;  %vm1724_vm11 = vcmp.ge.f32.partialorder %v1640_v13, 0.0  ;;  %v1756_v18 = vmul.f32 0.05, %v1640_v13 }
 0x226   : > { %v1804_v14 = vsel %vm1740_vm9, %v1704_v3, %v1772_v9  ;;  %vm1741_vm10 = vcmp.ge.f32.partialorder %v1707_v7, 0.0  ;;  %v1773_v16 = vmul.f32 0.05, %v1707_v7  ;;  %v1643_v21 = vadd.f32 %v3162_v22, %v1642_v15  ;;  %v1644_v24 = vpop.f32.mrb[31].mxu0  ;;  %2023 = vrot.lane.b32.xlu0 %v2420_v62, %s2550_s9 }
 0x227   : > { %v2422_v46 = vpack.c.bf16 %v1804_v14, %v1804_v14  ;;  %v1788_v20 = vsel %vm1724_vm11, %v1640_v13, %v1756_v18 }
 0x228   : > { %v1805_v57 = vsel %vm1741_vm10, %v1707_v7, %v1773_v16  ;;  %vm1725_vm12 = vcmp.ge.f32.partialorder %v1643_v21, 0.0  ;;  %v1757_v27 = vmul.f32 0.05, %v1643_v21  ;;  %v2406_v29 = vpack.c.bf16 %v1788_v20, %v1788_v20 }
 0x229   : > { %1965 = vst.msk [vmem:[%s3171_s8 + $0x78] sm:$0xf] %vm1934_vm13, %v2422_v46  ;;  %v2423_v25 = vpack.c.bf16 %v1805_v57, %v1805_v57  ;;  %2025 = vrot.lane.b32.xlu1 %v2421_v35, %s2550_s9 }
 0x22a   : > { %v1789_v28 = vsel %vm1725_vm12, %v1643_v21, %v1757_v27  ;;  %1995 = vrot.lane.b32.xlu0 %v2406_v29, %s2550_s9  ;;  %1949 = vst.msk [vmem:[%s3171_s8 + $0x38] sm:$0xf] %vm1934_vm13, %v2406_v29 }
 0x22b   : > { %1966 = vst.msk [vmem:[%s3171_s8 + $0x7c] sm:$0xf] %vm1934_vm13, %v2423_v25  ;;  %v2407_v22 = vpack.c.bf16 %v1789_v28, %v1789_v28 }
 0x22d   : > { %1997 = vrot.lane.b32.xlu1 %v2407_v22, %s2550_s9  ;;  %1950 = vst.msk [vmem:[%s3171_s8 + $0x3c] sm:$0xf] %vm1934_vm13, %v2407_v22 }
 0x22e   : > { %2027 = vrot.lane.b32.xlu0 %v2422_v46, %s2550_s9 }
 0x231   : > { %2029 = vrot.lane.b32.xlu1 %v2423_v25, %s2550_s9 }
 0x264   : > { %v1968_v1 = vpop.permute.xlu0 %1967 }
 0x265   : > { %2064 = vst.msk [vmem:[%s3303_s12] sm:$0xf] %vm2063_vm14, %v1968_v1 }
 0x266   : > { %v1970_v30 = vpop.permute.xlu1 %1969 }
 0x267   : > { %2065 = vst.msk [vmem:[%s3303_s12 + $0x4] sm:$0xf] %vm2063_vm14, %v1970_v30 }
 0x268   : > { %v2000_v38 = vpop.permute.xlu0 %1999 }
 0x269   : > { %2080 = vst.msk [vmem:[%s3303_s12 + $0x40] sm:$0xf] %vm2063_vm14, %v2000_v38 }
 0x26a   : > { %v2002_v37 = vpop.permute.xlu1 %2001 }
 0x26b   : > { %2081 = vst.msk [vmem:[%s3303_s12 + $0x44] sm:$0xf] %vm2063_vm14, %v2002_v37 }
 0x26c   : > { %v1972_v32 = vpop.permute.xlu0 %1971 }
 0x26d   : > { %2066 = vst.msk [vmem:[%s3303_s12 + $0x8] sm:$0xf] %vm2063_vm14, %v1972_v32 }
 0x26f   : > { %v1974_v33 = vpop.permute.xlu1 %1973 }
 0x270   : > { %2067 = vst.msk [vmem:[%s3303_s12 + $0xc] sm:$0xf] %vm2063_vm14, %v1974_v33  ;;  %v2004_v60 = vpop.permute.xlu0 %2003 }
 0x271   : > { %2082 = vst.msk [vmem:[%s3303_s12 + $0x48] sm:$0xf] %vm2063_vm14, %v2004_v60 }
 0x273   : > { %v2006_v34 = vpop.permute.xlu1 %2005 }
 0x274   : > { %2083 = vst.msk [vmem:[%s3303_s12 + $0x4c] sm:$0xf] %vm2063_vm14, %v2006_v34  ;;  %v1976_v53 = vpop.permute.xlu0 %1975 }
 0x275   : > { %2068 = vst.msk [vmem:[%s3303_s12 + $0x10] sm:$0xf] %vm2063_vm14, %v1976_v53 }
 0x277   : > { %v1978_v5 = vpop.permute.xlu1 %1977 }
 0x278   : > { %2069 = vst.msk [vmem:[%s3303_s12 + $0x14] sm:$0xf] %vm2063_vm14, %v1978_v5  ;;  %v2008_v36 = vpop.permute.xlu0 %2007 }
 0x279   : > { %2084 = vst.msk [vmem:[%s3303_s12 + $0x50] sm:$0xf] %vm2063_vm14, %v2008_v36 }
 0x27b   : > { %v2010_v39 = vpop.permute.xlu1 %2009 }
 0x27c   : > { %2085 = vst.msk [vmem:[%s3303_s12 + $0x54] sm:$0xf] %vm2063_vm14, %v2010_v39  ;;  %v1980_v44 = vpop.permute.xlu0 %1979 }
 0x27d   : > { %2070 = vst.msk [vmem:[%s3303_s12 + $0x18] sm:$0xf] %vm2063_vm14, %v1980_v44 }
 0x27f   : > { %v1982_v43 = vpop.permute.xlu1 %1981 }
 0x280   : > { %2071 = vst.msk [vmem:[%s3303_s12 + $0x1c] sm:$0xf] %vm2063_vm14, %v1982_v43  ;;  %v2012_v47 = vpop.permute.xlu0 %2011 }
 0x281   : > { %2086 = vst.msk [vmem:[%s3303_s12 + $0x58] sm:$0xf] %vm2063_vm14, %v2012_v47 }
 0x283   : > { %v2014_v61 = vpop.permute.xlu1 %2013 }
 0x284   : > { %2087 = vst.msk [vmem:[%s3303_s12 + $0x5c] sm:$0xf] %vm2063_vm14, %v2014_v61  ;;  %v1984_v4 = vpop.permute.xlu0 %1983 }
 0x285   : > { %2072 = vst.msk [vmem:[%s3303_s12 + $0x20] sm:$0xf] %vm2063_vm14, %v1984_v4 }
 0x287   : > { %v1986_v19 = vpop.permute.xlu1 %1985 }
 0x288   : > { %2073 = vst.msk [vmem:[%s3303_s12 + $0x24] sm:$0xf] %vm2063_vm14, %v1986_v19  ;;  %v2016_v48 = vpop.permute.xlu0 %2015 }
 0x289   : > { %2088 = vst.msk [vmem:[%s3303_s12 + $0x60] sm:$0xf] %vm2063_vm14, %v2016_v48 }
 0x28b   : > { %v2018_v50 = vpop.permute.xlu1 %2017 }
 0x28c   : > { %2089 = vst.msk [vmem:[%s3303_s12 + $0x64] sm:$0xf] %vm2063_vm14, %v2018_v50  ;;  %v1988_v51 = vpop.permute.xlu0 %1987 }
 0x28d   : > { %2074 = vst.msk [vmem:[%s3303_s12 + $0x28] sm:$0xf] %vm2063_vm14, %v1988_v51 }
 0x28f   : > { %v1990_v26 = vpop.permute.xlu1 %1989 }
 0x290   : > { %2075 = vst.msk [vmem:[%s3303_s12 + $0x2c] sm:$0xf] %vm2063_vm14, %v1990_v26  ;;  %v2020_v52 = vpop.permute.xlu0 %2019 }
 0x291   : > { %2090 = vst.msk [vmem:[%s3303_s12 + $0x68] sm:$0xf] %vm2063_vm14, %v2020_v52 }
 0x293   : > { %v2022_v17 = vpop.permute.xlu1 %2021 }
 0x294   : > { %2091 = vst.msk [vmem:[%s3303_s12 + $0x6c] sm:$0xf] %vm2063_vm14, %v2022_v17  ;;  %v1992_v54 = vpop.permute.xlu0 %1991 }
 0x295   : > { %2076 = vst.msk [vmem:[%s3303_s12 + $0x30] sm:$0xf] %vm2063_vm14, %v1992_v54 }
 0x297   : > { %v1994_v42 = vpop.permute.xlu1 %1993 }
 0x298   : > { %2077 = vst.msk [vmem:[%s3303_s12 + $0x34] sm:$0xf] %vm2063_vm14, %v1994_v42  ;;  %v2024_v55 = vpop.permute.xlu0 %2023 }
 0x299   : > { %2092 = vst.msk [vmem:[%s3303_s12 + $0x70] sm:$0xf] %vm2063_vm14, %v2024_v55 }
 0x29b   : > { %v2026_v56 = vpop.permute.xlu1 %2025 }
 0x29c   : > { %2093 = vst.msk [vmem:[%s3303_s12 + $0x74] sm:$0xf] %vm2063_vm14, %v2026_v56  ;;  %v1996_v58 = vpop.permute.xlu0 %1995 }
 0x29d   : > { %2078 = vst.msk [vmem:[%s3303_s12 + $0x38] sm:$0xf] %vm2063_vm14, %v1996_v58 }
 0x29f   : > { %v1998_v31 = vpop.permute.xlu1 %1997 }
 0x2a0   : > { %2079 = vst.msk [vmem:[%s3303_s12 + $0x3c] sm:$0xf] %vm2063_vm14, %v1998_v31  ;;  %v2028_v59 = vpop.permute.xlu0 %2027 }
 0x2a1   : > { %2094 = vst.msk [vmem:[%s3303_s12 + $0x78] sm:$0xf] %vm2063_vm14, %v2028_v59 }
 0x2a3   : > { %v2030_v11 = vpop.permute.xlu1 %2029 }
 0x2a4   : > { %2095 = vst.msk [vmem:[%s3303_s12 + $0x7c] sm:$0xf] %vm2063_vm14, %v2030_v11 }
 0x2a5 PF: > { %s17_s23 = sadd.s32 1, %s2543_s23   ;;  %s3387_s21 = smov %s2539_s22 }
 0x2a6   : > { %p14_p5 = scmp.ge.s32.totalorder %s17_s23, 4   ;;  %s3388_s22 = smov %s3390_s24 }
 0x2a8   :  { %16 = sbr.rel (!%p14_p5) target bundleno = 2 (0x2), region = 88 }

// kernel: colornet_forward.27
= control target key start
LH: loop header
LB: loop body
LE: loop exit
PB: predicated region body
PF: predicated region fallthrough
CT: control target
= control target key end

     0   :  { %s3873_s30 = smov 0   ;;  %s3875_s10 = smov 0   ;;  %s5096_s0 = inlined_call_operand.vmem [shape: bf16[2,16,16,24], index: 0, kind: input, shape index: {}, may-alias: {0,1,2}]   ;;  %s5097_s1 = inlined_call_operand.vmem [shape: bf16[2,16,16,24], index: 1, kind: input, shape index: {}, may-alias: {0,1,2}]   ;;  %s5098_s2 = inlined_call_operand.vmem [shape: bf16[2,16,16,24], index: 2, kind: input, shape index: {}, may-alias: {0,1,2}]   ;;  %s5099_s3 = inlined_call_operand.vmem [shape: bf16[216,8], index: 3, kind: input, shape index: {}]   ;;  %s5100_s4 = inlined_call_operand.vmem [shape: f32[1,8], index: 4, kind: input, shape index: {}]   ;;  %s5101_s5 = inlined_call_operand.vmem [shape: bf16[2,16,16,8], index: 5, kind: input, shape index: {}]   ;;  %s5102_s6 = inlined_call_operand.vmem [shape: bf16[2,16,16,8], index: 6, kind: input, shape index: {}]   ;;  %s5103_s7 = inlined_call_operand.vmem [shape: bf16[2,16,16,8], index: 7, kind: input, shape index: {}]   ;;  %s5104_s8 = inlined_call_operand.vmem [shape: bf16[2,16,16,32], index: 8, kind: output, shape index: {0}]   ;;  %s5105_s9 = inlined_call_operand.vmem [shape: f32[2,1,32], index: 9, kind: output, shape index: {1}]  }
   0x1   :  { %s3877_s11 = smov 0  }
   0x2 LB: > { %s32_s12 = sadd.s32 1, %s3810_s10  ;;  %p3159_p0 = scmp.ge.s32.totalorder %s3814_s11, 1  ;;  %s3814_s11 = sphi %s3877_s11, %s20_s11   ;;  %s3810_s10 = sphi %s3875_s10, %s5109_s10   ;;  %s3806_s30 = sphi %s3873_s30, %s5108_s30  }
   0x3   : > { %p34_p1 = scmp.ge.s32.totalorder %s32_s12, 2  ;;  %p430_p2 = scmp.lt.s32.totalorder %s3814_s11, 3 }
   0x5   : > { %s5111_s12 = smov (%p34_p1, %s32_s12), 0  ;;  %p431_p3 = pnand %p3159_p0, %p430_p2 }
   0x6   : > { %p539_p4 = scmp.lt.s32.totalorder (!%p431_p3), %s3806_s30, 1  ;;  %vm923_vm0 = vsmask.f32 (!%p431_p3), 256  ;;  %vm922_vm1 = vcmask (!%p431_p3), 1040384   ;;  %vm1250_vm2 = vcmask (!%p431_p3), 1046528   ;;  %s3816_s17 = smov (!%p431_p3), 48  }
   0x7   : > { %434 = sbr.rel (%p431_p3) target bundleno = 789 (0x315), region = 52  ;;  %vm961_vm3 = vsmask.f32 (!%p431_p3), 7424  ;;  %vm3908_vm4 = vmand (!%p431_p3), %vm922_vm1, %vm923_vm0  ;;  %s3817_s18 = smov (!%p431_p3), 24   ;;  %vm1726_vm5 = vcmask (!%p431_p3), 1043456   ;;  %vm1341_vm6 = vcmask (!%p431_p3), 195584  }
   0x8   : > { %vm1378_vm7 = vcmask (!%p431_p3), 392192   ;;  %s3819_s27 = smov (!%p431_p3), 72   ;;  %s3820_s28 = smov (!%p431_p3), 16   ;;  %vm1545_vm8 = vcmask (!%p431_p3), 130048   ;;  %vm1693_vm9 = vcmask (!%p431_p3), 719872   ;;  %vm1496_vm10 = vcmask (!%p431_p3), 588800  }
   0x9   : > { %vm2467_vm11 = vcmask (!%p431_p3), 64512   ;;  %vm2692_vm12 = vcmask (!%p431_p3), 257024   ;;  %vm2729_vm13 = vcmask (!%p431_p3), 253952   ;;  %vm2733_vm14 = vcmask (!%p431_p3), 261120  }
   0xe   : > { %s5113_s30 = smov (!%p539_p4, %s3806_s30), 1 }
   0xf   : > { %s3894_s13 = sshll.u32 %s5113_s30, 7 }
  0x10   : > { %s3900_s16 = scalar_lea.vmem %s5097_s1, %s3894_s13  ;;  %s547_s21 = scalar_lea.vmem %s5096_s0, %s3894_s13 }
  0x11   : > { %v3760_v0 = vld [vmem:[%s3900_s16] sm:$0xff]   ;;  %v3761_v1 = vld [vmem:[%s3900_s16 + $0x8] sm:$0xff]   ;;  %v3762_v6 = vld [vmem:[%s3900_s16 + $0x10] sm:$0xff]   ;;  %s3258_s25 = sadd.s32 120, %s3894_s13  ;;  %s4406_s20 = scalar_lea.vmem %s5103_s7, %s3894_s13 }
  0x12   : > { %v768_v2 = vshrl.u32 %v3760_v0, 16  ;;  %v771_v3 = vshll.u32 %v3760_v0, 16  ;;  %v775_v4 = vshrl.u32 %v3761_v1, 16  ;;  %v778_v5 = vshll.u32 %v3761_v1, 16  ;;  %v3763_v7 = vld [vmem:[%s3900_s16 + $0x18] sm:$0xff]   ;;  %v3764_v9 = vld [vmem:[%s3900_s16 + $0x20] sm:$0xff]   ;;  %s575_s14 = scalar_lea.vmem %s5098_s2, %s3258_s25  ;;  %s4514_s25 = scalar_lea.vmem %s5101_s5, %s3894_s13 }
  0x13   : > { %v782_v12 = vshrl.u32 %v3762_v6, 16  ;;  %v785_v13 = vshll.u32 %v3762_v6, 16  ;;  %v789_v14 = vshrl.u32 %v3763_v7, 16  ;;  %v792_v17 = vshll.u32 %v3763_v7, 16  ;;  %v3765_v51 = vld [vmem:[%s3900_s16 + $0x28] sm:$0xff]  }
  0x14   : > { %v770_v8 = vrot.slane %v768_v2, 7  ;;  %v777_v11 = vrot.slane %v775_v4, 7  ;;  %v796_v18 = vshrl.u32 %v3764_v9, 16  ;;  %v799_v59 = vshll.u32 %v3764_v9, 16  ;;  %v3766_v4 = vld [vmem:[%s3900_s16 + $0x40] sm:$0xff]   ;;  %v3767_v9 = vld [vmem:[%s3900_s16 + $0x48] sm:$0xff]  }
  0x15   : > { %v784_v26 = vrot.slane %v782_v12, 7  ;;  %v791_v50 = vrot.slane %v789_v14, 7 }
  0x16   : > { %v773_v15 = vor.u32 %v771_v3, %v770_v8  ;;  %v944_v16 = vsel %vm3908_vm4, %v770_v8, 0  ;;  %v780_v21 = vor.u32 %v778_v5, %v777_v11  ;;  %v945_v22 = vsel %vm3908_vm4, %v777_v11, 0 }
  0x17   : > { %v982_v19 = vshll.u32 %v944_v16, 16  ;;  %v1255_v20 = vrot.slane %v944_v16, 1  ;;  %v994_v24 = vshll.u32 %v945_v22, 16  ;;  %v1258_v25 = vrot.slane %v945_v22, 1 }
  0x18   : > { %v3918_v23 = vsel %vm3908_vm4, 0, %v773_v15  ;;  %v3925_v31 = vsel %vm3908_vm4, 0, %v780_v21  ;;  %v787_v33 = vor.u32 %v785_v13, %v784_v26  ;;  %v946_v34 = vsel %vm3908_vm4, %v784_v26, 0 }
  0x19   : > { %v975_v27 = vshrl.u32 %v3918_v23, 16  ;;  %v977_v28 = vshll.u32 %v3918_v23, 16  ;;  %v984_v29 = vrot.slane %v982_v19, 1  ;;  %v1254_v30 = vrot.slane %v3918_v23, 1 }
  0x1a   : > { %v996_v32 = vrot.slane %v994_v24, 1  ;;  %v987_v37 = vshrl.u32 %v3925_v31, 16  ;;  %v989_v38 = vshll.u32 %v3925_v31, 16  ;;  %v1257_v39 = vrot.slane %v3925_v31, 1 }
  0x1b   : > { %v979_v35 = vrot.slane %v977_v28, 1  ;;  %v1256_v36 = vsel %vm1250_vm2, %v1254_v30, %v1255_v20  ;;  %v3936_v40 = vsel %vm3908_vm4, 0, %v787_v33  ;;  %v1006_v41 = vshll.u32 %v946_v34, 16 }
  0x1c   : > { %1307 = vrot.lane.b32.xlu1 %v1256_v36, %s3816_s17  ;;  %v1261_v42 = vrot.slane %v946_v34, 1  ;;  %v991_v44 = vrot.slane %v989_v38, 1  ;;  %v999_v45 = vshrl.u32 %v3936_v40, 16  ;;  %v1001_v46 = vshll.u32 %v3936_v40, 16 }
  0x1d   : > { %v980_v43 = vor.u32 %v979_v35, %v975_v27  ;;  %v1259_v47 = vsel %vm1250_vm2, %v1257_v39, %v1258_v25  ;;  %v1008_v48 = vrot.slane %v1006_v41, 1  ;;  %v1260_v49 = vrot.slane %v3936_v40, 1 }
  0x1e   : > { %v992_v53 = vor.u32 %v991_v44, %v987_v37  ;;  %v1003_v54 = vrot.slane %v1001_v46, 1  ;;  %v798_v55 = vrot.slane %v796_v18, 7  ;;  %v794_v57 = vor.u32 %v792_v17, %v791_v50 }
  0x1f   : > { %v985_v52 = vsel %vm961_vm3, %v980_v43, %v984_v29  ;;  %v1262_v56 = vsel %vm1250_vm2, %v1260_v49, %v1261_v42  ;;  %v947_v58 = vsel %vm3908_vm4, %v791_v50, 0  ;;  %v803_v3 = vshrl.u32 %v3765_v51, 16  ;;  %v3768_v49 = vld [vmem:[%s3900_s16 + $0x30] sm:$0xff]  }
  0x20   : > { %1180 = vrot.lane.b32.xlu0 %v985_v52, %s3817_s18  ;;  %1309 = vrot.lane.b32.xlu1 %v1259_v47, %s3816_s17  ;;  %v997_v60 = vsel %vm961_vm3, %v992_v53, %v996_v32  ;;  %v1004_v61 = vor.u32 %v1003_v54, %v999_v45  ;;  %v1018_v62 = vshll.u32 %v947_v58, 16  ;;  %v1264_v63 = vrot.slane %v947_v58, 1  ;;  %v3769_v50 = vld [vmem:[%s3900_s16 + $0x50] sm:$0xff]  }
  0x21   : > { %v3952_v0 = vsel %vm3908_vm4, 0, %v794_v57  ;;  %v801_v1 = vor.u32 %v799_v59, %v798_v55  ;;  %v948_v2 = vsel %vm3908_vm4, %v798_v55, 0  ;;  %v805_v21 = vrot.slane %v803_v3, 7 }
  0x22   : > { %v1009_v5 = vsel %vm961_vm3, %v1004_v61, %v1008_v48  ;;  %v1011_v6 = vshrl.u32 %v3952_v0, 16  ;;  %v1013_v7 = vshll.u32 %v3952_v0, 16  ;;  %v1020_v8 = vrot.slane %v1018_v62, 1 }
  0x23   : > { %v1263_v11 = vrot.slane %v3952_v0, 1  ;;  %v3966_v12 = vsel %vm3908_vm4, 0, %v801_v1  ;;  %v1030_v13 = vshll.u32 %v948_v2, 16  ;;  %v1267_v14 = vrot.slane %v948_v2, 1 }
  0x24   : > { %1182 = vrot.lane.b32.xlu0 %v997_v60, %s3817_s18  ;;  %1311 = vrot.lane.b32.xlu1 %v1262_v56, %s3816_s17  ;;  %v1015_v15 = vrot.slane %v1013_v7, 1  ;;  %v1023_v16 = vshrl.u32 %v3966_v12, 16  ;;  %v1025_v17 = vshll.u32 %v3966_v12, 16  ;;  %v1266_v18 = vrot.slane %v3966_v12, 1 }
  0x25   : > { %v1265_v19 = vsel %vm1250_vm2, %v1263_v11, %v1264_v63  ;;  %v1032_v20 = vrot.slane %v1030_v13, 1  ;;  %v806_v22 = vshll.u32 %v3765_v51, 16  ;;  %v824_v27 = vshrl.u32 %v3766_v4, 16  ;;  %v3770_v63 = vld [vmem:[%s3900_s16 + $0x38] sm:$0xff]  }
  0x26   : > { %v1016_v24 = vor.u32 %v1015_v15, %v1011_v6  ;;  %v1027_v25 = vrot.slane %v1025_v17, 1  ;;  %v1268_v26 = vsel %vm1250_vm2, %v1266_v18, %v1267_v14  ;;  %v949_v29 = vsel %vm3908_vm4, %v805_v21, 0  ;;  %v3771_v18 = vld [vmem:[%s3900_s16 + $0x58] sm:$0xff]  }
  0x27   : > { %v808_v28 = vor.u32 %v806_v22, %v805_v21  ;;  %v827_v30 = vshll.u32 %v3766_v4, 16  ;;  %v831_v32 = vshrl.u32 %v3767_v9, 16  ;;  %v1042_v35 = vshll.u32 %v949_v29, 16 }
  0x28   : > { %1184 = vrot.lane.b32.xlu0 %v1009_v5, %s3817_s18  ;;  %1313 = vrot.lane.b32.xlu1 %v1265_v19, %s3816_s17  ;;  %v1021_v33 = vsel %vm961_vm3, %v1016_v24, %v1020_v8  ;;  %v1028_v34 = vor.u32 %v1027_v25, %v1023_v16  ;;  %v826_v36 = vrot.slane %v824_v27, 7  ;;  %v834_v39 = vshll.u32 %v3767_v9, 16 }
  0x29   : > { %v3980_v37 = vsel %vm3908_vm4, 0, %v808_v28  ;;  %v833_v38 = vrot.slane %v831_v32, 7  ;;  %v1270_v44 = vrot.slane %v949_v29, 1  ;;  %v1044_v52 = vrot.slane %v1042_v35, 1 }
  0x2a   : > { %v1033_v41 = vsel %vm961_vm3, %v1028_v34, %v1032_v20  ;;  %v1035_v42 = vshrl.u32 %v3980_v37, 16  ;;  %v1037_v43 = vshll.u32 %v3980_v37, 16  ;;  %v829_v45 = vor.u32 %v827_v30, %v826_v36 }
  0x2b   : > { %v952_v46 = vsel %vm3908_vm4, %v826_v36, 0  ;;  %v836_v47 = vor.u32 %v834_v39, %v833_v38  ;;  %v953_v48 = vsel %vm3908_vm4, %v833_v38, 0  ;;  %v1269_v57 = vrot.slane %v3980_v37, 1 }
  0x2c   : > { %1186 = vrot.lane.b32.xlu0 %v1021_v33, %s3817_s18  ;;  %1315 = vrot.lane.b32.xlu1 %v1268_v26, %s3816_s17  ;;  %v1039_v51 = vrot.slane %v1037_v43, 1  ;;  %v1078_v53 = vshll.u32 %v952_v46, 16  ;;  %v1090_v54 = vshll.u32 %v953_v48, 16  ;;  %v3995_v55 = vsel %vm3908_vm4, 0, %v829_v45 }
  0x2d   : > { %v3999_v56 = vsel %vm3908_vm4, 0, %v836_v47  ;;  %v1279_v58 = vrot.slane %v952_v46, 1  ;;  %v1071_v60 = vshrl.u32 %v3995_v55, 16  ;;  %v1073_v61 = vshll.u32 %v3995_v55, 16 }
  0x2e   : > { %v1040_v59 = vor.u32 %v1039_v51, %v1035_v42  ;;  %v1282_v62 = vrot.slane %v953_v48, 1  ;;  %v1080_v1 = vrot.slane %v1078_v53, 1  ;;  %v1083_v2 = vshrl.u32 %v3999_v56, 16 }
  0x2f   : > { %v1085_v3 = vshll.u32 %v3999_v56, 16  ;;  %v1092_v4 = vrot.slane %v1090_v54, 1  ;;  %v1075_v6 = vrot.slane %v1073_v61, 1  ;;  %v1278_v7 = vrot.slane %v3995_v55, 1 }
  0x30   : > { %1188 = vrot.lane.b32.xlu0 %v1033_v41, %s3817_s18  ;;  %v1045_v5 = vsel %vm961_vm3, %v1040_v59, %v1044_v52  ;;  %v1281_v8 = vrot.slane %v3999_v56, 1  ;;  %v810_v11 = vshrl.u32 %v3768_v49, 16  ;;  %v813_v13 = vshll.u32 %v3768_v49, 16 }
  0x31   : > { %v1087_v9 = vrot.slane %v1085_v3, 1  ;;  %v838_v14 = vshrl.u32 %v3769_v50, 16  ;;  %v1076_v15 = vor.u32 %v1075_v6, %v1071_v60  ;;  %v1271_v16 = vsel %vm1250_vm2, %v1269_v57, %v1270_v44 }
  0x32   : > { %v841_v17 = vshll.u32 %v3769_v50, 16  ;;  %v812_v20 = vrot.slane %v810_v11, 7  ;;  %v817_v22 = vshrl.u32 %v3770_v63, 16  ;;  %v1280_v25 = vsel %vm1250_vm2, %v1278_v7, %v1279_v58 }
  0x33   : > { %v1088_v19 = vor.u32 %v1087_v9, %v1083_v2  ;;  %v840_v21 = vrot.slane %v838_v14, 7  ;;  %v1081_v24 = vsel %vm961_vm3, %v1076_v15, %v1080_v1  ;;  %v1283_v26 = vsel %vm1250_vm2, %v1281_v8, %v1282_v62  ;;  %v3296_v15 = vld [vmem:[%s547_s21] sm:$0xff]   ;;  %s3821_s21 = smov 8  }
  0x34   : > { %1190 = vrot.lane.b32.xlu0 %v1045_v5, %s3817_s18  ;;  %v820_v27 = vshll.u32 %v3770_v63, 16  ;;  %1196 = vrot.lane.b32.xlu1 %v1081_v24, %s3817_s18  ;;  %v815_v29 = vor.u32 %v813_v13, %v812_v20  ;;  %v950_v30 = vsel %vm3908_vm4, %v812_v20, 0  ;;  %v819_v35 = vrot.slane %v817_v22, 7  ;;  %v3772_v5 = vld [vmem:[%s3900_s16 + $0x60] sm:$0xff]  }
  0x35   : > { %v1093_v28 = vsel %vm961_vm3, %v1088_v19, %v1092_v4  ;;  %v843_v32 = vor.u32 %v841_v17, %v840_v21  ;;  %v1054_v33 = vshll.u32 %v950_v30, 16  ;;  %v954_v34 = vsel %vm3908_vm4, %v840_v21, 0 }
  0x36   : > { %v845_v36 = vshrl.u32 %v3771_v18, 16  ;;  %v4026_v38 = vsel %vm3908_vm4, 0, %v815_v29  ;;  %v1102_v41 = vshll.u32 %v954_v34, 16  ;;  %v848_v42 = vshll.u32 %v3771_v18, 16 }
  0x37   : > { %v4030_v39 = vsel %vm3908_vm4, 0, %v843_v32  ;;  %v1047_v43 = vshrl.u32 %v4026_v38, 16  ;;  %v1049_v44 = vshll.u32 %v4026_v38, 16  ;;  %v1273_v45 = vrot.slane %v950_v30, 1 }
  0x38   : > { %1198 = vrot.lane.b32.xlu0 %v1093_v28, %s3817_s18  ;;  %v1285_v46 = vrot.slane %v954_v34, 1  ;;  %1317 = vrot.lane.b32.xlu1 %v1271_v16, %s3816_s17  ;;  %v1056_v47 = vrot.slane %v1054_v33, 1  ;;  %v1095_v48 = vshrl.u32 %v4030_v39, 16  ;;  %v1097_v49 = vshll.u32 %v4030_v39, 16  ;;  %v3773_v16 = vld [vmem:[%s3900_s16 + $0x68] sm:$0xff]  }
  0x39   : > { %v1104_v50 = vrot.slane %v1102_v41, 1  ;;  %v1051_v51 = vrot.slane %v1049_v44, 1  ;;  %v822_v52 = vor.u32 %v820_v27, %v819_v35  ;;  %v951_v53 = vsel %vm3908_vm4, %v819_v35, 0 }
  0x3a   : > { %v847_v54 = vrot.slane %v845_v36, 7  ;;  %v1099_v57 = vrot.slane %v1097_v49, 1  ;;  %v1272_v58 = vrot.slane %v4026_v38, 1  ;;  %v1284_v59 = vrot.slane %v4030_v39, 1 }
  0x3b   : > { %v1066_v60 = vshll.u32 %v951_v53, 16  ;;  %v1052_v61 = vor.u32 %v1051_v51, %v1047_v43  ;;  %v4044_v62 = vsel %vm3908_vm4, 0, %v822_v52  ;;  %v852_v24 = vshrl.u32 %v3772_v5, 16 }
  0x3c   : > { %1323 = vrot.lane.b32.xlu0 %v1280_v25, %s3816_s17  ;;  %v850_v63 = vor.u32 %v848_v42, %v847_v54  ;;  %v955_v1 = vsel %vm3908_vm4, %v847_v54, 0  ;;  %1325 = vrot.lane.b32.xlu1 %v1283_v26, %s3816_s17  ;;  %v1100_v2 = vor.u32 %v1099_v57, %v1095_v48  ;;  %v1059_v3 = vshrl.u32 %v4044_v62, 16 }
  0x3d   : > { %v1061_v4 = vshll.u32 %v4044_v62, 16  ;;  %v1057_v6 = vsel %vm961_vm3, %v1052_v61, %v1056_v47  ;;  %v1114_v8 = vshll.u32 %v955_v1, 16  ;;  %v1274_v17 = vsel %vm1250_vm2, %v1272_v58, %v1273_v45 }
  0x3e   : > { %v4059_v7 = vsel %vm3908_vm4, 0, %v850_v63  ;;  %v1105_v9 = vsel %vm961_vm3, %v1100_v2, %v1104_v50  ;;  %v1286_v18 = vsel %vm1250_vm2, %v1284_v59, %v1285_v46  ;;  %v1068_v19 = vrot.slane %v1066_v60, 1 }
  0x3f   : > { %v1063_v11 = vrot.slane %v1061_v4, 1  ;;  %v1107_v13 = vshrl.u32 %v4059_v7, 16  ;;  %v1109_v14 = vshll.u32 %v4059_v7, 16  ;;  %v1275_v20 = vrot.slane %v4044_v62, 1 }
  0x40   : > { %1192 = vrot.lane.b32.xlu0 %v1057_v6, %s3817_s18  ;;  %1200 = vrot.lane.b32.xlu1 %v1105_v9, %s3817_s18  ;;  %v855_v25 = vshll.u32 %v3772_v5, 16  ;;  %v1116_v26 = vrot.slane %v1114_v8, 1  ;;  %v1276_v27 = vrot.slane %v951_v53, 1  ;;  %v3297_v28 = vunpack.c.l.bf16 %v3296_v15 }
  0x41   : > { %v1064_v21 = vor.u32 %v1063_v11, %v1059_v3  ;;  %v1111_v22 = vrot.slane %v1109_v14, 1  ;;  %v3298_v29 = vunpack.c.h.bf16 %v3296_v15  ;;  %v1287_v32 = vrot.slane %v4059_v7, 1 }
  0x42   : > { %v854_v33 = vrot.slane %v852_v24, 7  ;;  %v859_v34 = vshrl.u32 %v3773_v16, 16  ;;  %v669_v36 = vmul.f32 0.0, %v3297_v28  ;;  %v862_v42 = vshll.u32 %v3773_v16, 16 }
  0x43   : > { %v1112_v30 = vor.u32 %v1111_v22, %v1107_v13  ;;  %v1069_v35 = vsel %vm961_vm3, %v1064_v21, %v1068_v19  ;;  %v670_v41 = vmul.f32 0.0, %v3298_v29  ;;  %v1288_v43 = vrot.slane %v955_v1, 1 }
  0x44   : > { %1319 = vrot.lane.b32.xlu0 %v1274_v17, %s3816_s17  ;;  %1327 = vrot.lane.b32.xlu1 %v1286_v18, %s3816_s17  ;;  %v857_v44 = vor.u32 %v855_v25, %v854_v33  ;;  %v956_v45 = vsel %vm3908_vm4, %v854_v33, 0  ;;  %v861_v46 = vrot.slane %v859_v34, 7  ;;  %v1277_v52 = vsel %vm1250_vm2, %v1275_v20, %v1276_v27 }
  0x45   : > { %v1117_v47 = vsel %vm961_vm3, %v1112_v30, %v1116_v26  ;;  %v1126_v48 = vshll.u32 %v956_v45, 16  ;;  %v671_v49 = vpack.c.bf16 %v670_v41, %v669_v36  ;;  %v1289_v57 = vsel %vm1250_vm2, %v1287_v32, %v1288_v43  ;;  %v3778_v43 = vld [vmem:[%s5099_s3 + $0x10] sm:$0xff]  }
  0x46   : > { %v4080_v50 = vsel %vm3908_vm4, 0, %v857_v44  ;;  %v864_v51 = vor.u32 %v862_v42, %v861_v46  ;;  %v1291_v2 = vrot.slane %v956_v45, 1  ;;  %v957_v5 = vsel %vm3908_vm4, %v861_v46, 0  ;;  %v3777_v42 = vld [vmem:[%s5099_s3 + $0x8] sm:$0xff]   ;;  %v3779_v44 = vld [vmem:[%s5099_s3 + $0x18] sm:$0xff]   ;;  %v3780_v45 = vld [vmem:[%s5099_s3 + $0x20] sm:$0xff]  }
  0x47   : > { %v1119_v53 = vshrl.u32 %v4080_v50, 16  ;;  %v1121_v54 = vshll.u32 %v4080_v50, 16  ;;  %v761_v58 = vshrl.u32 %v671_v49, 16  ;;  %v764_v59 = vshll.u32 %v671_v49, 16  ;;  %v3781_v46 = vld [vmem:[%s5099_s3 + $0x28] sm:$0xff]   ;;  %v3774_v49 = vld [vmem:[%s3900_s16 + $0x70] sm:$0xff]  }
  0x48   : > { %1194 = vrot.lane.b32.xlu0 %v1069_v35, %s3817_s18  ;;  %1202 = vrot.lane.b32.xlu1 %v1117_v47, %s3817_s18  ;;  %v4089_v60 = vsel %vm3908_vm4, 0, %v864_v51  ;;  %v1128_v63 = vrot.slane %v1126_v48, 1  ;;  %v1290_v1 = vrot.slane %v4080_v50, 1  ;;  %v1138_v18 = vshll.u32 %v957_v5, 16  ;;  %v3776_v35 = vld [vmem:[%s5099_s3] sm:$0xff]   ;;  %v3782_v47 = vld [vmem:[%s5099_s3 + $0x30] sm:$0xff]  }
  0x49   : > { %v1123_v61 = vrot.slane %v1121_v54, 1  ;;  %v763_v3 = vrot.slane %v761_v58, 7  ;;  %v1133_v6 = vshll.u32 %v4089_v60, 16  ;;  %v1131_v17 = vshrl.u32 %v4089_v60, 16  ;;  %v3783_v48 = vld [vmem:[%s5099_s3 + $0x38] sm:$0xff]   ;;  %v3784_v51 = vld [vmem:[%s5099_s3 + $0x40] sm:$0xff]  }
  0x4a   : > { %v1292_v13 = vsel %vm1250_vm2, %v1290_v1, %v1291_v2  ;;  %v1293_v24 = vrot.slane %v4089_v60, 1  ;;  %v1294_v28 = vrot.slane %v957_v5, 1  ;;  %v1140_v32 = vrot.slane %v1138_v18, 1  ;;  %v3300_v54 = vld [vmem:[%s575_s14] sm:$0xff]   ;;  %v3786_v1 = vld [vmem:[%s5099_s3 + $0x50] sm:$0xff]   ;;  %s4384_s14 = scalar_lea.vmem %s5102_s6, %s3894_s13 }
  0x4b   : > { %v1124_v4 = vor.u32 %v1123_v61, %v1119_v53  ;;  %v766_v8 = vor.u32 %v764_v59, %v763_v3  ;;  %v943_v9 = vsel %vm3908_vm4, %v763_v3, 0  ;;  %v1135_v22 = vrot.slane %v1133_v6, 1  ;;  %v3785_v53 = vld [vmem:[%s5099_s3 + $0x48] sm:$0xff]   ;;  %v3787_v6 = vld [vmem:[%s5099_s3 + $0x58] sm:$0xff]  }
  0x4c   : > { %1321 = vrot.lane.b32.xlu0 %v1277_v52, %s3816_s17  ;;  %1329 = vrot.lane.b32.xlu1 %v1289_v57, %s3816_s17  ;;  %v970_v14 = vshll.u32 %v943_v9, 16  ;;  %v1252_v15 = vrot.slane %v943_v9, 1  ;;  %v1295_v34 = vsel %vm1250_vm2, %v1293_v24, %v1294_v28  ;;  %v3818_v41 = vmov 0   ;;  %v3775_v57 = vld [vmem:[%s3900_s16 + $0x78] sm:$0xff]  }
  0x4d   : > { %v1129_v11 = vsel %vm961_vm3, %v1124_v4, %v1128_v63  ;;  %v4104_v16 = vsel %vm3908_vm4, 0, %v766_v8  ;;  %v1136_v30 = vor.u32 %v1135_v22, %v1131_v17  ;;  %1730 = vmatprep.subr.bf16.mxu0 %v3818_v41  ;;  %3541 = vmatprep.subr.bf16.mxu1 %v3818_v41  ;;  %v866_v52 = vshrl.u32 %v3774_v49, 16 }
  0x4e   : > { %v963_v19 = vshrl.u32 %v4104_v16, 16  ;;  %v965_v20 = vshll.u32 %v4104_v16, 16  ;;  %v1251_v21 = vrot.slane %v4104_v16, 1  ;;  %v972_v26 = vrot.slane %v970_v14, 1  ;;  %1731 = vmatpush1.bf16.msra.mxu0 %v3776_v35  ;;  %3555 = vmatpush1.bf16.msra.mxu1 %v3776_v35  ;;  %v3788_v14 = vld [vmem:[%s5099_s3 + $0x60] sm:$0xff]  }
  0x4f   : > { %v1141_v36 = vsel %vm961_vm3, %v1136_v30, %v1140_v32  ;;  %1732 = vmatprep.subr.bf16.mxu0 %v3818_v41  ;;  %3542 = vmatprep.subr.bf16.mxu1 %v3818_v41  ;;  %v868_v58 = vrot.slane %v866_v52, 7  ;;  %v869_v59 = vshll.u32 %v3774_v49, 16  ;;  %v3301_v61 = vunpack.c.l.bf16 %v3300_v54 }
  0x50   : > { %1204 = vrot.lane.b32.xlu0 %v1129_v11, %s3817_s18  ;;  %1331 = vrot.lane.b32.xlu1 %v1292_v13, %s3816_s17  ;;  %v967_v25 = vrot.slane %v965_v20, 1  ;;  %v1253_v27 = vsel %vm1250_vm2, %v1251_v21, %v1252_v15  ;;  %v3302_v63 = vunpack.c.h.bf16 %v3300_v54  ;;  %v873_v2 = vshrl.u32 %v3775_v57, 16  ;;  %v3789_v15 = vld [vmem:[%s5099_s3 + $0x68] ss:$0 sps:$4 sm:$0xff]  }
  0x51   : > { %v871_v3 = vor.u32 %v869_v59, %v868_v58  ;;  %v677_v4 = vmul.f32 0.0, %v3301_v61  ;;  %v876_v9 = vshll.u32 %v3775_v57, 16  ;;  %v1728_v21 = vsel %vm1726_vm5, %v3789_v15, 0 }
  0x52   : > { %v968_v29 = vor.u32 %v967_v25, %v963_v19  ;;  %1733 = vmatpush1.bf16.msra.mxu0 %v3777_v42  ;;  %3556 = vmatpush1.bf16.msra.mxu1 %v3777_v42  ;;  %v678_v5 = vmul.f32 0.0, %v3302_v63  ;;  %v875_v8 = vrot.slane %v873_v2, 7  ;;  %v958_v19 = vsel %vm3908_vm4, %v868_v58, 0 }
  0x53   : > { %1734 = vmatprep.subr.bf16.mxu0 %v3818_v41  ;;  %3543 = vmatprep.subr.bf16.mxu1 %v3818_v41  ;;  %v4188_v11 = vsel %vm3908_vm4, 0, %v871_v3 }
  0x54   : > { %1305 = vrot.lane.b32.xlu1 %v1253_v27, %s3816_s17  ;;  %v973_v33 = vsel %vm961_vm3, %v968_v29, %v972_v26  ;;  %v679_v13 = vpack.c.bf16 %v678_v5, %v677_v4  ;;  %v1145_v17 = vshll.u32 %v4188_v11, 16  ;;  %v878_v18 = vor.u32 %v876_v9, %v875_v8 }
  0x55   : > { %1178 = vrot.lane.b32.xlu0 %v973_v33, %s3817_s18  ;;  %v1143_v24 = vshrl.u32 %v4188_v11, 16  ;;  %v1150_v26 = vshll.u32 %v958_v19, 16  ;;  %v1296_v49 = vrot.slane %v4188_v11, 1 }
  0x56   : > { %1735 = vmatpush1.bf16.msra.mxu0 %v3778_v43  ;;  %3557 = vmatpush1.bf16.msra.mxu1 %v3778_v43  ;;  %v880_v20 = vshrl.u32 %v679_v13, 16  ;;  %v1147_v25 = vrot.slane %v1145_v17, 1  ;;  %v4205_v27 = vsel %vm3908_vm4, 0, %v878_v18  ;;  %v883_v29 = vshll.u32 %v679_v13, 16 }
  0x57   : > { %1736 = vmatprep.subr.bf16.mxu0 %v3818_v41  ;;  %3544 = vmatprep.subr.bf16.mxu1 %v3818_v41  ;;  %v1157_v30 = vshll.u32 %v4205_v27, 16  ;;  %v1152_v35 = vrot.slane %v1150_v26, 1  ;;  %v1299_v4 = vrot.slane %v4205_v27, 1 }
  0x58   : > { %1333 = vrot.lane.b32.xlu1 %v1295_v34, %s3816_s17  ;;  %v882_v28 = vrot.slane %v880_v20, 7  ;;  %v1148_v34 = vor.u32 %v1147_v25, %v1143_v24 }
  0x59   : > { %1206 = vrot.lane.b32.xlu0 %v1141_v36, %s3817_s18  ;;  %v959_v36 = vsel %vm3908_vm4, %v875_v8, 0 }
  0x5a   : > { %1737 = vmatpush1.bf16.msra.mxu0 %v3779_v44  ;;  %3558 = vmatpush1.bf16.msra.mxu1 %v3779_v44  ;;  %v885_v43 = vor.u32 %v883_v29, %v882_v28  ;;  %v1155_v44 = vshrl.u32 %v4205_v27, 16  ;;  %v1300_v5 = vrot.slane %v959_v36, 1 }
  0x5b   : > { %1738 = vmatprep.subr.bf16.mxu0 %v3818_v41  ;;  %3545 = vmatprep.subr.bf16.mxu1 %v3818_v41 }
  0x5c   : > { %v1301_v13 = vsel %vm1250_vm2, %v1299_v4, %v1300_v5 }
  0x5e   : > { %1739 = vmatpush1.bf16.msra.mxu0 %v3780_v45  ;;  %3559 = vmatpush1.bf16.msra.mxu1 %v3780_v45  ;;  %v1159_v45 = vrot.slane %v1157_v30, 1 }
  0x5f   : > { %1740 = vmatprep.subr.bf16.mxu0 %v3818_v41  ;;  %3546 = vmatprep.subr.bf16.mxu1 %v3818_v41 }
  0x60   : > { %v1160_v57 = vor.u32 %v1159_v45, %v1155_v44 }
  0x62   : > { %1741 = vmatpush1.bf16.msra.mxu0 %v3781_v46  ;;  %3560 = vmatpush1.bf16.msra.mxu1 %v3781_v46  ;;  %v1162_v46 = vshll.u32 %v959_v36, 16 }
  0x63   : > { %1742 = vmatprep.subr.bf16.mxu0 %v3818_v41  ;;  %3547 = vmatprep.subr.bf16.mxu1 %v3818_v41 }
  0x64   : > { %v1164_v58 = vrot.slane %v1162_v46, 1 }
  0x66   : > { %1743 = vmatpush1.bf16.msra.mxu0 %v3782_v47  ;;  %3561 = vmatpush1.bf16.msra.mxu1 %v3782_v47  ;;  %v1165_v3 = vsel %vm961_vm3, %v1160_v57, %v1164_v58 }
  0x67   : > { %1744 = vmatprep.subr.bf16.mxu0 %v3818_v41  ;;  %3548 = vmatprep.subr.bf16.mxu1 %v3818_v41 }
  0x6a   : > { %1745 = vmatpush1.bf16.msra.mxu0 %v3783_v48  ;;  %3562 = vmatpush1.bf16.msra.mxu1 %v3783_v48  ;;  %v1153_v48 = vsel %vm961_vm3, %v1148_v34, %v1152_v35 }
  0x6b   : > { %1746 = vmatprep.subr.bf16.mxu0 %v3818_v41  ;;  %3549 = vmatprep.subr.bf16.mxu1 %v3818_v41 }
  0x6e   : > { %1747 = vmatpush1.bf16.msra.mxu0 %v3784_v51  ;;  %3563 = vmatpush1.bf16.msra.mxu1 %v3784_v51  ;;  %v1297_v51 = vrot.slane %v958_v19, 1 }
  0x6f   : > { %1748 = vmatprep.subr.bf16.mxu0 %v3818_v41  ;;  %3550 = vmatprep.subr.bf16.mxu1 %v3818_v41 }
  0x70   : > { %v1298_v59 = vsel %vm1250_vm2, %v1296_v49, %v1297_v51 }
  0x72   : > { %1749 = vmatpush1.bf16.msra.mxu0 %v3785_v53  ;;  %3564 = vmatpush1.bf16.msra.mxu1 %v3785_v53  ;;  %v4225_v53 = vsel %vm3908_vm4, 0, %v885_v43 }
  0x73   : > { %1750 = vmatprep.subr.bf16.mxu0 %v3818_v41  ;;  %3551 = vmatprep.subr.bf16.mxu1 %v3818_v41  ;;  %v1302_v24 = vrot.slane %v4225_v53, 1 }
  0x76   : > { %1751 = vmatpush1.bf16.msra.mxu0 %v3786_v1  ;;  %3565 = vmatpush1.bf16.msra.mxu1 %v3786_v1  ;;  %v960_v1 = vsel %vm3908_vm4, %v882_v28, 0 }
  0x77   : > { %1752 = vmatprep.subr.bf16.mxu0 %v3818_v41  ;;  %3552 = vmatprep.subr.bf16.mxu1 %v3818_v41  ;;  %v1174_v10 = vshll.u32 %v960_v1, 16  ;;  %v1303_v25 = vrot.slane %v960_v1, 1 }
  0x79   : > { %v1176_v18 = vrot.slane %v1174_v10, 1 }
  0x7a   : > { %1753 = vmatpush1.bf16.msra.mxu0 %v3787_v6  ;;  %3566 = vmatpush1.bf16.msra.mxu1 %v3787_v6 }
  0x7b   : > { %1754 = vmatprep.subr.bf16.mxu0 %v3818_v41  ;;  %3553 = vmatprep.subr.bf16.mxu1 %v3818_v41 }
  0x7e   : > { %1755 = vmatpush1.bf16.msra.mxu0 %v3788_v14  ;;  %3567 = vmatpush1.bf16.msra.mxu1 %v3788_v14 }
  0x7f   : > { %1756 = vmatprep.subr.bf16.mxu0 %v3818_v41  ;;  %3554 = vmatprep.subr.bf16.mxu1 %v3818_v41 }
  0x82   : > { %1757 = vmatpush1.bf16.msra.mxu0 %v1728_v21  ;;  %3568 = vmatpush1.bf16.msra.mxu1 %v1728_v21 }
  0x8e   : > { %v1308_v22 = vpop.permute.xlu1 %1307 }
  0x92   : > { %v1181_v32 = vpop.permute.xlu0 %1180  ;;  %v1310_v33 = vpop.permute.xlu1 %1309 }
  0x93   : > { %v1345_v42 = vsel %vm1341_vm6, %v3918_v23, %v1181_v32 }
  0x94   : > { %v4214_v41 = vsel %vm1378_vm7, %v1345_v42, %v1308_v22 }
  0x95   : > { %1431 = vrot.lane.b32.xlu0 %v4214_v41, %s3819_s27 }
  0x96   : > { %v1183_v47 = vpop.permute.xlu0 %1182  ;;  %v1312_v52 = vpop.permute.xlu1 %1311 }
  0x97   : > { %v1347_v23 = vsel %vm1341_vm6, %v3925_v31, %v1183_v47  ;;  %v1169_v31 = vshll.u32 %v4225_v53, 16 }
  0x98   : > { %v4228_v54 = vsel %vm1378_vm7, %v1347_v23, %v1310_v33 }
  0x99   : > { %1464 = vrot.lane.b32.xlu1 %v4228_v54, %s3820_s28  ;;  %1208 = vrot.lane.b32.xlu0 %v1153_v48, %s3817_s18  ;;  %v1171_v9 = vrot.slane %v1169_v31, 1 }
  0x9a   : > { %v1185_v61 = vpop.permute.xlu0 %1184  ;;  %v1314_v2 = vpop.permute.xlu1 %1313 }
  0x9b   : > { %v1349_v63 = vsel %vm1341_vm6, %v3936_v40, %v1185_v61  ;;  %v1167_v40 = vshrl.u32 %v4225_v53, 16 }
  0x9c   : > { %v4245_v6 = vsel %vm1378_vm7, %v1349_v63, %v1312_v52 }
  0x9d   : > { %1335 = vrot.lane.b32.xlu1 %v1298_v59, %s3816_s17  ;;  %1433 = vrot.lane.b32.xlu0 %v4228_v54, %s3819_s27  ;;  %v1172_v17 = vor.u32 %v1171_v9, %v1167_v40 }
  0x9e   : > { %v1187_v8 = vpop.permute.xlu0 %1186  ;;  %v1316_v15 = vpop.permute.xlu1 %1315 }
  0x9f   : > { %v1351_v19 = vsel %vm1341_vm6, %v3952_v0, %v1187_v8  ;;  %v1177_v21 = vsel %vm961_vm3, %v1172_v17, %v1176_v18  ;;  %v1304_v0 = vsel %vm1250_vm2, %v1302_v24, %v1303_v25 }
  0xa0   : > { %v4258_v20 = vsel %vm1378_vm7, %v1351_v19, %v1314_v2 }
  0xa1   : > { %1466 = vrot.lane.b32.xlu1 %v4245_v6, %s3820_s28  ;;  %1210 = vrot.lane.b32.xlu0 %v1165_v3, %s3817_s18 }
  0xa2   : > { %v1189_v14 = vpop.permute.xlu0 %1188 }
  0xa3   : > { %v1353_v30 = vsel %vm1341_vm6, %v3966_v12, %v1189_v14 }
  0xa4   : > { %v4274_v34 = vsel %vm1378_vm7, %v1353_v30, %v1316_v15 }
  0xa5   : > { %1337 = vrot.lane.b32.xlu1 %v1301_v13, %s3816_s17  ;;  %1435 = vrot.lane.b32.xlu0 %v4245_v6, %s3819_s27 }
  0xa6   : > { %v1191_v22 = vpop.permute.xlu0 %1190  ;;  %v1197_v26 = vpop.permute.xlu1 %1196 }
  0xa7   : > { %v1361_v33 = vsel %vm1341_vm6, %v3995_v55, %v1197_v26  ;;  %v1355_v36 = vsel %vm1341_vm6, %v3980_v37, %v1191_v22 }
  0xa9   : > { %1468 = vrot.lane.b32.xlu1 %v4258_v20, %s3820_s28  ;;  %1212 = vrot.lane.b32.xlu0 %v1177_v21, %s3817_s18 }
  0xaa   : > { %v1199_v28 = vpop.permute.xlu0 %1198  ;;  %v1318_v29 = vpop.permute.xlu1 %1317 }
  0xab   : > { %v4286_v43 = vsel %vm1378_vm7, %v1355_v36, %v1318_v29  ;;  %v1363_v44 = vsel %vm1341_vm6, %v3999_v56, %v1199_v28 }
  0xad   : > { %1339 = vrot.lane.b32.xlu1 %v1304_v0, %s3816_s17  ;;  %1437 = vrot.lane.b32.xlu0 %v4258_v20, %s3819_s27  ;;  %s626_s17 = scalar_lea.vmem %s5105_s9, %s5113_s30 }
  0xae   : > { %v1324_v32 = vpop.permute.xlu0 %1323  ;;  %v1326_v35 = vpop.permute.xlu1 %1325 }
  0xaf   : > { %v4283_v12 = vsel %vm1378_vm7, %v1361_v33, %v1324_v32  ;;  %v4297_v46 = vsel %vm1378_vm7, %v1363_v44, %v1326_v35  ;;  %v3513_v35 = vld [vmem:[%s4384_s14 + $0x18] sm:$0xff]  }
  0xb1   : > { %1470 = vrot.lane.b32.xlu1 %v4274_v34, %s3820_s28  ;;  %1439 = vrot.lane.b32.xlu0 %v4274_v34, %s3819_s27 }
  0xb2   : > { %v1193_v42 = vpop.permute.xlu0 %1192  ;;  %v1201_v55 = vpop.permute.xlu1 %1200 }
  0xb3   : > { %v1357_v45 = vsel %vm1341_vm6, %v4026_v38, %v1193_v42  ;;  %v1365_v49 = vsel %vm1341_vm6, %v4030_v39, %v1201_v55  ;;  %v3368_v55 = vld [vmem:[%s4384_s14] sm:$0xff]  }
  0xb5   : > { %1447 = vrot.lane.b32.xlu1 %v4283_v12, %s3819_s27  ;;  %1472 = vrot.lane.b32.xlu0 %v4286_v43, %s3820_s28 }
  0xb6   : > { %v1320_v37 = vpop.permute.xlu0 %1319  ;;  %v1328_v47 = vpop.permute.xlu1 %1327 }
  0xb7   : > { %v4304_v56 = vsel %vm1378_vm7, %v1357_v45, %v1320_v37  ;;  %v4313_v38 = vsel %vm1378_vm7, %v1365_v49, %v1328_v47  ;;  %v3512_v37 = vld [vmem:[%s4384_s14 + $0x10] sm:$0xff]   ;;  %v3381_v45 = vunpack.c.l.bf16 %v3513_v35  ;;  %v3382_v47 = vunpack.c.h.bf16 %v3513_v35 }
  0xb8   : > { %v3369_v49 = vunpack.c.l.bf16 %v3368_v55 }
  0xb9   : > { %1480 = vrot.lane.b32.xlu1 %v4297_v46, %s3820_s28  ;;  %1441 = vrot.lane.b32.xlu0 %v4286_v43, %s3819_s27 }
  0xba   : > { %v1195_v48 = vpop.permute.xlu0 %1194  ;;  %v1203_v51 = vpop.permute.xlu1 %1202 }
  0xbb   : > { %v1359_v52 = vsel %vm1341_vm6, %v4044_v62, %v1195_v48  ;;  %v1367_v58 = vsel %vm1341_vm6, %v4059_v7, %v1203_v51  ;;  %v3515_v48 = vld [vmem:[%s4384_s14 + $0x28] sm:$0xff]  }
  0xbd   : > { %1449 = vrot.lane.b32.xlu1 %v4297_v46, %s3819_s27  ;;  %1474 = vrot.lane.b32.xlu0 %v4304_v56, %s3820_s28 }
  0xbe   : > { %v1322_v23 = vpop.permute.xlu0 %1321  ;;  %v1330_v57 = vpop.permute.xlu1 %1329 }
  0xbf   : > { %v4322_v39 = vsel %vm1378_vm7, %v1359_v52, %v1322_v23  ;;  %v4331_v62 = vsel %vm1378_vm7, %v1367_v58, %v1330_v57  ;;  %v3377_v23 = vunpack.c.l.bf16 %v3512_v37  ;;  %v3378_v57 = vunpack.c.h.bf16 %v3512_v37  ;;  %v3531_v37 = vld [vmem:[%s4406_s20 + $0x30] sm:$0xff]  }
  0xc1   : > { %1482 = vrot.lane.b32.xlu1 %v4313_v38, %s3820_s28  ;;  %1443 = vrot.lane.b32.xlu0 %v4304_v56, %s3819_s27 }
  0xc2   : > { %v1205_v59 = vpop.permute.xlu0 %1204  ;;  %v1332_v61 = vpop.permute.xlu1 %1331 }
  0xc3   : > { %v1369_v7 = vsel %vm1341_vm6, %v4080_v50, %v1205_v59 }
  0xc4   : > { %v4344_v1 = vsel %vm1378_vm7, %v1369_v7, %v1332_v61  ;;  %v3514_v61 = vld [vmem:[%s4384_s14 + $0x20] sm:$0xff]   ;;  %v3389_v7 = vunpack.c.l.bf16 %v3515_v48 }
  0xc5   : > { %1451 = vrot.lane.b32.xlu1 %v4313_v38, %s3819_s27  ;;  %1476 = vrot.lane.b32.xlu0 %v4322_v39, %s3820_s28 }
  0xc6   : > { %v1306_v31 = vpop.permute.xlu1 %1305 }
  0xc7   : > { %v1179_v63 = vpop.permute.xlu0 %1178 }
  0xc9   : > { %1484 = vrot.lane.b32.xlu1 %v4331_v62, %s3820_s28  ;;  %1445 = vrot.lane.b32.xlu0 %v4322_v39, %s3819_s27 }
  0xca   : > { %v1334_v4 = vpop.permute.xlu1 %1333 }
  0xcb   : > { %v1207_v2 = vpop.permute.xlu0 %1206 }
  0xcc   : > { %v1371_v3 = vsel %vm1341_vm6, %v4089_v60, %v1207_v2  ;;  %v1343_v60 = vsel %vm1341_vm6, %v4104_v16, %v1179_v63  ;;  %v3615_v63 = vpack.i.bf16 %v3382_v47, %v3381_v45  ;;  %v3390_v2 = vunpack.c.h.bf16 %v3515_v48 }
  0xcd   : > { %1453 = vrot.lane.b32.xlu1 %v4331_v62, %s3819_s27  ;;  %1478 = vrot.lane.b32.xlu0 %v4283_v12, %s3820_s28  ;;  %v4353_v50 = vsel %vm1378_vm7, %v1371_v3, %v1334_v4  ;;  %v1380_v9 = vsel %vm1378_vm7, %v1343_v60, %v1306_v31  ;;  %v3526_v3 = vld [vmem:[%s4406_s20 + $0x8] sm:$0xff]   ;;  %v3610_v4 = vpack.i.bf16 %v3378_v57, %v3377_v23  ;;  %v3457_v48 = vunpack.c.l.bf16 %v3531_v37 }
  0xd1   : > { %1486 = vrot.lane.b32.xlu1 %v4344_v1, %s3820_s28  ;;  %1455 = vrot.lane.b32.xlu0 %v4344_v1, %s3819_s27 }
  0xd5   : > { %1457 = vrot.lane.b32.xlu0 %v4353_v50, %s3819_s27  ;;  %1488 = vrot.lane.b32.xlu1 %v4353_v50, %s3820_s28 }
 0x107   : > { %v1432_v5 = vpop.permute.xlu0 %1431 }
 0x108   : > { %v1498_v14 = vsel %vm1496_vm10, %v1380_v9, %v1432_v5 }
 0x10b   : > { %v1465_v8 = vpop.permute.xlu1 %1464  ;;  %v1209_v40 = vpop.permute.xlu0 %1208 }
 0x10c   : > { %v1547_v10 = vsel %vm1545_vm8, %v1432_v5, %v1465_v8  ;;  %v1373_v13 = vsel %vm1341_vm6, %v4188_v11, %v1209_v40  ;;  %v3385_v8 = vunpack.c.l.bf16 %v3514_v61  ;;  %v3386_v40 = vunpack.c.h.bf16 %v3514_v61 }
 0x10d   : > { %3205 = vmatprep.mubr.msk.bf16.mxu0 %vm1693_vm9, %v1547_v10  ;;  %v3437_v10 = vunpack.c.l.bf16 %v3526_v3 }
 0x10e   : > { %1763 = vmatmul.mubr.bf16.vlgmr.msra.gmra.mrb[0].mxu0 %v1498_v14  ;;  %v3528_v14 = vld [vmem:[%s4406_s20 + $0x18] sm:$0xff]  }
 0x10f   : > { %v1336_v15 = vpop.permute.xlu1 %1335  ;;  %v1434_v16 = vpop.permute.xlu0 %1433 }
 0x110   : > { %v4368_v17 = vsel %vm1378_vm7, %v1373_v13, %v1336_v15  ;;  %v1501_v22 = vsel %vm1496_vm10, %v4214_v41, %v1434_v16  ;;  %v3438_v13 = vunpack.c.h.bf16 %v3526_v3 }
 0x111   : > { %1459 = vrot.lane.b32.xlu0 %v4368_v17, %s3819_s27  ;;  %1490 = vrot.lane.b32.xlu1 %v4368_v17, %s3820_s28 }
 0x113   : > { %v1467_v18 = vpop.permute.xlu1 %1466  ;;  %v1211_v19 = vpop.permute.xlu0 %1210 }
 0x114   : > { %v1549_v11 = vsel %vm1545_vm8, %v1434_v16, %v1467_v18  ;;  %v1375_v21 = vsel %vm1341_vm6, %v4205_v27, %v1211_v19  ;;  %v3511_v27 = vld [vmem:[%s4384_s14 + $0x8] sm:$0xff]   ;;  %v3620_v18 = vpack.i.bf16 %v3386_v40, %v3385_v8 }
 0x115   : > { %3206 = vmatprep.mubr.msk.bf16.mxu0 %vm1693_vm9, %v1549_v11  ;;  %v3373_v32 = vunpack.c.l.bf16 %v3511_v27  ;;  %v3374_v33 = vunpack.c.h.bf16 %v3511_v27  ;;  %v3445_v11 = vunpack.c.l.bf16 %v3528_v14 }
 0x116   : > { %1771 = vmatmul.mubr.bf16.gmra.mrb[4].mxu0 %v1501_v22 }
 0x117   : > { %v1338_v24 = vpop.permute.xlu1 %1337  ;;  %v1436_v25 = vpop.permute.xlu0 %1435 }
 0x118   : > { %v1412_v26 = vsel %vm1378_vm7, %v1375_v21, %v1338_v24  ;;  %v1504_v30 = vsel %vm1496_vm10, %v4228_v54, %v1436_v25  ;;  %v3370_v54 = vunpack.c.h.bf16 %v3368_v55  ;;  %v3635_v24 = vpack.i.bf16 %v3438_v13, %v3437_v10  ;;  %v3533_v13 = vld [vmem:[%s4406_s20 + $0x40] sm:$0xff]  }
 0x119   : > { %1461 = vrot.lane.b32.xlu0 %v1412_v26, %s3819_s27  ;;  %1492 = vrot.lane.b32.xlu1 %v1412_v26, %s3820_s28  ;;  %v3530_v26 = vld [vmem:[%s4406_s20 + $0x28] sm:$0xff]  }
 0x11a   : > { %v3600_v59 = vpack.i.bf16 %v3370_v54, %v3369_v49  ;;  %v3458_v49 = vunpack.c.h.bf16 %v3531_v37 }
 0x11b   : > { %v1469_v41 = vpop.permute.xlu1 %1468  ;;  %v1213_v0 = vpop.permute.xlu0 %1212 }
 0x11c   : > { %v1551_v28 = vsel %vm1545_vm8, %v1436_v25, %v1469_v41  ;;  %v1377_v29 = vsel %vm1341_vm6, %v4225_v53, %v1213_v0  ;;  %v3605_v53 = vpack.i.bf16 %v3374_v33, %v3373_v32  ;;  %v3446_v25 = vunpack.c.h.bf16 %v3528_v14 }
 0x11d   : > { %3207 = vmatprep.mubr.msk.bf16.mxu0 %vm1693_vm9, %v1551_v28  ;;  %3601 = vrot.lane.b32.xlu0 %v3600_v59, %s3821_s21  ;;  %v3454_v28 = vunpack.c.h.bf16 %v3530_v26  ;;  %v3665_v59 = vpack.i.bf16 %v3458_v49, %v3457_v48 }
 0x11e   : > { %1779 = vmatmul.mubr.bf16.gmra.mrb[8].mxu0 %v1504_v30 }
 0x11f   : > { %v1340_v36 = vpop.permute.xlu1 %1339  ;;  %v1438_v42 = vpop.permute.xlu0 %1437 }
 0x120   : > { %v1414_v44 = vsel %vm1378_vm7, %v1377_v29, %v1340_v36  ;;  %v1507_v31 = vsel %vm1496_vm10, %v4245_v6, %v1438_v42  ;;  %v3625_v6 = vpack.i.bf16 %v3390_v2, %v3389_v7  ;;  %v3516_v29 = vld [vmem:[%s4384_s14 + $0x30] sm:$0xff]  }
 0x121   : > { %1494 = vrot.lane.b32.xlu1 %v1414_v44, %s3820_s28  ;;  %3611 = vrot.lane.b32.xlu0 %v3610_v4, %s3821_s21  ;;  %v3393_v35 = vunpack.c.l.bf16 %v3516_v29  ;;  %v3394_v44 = vunpack.c.h.bf16 %v3516_v29  ;;  %v3432_v29 = vld [vmem:[%s4406_s20] sm:$0xff]  }
 0x123   : > { %v1471_v51 = vpop.permute.xlu1 %1470  ;;  %v1440_v52 = vpop.permute.xlu0 %1439 }
 0x124   : > { %v1553_v58 = vsel %vm1545_vm8, %v1438_v42, %v1471_v51  ;;  %v1510_v21 = vsel %vm1496_vm10, %v4258_v20, %v1440_v52  ;;  %v3645_v20 = vpack.i.bf16 %v3446_v25, %v3445_v11  ;;  %v3534_v25 = vld [vmem:[%s4406_s20 + $0x48] sm:$0xff]  }
 0x125   : > { %3208 = vmatprep.mubr.msk.bf16.mxu0 %vm1693_vm9, %v1553_v58  ;;  %3606 = vrot.lane.b32.xlu1 %v3605_v53, %s3821_s21 }
 0x126   : > { %1787 = vmatmul.mubr.bf16.gmra.mrb[12].mxu0 %v1507_v31  ;;  %3621 = vrot.lane.b32.xlu0 %v3620_v18, %s3821_s21  ;;  %v3532_v31 = vld [vmem:[%s4406_s20 + $0x38] sm:$0xff]   ;;  %v3465_v18 = vunpack.c.l.bf16 %v3533_v13 }
 0x127   : > { %v1448_v5 = vpop.permute.xlu1 %1447  ;;  %v1473_v60 = vpop.permute.xlu0 %1472  ;;  %v3461_v3 = vunpack.c.l.bf16 %v3532_v31  ;;  %v3462_v4 = vunpack.c.h.bf16 %v3532_v31 }
 0x128   : > { %v1555_v9 = vsel %vm1545_vm8, %v1440_v52, %v1473_v60  ;;  %v1522_v22 = vsel %vm1496_vm10, %v4322_v39, %v1448_v5  ;;  %v3453_v39 = vunpack.c.l.bf16 %v3530_v26 }
 0x129   : > { %3209 = vmatprep.mubr.msk.bf16.mxu0 %vm1693_vm9, %v1555_v9  ;;  %3616 = vrot.lane.b32.xlu1 %v3615_v63, %s3821_s21 }
 0x12a   : > { %v3655_v55 = vpack.i.bf16 %v3454_v28, %v3453_v39 }
 0x12b   : > { %v1481_v15 = vpop.permute.xlu1 %1480  ;;  %v1442_v16 = vpop.permute.xlu0 %1441 }
 0x12c   : > { %v1563_v19 = vsel %vm1545_vm8, %v1448_v5, %v1481_v15  ;;  %v1513_v36 = vsel %vm1496_vm10, %v4274_v34, %v1442_v16  ;;  %v3660_v34 = vpack.i.bf16 %v3394_v44, %v3393_v35  ;;  %v3527_v35 = vld [vmem:[%s4406_s20 + $0x10] sm:$0xff]   ;;  %v3529_v44 = vld [vmem:[%s4406_s20 + $0x20] sm:$0xff]  }
 0x12d   : > { %3213 = vmatprep.mubr.msk.bf16.mxu1 %vm1693_vm9, %v1563_v19  ;;  %3626 = vrot.lane.b32.xlu1 %v3625_v6, %s3821_s21  ;;  %v3675_v6 = vpack.i.bf16 %v3462_v4, %v3461_v3  ;;  %v3519_v19 = vld [vmem:[%s4384_s14 + $0x48] sm:$0xff]   ;;  %v3449_v37 = vunpack.c.l.bf16 %v3529_v44 }
 0x12e   : > { %1795 = vmatmul.mubr.bf16.gmra.mrb[16].mxu0 %v1510_v21  ;;  %1827 = vmatmul.mubr.bf16.vlgmr.msra.gmra.mrb[0].mxu1 %v1522_v22  ;;  %v3405_v22 = vunpack.c.l.bf16 %v3519_v19 }
 0x12f   : > { %v1450_v27 = vpop.permute.xlu1 %1449  ;;  %v1475_v41 = vpop.permute.xlu0 %1474 }
 0x130   : > { %v1557_v0 = vsel %vm1545_vm8, %v1442_v16, %v1475_v41  ;;  %v1525_v42 = vsel %vm1496_vm10, %v4283_v12, %v1450_v27  ;;  %v3517_v12 = vld [vmem:[%s4384_s14 + $0x38] sm:$0xff]   ;;  %v3470_v41 = vunpack.c.h.bf16 %v3534_v25 }
 0x131   : > { %3210 = vmatprep.mubr.msk.bf16.mxu0 %vm1693_vm9, %v1557_v0  ;;  %3636 = vrot.lane.b32.xlu1 %v3635_v24, %s3820_s28  ;;  %v3397_v23 = vunpack.c.l.bf16 %v3517_v12  ;;  %v3398_v61 = vunpack.c.h.bf16 %v3517_v12  ;;  %v3406_v24 = vunpack.c.h.bf16 %v3519_v19  ;;  %v3520_v0 = vld [vmem:[%s4384_s14 + $0x50] sm:$0xff]  }
 0x132   : > { %v3410_v39 = vunpack.c.h.bf16 %v3520_v0 }
 0x133   : > { %v1483_v30 = vpop.permute.xlu1 %1482  ;;  %v1444_v32 = vpop.permute.xlu0 %1443  ;;  %v3690_v26 = vpack.i.bf16 %v3406_v24, %v3405_v22 }
 0x134   : > { %v1565_v33 = vsel %vm1545_vm8, %v1450_v27, %v1483_v30  ;;  %v1516_v57 = vsel %vm1496_vm10, %v4286_v43, %v1444_v32  ;;  %v3670_v43 = vpack.i.bf16 %v3398_v61, %v3397_v23  ;;  %v3469_v27 = vunpack.c.l.bf16 %v3534_v25 }
 0x135   : > { %3214 = vmatprep.mubr.msk.bf16.mxu1 %vm1693_vm9, %v1565_v33  ;;  %3646 = vrot.lane.b32.xlu1 %v3645_v20, %s3820_s28  ;;  %v3433_v30 = vunpack.c.l.bf16 %v3432_v29 }
 0x136   : > { %1803 = vmatmul.mubr.bf16.gmra.mrb[20].mxu0 %v1513_v36  ;;  %1835 = vmatmul.mubr.bf16.gmra.mrb[4].mxu1 %v1525_v42  ;;  %v3695_v20 = vpack.i.bf16 %v3470_v41, %v3469_v27  ;;  %v3441_v36 = vunpack.c.l.bf16 %v3527_v35  ;;  %v3442_v42 = vunpack.c.h.bf16 %v3527_v35 }
 0x137   : > { %v1452_v53 = vpop.permute.xlu1 %1451  ;;  %v1477_v45 = vpop.permute.xlu0 %1476 }
 0x138   : > { %v1559_v47 = vsel %vm1545_vm8, %v1444_v32, %v1477_v45  ;;  %v1528_v58 = vsel %vm1496_vm10, %v4297_v46, %v1452_v53  ;;  %v3518_v46 = vld [vmem:[%s4384_s14 + $0x40] sm:$0xff]   ;;  %v3434_v32 = vunpack.c.h.bf16 %v3432_v29 }
 0x139   : > { %3211 = vmatprep.mubr.msk.bf16.mxu0 %vm1693_vm9, %v1559_v47  ;;  %3656 = vrot.lane.b32.xlu1 %v3655_v55, %s3820_s28  ;;  %v3401_v8 = vunpack.c.l.bf16 %v3518_v46  ;;  %v3402_v10 = vunpack.c.h.bf16 %v3518_v46  ;;  %v3640_v55 = vpack.i.bf16 %v3442_v42, %v3441_v36 }
 0x13a   : > { %v3630_v33 = vpack.i.bf16 %v3434_v32, %v3433_v30 }
 0x13b   : > { %v1485_v54 = vpop.permute.xlu1 %1484  ;;  %v1446_v51 = vpop.permute.xlu0 %1445 }
 0x13c   : > { %v1567_v52 = vsel %vm1545_vm8, %v1452_v53, %v1485_v54  ;;  %v1519_v40 = vsel %vm1496_vm10, %v4304_v56, %v1446_v51  ;;  %v3680_v56 = vpack.i.bf16 %v3402_v10, %v3401_v8  ;;  %3631 = vrot.lane.b32.xlu0 %v3630_v33, %s3820_s28  ;;  %v3450_v53 = vunpack.c.h.bf16 %v3529_v44  ;;  %v3498_v10 = vld [vmem:[%s4514_s25 + $0x18] sm:$0xff]  }
 0x13d   : > { %3215 = vmatprep.mubr.msk.bf16.mxu1 %vm1693_vm9, %v1567_v52  ;;  %3661 = vrot.lane.b32.xlu1 %v3660_v34, %s3821_s21 }
 0x13e   : > { %1811 = vmatmul.mubr.bf16.gmra.mrb[24].mxu0 %v1516_v57  ;;  %1843 = vmatmul.mubr.bf16.gmra.mrb[8].mxu1 %v1528_v58  ;;  %v3650_v45 = vpack.i.bf16 %v3450_v53, %v3449_v37 }
 0x13f   : > { %v1454_v63 = vpop.permute.xlu1 %1453  ;;  %v1479_v7 = vpop.permute.xlu0 %1478 }
 0x140   : > { %v1561_v2 = vsel %vm1545_vm8, %v1446_v51, %v1479_v7  ;;  %v1531_v9 = vsel %vm1496_vm10, %v4313_v38, %v1454_v63  ;;  %v3466_v38 = vunpack.c.h.bf16 %v3533_v13  ;;  %3641 = vrot.lane.b32.xlu0 %v3640_v55, %s3820_s28 }
 0x141   : > { %3212 = vmatprep.mubr.msk.bf16.mxu0 %vm1693_vm9, %v1561_v2  ;;  %3666 = vrot.lane.b32.xlu1 %v3665_v59, %s3820_s28 }
 0x142   : > { %v3685_v21 = vpack.i.bf16 %v3466_v38, %v3465_v18  ;;  %v3317_v38 = vunpack.c.l.bf16 %v3498_v10 }
 0x143   : > { %v1487_v5 = vpop.permute.xlu1 %1486  ;;  %v1456_v14 = vpop.permute.xlu0 %1455 }
 0x144   : > { %v1569_v60 = vsel %vm1545_vm8, %v1454_v63, %v1487_v5  ;;  %v1534_v11 = vsel %vm1496_vm10, %v4331_v62, %v1456_v14  ;;  %v3409_v62 = vunpack.c.l.bf16 %v3520_v0  ;;  %3651 = vrot.lane.b32.xlu0 %v3650_v45, %s3820_s28 }
 0x145   : > { %3216 = vmatprep.mubr.msk.bf16.mxu1 %vm1693_vm9, %v1569_v60  ;;  %3671 = vrot.lane.b32.xlu1 %v3670_v43, %s3821_s21  ;;  %v4519_v60 = vld [vmem:[%s4514_s25 + $0x8] sm:$0xff]  }
 0x146   : > { %1819 = vmatmul.mubr.bf16.gmra.mrb[28].mxu0 %v1519_v40  ;;  %1851 = vmatmul.mubr.bf16.gmra.mrb[12].mxu1 %v1531_v9  ;;  %v3700_v28 = vpack.i.bf16 %v3410_v39, %v3409_v62  ;;  %v3309_v8 = vunpack.c.l.bf16 %v4519_v60  ;;  %v3500_v39 = vld [vmem:[%s4514_s25 + $0x28] sm:$0xff]  }
 0x147   : > { %v1489_v15 = vpop.permute.xlu1 %1488  ;;  %v1458_v47 = vpop.permute.xlu0 %1457  ;;  %v3326_v29 = vunpack.c.h.bf16 %v3500_v39 }
 0x148   : > { %v1571_v16 = vsel %vm1545_vm8, %v1456_v14, %v1489_v15  ;;  %v1537_v49 = vsel %vm1496_vm10, %v4344_v1, %v1458_v47 }
 0x149   : > { %3217 = vmatprep.mubr.msk.bf16.mxu1 %vm1693_vm9, %v1571_v16  ;;  %3676 = vrot.lane.b32.xlu1 %v3675_v6, %s3820_s28  ;;  %v3318_v16 = vunpack.c.h.bf16 %v3498_v10 }
 0x14d   : > { %3681 = vrot.lane.b32.xlu1 %v3680_v56, %s3821_s21 }
 0x14e   : > { %1859 = vmatmul.mubr.bf16.gmra.mrb[16].mxu1 %v1534_v11 }
 0x151   : > { %3686 = vrot.lane.b32.xlu1 %v3685_v21, %s3820_s28 }
 0x155   : > { %3691 = vrot.lane.b32.xlu1 %v3690_v26, %s3821_s21 }
 0x159   : > { %3696 = vrot.lane.b32.xlu1 %v3695_v20, %s3820_s28 }
 0x15d   : > { %3701 = vrot.lane.b32.xlu1 %v3700_v28, %s3821_s21  ;;  %v3325_v28 = vunpack.c.l.bf16 %v3500_v39 }
 0x183   : > { %v1491_v34 = vpop.permute.xlu1 %1490  ;;  %v1460_v12 = vpop.permute.xlu0 %1459 }
 0x184   : > { %v1573_v48 = vsel %vm1545_vm8, %v1458_v47, %v1491_v34  ;;  %v1540_v52 = vsel %vm1496_vm10, %v4353_v50, %v1460_v12  ;;  %v4504_v50 = vld [vmem:[%s5100_s4] ss:$0 sm:$0xff] }
 0x185   : > { %3218 = vmatprep.mubr.msk.bf16.mxu1 %vm1693_vm9, %v1573_v48 }
 0x186   : > { %1867 = vmatmul.mubr.bf16.gmra.mrb[20].mxu1 %v1537_v49 }
 0x18b   : > { %v1493_v54 = vpop.permute.xlu1 %1492  ;;  %v1462_v23 = vpop.permute.xlu0 %1461 }
 0x18c   : > { %v1575_v51 = vsel %vm1545_vm8, %v1460_v12, %v1493_v54  ;;  %v1543_v1 = vsel %vm1496_vm10, %v4368_v17, %v1462_v23 }
 0x18d   : > { %3219 = vmatprep.mubr.msk.bf16.mxu1 %vm1693_vm9, %v1575_v51 }
 0x18e   : > { %1875 = vmatmul.mubr.bf16.gmra.mrb[24].mxu1 %v1540_v52 }
 0x193   : > { %v1495_v57 = vpop.permute.xlu1 %1494 }
 0x194   : > { %v1577_v58 = vsel %vm1545_vm8, %v1462_v23, %v1495_v57 }
 0x195   : > { %3220 = vmatprep.mubr.msk.bf16.mxu1 %vm1693_vm9, %v1577_v58  ;;  %v3501_v58 = vld [vmem:[%s4514_s25 + $0x30] sm:$0xff]  }
 0x196   : > { %1883 = vmatmul.mubr.bf16.gmra.mrb[28].mxu1 %v1543_v1  ;;  %v3535_v1 = vld [vmem:[%s4406_s20 + $0x50] sm:$0xff]  }
 0x197   : > { %v4497_v59 = vpop.permute.xlu1 %3606 }
 0x198   : > { %v3608_v17 = vunpack.i.l.bf16 %v4497_v59 }
 0x19a   : > { %v2470_v13 = vsel %vm2467_vm11, %v3309_v8, %v3608_v17  ;;  %v3521_v17 = vld [vmem:[%s4384_s14 + $0x58] sm:$0xff]  }
 0x19b   : > { %v3617_v61 = vpop.permute.xlu1 %3616 }
 0x19c   : > { %v3619_v40 = vunpack.i.h.bf16 %v3617_v61  ;;  %v3618_v9 = vunpack.i.l.bf16 %v3617_v61  ;;  %v3329_v61 = vunpack.c.l.bf16 %v3501_v58 }
 0x19e   : > { %v2475_v11 = vsel %vm2467_vm11, %v3318_v16, %v3619_v40  ;;  %v2474_v26 = vsel %vm2467_vm11, %v3317_v38, %v3618_v9  ;;  %v3413_v38 = vunpack.c.l.bf16 %v3521_v17 }
 0x19f   : > { %v3627_v31 = vpop.permute.xlu1 %3626 }
 0x1a0   : > { %v3629_v22 = vunpack.i.h.bf16 %v3627_v31  ;;  %v3628_v24 = vunpack.i.l.bf16 %v3627_v31  ;;  %v3330_v31 = vunpack.c.h.bf16 %v3501_v58 }
 0x1a2   : > { %v2478_v32 = vsel %vm2467_vm11, %v3325_v28, %v3628_v24  ;;  %v2479_v33 = vsel %vm2467_vm11, %v3326_v29, %v3629_v22 }
 0x1a3   : > { %v4499_v63 = vpop.permute.xlu1 %3636 }
 0x1a4   : > { %v3638_v5 = vunpack.i.l.bf16 %v4499_v63 }
 0x1a6   : > { %v4525_v56 = vsel %vm1545_vm8, %v2470_v13, %v3638_v5 }
 0x1a7   : > { %v3647_v3 = vpop.permute.xlu1 %3646 }
 0x1a8   : > { %v3649_v6 = vunpack.i.h.bf16 %v3647_v3  ;;  %v3648_v14 = vunpack.i.l.bf16 %v3647_v3  ;;  %v3474_v3 = vunpack.c.h.bf16 %v3535_v1 }
 0x1aa   : > { %v4531_v25 = vsel %vm1545_vm8, %v2475_v11, %v3649_v6  ;;  %v4536_v62 = vsel %vm1545_vm8, %v2474_v26, %v3648_v14 }
 0x1ab   : > { %v3657_v15 = vpop.permute.xlu1 %3656 }
 0x1ac   : > { %v3659_v0 = vunpack.i.h.bf16 %v3657_v15  ;;  %v3658_v20 = vunpack.i.l.bf16 %v3657_v15 }
 0x1ae   : > { %v4543_v35 = vsel %vm1545_vm8, %v2478_v32, %v3658_v20  ;;  %v4546_v36 = vsel %vm1545_vm8, %v2479_v33, %v3659_v0  ;;  %v3502_v0 = vld [vmem:[%s4514_s25 + $0x38] sm:$0xff]  }
 0x1af   : > { %v3662_v30 = vpop.permute.xlu1 %3661  ;;  %v3536_v20 = vld [vmem:[%s4406_s20 + $0x58] sm:$0xff]   ;;  %v3333_v39 = vunpack.c.l.bf16 %v3502_v0  ;;  %v3334_v28 = vunpack.c.h.bf16 %v3502_v0  ;;  %v3524_v0 = vld [vmem:[%s4384_s14 + $0x70] sm:$0xff]  }
 0x1b0   : > { %v3664_v12 = vunpack.i.h.bf16 %v3662_v30  ;;  %v3663_v54 = vunpack.i.l.bf16 %v3662_v30 }
 0x1b3   : > { %v3667_v45 = vpop.permute.xlu1 %3666 }
 0x1b4   : > { %v3669_v23 = vunpack.i.h.bf16 %v3667_v45  ;;  %v3668_v57 = vunpack.i.l.bf16 %v3667_v45 }
 0x1b7   : > { %v3672_v48 = vpop.permute.xlu1 %3671 }
 0x1b8   : > { %v3674_v11 = vunpack.i.h.bf16 %v3672_v48 }
 0x1ba   : > { %v2483_v33 = vsel %vm2467_vm11, %v3334_v28, %v3674_v11  ;;  %v3538_v11 = vld [vmem:[%s4406_s20 + $0x68] sm:$0xff]  }
 0x1e1   : > { %v1764_v7 = vpop.f32.mrb[0].mxu0 }
 0x1e2   : > { %v1765_v2 = vadd.f32 %v4504_v50, %v1764_v7  ;;  %v1766_v43 = vpop.f32.mrb[1].mxu0  ;;  %v2480_v7 = vsel %vm2467_vm11, %v3329_v61, %v3663_v54  ;;  %v3537_v61 = vld [vmem:[%s4406_s20 + $0x60] sm:$0xff]  }
 0x1e3   : > { %v4507_v4 = vpop.f32.mrb[2].mxu0  ;;  %v3473_v43 = vunpack.c.l.bf16 %v3535_v1  ;;  %v4562_v5 = vsel %vm1545_vm8, %v2480_v7, %v3668_v57 }
 0x1e4   : > { %v1769_v46 = vpop.f32.mrb[3].mxu0  ;;  %2371 = vrot.lane.b32.xlu1 %v1765_v2, %s3817_s18  ;;  %v2481_v2 = vsel %vm2467_vm11, %v3330_v31, %v3664_v12  ;;  %v1768_v29 = vadd.f32 %v4504_v50, %v4507_v4 }
 0x1e5   : > { %v3677_v46 = vpop.permute.xlu1 %3676  ;;  %v4565_v8 = vsel %vm1545_vm8, %v2481_v2, %v3669_v23  ;;  %v3705_v26 = vpack.i.bf16 %v3474_v3, %v3473_v43  ;;  %v3481_v2 = vunpack.c.l.bf16 %v3537_v61  ;;  %v3482_v43 = vunpack.c.h.bf16 %v3537_v61 }
 0x1e9   : > { %v4527_v18 = vpop.f32.mrb[4].mxu0 }
 0x1ea   : > { %v1774_v19 = vpop.f32.mrb[5].mxu0  ;;  %v1773_v31 = vadd.f32 %v4504_v50, %v4527_v18 }
 0x1eb   : > { %v1775_v21 = vpop.f32.mrb[6].mxu0  ;;  %v3414_v19 = vunpack.c.h.bf16 %v3521_v17 }
 0x1ec   : > { %v1776_v27 = vadd.f32 %v4504_v50, %v1775_v21  ;;  %v1777_v41 = vpop.f32.mrb[7].mxu0  ;;  %v3673_v21 = vunpack.i.l.bf16 %v3672_v48 }
 0x1ed   : > { %v3678_v41 = vunpack.i.l.bf16 %v3677_v46  ;;  %v3710_v30 = vpack.i.bf16 %v3414_v19, %v3413_v38 }
 0x1ee   : > { %2377 = vrot.lane.b32.xlu1 %v1776_v27, %s3817_s18  ;;  %v3679_v27 = vunpack.i.h.bf16 %v3677_v46  ;;  %v2482_v32 = vsel %vm2467_vm11, %v3333_v39, %v3673_v21  ;;  %v3523_v46 = vld [vmem:[%s4384_s14 + $0x68] sm:$0xff]  }
 0x1ef   : > { %v3421_v38 = vunpack.c.l.bf16 %v3523_v46  ;;  %v3422_v19 = vunpack.c.h.bf16 %v3523_v46 }
 0x1f1   : > { %v1780_v42 = vpop.f32.mrb[8].mxu0 }
 0x1f2   : > { %v1781_v55 = vadd.f32 %v4504_v50, %v1780_v42  ;;  %v1782_v44 = vpop.f32.mrb[9].mxu0  ;;  %v3477_v42 = vunpack.c.l.bf16 %v3536_v20 }
 0x1f3   : > { %v4549_v37 = vpop.f32.mrb[10].mxu0  ;;  %v4582_v44 = vsel %vm1545_vm8, %v2482_v32, %v3678_v41 }
 0x1f4   : > { %v1785_v53 = vpop.f32.mrb[11].mxu0  ;;  %2379 = vrot.lane.b32.xlu1 %v1781_v55, %s3817_s18  ;;  %v3478_v55 = vunpack.c.h.bf16 %v3536_v20  ;;  %v1784_v20 = vadd.f32 %v4504_v50, %v4549_v37 }
 0x1f5   : > { %v4585_v53 = vsel %vm1545_vm8, %v2483_v33, %v3679_v27 }
 0x1f6   : > { %v3715_v57 = vpack.i.bf16 %v3478_v55, %v3477_v42  ;;  %v3425_v55 = vunpack.c.l.bf16 %v3524_v0 }
 0x1f9   : > { %v4552_v47 = vpop.f32.mrb[12].mxu0 }
 0x1fa   : > { %v1790_v34 = vpop.f32.mrb[13].mxu0 }
 0x1fb   : > { %v1791_v49 = vpop.f32.mrb[14].mxu0  ;;  %v3522_v34 = vld [vmem:[%s4384_s14 + $0x60] sm:$0xff]  }
 0x1fc   : > { %v1792_v51 = vadd.f32 %v4504_v50, %v1791_v49  ;;  %v1793_v52 = vpop.f32.mrb[15].mxu0  ;;  %v3417_v58 = vunpack.c.l.bf16 %v3522_v34  ;;  %v3418_v1 = vunpack.c.h.bf16 %v3522_v34  ;;  %v3539_v34 = vld [vmem:[%s4406_s20 + $0x70] sm:$0xff]  }
 0x1fe   : > { %2385 = vrot.lane.b32.xlu1 %v1792_v51, %s3817_s18  ;;  %v3720_v7 = vpack.i.bf16 %v3418_v1, %v3417_v58 }
 0x201   : > { %v1796_v40 = vpop.f32.mrb[16].mxu0  ;;  %v1828_v9 = vpop.f32.mrb[0].mxu1 }
 0x202   : > { %v1797_v6 = vadd.f32 %v4504_v50, %v1796_v40  ;;  %v1829_v10 = vadd.f32 %v4504_v50, %v1828_v9  ;;  %v1798_v13 = vpop.f32.mrb[17].mxu0  ;;  %v1830_v14 = vpop.f32.mrb[1].mxu1 }
 0x203   : > { %v4569_v15 = vpop.f32.mrb[18].mxu0  ;;  %v1831_v16 = vpop.f32.mrb[2].mxu1 }
 0x204   : > { %v1833_v22 = vpop.f32.mrb[3].mxu1  ;;  %2403 = vrot.lane.b32.xlu0 %v1829_v10, %s3817_s18  ;;  %v1801_v24 = vpop.f32.mrb[19].mxu0  ;;  %2387 = vrot.lane.b32.xlu1 %v1797_v6, %s3817_s18  ;;  %v1832_v48 = vadd.f32 %v4504_v50, %v1831_v16  ;;  %v3725_v16 = vpack.i.bf16 %v3482_v43, %v3481_v2 }
 0x205   : > { %v3730_v22 = vpack.i.bf16 %v3422_v19, %v3421_v38  ;;  %v3485_v24 = vunpack.c.l.bf16 %v3538_v11 }
 0x208   : > { %2373 = vrot.lane.b32.xlu0 %v1768_v29, %s3817_s18  ;;  %3706 = vrot.lane.b32.xlu1 %v3705_v26, %s3820_s28  ;;  %v3486_v26 = vunpack.c.h.bf16 %v3538_v11 }
 0x209   : > { %v4587_v45 = vpop.f32.mrb[20].mxu0  ;;  %v1836_v4 = vpop.f32.mrb[4].mxu1 }
 0x20a   : > { %v1806_v49 = vpop.f32.mrb[21].mxu0  ;;  %v1838_v12 = vpop.f32.mrb[5].mxu1  ;;  %v1837_v40 = vadd.f32 %v4504_v50, %v1836_v4  ;;  %v3735_v42 = vpack.i.bf16 %v3486_v26, %v3485_v24  ;;  %v3426_v4 = vunpack.c.h.bf16 %v3524_v0  ;;  %v4669_v24 = vld [vmem:[%s4514_s25] sm:$0xff]  }
 0x20b   : > { %v4591_v54 = vpop.f32.mrb[22].mxu0  ;;  %v1839_v51 = vpop.f32.mrb[6].mxu1  ;;  %v3489_v49 = vunpack.c.l.bf16 %v3539_v34  ;;  %v3490_v12 = vunpack.c.h.bf16 %v3539_v34 }
 0x20c   : > { %v1841_v52 = vpop.f32.mrb[7].mxu1  ;;  %2405 = vrot.lane.b32.xlu0 %v1832_v48, %s3817_s18  ;;  %v1809_v23 = vpop.f32.mrb[23].mxu0  ;;  %3711 = vrot.lane.b32.xlu1 %v3710_v30, %s3821_s21  ;;  %v1840_v21 = vadd.f32 %v4504_v50, %v1839_v51  ;;  %v1789_v48 = vadd.f32 %v4504_v50, %v4552_v47  ;;  %v3740_v37 = vpack.i.bf16 %v3426_v4, %v3425_v55  ;;  %v3310_v55 = vunpack.c.h.bf16 %v4519_v60 }
 0x20d   : > { %v3525_v52 = vld [vmem:[%s4384_s14 + $0x78] sm:$0xff]   ;;  %v3745_v47 = vpack.i.bf16 %v3490_v12, %v3489_v49  ;;  %v4703_v49 = vld [vmem:[%s4514_s25 + $0x10] sm:$0xff]  }
 0x20e   : > { %v3429_v61 = vunpack.c.l.bf16 %v3525_v52 }
 0x210   : > { %2375 = vrot.lane.b32.xlu0 %v1773_v31, %s3817_s18  ;;  %3716 = vrot.lane.b32.xlu1 %v3715_v57, %s3820_s28  ;;  %v3430_v31 = vunpack.c.h.bf16 %v3525_v52 }
 0x211   : > { %v4600_v3 = vpop.f32.mrb[24].mxu0  ;;  %v1844_v17 = vpop.f32.mrb[8].mxu1 }
 0x212   : > { %v1814_v9 = vpop.f32.mrb[25].mxu0  ;;  %v1846_v6 = vpop.f32.mrb[9].mxu1  ;;  %v1845_v23 = vadd.f32 %v4504_v50, %v1844_v17  ;;  %v3750_v43 = vpack.i.bf16 %v3430_v31, %v3429_v61 }
 0x213   : > { %v4604_v10 = vpop.f32.mrb[26].mxu0  ;;  %v1847_v13 = vpop.f32.mrb[10].mxu1  ;;  %v1800_v6 = vadd.f32 %v4504_v50, %v4569_v15  ;;  %v1813_v15 = vadd.f32 %v4504_v50, %v4600_v3 }
 0x214   : > { %v1849_v18 = vpop.f32.mrb[11].mxu1  ;;  %2407 = vrot.lane.b32.xlu0 %v1837_v40, %s3817_s18  ;;  %v1817_v14 = vpop.f32.mrb[27].mxu0  ;;  %3721 = vrot.lane.b32.xlu1 %v3720_v7, %s3821_s21  ;;  %v3540_v7 = vld [vmem:[%s4406_s20 + $0x78] sm:$0xff]   ;;  %v1848_v2 = vadd.f32 %v4504_v50, %v1847_v13  ;;  %v1805_v13 = vadd.f32 %v4504_v50, %v4587_v45  ;;  %v1816_v45 = vadd.f32 %v4504_v50, %v4604_v10 }
 0x215   : > { %v3493_v46 = vunpack.c.l.bf16 %v3540_v7  ;;  %v3494_v17 = vunpack.c.h.bf16 %v3540_v7  ;;  %v1808_v18 = vadd.f32 %v4504_v50, %v4591_v54  ;;  %v4643_v14 = vpop.permute.xlu1 %3681 }
 0x217   : > { %v3755_v9 = vpack.i.bf16 %v3494_v17, %v3493_v46 }
 0x218   : > { %2409 = vrot.lane.b32.xlu0 %v1840_v21, %s3817_s18  ;;  %3726 = vrot.lane.b32.xlu1 %v3725_v16, %s3820_s28  ;;  %v4647_v16 = vpop.permute.xlu0 %3601 }
 0x219   : > { %v1820_v27 = vpop.f32.mrb[28].mxu0  ;;  %v1852_v41 = vpop.f32.mrb[12].mxu1  ;;  %v3603_v26 = vunpack.i.l.bf16 %v4647_v16 }
 0x21a   : > { %v1854_v39 = vpop.f32.mrb[13].mxu1  ;;  %v1822_v28 = vpop.f32.mrb[29].mxu0  ;;  %v1853_v40 = vadd.f32 %v4504_v50, %v1852_v41  ;;  %v1821_v19 = vadd.f32 %v4504_v50, %v1820_v27  ;;  %v3305_v41 = vunpack.c.l.bf16 %v4669_v24 }
 0x21b   : > { %v1823_v29 = vpop.f32.mrb[30].mxu0  ;;  %v1855_v30 = vpop.f32.mrb[14].mxu1 }
 0x21c   : > { %v1857_v32 = vpop.f32.mrb[15].mxu1  ;;  %2381 = vrot.lane.b32.xlu0 %v1784_v20, %s3817_s18  ;;  %v1825_v33 = vpop.f32.mrb[31].mxu0  ;;  %3731 = vrot.lane.b32.xlu1 %v3730_v22, %s3821_s21  ;;  %v1824_v3 = vadd.f32 %v4504_v50, %v1823_v29  ;;  %v1856_v10 = vadd.f32 %v4504_v50, %v1855_v30  ;;  %v2468_v28 = vsel %vm2467_vm11, %v3305_v41, %v3603_v26  ;;  %v3503_v26 = vld [vmem:[%s4514_s25 + $0x40] sm:$0xff]  }
 0x21d   : > { %v4652_v38 = vpop.permute.xlu1 %3686  ;;  %v4655_v54 = vpop.permute.xlu0 %3611  ;;  %v3609_v33 = vunpack.i.h.bf16 %v4497_v59 }
 0x21e   : > { %v3613_v60 = vunpack.i.l.bf16 %v4655_v54 }
 0x220   : > { %2383 = vrot.lane.b32.xlu0 %v1789_v48, %s3817_s18  ;;  %3736 = vrot.lane.b32.xlu1 %v3735_v42, %s3820_s28  ;;  %v3639_v48 = vunpack.i.h.bf16 %v4499_v63  ;;  %v3313_v63 = vunpack.c.l.bf16 %v4703_v49 }
 0x221   : > { %v1860_v51 = vpop.f32.mrb[16].mxu1  ;;  %v4659_v11 = vpop.permute.xlu1 %3691 }
 0x222   : > { %v1862_v57 = vpop.f32.mrb[17].mxu1  ;;  %v4662_v21 = vpop.permute.xlu0 %3621  ;;  %v1861_v0 = vadd.f32 %v4504_v50, %v1860_v51  ;;  %v2471_v51 = vsel %vm2467_vm11, %v3310_v55, %v3609_v33  ;;  %v2472_v7 = vsel %vm2467_vm11, %v3313_v63, %v3613_v60  ;;  %v3684_v60 = vunpack.i.h.bf16 %v4643_v14 }
 0x223   : > { %v1863_v58 = vpop.f32.mrb[18].mxu1  ;;  %v3338_v63 = vunpack.c.h.bf16 %v3503_v26 }
 0x224   : > { %2411 = vrot.lane.b32.xlu0 %v1845_v23, %s3817_s18  ;;  %v1865_v1 = vpop.f32.mrb[19].mxu1  ;;  %3741 = vrot.lane.b32.xlu1 %v3740_v37, %s3821_s21  ;;  %v1864_v29 = vadd.f32 %v4504_v50, %v1863_v58  ;;  %v2503_v58 = vsel %vm1545_vm8, %v2471_v51, %v3639_v48 }
 0x225   : > { %v4666_v22 = vpop.permute.xlu1 %3696 }
 0x226   : > { %v4673_v27 = vpop.permute.xlu0 %3631 }
 0x227   : > { %v3633_v39 = vunpack.i.l.bf16 %v4673_v27 }
 0x228   : > { %2413 = vrot.lane.b32.xlu0 %v1848_v2, %s3817_s18  ;;  %3746 = vrot.lane.b32.xlu1 %v3745_v47, %s3820_s28 }
 0x229   : > { %v4678_v20 = vpop.permute.xlu1 %3701  ;;  %v2500_v30 = vsel %vm1545_vm8, %v2468_v28, %v3633_v39  ;;  %v4742_v28 = vld [vmem:[%s4514_s25 + $0x20] sm:$0xff]  }
 0x22a   : > { %v4708_v23 = vpop.permute.xlu0 %3641  ;;  %v3321_v55 = vunpack.c.l.bf16 %v4742_v28 }
 0x22b   : > { %v3643_v47 = vunpack.i.l.bf16 %v4708_v23 }
 0x22c   : > { %2415 = vrot.lane.b32.xlu0 %v1853_v40, %s3817_s18  ;;  %3751 = vrot.lane.b32.xlu1 %v3750_v43, %s3821_s21 }
 0x22e   : > { %v4747_v33 = vpop.permute.xlu0 %3651 }
 0x230   : > { %2389 = vrot.lane.b32.xlu0 %v1800_v6, %s3817_s18  ;;  %3756 = vrot.lane.b32.xlu1 %v3755_v9, %s3820_s28  ;;  %s4690_s28 = scalar_lea.vmem %s5104_s8, %s3894_s13  ;;  %v2504_v9 = vsel %vm1545_vm8, %v2472_v7, %v3643_v47  ;;  %v3822_v6 = vmov 0.0   ;;  %v3689_v7 = vunpack.i.h.bf16 %v4652_v38 }
 0x231   : > { %2730 = vst.msk [vmem:[#allocation2] sm:$0x1] %vm2729_vm13, %v3822_v6  ;;  %2731 = vst.msk [vmem:[#allocation3] sm:$0x1] %vm2729_vm13, %v3822_v6 }
 0x234   : > { %2391 = vrot.lane.b32.xlu0 %v1805_v13, %s3817_s18 }
 0x238   : > { %2393 = vrot.lane.b32.xlu0 %v1808_v18, %s3817_s18 }
 0x23c   : > { %2395 = vrot.lane.b32.xlu0 %v1813_v15, %s3817_s18 }
 0x240   : > { %2397 = vrot.lane.b32.xlu0 %v1816_v45, %s3817_s18 }
 0x244   : > { %2399 = vrot.lane.b32.xlu0 %v1821_v19, %s3817_s18 }
 0x248   : > { %2401 = vrot.lane.b32.xlu0 %v1824_v3, %s3817_s18 }
 0x24c   : > { %2417 = vrot.lane.b32.xlu0 %v1856_v10, %s3817_s18 }
 0x250   : > { %2419 = vrot.lane.b32.xlu0 %v1861_v0, %s3817_s18 }
 0x254   : > { %2421 = vrot.lane.b32.xlu0 %v1864_v29, %s3817_s18  ;;  %v3683_v29 = vunpack.i.l.bf16 %v4643_v14 }
 0x256   : > { %v2372_v32 = vpop.permute.xlu1 %2371 }
 0x257   : > { %v4693_v42 = vsel %vm1341_vm6, %v2500_v30, %v2372_v32  ;;  %v3337_v30 = vunpack.c.l.bf16 %v3503_v26  ;;  %v3623_v32 = vunpack.i.l.bf16 %v4662_v21 }
 0x258   : > { %v3263_v4 = vpack.c.bf16 %v4693_v42, %v4693_v42 }
 0x259   : > { %v1868_v34 = vpop.f32.mrb[20].mxu1  ;;  %v2484_v48 = vsel %vm2467_vm11, %v3337_v30, %v3683_v29  ;;  %v2476_v51 = vsel %vm2467_vm11, %v3321_v55, %v3623_v32  ;;  %v3699_v30 = vunpack.i.h.bf16 %v4666_v22  ;;  %v2734_v32 = vsel %vm2733_vm14, %v4693_v42, 0.0 }
 0x25a   : > { %2693 = vst.msk [vmem:[%s4690_s28] sm:$0xf] %vm2692_vm12, %v3263_v4  ;;  %v1869_v59 = vadd.f32 %v4504_v50, %v1868_v34  ;;  %v1870_v37 = vpop.f32.mrb[21].mxu1  ;;  %v3688_v4 = vunpack.i.l.bf16 %v4652_v38  ;;  %v3693_v38 = vunpack.i.l.bf16 %v4659_v11 }
 0x25b   : > { %v1871_v12 = vpop.f32.mrb[22].mxu1 }
 0x25c   : > { %v1873_v52 = vpop.f32.mrb[23].mxu1  ;;  %2423 = vrot.lane.b32.xlu0 %v1869_v59, %s3817_s18  ;;  %v1872_v57 = vadd.f32 %v4504_v50, %v1871_v12  ;;  %v3653_v59 = vunpack.i.l.bf16 %v4747_v33  ;;  %v3604_v12 = vunpack.i.h.bf16 %v4647_v16 }
 0x25d   : > { %v3306_v52 = vunpack.c.h.bf16 %v4669_v24 }
 0x260   : > { %v2378_v1 = vpop.permute.xlu1 %2377  ;;  %2425 = vrot.lane.b32.xlu0 %v1872_v57, %s3817_s18  ;;  %v3634_v57 = vunpack.i.h.bf16 %v4673_v27 }
 0x261   : > { %v4716_v61 = vsel %vm1341_vm6, %v2503_v58, %v2378_v1  ;;  %v1876_v31 = vpop.f32.mrb[24].mxu1  ;;  %v2508_v1 = vsel %vm1545_vm8, %v2476_v51, %v3653_v59 }
 0x262   : > { %v3266_v2 = vpack.c.bf16 %v4716_v61, %v4716_v61  ;;  %v1877_v43 = vadd.f32 %v4504_v50, %v1876_v31  ;;  %v1878_v46 = vpop.f32.mrb[25].mxu1  ;;  %v2469_v31 = vsel %vm2467_vm11, %v3306_v52, %v3604_v12 }
 0x263   : > { %v1879_v17 = vpop.f32.mrb[26].mxu1 }
 0x264   : > { %2696 = vst.msk [vmem:[%s4690_s28 + $0xc] sm:$0xf] %vm2692_vm12, %v3266_v2  ;;  %v1881_v40 = vpop.f32.mrb[27].mxu1  ;;  %2427 = vrot.lane.b32.xlu0 %v1877_v43, %s3817_s18  ;;  %v1880_v13 = vadd.f32 %v4504_v50, %v1879_v17  ;;  %v2485_v2 = vsel %vm2467_vm11, %v3338_v63, %v3684_v60  ;;  %v3504_v43 = vld [vmem:[%s4514_s25 + $0x48] sm:$0xff]   ;;  %v2501_v17 = vsel %vm1545_vm8, %v2469_v31, %v3634_v57  ;;  %v3614_v60 = vunpack.i.h.bf16 %v4655_v54 }
 0x265   : > { %v2517_v6 = vsel %vm1545_vm8, %v2485_v2, %v3689_v7  ;;  %v3342_v29 = vunpack.c.h.bf16 %v3504_v43  ;;  %v2739_v63 = vsel %vm2733_vm14, %v4716_v61, 0.0  ;;  %v3314_v54 = vunpack.c.h.bf16 %v4703_v49 }
 0x266   : > { %v2380_v18 = vpop.permute.xlu1 %2379 }
 0x267   : > { %v4730_v15 = vsel %vm1341_vm6, %v2504_v9, %v2380_v18 }
 0x268   : > { %v3267_v45 = vpack.c.bf16 %v4730_v15, %v4730_v15  ;;  %2429 = vrot.lane.b32.xlu0 %v1880_v13, %s3817_s18  ;;  %v3341_v13 = vunpack.c.l.bf16 %v3504_v43 }
 0x269   : > { %v1884_v19 = vpop.f32.mrb[28].mxu1 }
 0x26a   : > { %2697 = vst.msk [vmem:[%s4690_s28 + $0x10] sm:$0xf] %vm2692_vm12, %v3267_v45  ;;  %v1885_v3 = vadd.f32 %v4504_v50, %v1884_v19  ;;  %v1886_v10 = vpop.f32.mrb[29].mxu1  ;;  %v3698_v19 = vunpack.i.l.bf16 %v4666_v22  ;;  %v2810_v22 = vmul.f32 %v4716_v61, %v4716_v61  ;;  %v2741_v61 = vsel %vm2733_vm14, %v4730_v15, 0.0 }
 0x26b   : > { %v1887_v41 = vpop.f32.mrb[30].mxu1 }
 0x26c   : > { %v1888_v0 = vadd.f32 %v4504_v50, %v1887_v41  ;;  %v1889_v39 = vpop.f32.mrb[31].mxu1  ;;  %2431 = vrot.lane.b32.xlu0 %v1885_v3, %s3817_s18  ;;  %v2807_v3 = vmul.f32 %v4693_v42, %v4693_v42  ;;  %v2844_v7 = vsel %vm2733_vm14, %v2810_v22, 0.0 }
 0x26d   : > { %v3694_v39 = vunpack.i.h.bf16 %v4659_v11 }
 0x26e   : > { %2433 = vrot.lane.b32.xlu1 %v1888_v0, %s3817_s18  ;;  %v2486_v0 = vsel %vm2467_vm11, %v3341_v13, %v3693_v38  ;;  %v3505_v38 = vld [vmem:[%s4514_s25 + $0x50] sm:$0xff]  }
 0x26f   : > { %v2518_v11 = vsel %vm1545_vm8, %v2486_v0, %v3698_v19 }
 0x270   : > { %v2386_v50 = vpop.permute.xlu1 %2385 }
 0x271   : > { %v4753_v34 = vsel %vm1341_vm6, %v4531_v25, %v2386_v50  ;;  %v2516_v25 = vsel %vm1545_vm8, %v2484_v48, %v3688_v4  ;;  %v2839_v50 = vsel %vm2733_vm14, %v2807_v3, 0.0 }
 0x272   : > { %v3270_v37 = vpack.c.bf16 %v4753_v34, %v4753_v34 }
 0x274   : > { %2700 = vst.msk [vmem:[%s4690_s28 + $0x1c] sm:$0xf] %vm2692_vm12, %v3270_v37 }
 0x276   : > { %v2388_v58 = vpop.permute.xlu1 %2387  ;;  %v2404_v16 = vpop.permute.xlu0 %2403 }
 0x277   : > { %v4769_v47 = vsel %vm1341_vm6, %v2508_v1, %v2388_v58  ;;  %v4772_v24 = vsel %vm1341_vm6, %v2516_v25, %v2404_v16  ;;  %v2487_v25 = vsel %vm2467_vm11, %v3342_v29, %v3694_v39 }
 0x278   : > { %v3271_v14 = vpack.c.bf16 %v4769_v47, %v4769_v47  ;;  %v3279_v27 = vpack.c.bf16 %v4772_v24, %v4772_v24 }
 0x27a   : > { %2701 = vst.msk [vmem:[%s4690_s28 + $0x20] sm:$0xf] %vm2692_vm12, %v3271_v14  ;;  %2709 = vst.msk [vmem:[%s4690_s28 + $0x40] sm:$0xf] %vm2692_vm12, %v3279_v27  ;;  %v2374_v46 = vpop.permute.xlu0 %2373  ;;  %v2519_v27 = vsel %vm1545_vm8, %v2487_v25, %v3699_v30 }
 0x27b   : > { %v2533_v40 = vsel %vm1341_vm6, %v2501_v17, %v2374_v46  ;;  %v3707_v46 = vpop.permute.xlu1 %3706  ;;  %v3644_v17 = vunpack.i.h.bf16 %v4708_v23  ;;  %v3704_v23 = vunpack.i.h.bf16 %v4678_v20 }
 0x27c   : > { %v3264_v9 = vpack.c.bf16 %v2533_v40, %v2533_v40  ;;  %v2808_v18 = vmul.f32 %v2533_v40, %v2533_v40  ;;  %v2735_v26 = vsel %vm2733_vm14, %v2533_v40, 0.0 }
 0x27d   : > { %v2736_v48 = vadd.f32 %v2735_v26, %v2734_v32  ;;  %v3346_v26 = vunpack.c.h.bf16 %v3505_v38  ;;  %v3708_v32 = vunpack.i.l.bf16 %v3707_v46 }
 0x27e   : > { %2694 = vst.msk [vmem:[%s4690_s28 + $0x4] sm:$0xf] %vm2692_vm12, %v3264_v9  ;;  %v2406_v45 = vpop.permute.xlu0 %2405  ;;  %v2840_v55 = vsel %vm2733_vm14, %v2808_v18, 0.0  ;;  %v3703_v18 = vunpack.i.l.bf16 %v4678_v20 }
 0x27f   : > { %v4796_v10 = vsel %vm1341_vm6, %v2517_v6, %v2406_v45  ;;  %v2841_v51 = vadd.f32 %v2840_v55, %v2839_v50  ;;  %v3345_v45 = vunpack.c.l.bf16 %v3505_v38  ;;  %v4852_v0 = vpop.permute.xlu1 %3711  ;;  %v2489_v50 = vsel %vm2467_vm11, %v3346_v26, %v3704_v23 }
 0x280   : > { %v3280_v41 = vpack.c.bf16 %v4796_v10, %v4796_v10  ;;  %v2749_v23 = vsel %vm2733_vm14, %v4769_v47, 0.0 }
 0x281   : > { %v2488_v55 = vsel %vm2467_vm11, %v3345_v45, %v3703_v18  ;;  %v2815_v45 = vmul.f32 %v4769_v47, %v4769_v47 }
 0x282   : > { %2710 = vst.msk [vmem:[%s4690_s28 + $0x44] sm:$0xf] %vm2692_vm12, %v3280_v41  ;;  %v2376_v4 = vpop.permute.xlu0 %2375 }
 0x283   : > { %v2534_v59 = vsel %vm1341_vm6, %v4525_v56, %v2376_v4  ;;  %v2811_v56 = vmul.f32 %v4730_v15, %v4730_v15  ;;  %v2473_v15 = vsel %vm2467_vm11, %v3314_v54, %v3614_v60 }
 0x284   : > { %v3265_v37 = vpack.c.bf16 %v2534_v59, %v2534_v59  ;;  %v2737_v42 = vsel %vm2733_vm14, %v2534_v59, 0.0  ;;  %v2809_v12 = vmul.f32 %v2534_v59, %v2534_v59  ;;  %v2505_v3 = vsel %vm1545_vm8, %v2473_v15, %v3644_v17 }
 0x285   : > { %v2738_v52 = vadd.f32 %v2737_v42, %v2736_v48  ;;  %v2846_v40 = vsel %vm2733_vm14, %v2811_v56, 0.0  ;;  %v4861_v48 = vld [vmem:[%s4514_s25 + $0x58] sm:$0xff]   ;;  %v2814_v59 = vmul.f32 %v4753_v34, %v4753_v34  ;;  %v4870_v56 = vpop.permute.xlu1 %3716  ;;  %v3624_v17 = vunpack.i.h.bf16 %v4662_v21 }
 0x286   : > { %2695 = vst.msk [vmem:[%s4690_s28 + $0x8] sm:$0xf] %vm2692_vm12, %v3265_v37  ;;  %v2842_v57 = vsel %vm2733_vm14, %v2809_v12, 0.0  ;;  %v2408_v58 = vpop.permute.xlu0 %2407  ;;  %v3709_v37 = vunpack.i.h.bf16 %v3707_v46 }
 0x287   : > { %v2740_v1 = vadd.f32 %v2739_v63, %v2738_v52  ;;  %v2843_v16 = vadd.f32 %v2842_v57, %v2841_v51  ;;  %v4826_v31 = vsel %vm1341_vm6, %v2518_v11, %v2408_v58  ;;  %v2520_v52 = vsel %vm1545_vm8, %v2488_v55, %v3708_v32 }
 0x288   : > { %v3281_v14 = vpack.c.bf16 %v4826_v31, %v4826_v31  ;;  %v3713_v63 = vunpack.i.l.bf16 %v4852_v0  ;;  %v3349_v57 = vunpack.c.l.bf16 %v4861_v48  ;;  %v2747_v58 = vsel %vm2733_vm14, %v4753_v34, 0.0 }
 0x289   : > { %v2845_v2 = vadd.f32 %v2844_v7, %v2843_v16  ;;  %v2742_v43 = vadd.f32 %v2741_v61, %v2740_v1  ;;  %v2852_v61 = vsel %vm2733_vm14, %v2814_v59, 0.0  ;;  %v3718_v34 = vunpack.i.l.bf16 %v4870_v56 }
 0x28a   : > { %2711 = vst.msk [vmem:[%s4690_s28 + $0x48] sm:$0xf] %vm2692_vm12, %v3281_v14  ;;  %v2410_v49 = vpop.permute.xlu0 %2409 }
 0x28b   : > { %v4841_v9 = vsel %vm1341_vm6, %v2519_v27, %v2410_v49  ;;  %v2847_v6 = vadd.f32 %v2846_v40, %v2845_v2  ;;  %v2521_v27 = vsel %vm1545_vm8, %v2489_v50, %v3709_v37  ;;  %v3322_v49 = vunpack.c.h.bf16 %v4742_v28 }
 0x28c   : > { %v3282_v13 = vpack.c.bf16 %v4841_v9, %v4841_v9 }
 0x28d   : > { %v2477_v21 = vsel %vm2467_vm11, %v3322_v49, %v3624_v17 }
 0x28e   : > { %2712 = vst.msk [vmem:[%s4690_s28 + $0x4c] sm:$0xf] %vm2692_vm12, %v3282_v13  ;;  %v2382_v19 = vpop.permute.xlu0 %2381 }
 0x28f   : > { %v2537_v41 = vsel %vm1341_vm6, %v2505_v3, %v2382_v19 }
 0x290   : > { %v3268_v39 = vpack.c.bf16 %v2537_v41, %v2537_v41  ;;  %v2743_v29 = vsel %vm2733_vm14, %v2537_v41, 0.0  ;;  %v2812_v30 = vmul.f32 %v2537_v41, %v2537_v41  ;;  %v2854_v41 = vsel %vm2733_vm14, %v2815_v45, 0.0 }
 0x291   : > { %v2744_v11 = vadd.f32 %v2743_v29, %v2742_v43  ;;  %v2490_v43 = vsel %vm2467_vm11, %v3349_v57, %v3713_v63  ;;  %v4928_v57 = vpop.permute.xlu1 %3721 }
 0x292   : > { %2698 = vst.msk [vmem:[%s4690_s28 + $0x14] sm:$0xf] %vm2692_vm12, %v3268_v39  ;;  %v2848_v20 = vsel %vm2733_vm14, %v2812_v30, 0.0  ;;  %v2384_v4 = vpop.permute.xlu0 %2383  ;;  %v2522_v15 = vsel %vm1545_vm8, %v2490_v43, %v3718_v34 }
 0x293   : > { %v2538_v22 = vsel %vm1341_vm6, %v4536_v62, %v2384_v4  ;;  %v2849_v25 = vadd.f32 %v2848_v20, %v2847_v6  ;;  %v3654_v6 = vunpack.i.h.bf16 %v4747_v33 }
 0x294   : > { %v3269_v42 = vpack.c.bf16 %v2538_v22, %v2538_v22  ;;  %v2745_v12 = vsel %vm2733_vm14, %v2538_v22, 0.0  ;;  %v2813_v51 = vmul.f32 %v2538_v22, %v2538_v22 }
 0x295   : > { %v2746_v60 = vadd.f32 %v2745_v12, %v2744_v11  ;;  %v2509_v19 = vsel %vm1545_vm8, %v2477_v21, %v3654_v6  ;;  %v3714_v21 = vunpack.i.h.bf16 %v4852_v0  ;;  %v3719_v0 = vunpack.i.h.bf16 %v4870_v56 }
 0x296   : > { %2699 = vst.msk [vmem:[%s4690_s28 + $0x18] sm:$0xf] %vm2692_vm12, %v3269_v42  ;;  %v2850_v62 = vsel %vm2733_vm14, %v2813_v51, 0.0  ;;  %v2412_v1 = vpop.permute.xlu0 %2411  ;;  %v2765_v56 = vsel %vm2733_vm14, %v4772_v24, 0.0 }
 0x297   : > { %v2748_v16 = vadd.f32 %v2747_v58, %v2746_v60  ;;  %v2851_v54 = vadd.f32 %v2850_v62, %v2849_v25  ;;  %v4879_v7 = vsel %vm1341_vm6, %v2520_v52, %v2412_v1 }
 0x298   : > { %v3283_v14 = vpack.c.bf16 %v4879_v7, %v4879_v7 }
 0x299   : > { %v2853_v2 = vadd.f32 %v2852_v61, %v2851_v54  ;;  %v2750_v26 = vadd.f32 %v2749_v23, %v2748_v16 }
 0x29a   : > { %2713 = vst.msk [vmem:[%s4690_s28 + $0x50] sm:$0xf] %vm2692_vm12, %v3283_v14  ;;  %v2414_v46 = vpop.permute.xlu0 %2413 }
 0x29b   : > { %v4891_v40 = vsel %vm1341_vm6, %v2521_v27, %v2414_v46  ;;  %v2855_v55 = vadd.f32 %v2854_v41, %v2853_v2  ;;  %v4941_v46 = vpop.permute.xlu1 %3726 }
 0x29c   : > { %v3284_v38 = vpack.c.bf16 %v4891_v40, %v4891_v40 }
 0x29e   : > { %2714 = vst.msk [vmem:[%s4690_s28 + $0x54] sm:$0xf] %vm2692_vm12, %v3284_v38  ;;  %v2416_v13 = vpop.permute.xlu0 %2415 }
 0x29f   : > { %v4901_v18 = vsel %vm1341_vm6, %v2522_v15, %v2416_v13  ;;  %v3507_v13 = vld [vmem:[%s4514_s25 + $0x60] sm:$0xff]  }
 0x2a0   : > { %v3285_v28 = vpack.c.bf16 %v4901_v18, %v4901_v18  ;;  %v3353_v41 = vunpack.c.l.bf16 %v3507_v13 }
 0x2a2   : > { %2715 = vst.msk [vmem:[%s4690_s28 + $0x58] sm:$0xf] %vm2692_vm12, %v3285_v28  ;;  %v2390_v33 = vpop.permute.xlu0 %2389  ;;  %v3350_v28 = vunpack.c.h.bf16 %v4861_v48 }
 0x2a3   : > { %v2541_v3 = vsel %vm1341_vm6, %v2509_v19, %v2390_v33 }
 0x2a4   : > { %v3272_v39 = vpack.c.bf16 %v2541_v3, %v2541_v3  ;;  %v2751_v29 = vsel %vm2733_vm14, %v2541_v3, 0.0  ;;  %v2816_v30 = vmul.f32 %v2541_v3, %v2541_v3 }
 0x2a5   : > { %v2752_v32 = vadd.f32 %v2751_v29, %v2750_v26  ;;  %v3723_v26 = vunpack.i.l.bf16 %v4928_v57  ;;  %v2823_v29 = vmul.f32 %v4772_v24, %v4772_v24  ;;  %v3724_v24 = vunpack.i.h.bf16 %v4928_v57 }
 0x2a6   : > { %2702 = vst.msk [vmem:[%s4690_s28 + $0x24] sm:$0xf] %vm2692_vm12, %v3272_v39  ;;  %v2856_v47 = vsel %vm2733_vm14, %v2816_v30, 0.0  ;;  %v2392_v20 = vpop.permute.xlu0 %2391  ;;  %v4954_v39 = vpop.permute.xlu1 %3731  ;;  %v2769_v57 = vsel %vm2733_vm14, %v4826_v31, 0.0 }
 0x2a7   : > { %v2857_v4 = vadd.f32 %v2856_v47, %v2855_v55  ;;  %v2542_v50 = vsel %vm1341_vm6, %v4543_v35, %v2392_v20  ;;  %v2491_v55 = vsel %vm2467_vm11, %v3350_v28, %v3714_v21 }
 0x2a8   : > { %v3273_v59 = vpack.c.bf16 %v2542_v50, %v2542_v50  ;;  %v2753_v11 = vsel %vm2733_vm14, %v2542_v50, 0.0  ;;  %v2817_v22 = vmul.f32 %v2542_v50, %v2542_v50  ;;  %v3728_v50 = vunpack.i.l.bf16 %v4941_v46 }
 0x2a9   : > { %v2754_v37 = vadd.f32 %v2753_v11, %v2752_v32  ;;  %v2492_v11 = vsel %vm2467_vm11, %v3353_v41, %v3723_v26  ;;  %v2829_v41 = vmul.f32 %v4901_v18, %v4901_v18 }
 0x2aa   : > { %2703 = vst.msk [vmem:[%s4690_s28 + $0x28] sm:$0xf] %vm2692_vm12, %v3273_v59  ;;  %v2858_v42 = vsel %vm2733_vm14, %v2817_v22, 0.0  ;;  %v2394_v12 = vpop.permute.xlu0 %2393  ;;  %v3354_v22 = vunpack.c.h.bf16 %v3507_v13 }
 0x2ab   : > { %v2859_v51 = vadd.f32 %v2858_v42, %v2857_v4  ;;  %v2543_v52 = vsel %vm1341_vm6, %v4546_v36, %v2394_v12  ;;  %v2523_v12 = vsel %vm1545_vm8, %v2491_v55, %v3719_v0  ;;  %v2777_v55 = vsel %vm2733_vm14, %v4901_v18, 0.0 }
 0x2ac   : > { %v3274_v25 = vpack.c.bf16 %v2543_v52, %v2543_v52  ;;  %v2755_v60 = vsel %vm2733_vm14, %v2543_v52, 0.0  ;;  %v2818_v63 = vmul.f32 %v2543_v52, %v2543_v52 }
 0x2ad   : > { %v2756_v35 = vadd.f32 %v2755_v60, %v2754_v37  ;;  %v2870_v37 = vsel %vm2733_vm14, %v2823_v29, 0.0 }
 0x2ae   : > { %2704 = vst.msk [vmem:[%s4690_s28 + $0x2c] sm:$0xf] %vm2692_vm12, %v3274_v25  ;;  %v2860_v58 = vsel %vm2733_vm14, %v2818_v63, 0.0  ;;  %v2396_v62 = vpop.permute.xlu0 %2395  ;;  %v4979_v63 = vpop.permute.xlu1 %3736 }
 0x2af   : > { %v2861_v1 = vadd.f32 %v2860_v58, %v2859_v51  ;;  %v2544_v16 = vsel %vm1341_vm6, %v4562_v5, %v2396_v62  ;;  %v2825_v58 = vmul.f32 %v4826_v31, %v4826_v31  ;;  %v2771_v31 = vsel %vm2733_vm14, %v4841_v9, 0.0 }
 0x2b0   : > { %v3275_v54 = vpack.c.bf16 %v2544_v16, %v2544_v16  ;;  %v2757_v36 = vsel %vm2733_vm14, %v2544_v16, 0.0  ;;  %v2819_v61 = vmul.f32 %v2544_v16, %v2544_v16 }
 0x2b1   : > { %v2758_v14 = vadd.f32 %v2757_v36, %v2756_v35  ;;  %v2767_v35 = vsel %vm2733_vm14, %v4796_v10, 0.0 }
 0x2b2   : > { %2705 = vst.msk [vmem:[%s4690_s28 + $0x30] sm:$0xf] %vm2692_vm12, %v3275_v54  ;;  %v2862_v27 = vsel %vm2733_vm14, %v2819_v61, 0.0  ;;  %v2398_v34 = vpop.permute.xlu0 %2397  ;;  %v2826_v61 = vmul.f32 %v4841_v9, %v4841_v9 }
 0x2b3   : > { %v2863_v2 = vadd.f32 %v2862_v27, %v2861_v1  ;;  %v2545_v43 = vsel %vm1341_vm6, %v4565_v8, %v2398_v34  ;;  %v2524_v1 = vsel %vm1545_vm8, %v2492_v11, %v3728_v50  ;;  %v3508_v27 = vld [vmem:[%s4514_s25 + $0x68] sm:$0xff]   ;;  %v2882_v11 = vsel %vm2733_vm14, %v2829_v41, 0.0 }
 0x2b4   : > { %v3276_v17 = vpack.c.bf16 %v2545_v43, %v2545_v43  ;;  %v2759_v5 = vsel %vm2733_vm14, %v2545_v43, 0.0  ;;  %v2820_v49 = vmul.f32 %v2545_v43, %v2545_v43  ;;  %v3357_v13 = vunpack.c.l.bf16 %v3508_v27 }
 0x2b5   : > { %v2760_v38 = vadd.f32 %v2759_v5, %v2758_v14  ;;  %v2874_v5 = vsel %vm2733_vm14, %v2825_v58, 0.0  ;;  %v2876_v21 = vsel %vm2733_vm14, %v2826_v61, 0.0 }
 0x2b6   : > { %2706 = vst.msk [vmem:[%s4690_s28 + $0x34] sm:$0xf] %vm2692_vm12, %v3276_v17  ;;  %v2864_v15 = vsel %vm2733_vm14, %v2820_v49, 0.0  ;;  %v2400_v6 = vpop.permute.xlu0 %2399  ;;  %v2493_v17 = vsel %vm2467_vm11, %v3354_v22, %v3724_v24  ;;  %v2827_v49 = vmul.f32 %v4879_v7, %v4879_v7 }
 0x2b7   : > { %v2865_v45 = vadd.f32 %v2864_v15, %v2863_v2  ;;  %v2546_v8 = vsel %vm1341_vm6, %v4582_v44, %v2400_v6  ;;  %v5002_v6 = vpop.permute.xlu1 %3741 }
 0x2b8   : > { %v3277_v23 = vpack.c.bf16 %v2546_v8, %v2546_v8  ;;  %v2761_v33 = vsel %vm2733_vm14, %v2546_v8, 0.0  ;;  %v2821_v19 = vmul.f32 %v2546_v8, %v2546_v8  ;;  %v2828_v8 = vmul.f32 %v4891_v40, %v4891_v40 }
 0x2b9   : > { %v2762_v3 = vadd.f32 %v2761_v33, %v2760_v38  ;;  %v2878_v26 = vsel %vm2733_vm14, %v2827_v49, 0.0 }
 0x2ba   : > { %2707 = vst.msk [vmem:[%s4690_s28 + $0x38] sm:$0xf] %vm2692_vm12, %v3277_v23  ;;  %v2866_v44 = vsel %vm2733_vm14, %v2821_v19, 0.0  ;;  %v2402_v48 = vpop.permute.xlu0 %2401  ;;  %v3733_v19 = vunpack.i.l.bf16 %v4954_v39 }
 0x2bb   : > { %v2867_v30 = vadd.f32 %v2866_v44, %v2865_v45  ;;  %v2547_v32 = vsel %vm1341_vm6, %v4585_v53, %v2402_v48  ;;  %v2824_v53 = vmul.f32 %v4796_v10, %v4796_v10  ;;  %v3729_v10 = vunpack.i.h.bf16 %v4941_v46 }
 0x2bc   : > { %v3278_v47 = vpack.c.bf16 %v2547_v32, %v2547_v32  ;;  %v2763_v20 = vsel %vm2733_vm14, %v2547_v32, 0.0  ;;  %v2822_v4 = vmul.f32 %v2547_v32, %v2547_v32  ;;  %v2773_v45 = vsel %vm2733_vm14, %v4879_v7, 0.0 }
 0x2bd   : > { %v2764_v59 = vadd.f32 %v2763_v20, %v2762_v3  ;;  %v2872_v36 = vsel %vm2733_vm14, %v2824_v53, 0.0  ;;  %v2525_v9 = vsel %vm1545_vm8, %v2493_v17, %v3729_v10  ;;  %v2775_v7 = vsel %vm2733_vm14, %v4891_v40, 0.0  ;;  %v3509_v40 = vld [vmem:[%s4514_s25 + $0x70] sm:$0xff]  }
 0x2be   : > { %2708 = vst.msk [vmem:[%s4690_s28 + $0x3c] sm:$0xf] %vm2692_vm12, %v3278_v47  ;;  %v2868_v42 = vsel %vm2733_vm14, %v2822_v4, 0.0  ;;  %v2418_v51 = vpop.permute.xlu0 %2417  ;;  %v3734_v48 = vunpack.i.h.bf16 %v4954_v39  ;;  %v2880_v32 = vsel %vm2733_vm14, %v2828_v8, 0.0  ;;  %v3738_v20 = vunpack.i.l.bf16 %v4979_v63 }
 0x2bf   : > { %v2766_v52 = vadd.f32 %v2765_v56, %v2764_v59  ;;  %v2869_v25 = vadd.f32 %v2868_v42, %v2867_v30  ;;  %v2555_v60 = vsel %vm1341_vm6, %v2523_v12, %v2418_v51  ;;  %v3358_v30 = vunpack.c.h.bf16 %v3508_v27  ;;  %v3747_v59 = vpop.permute.xlu1 %3746 }
 0x2c0   : > { %v3286_v62 = vpack.c.bf16 %v2555_v60, %v2555_v60  ;;  %v2830_v47 = vmul.f32 %v2555_v60, %v2555_v60  ;;  %v2494_v56 = vsel %vm2467_vm11, %v3357_v13, %v3733_v19  ;;  %v2779_v39 = vsel %vm2733_vm14, %v2555_v60, 0.0 }
 0x2c1   : > { %v2768_v16 = vadd.f32 %v2767_v35, %v2766_v52  ;;  %v2871_v54 = vadd.f32 %v2870_v37, %v2869_v25  ;;  %v2495_v18 = vsel %vm2467_vm11, %v3358_v30, %v3734_v48  ;;  %v3361_v42 = vunpack.c.l.bf16 %v3509_v40 }
 0x2c2   : > { %2716 = vst.msk [vmem:[%s4690_s28 + $0x5c] sm:$0xf] %vm2692_vm12, %v3286_v62  ;;  %v2420_v14 = vpop.permute.xlu0 %2419  ;;  %v2884_v12 = vsel %vm2733_vm14, %v2830_v47, 0.0  ;;  %v3739_v52 = vunpack.i.h.bf16 %v4979_v63  ;;  %v2526_v25 = vsel %vm1545_vm8, %v2494_v56, %v3738_v20  ;;  %v3743_v60 = vunpack.i.l.bf16 %v5002_v6 }
 0x2c3   : > { %v2770_v34 = vadd.f32 %v2769_v57, %v2768_v16  ;;  %v2873_v2 = vadd.f32 %v2872_v36, %v2871_v54  ;;  %v2556_v43 = vsel %vm1341_vm6, %v2524_v1, %v2420_v14  ;;  %v3752_v57 = vpop.permute.xlu1 %3751  ;;  %v3748_v63 = vunpack.i.l.bf16 %v3747_v59 }
 0x2c4   : > { %v3287_v38 = vpack.c.bf16 %v2556_v43, %v2556_v43  ;;  %v2831_v22 = vmul.f32 %v2556_v43, %v2556_v43  ;;  %v2781_v51 = vsel %vm2733_vm14, %v2556_v43, 0.0  ;;  %v2527_v10 = vsel %vm1545_vm8, %v2495_v18, %v3739_v52 }
 0x2c5   : > { %v2875_v15 = vadd.f32 %v2874_v5, %v2873_v2  ;;  %v2772_v46 = vadd.f32 %v2771_v31, %v2770_v34  ;;  %v3362_v27 = vunpack.c.h.bf16 %v3509_v40  ;;  %v3510_v34 = vld [vmem:[%s4514_s25 + $0x78] sm:$0xff]   ;;  %v3744_v43 = vunpack.i.h.bf16 %v5002_v6 }
 0x2c6   : > { %2717 = vst.msk [vmem:[%s4690_s28 + $0x60] sm:$0xf] %vm2692_vm12, %v3287_v38  ;;  %v2422_v28 = vpop.permute.xlu0 %2421  ;;  %v2886_v1 = vsel %vm2733_vm14, %v2831_v22, 0.0  ;;  %v2496_v5 = vsel %vm2467_vm11, %v3361_v42, %v3743_v60 }
 0x2c7   : > { %v2774_v23 = vadd.f32 %v2773_v45, %v2772_v46  ;;  %v2877_v33 = vadd.f32 %v2876_v21, %v2875_v15  ;;  %v2557_v3 = vsel %vm1341_vm6, %v2525_v9, %v2422_v28  ;;  %v3365_v46 = vunpack.c.l.bf16 %v3510_v34 }
 0x2c8   : > { %v3288_v29 = vpack.c.bf16 %v2557_v3, %v2557_v3  ;;  %v2832_v16 = vmul.f32 %v2557_v3, %v2557_v3  ;;  %v2783_v61 = vsel %vm2733_vm14, %v2557_v3, 0.0  ;;  %v3749_v21 = vunpack.i.h.bf16 %v3747_v59 }
 0x2c9   : > { %v2776_v0 = vadd.f32 %v2775_v7, %v2774_v23  ;;  %v2879_v44 = vadd.f32 %v2878_v26, %v2877_v33  ;;  %v2528_v8 = vsel %vm1545_vm8, %v2496_v5, %v3748_v63  ;;  %v3753_v28 = vunpack.i.l.bf16 %v3752_v57  ;;  %v3757_v33 = vpop.permute.xlu1 %3756 }
 0x2ca   : > { %2718 = vst.msk [vmem:[%s4690_s28 + $0x64] sm:$0xf] %vm2692_vm12, %v3288_v29  ;;  %v2888_v31 = vsel %vm2733_vm14, %v2832_v16, 0.0  ;;  %v2497_v19 = vsel %vm2467_vm11, %v3362_v27, %v3744_v43  ;;  %v3759_v40 = vunpack.i.h.bf16 %v3757_v33 }
 0x2cb   : > { %v2778_v4 = vadd.f32 %v2777_v55, %v2776_v0  ;;  %v2881_v50 = vadd.f32 %v2880_v32, %v2879_v44  ;;  %v3754_v0 = vunpack.i.h.bf16 %v3752_v57  ;;  %v3366_v44 = vunpack.c.h.bf16 %v3510_v34 }
 0x2cc   : > { %v3758_v32 = vunpack.i.l.bf16 %v3757_v33  ;;  %v2529_v55 = vsel %vm1545_vm8, %v2497_v19, %v3749_v21 }
 0x2cd   : > { %v2780_v37 = vadd.f32 %v2779_v39, %v2778_v4  ;;  %v2883_v53 = vadd.f32 %v2882_v11, %v2881_v50  ;;  %v2498_v50 = vsel %vm2467_vm11, %v3365_v46, %v3753_v28 }
 0x2ce   : > { %v2424_v24 = vpop.permute.xlu0 %2423  ;;  %v2530_v42 = vsel %vm1545_vm8, %v2498_v50, %v3758_v32 }
 0x2cf   : > { %v2885_v35 = vadd.f32 %v2884_v12, %v2883_v53  ;;  %v2782_v58 = vadd.f32 %v2781_v51, %v2780_v37  ;;  %v2558_v62 = vsel %vm1341_vm6, %v2526_v25, %v2424_v24  ;;  %v2499_v53 = vsel %vm2467_vm11, %v3366_v44, %v3754_v0 }
 0x2d0   : > { %v3289_v54 = vpack.c.bf16 %v2558_v62, %v2558_v62  ;;  %v2833_v49 = vmul.f32 %v2558_v62, %v2558_v62  ;;  %v2785_v13 = vsel %vm2733_vm14, %v2558_v62, 0.0  ;;  %v2531_v60 = vsel %vm1545_vm8, %v2499_v53, %v3759_v40 }
 0x2d1   : > { %v2887_v36 = vadd.f32 %v2886_v1, %v2885_v35  ;;  %v2784_v2 = vadd.f32 %v2783_v61, %v2782_v58 }
 0x2d2   : > { %2719 = vst.msk [vmem:[%s4690_s28 + $0x68] sm:$0xf] %vm2692_vm12, %v3289_v54  ;;  %v2426_v14 = vpop.permute.xlu0 %2425  ;;  %v2890_v3 = vsel %vm2733_vm14, %v2833_v49, 0.0 }
 0x2d3   : > { %v2559_v17 = vsel %vm1341_vm6, %v2527_v10, %v2426_v14  ;;  %v2889_v15 = vadd.f32 %v2888_v31, %v2887_v36  ;;  %v2786_v9 = vadd.f32 %v2785_v13, %v2784_v2  ;;  %v2732_v13 = vld [vmem:[#allocation2] sm:$0x1] }
 0x2d4   : > { %v3290_v38 = vpack.c.bf16 %v2559_v17, %v2559_v17  ;;  %v2834_v45 = vmul.f32 %v2559_v17, %v2559_v17  ;;  %v2787_v26 = vsel %vm2733_vm14, %v2559_v17, 0.0 }
 0x2d5   : > { %v2891_v29 = vadd.f32 %v2890_v3, %v2889_v15  ;;  %v2788_v20 = vadd.f32 %v2787_v26, %v2786_v9 }
 0x2d6   : > { %2720 = vst.msk [vmem:[%s4690_s28 + $0x6c] sm:$0xf] %vm2692_vm12, %v3290_v38  ;;  %v2428_v6 = vpop.permute.xlu0 %2427  ;;  %v2892_v48 = vsel %vm2733_vm14, %v2834_v45, 0.0 }
 0x2d7   : > { %v2560_v23 = vsel %vm1341_vm6, %v2528_v8, %v2428_v6  ;;  %v2893_v22 = vadd.f32 %v2892_v48, %v2891_v29  ;;  %v2806_v8 = vld [vmem:[#allocation3] sm:$0x1] }
 0x2d8   : > { %v3291_v7 = vpack.c.bf16 %v2560_v23, %v2560_v23  ;;  %v2835_v41 = vmul.f32 %v2560_v23, %v2560_v23  ;;  %v2789_v30 = vsel %vm2733_vm14, %v2560_v23, 0.0 }
 0x2d9   : > { %v2790_v37 = vadd.f32 %v2789_v30, %v2788_v20 }
 0x2da   : > { %2721 = vst.msk [vmem:[%s4690_s28 + $0x70] sm:$0xf] %vm2692_vm12, %v3291_v7  ;;  %v2430_v47 = vpop.permute.xlu0 %2429  ;;  %v2894_v56 = vsel %vm2733_vm14, %v2835_v41, 0.0 }
 0x2db   : > { %v2561_v4 = vsel %vm1341_vm6, %v2529_v55, %v2430_v47  ;;  %v2895_v51 = vadd.f32 %v2894_v56, %v2893_v22 }
 0x2dc   : > { %v3292_v59 = vpack.c.bf16 %v2561_v4, %v2561_v4  ;;  %v2791_v11 = vsel %vm2733_vm14, %v2561_v4, 0.0  ;;  %v2836_v39 = vmul.f32 %v2561_v4, %v2561_v4 }
 0x2dd   : > { %v2792_v52 = vadd.f32 %v2791_v11, %v2790_v37 }
 0x2de   : > { %2722 = vst.msk [vmem:[%s4690_s28 + $0x74] sm:$0xf] %vm2692_vm12, %v3292_v59  ;;  %v2896_v18 = vsel %vm2733_vm14, %v2836_v39, 0.0  ;;  %v2432_v12 = vpop.permute.xlu0 %2431 }
 0x2df   : > { %v2562_v25 = vsel %vm1341_vm6, %v2530_v42, %v2432_v12  ;;  %v2897_v1 = vadd.f32 %v2896_v18, %v2895_v51 }
 0x2e0   : > { %v3293_v24 = vpack.c.bf16 %v2562_v25, %v2562_v25  ;;  %v2793_v35 = vsel %vm2733_vm14, %v2562_v25, 0.0  ;;  %v2837_v58 = vmul.f32 %v2562_v25, %v2562_v25  ;;  %v2434_v62 = vpop.permute.xlu1 %2433 }
 0x2e1   : > { %v2794_v16 = vadd.f32 %v2793_v35, %v2792_v52  ;;  %v2563_v54 = vsel %vm1341_vm6, %v2531_v60, %v2434_v62 }
 0x2e2   : > { %2723 = vst.msk [vmem:[%s4690_s28 + $0x78] sm:$0xf] %vm2692_vm12, %v3293_v24  ;;  %v2898_v36 = vsel %vm2733_vm14, %v2837_v58, 0.0  ;;  %v3294_v57 = vpack.c.bf16 %v2563_v54, %v2563_v54  ;;  %v2795_v61 = vsel %vm2733_vm14, %v2563_v54, 0.0  ;;  %v2838_v63 = vmul.f32 %v2563_v54, %v2563_v54 }
 0x2e3   : > { %v2899_v10 = vadd.f32 %v2898_v36, %v2897_v1  ;;  %v2796_v14 = vadd.f32 %v2795_v61, %v2794_v16 }
 0x2e4   : > { %2724 = vst.msk [vmem:[%s4690_s28 + $0x7c] sm:$0xf] %vm2692_vm12, %v3294_v57  ;;  %v2900_v27 = vsel %vm2733_vm14, %v2838_v63, 0.0 }
 0x2e5   : > { %v2797_v34 = vrot.slane %v2796_v14, 4  ;;  %v2901_v2 = vadd.f32 %v2900_v27, %v2899_v10 }
 0x2e7   : > { %v2798_v43 = vadd.f32 %v2797_v34, %v2796_v14  ;;  %v2902_v17 = vrot.slane %v2901_v2, 4 }
 0x2e9   : > { %v2799_v5 = vrot.slane %v2798_v43, 2  ;;  %v2903_v31 = vadd.f32 %v2902_v17, %v2901_v2 }
 0x2eb   : > { %v2800_v49 = vadd.f32 %v2799_v5, %v2798_v43  ;;  %v2904_v38 = vrot.slane %v2903_v31, 2 }
 0x2ed   : > { %v2801_v15 = vrot.slane %v2800_v49, 1  ;;  %v2905_v46 = vadd.f32 %v2904_v38, %v2903_v31 }
 0x2ef   : > { %v2802_v21 = vadd.f32 %v2801_v15, %v2800_v49  ;;  %v2906_v45 = vrot.slane %v2905_v46, 1 }
 0x2f1   : > { %v2803_v6 = vadd.f32 %v2802_v21, %v2732_v13  ;;  %v2907_v9 = vadd.f32 %v2906_v45, %v2905_v46 }
 0x2f3   : > { %2805 = vst.msk [vmem:[#allocation2] sm:$0x1] %vm2729_vm13, %v2803_v6  ;;  %v2908_v28 = vadd.f32 %v2907_v9, %v2806_v8 }
 0x2f5   : > { %2909 = vst.msk [vmem:[#allocation3] sm:$0x1] %vm2729_vm13, %v2908_v28 }
 0x2fa   : > { %v2913_v23 = vld [vmem:[#allocation2] sm:$0x1] }
 0x2fb   : > { %v2914_v33 = vmul.f32 0.00390625, %v2913_v23 }
 0x2fc   : > { %v2915_v19 = vld [vmem:[#allocation3] sm:$0x1] }
 0x2fd   : > { %v2916_v3 = vmul.f32 0.00390625, %v2915_v19  ;;  %v2917_v26 = vmul.f32 %v2914_v33, %v2914_v33 }
 0x2ff   : > { %v2918_v7 = vsub.f32 %v2916_v3, %v2917_v26 }
 0x301   : > { %v2919_v41 = vmax.f32 %v2918_v7, 0.0 }
 0x303   : > { %3790 = vrsqrt.f32 %v2919_v41  ;;  %vm2922_vm15 = vcmp.eq.f32.partialorder %v2919_v41, inf  ;;  %v2925_v44 = vand.u32 2147483648, %v2919_v41  ;;  %vm2924_vm0 = vcmp.eq.f32.partialorder %v2919_v41, 0.0 }
 0x30d   : > { %v3791_v29 = vpop.eup %3790 }
 0x30e   : > { %v2921_v0 = vmul.f32 %v3791_v29, %v2919_v41 }
 0x310   : > { %v2923_v48 = vsel %vm2922_vm15, %v2919_v41, %v2921_v0 }
 0x311   : > { %v2926_v30 = vsel %vm2924_vm0, %v2925_v44, %v2923_v48 }
 0x312   : > { %v2927_v32 = vadd.f32 %v2926_v30, %v2914_v33 }
 0x314   : > { %2928 = vst.msk [vmem:[%s626_s17] sm:$0x1] %vm2729_vm13, %v2927_v32 }
 0x315 PF: > { %s20_s11 = sadd.s32 1, %s3814_s11   ;;  %s5108_s30 = smov %s3810_s10 }
 0x316   : > { %p17_p5 = scmp.ge.s32.totalorder %s20_s11, 4   ;;  %s5109_s10 = smov %s5111_s12 }
 0x318   :  { %19 = sbr.rel (!%p17_p5) target bundleno = 2 (0x2), region = 117 }

// kernel: colornet_forward.28
= control target key start
LH: loop header
LB: loop body
LE: loop exit
PB: predicated region body
PF: predicated region fallthrough
CT: control target
= control target key end

     0   :  { %s1379_s15 = smov 0   ;;  %s1381_s16 = smov 0   ;;  %s1578_s0 = inlined_call_operand.vmem [shape: bf16[2,16,16,32], index: 0, kind: input, shape index: {}]   ;;  %s1579_s1 = inlined_call_operand.vmem [shape: bf16[2,32,32], index: 1, kind: input, shape index: {}]   ;;  %s1580_s2 = inlined_call_operand.vmem [shape: f32[1,32], index: 2, kind: input, shape index: {}]   ;;  %s1581_s3 = inlined_call_operand.vmem [shape: bf16[2,16,16,32], index: 3, kind: input, shape index: {}]   ;;  %s1582_s4 = inlined_call_operand.vmem [shape: bf16[2,16,16,32], index: 4, kind: output, shape index: {}]  }
   0x1   :  { %s1383_s17 = smov 0  }
   0x2 LB: > { %s26_s18 = sadd.s32 1, %s1348_s16  ;;  %p1037_p0 = scmp.ge.s32.totalorder %s1352_s17, 1  ;;  %s1352_s17 = sphi %s1383_s17, %s14_s17   ;;  %s1348_s16 = sphi %s1381_s16, %s1584_s16   ;;  %s1344_s15 = sphi %s1379_s15, %s1583_s15  }
   0x3   : > { %p28_p1 = scmp.ge.s32.totalorder %s26_s18, 2  ;;  %p212_p2 = scmp.lt.s32.totalorder %s1352_s17, 3 }
   0x5   : > { %s1586_s18 = smov (%p28_p1, %s26_s18), 0  ;;  %p213_p3 = pnand %p1037_p0, %p212_p2 }
   0x6   : > { %p264_p4 = scmp.lt.s32.totalorder (!%p213_p3), %s1344_s15, 1  ;;  %vm437_vm0 = vcmask (!%p213_p3), 261120   ;;  %v1453_v22 = vld [vmem:[%s1580_s2] ss:$0 sm:$0xff] (!%p213_p3)  ;;  %vm871_vm1 = vcmask (!%p213_p3), 257024  }
   0x7   : > { %216 = sbr.rel (%p213_p3) target bundleno = 272 (0x110), region = 36 }
   0xe   : > { %s1588_s15 = smov (!%p264_p4, %s1344_s15), 1 }
   0xf   : > { %s1397_s19 = sshll.u32 %s1588_s15, 7  ;;  %s1116_s20 = sshll.u32 %s1588_s15, 4 }
  0x10   : > { %s1403_s23 = scalar_lea.vmem %s1578_s0, %s1397_s19  ;;  %s278_s26 = scalar_lea.vmem %s1579_s1, %s1116_s20 }
  0x11   : > { %v1312_v0 = vld [vmem:[%s278_s26] sm:$0xff]   ;;  %v1313_v1 = vld [vmem:[%s278_s26 + $0x8] sm:$0xff]   ;;  %v1318_v6 = vld [vmem:[%s1403_s23 + $0x10] sm:$0xff]   ;;  %s1444_s29 = scalar_lea.vmem %s1581_s3, %s1397_s19  ;;  %s1465_s8 = scalar_lea.vmem %s1582_s4, %s1397_s19 }
  0x12   : > { %1248 = vmatprep.subr.bf16.mxu0 %v1312_v0  ;;  %1284 = vmatprep.subr.bf16.mxu1 %v1312_v0  ;;  %v1314_v2 = vld [vmem:[%s1403_s23] sm:$0xff]   ;;  %v1316_v4 = vld [vmem:[%s1403_s23 + $0x8] sm:$0xff]   ;;  %v1319_v7 = vld [vmem:[%s1403_s23 + $0x50] sm:$0xff]  }
  0x13   : > { %1249 = vmatpush3.bf16.msra.mxu0 %v1312_v0  ;;  %1286 = vmatpush3.bf16.msra.mxu1 %v1312_v0  ;;  %v1315_v3 = vld [vmem:[%s1403_s23 + $0x40] sm:$0xff]   ;;  %v1317_v5 = vld [vmem:[%s1403_s23 + $0x48] sm:$0xff]   ;;  %v1320_v8 = vld [vmem:[%s1403_s23 + $0x18] sm:$0xff]  }
  0x14   : > { %1250 = vmatprep.subr.bf16.mxu0 %v1313_v1  ;;  %1285 = vmatprep.subr.bf16.mxu1 %v1313_v1  ;;  %v1321_v9 = vld [vmem:[%s1403_s23 + $0x58] sm:$0xff]   ;;  %v1322_v10 = vld [vmem:[%s1403_s23 + $0x20] sm:$0xff]   ;;  %v1324_v12 = vld [vmem:[%s1403_s23 + $0x28] sm:$0xff]  }
  0x15   : > { %1252 = vmatprep.mubr.msk.bf16.mxu0 %vm437_vm0, %v1314_v2  ;;  %1268 = vmatprep.mubr.msk.bf16.mxu1 %vm437_vm0, %v1315_v3  ;;  %v1323_v11 = vld [vmem:[%s1403_s23 + $0x60] sm:$0xff]   ;;  %v1325_v13 = vld [vmem:[%s1403_s23 + $0x68] sm:$0xff]   ;;  %v1326_v14 = vld [vmem:[%s1403_s23 + $0x30] sm:$0xff]  }
  0x16   : > { %v1327_v15 = vld [vmem:[%s1403_s23 + $0x70] sm:$0xff]   ;;  %v1328_v16 = vld [vmem:[%s1403_s23 + $0x38] sm:$0xff]   ;;  %v1215_v18 = vld [vmem:[%s1444_s29 + $0x8] sm:$0xff]  }
  0x17   : > { %1251 = vmatpush3.bf16.msra.mxu0 %v1313_v1  ;;  %1287 = vmatpush3.bf16.msra.mxu1 %v1313_v1  ;;  %v1329_v17 = vld [vmem:[%s1403_s23 + $0x78] sm:$0xff]   ;;  %v1223_v19 = vld [vmem:[%s1444_s29 + $0x48] sm:$0xff]   ;;  %v1152_v20 = vld [vmem:[%s1444_s29] sm:$0xff]   ;;  %v1157_v23 = vunpack.c.l.bf16 %v1215_v18  ;;  %v1158_v29 = vunpack.c.h.bf16 %v1215_v18 }
  0x18   : > { %v1222_v21 = vld [vmem:[%s1444_s29 + $0x40] sm:$0xff]   ;;  %v1189_v24 = vunpack.c.l.bf16 %v1223_v19  ;;  %v1153_v27 = vunpack.c.l.bf16 %v1152_v20  ;;  %v1190_v34 = vunpack.c.h.bf16 %v1223_v19  ;;  %v1154_v35 = vunpack.c.h.bf16 %v1152_v20  ;;  %v1217_v51 = vld [vmem:[%s1444_s29 + $0x18] sm:$0xff]   ;;  %v1216_v57 = vld [vmem:[%s1444_s29 + $0x10] sm:$0xff]  }
  0x19   : > { %v1185_v28 = vunpack.c.l.bf16 %v1222_v21  ;;  %v1186_v40 = vunpack.c.h.bf16 %v1222_v21  ;;  %v1225_v52 = vld [vmem:[%s1444_s29 + $0x58] sm:$0xff]   ;;  %v1224_v58 = vld [vmem:[%s1444_s29 + $0x50] sm:$0xff]   ;;  %v1165_v1 = vunpack.c.l.bf16 %v1217_v51  ;;  %v1162_v19 = vunpack.c.h.bf16 %v1216_v57 }
  0x1a   : > { %1253 = vmatmul.mubr.msk.bf16.vlgmr.msra.gmra.mrb[0].mxu0 %vm437_vm0, %v1316_v4  ;;  %1269 = vmatmul.mubr.msk.bf16.vlgmr.msra.gmra.mrb[0].mxu1 %vm437_vm0, %v1317_v5  ;;  %v1197_v2 = vunpack.c.l.bf16 %v1225_v52  ;;  %v1194_v20 = vunpack.c.h.bf16 %v1224_v58 }
  0x1b   : > { %1256 = vmatprep.mubr.msk.bf16.mxu0 %vm437_vm0, %v1318_v6  ;;  %1272 = vmatprep.mubr.msk.bf16.mxu1 %vm437_vm0, %v1319_v7  ;;  %v1161_v7 = vunpack.c.l.bf16 %v1216_v57 }
  0x22   : > { %1257 = vmatmul.mubr.msk.bf16.gmra.mrb[4].mxu0 %vm437_vm0, %v1320_v8  ;;  %1273 = vmatmul.mubr.msk.bf16.gmra.mrb[4].mxu1 %vm437_vm0, %v1321_v9  ;;  %v1193_v8 = vunpack.c.l.bf16 %v1224_v58 }
  0x23   : > { %1260 = vmatprep.mubr.msk.bf16.mxu0 %vm437_vm0, %v1322_v10  ;;  %1276 = vmatprep.mubr.msk.bf16.mxu1 %vm437_vm0, %v1323_v11 }
  0x2a   : > { %1261 = vmatmul.mubr.msk.bf16.gmra.mrb[8].mxu0 %vm437_vm0, %v1324_v12  ;;  %1277 = vmatmul.mubr.msk.bf16.gmra.mrb[8].mxu1 %vm437_vm0, %v1325_v13  ;;  %v1166_v13 = vunpack.c.h.bf16 %v1217_v51 }
  0x2b   : > { %1264 = vmatprep.mubr.msk.bf16.mxu0 %vm437_vm0, %v1326_v14  ;;  %1280 = vmatprep.mubr.msk.bf16.mxu1 %vm437_vm0, %v1327_v15  ;;  %v1198_v14 = vunpack.c.h.bf16 %v1225_v52 }
  0x32   : > { %1265 = vmatmul.mubr.msk.bf16.gmra.mrb[12].mxu0 %vm437_vm0, %v1328_v16  ;;  %1281 = vmatmul.mubr.msk.bf16.gmra.mrb[12].mxu1 %vm437_vm0, %v1329_v17 }
  0xed   : > { %v1254_v25 = vpop.f32.mrb[0].mxu0  ;;  %v1270_v26 = vpop.f32.mrb[0].mxu1 }
  0xee   : > { %v529_v30 = vadd.f32 %v1254_v25, %v1453_v22  ;;  %v593_v31 = vadd.f32 %v1270_v26, %v1453_v22  ;;  %v520_v32 = vpop.f32.mrb[1].mxu0  ;;  %v584_v33 = vpop.f32.mrb[1].mxu1 }
  0xef   : > { %v521_v36 = vadd.f32 %v1453_v22, %v520_v32  ;;  %v585_v37 = vadd.f32 %v1453_v22, %v584_v33  ;;  %v1255_v38 = vpop.f32.mrb[2].mxu0  ;;  %v1271_v39 = vpop.f32.mrb[2].mxu1  ;;  %v1219_v32 = vld [vmem:[%s1444_s29 + $0x28] sm:$0xff]  }
  0xf0   : > { %v713_v41 = vadd.f32 %v1157_v23, %v529_v30  ;;  %v729_v42 = vadd.f32 %v1189_v24, %v593_v31  ;;  %v532_v43 = vadd.f32 %v1255_v38, %v1453_v22  ;;  %v596_v44 = vadd.f32 %v1271_v39, %v1453_v22  ;;  %v523_v45 = vpop.f32.mrb[3].mxu0  ;;  %v587_v46 = vpop.f32.mrb[3].mxu1  ;;  %v1227_v33 = vld [vmem:[%s1444_s29 + $0x68] sm:$0xff]   ;;  %v1218_v38 = vld [vmem:[%s1444_s29 + $0x20] sm:$0xff]  }
  0xf1   : > { %v711_v47 = vadd.f32 %v1153_v27, %v521_v36  ;;  %v727_v48 = vadd.f32 %v1185_v28, %v585_v37  ;;  %v524_v49 = vadd.f32 %v1453_v22, %v523_v45  ;;  %v588_v50 = vadd.f32 %v1453_v22, %v587_v46  ;;  %v1226_v39 = vld [vmem:[%s1444_s29 + $0x60] sm:$0xff]  }
  0xf2   : > { %v1121_v53 = vpack.c.bf16 %v713_v41, %v713_v41  ;;  %v1137_v54 = vpack.c.bf16 %v729_v42, %v729_v42  ;;  %v714_v55 = vadd.f32 %v1158_v29, %v532_v43  ;;  %v730_v56 = vadd.f32 %v1190_v34, %v596_v44 }
  0xf3   : > { %v1119_v59 = vpack.c.bf16 %v711_v47, %v711_v47  ;;  %v1135_v60 = vpack.c.bf16 %v727_v48, %v727_v48  ;;  %v712_v61 = vadd.f32 %v1154_v35, %v524_v49  ;;  %v728_v62 = vadd.f32 %v1186_v40, %v588_v50 }
  0xf4   : > { %874 = vst.msk [vmem:[%s1465_s8 + $0x8] sm:$0xf] %vm871_vm1, %v1121_v53  ;;  %890 = vst.msk [vmem:[%s1465_s8 + $0x48] sm:$0xf] %vm871_vm1, %v1137_v54  ;;  %v1122_v63 = vpack.c.bf16 %v714_v55, %v714_v55  ;;  %v1138_v0 = vpack.c.bf16 %v730_v56, %v730_v56  ;;  %v1173_v46 = vunpack.c.l.bf16 %v1219_v32  ;;  %v1205_v47 = vunpack.c.l.bf16 %v1227_v33 }
  0xf5   : > { %872 = vst.msk [vmem:[%s1465_s8] sm:$0xf] %vm871_vm1, %v1119_v59  ;;  %888 = vst.msk [vmem:[%s1465_s8 + $0x40] sm:$0xf] %vm871_vm1, %v1135_v60  ;;  %v1120_v3 = vpack.c.bf16 %v712_v61, %v712_v61  ;;  %v1136_v4 = vpack.c.bf16 %v728_v62, %v728_v62  ;;  %v1258_v5 = vpop.f32.mrb[4].mxu0  ;;  %v1274_v6 = vpop.f32.mrb[4].mxu1  ;;  %v1169_v52 = vunpack.c.l.bf16 %v1218_v38  ;;  %v1201_v53 = vunpack.c.l.bf16 %v1226_v39 }
  0xf6   : > { %875 = vst.msk [vmem:[%s1465_s8 + $0xc] sm:$0xf] %vm871_vm1, %v1122_v63  ;;  %891 = vst.msk [vmem:[%s1465_s8 + $0x4c] sm:$0xf] %vm871_vm1, %v1138_v0  ;;  %v545_v9 = vadd.f32 %v1258_v5, %v1453_v22  ;;  %v609_v10 = vadd.f32 %v1274_v6, %v1453_v22  ;;  %v536_v11 = vpop.f32.mrb[5].mxu0  ;;  %v600_v12 = vpop.f32.mrb[5].mxu1  ;;  %v1174_v58 = vunpack.c.h.bf16 %v1219_v32  ;;  %v1206_v59 = vunpack.c.h.bf16 %v1227_v33 }
  0xf7   : > { %873 = vst.msk [vmem:[%s1465_s8 + $0x4] sm:$0xf] %vm871_vm1, %v1120_v3  ;;  %889 = vst.msk [vmem:[%s1465_s8 + $0x44] sm:$0xf] %vm871_vm1, %v1136_v4  ;;  %v537_v15 = vadd.f32 %v1453_v22, %v536_v11  ;;  %v601_v16 = vadd.f32 %v1453_v22, %v600_v12  ;;  %v1259_v17 = vpop.f32.mrb[6].mxu0  ;;  %v1275_v18 = vpop.f32.mrb[6].mxu1  ;;  %v1170_v0 = vunpack.c.h.bf16 %v1218_v38 }
  0xf8   : > { %v717_v21 = vadd.f32 %v1165_v1, %v545_v9  ;;  %v733_v23 = vadd.f32 %v1197_v2, %v609_v10  ;;  %v548_v24 = vadd.f32 %v1259_v17, %v1453_v22  ;;  %v612_v25 = vadd.f32 %v1275_v18, %v1453_v22  ;;  %v539_v26 = vpop.f32.mrb[7].mxu0  ;;  %v603_v27 = vpop.f32.mrb[7].mxu1  ;;  %v1221_v12 = vld [vmem:[%s1444_s29 + $0x38] sm:$0xff]   ;;  %v1220_v18 = vld [vmem:[%s1444_s29 + $0x30] sm:$0xff]  }
  0xf9   : > { %v715_v28 = vadd.f32 %v1161_v7, %v537_v15  ;;  %v731_v29 = vadd.f32 %v1193_v8, %v601_v16  ;;  %v540_v30 = vadd.f32 %v1453_v22, %v539_v26  ;;  %v604_v31 = vadd.f32 %v1453_v22, %v603_v27 }
  0xfa   : > { %v1125_v34 = vpack.c.bf16 %v717_v21, %v717_v21  ;;  %v1141_v35 = vpack.c.bf16 %v733_v23, %v733_v23  ;;  %v718_v36 = vadd.f32 %v1166_v13, %v548_v24  ;;  %v734_v37 = vadd.f32 %v1198_v14, %v612_v25  ;;  %v1229_v13 = vld [vmem:[%s1444_s29 + $0x78] sm:$0xff]  }
  0xfb   : > { %v1123_v40 = vpack.c.bf16 %v715_v28, %v715_v28  ;;  %v1139_v41 = vpack.c.bf16 %v731_v29, %v731_v29  ;;  %v716_v42 = vadd.f32 %v1162_v19, %v540_v30  ;;  %v732_v43 = vadd.f32 %v1194_v20, %v604_v31  ;;  %v1228_v19 = vld [vmem:[%s1444_s29 + $0x70] sm:$0xff]  }
  0xfc   : > { %878 = vst.msk [vmem:[%s1465_s8 + $0x18] sm:$0xf] %vm871_vm1, %v1125_v34  ;;  %894 = vst.msk [vmem:[%s1465_s8 + $0x58] sm:$0xf] %vm871_vm1, %v1141_v35  ;;  %v1126_v44 = vpack.c.bf16 %v718_v36, %v718_v36  ;;  %v1142_v45 = vpack.c.bf16 %v734_v37, %v734_v37  ;;  %v1202_v1 = vunpack.c.h.bf16 %v1226_v39  ;;  %v1181_v27 = vunpack.c.l.bf16 %v1221_v12 }
  0xfd   : > { %876 = vst.msk [vmem:[%s1465_s8 + $0x10] sm:$0xf] %vm871_vm1, %v1123_v40  ;;  %892 = vst.msk [vmem:[%s1465_s8 + $0x50] sm:$0xf] %vm871_vm1, %v1139_v41  ;;  %v1124_v48 = vpack.c.bf16 %v716_v42, %v716_v42  ;;  %v1140_v49 = vpack.c.bf16 %v732_v43, %v732_v43  ;;  %v1262_v50 = vpop.f32.mrb[8].mxu0  ;;  %v1278_v51 = vpop.f32.mrb[8].mxu1  ;;  %v1213_v28 = vunpack.c.l.bf16 %v1229_v13  ;;  %v1177_v33 = vunpack.c.l.bf16 %v1220_v18 }
  0xfe   : > { %879 = vst.msk [vmem:[%s1465_s8 + $0x1c] sm:$0xf] %vm871_vm1, %v1126_v44  ;;  %895 = vst.msk [vmem:[%s1465_s8 + $0x5c] sm:$0xf] %vm871_vm1, %v1142_v45  ;;  %v561_v54 = vadd.f32 %v1262_v50, %v1453_v22  ;;  %v625_v55 = vadd.f32 %v1278_v51, %v1453_v22  ;;  %v552_v56 = vpop.f32.mrb[9].mxu0  ;;  %v616_v57 = vpop.f32.mrb[9].mxu1  ;;  %v1209_v34 = vunpack.c.l.bf16 %v1228_v19  ;;  %v1182_v39 = vunpack.c.h.bf16 %v1221_v12 }
  0xff   : > { %877 = vst.msk [vmem:[%s1465_s8 + $0x14] sm:$0xf] %vm871_vm1, %v1124_v48  ;;  %893 = vst.msk [vmem:[%s1465_s8 + $0x54] sm:$0xf] %vm871_vm1, %v1140_v49  ;;  %v553_v60 = vadd.f32 %v1453_v22, %v552_v56  ;;  %v617_v61 = vadd.f32 %v1453_v22, %v616_v57  ;;  %v1263_v62 = vpop.f32.mrb[10].mxu0  ;;  %v1279_v63 = vpop.f32.mrb[10].mxu1  ;;  %v1214_v40 = vunpack.c.h.bf16 %v1229_v13  ;;  %v1178_v45 = vunpack.c.h.bf16 %v1220_v18 }
 0x100   : > { %v721_v2 = vadd.f32 %v1173_v46, %v561_v54  ;;  %v737_v3 = vadd.f32 %v1205_v47, %v625_v55  ;;  %v564_v4 = vadd.f32 %v1263_v62, %v1453_v22  ;;  %v628_v5 = vadd.f32 %v1279_v63, %v1453_v22  ;;  %v555_v6 = vpop.f32.mrb[11].mxu0  ;;  %v619_v7 = vpop.f32.mrb[11].mxu1 }
 0x101   : > { %v719_v8 = vadd.f32 %v1169_v52, %v553_v60  ;;  %v735_v9 = vadd.f32 %v1201_v53, %v617_v61  ;;  %v556_v10 = vadd.f32 %v1453_v22, %v555_v6  ;;  %v620_v11 = vadd.f32 %v1453_v22, %v619_v7 }
 0x102   : > { %v1129_v14 = vpack.c.bf16 %v721_v2, %v721_v2  ;;  %v1145_v15 = vpack.c.bf16 %v737_v3, %v737_v3  ;;  %v722_v16 = vadd.f32 %v1174_v58, %v564_v4  ;;  %v738_v17 = vadd.f32 %v1206_v59, %v628_v5 }
 0x103   : > { %v1127_v20 = vpack.c.bf16 %v719_v8, %v719_v8  ;;  %v1143_v21 = vpack.c.bf16 %v735_v9, %v735_v9  ;;  %v720_v23 = vadd.f32 %v1170_v0, %v556_v10  ;;  %v736_v24 = vadd.f32 %v1202_v1, %v620_v11 }
 0x104   : > { %882 = vst.msk [vmem:[%s1465_s8 + $0x28] sm:$0xf] %vm871_vm1, %v1129_v14  ;;  %898 = vst.msk [vmem:[%s1465_s8 + $0x68] sm:$0xf] %vm871_vm1, %v1145_v15  ;;  %v1130_v25 = vpack.c.bf16 %v722_v16, %v722_v16  ;;  %v1146_v26 = vpack.c.bf16 %v738_v17, %v738_v17  ;;  %v1210_v46 = vunpack.c.h.bf16 %v1228_v19 }
 0x105   : > { %880 = vst.msk [vmem:[%s1465_s8 + $0x20] sm:$0xf] %vm871_vm1, %v1127_v20  ;;  %896 = vst.msk [vmem:[%s1465_s8 + $0x60] sm:$0xf] %vm871_vm1, %v1143_v21  ;;  %v1128_v29 = vpack.c.bf16 %v720_v23, %v720_v23  ;;  %v1144_v30 = vpack.c.bf16 %v736_v24, %v736_v24  ;;  %v1266_v31 = vpop.f32.mrb[12].mxu0  ;;  %v1282_v32 = vpop.f32.mrb[12].mxu1 }
 0x106   : > { %883 = vst.msk [vmem:[%s1465_s8 + $0x2c] sm:$0xf] %vm871_vm1, %v1130_v25  ;;  %899 = vst.msk [vmem:[%s1465_s8 + $0x6c] sm:$0xf] %vm871_vm1, %v1146_v26  ;;  %v577_v35 = vadd.f32 %v1266_v31, %v1453_v22  ;;  %v641_v36 = vadd.f32 %v1282_v32, %v1453_v22  ;;  %v568_v37 = vpop.f32.mrb[13].mxu0  ;;  %v632_v38 = vpop.f32.mrb[13].mxu1 }
 0x107   : > { %881 = vst.msk [vmem:[%s1465_s8 + $0x24] sm:$0xf] %vm871_vm1, %v1128_v29  ;;  %897 = vst.msk [vmem:[%s1465_s8 + $0x64] sm:$0xf] %vm871_vm1, %v1144_v30  ;;  %v569_v41 = vadd.f32 %v1453_v22, %v568_v37  ;;  %v633_v42 = vadd.f32 %v1453_v22, %v632_v38  ;;  %v1267_v43 = vpop.f32.mrb[14].mxu0  ;;  %v1283_v44 = vpop.f32.mrb[14].mxu1 }
 0x108   : > { %v725_v47 = vadd.f32 %v1181_v27, %v577_v35  ;;  %v741_v48 = vadd.f32 %v1213_v28, %v641_v36  ;;  %v580_v49 = vadd.f32 %v1267_v43, %v1453_v22  ;;  %v644_v50 = vadd.f32 %v1283_v44, %v1453_v22  ;;  %v571_v51 = vpop.f32.mrb[15].mxu0  ;;  %v635_v52 = vpop.f32.mrb[15].mxu1 }
 0x109   : > { %v723_v53 = vadd.f32 %v1177_v33, %v569_v41  ;;  %v739_v54 = vadd.f32 %v1209_v34, %v633_v42  ;;  %v572_v55 = vadd.f32 %v1453_v22, %v571_v51  ;;  %v636_v56 = vadd.f32 %v1453_v22, %v635_v52 }
 0x10a   : > { %v1133_v57 = vpack.c.bf16 %v725_v47, %v725_v47  ;;  %v1149_v58 = vpack.c.bf16 %v741_v48, %v741_v48  ;;  %v726_v59 = vadd.f32 %v1182_v39, %v580_v49  ;;  %v742_v60 = vadd.f32 %v1214_v40, %v644_v50 }
 0x10b   : > { %v1131_v61 = vpack.c.bf16 %v723_v53, %v723_v53  ;;  %v1147_v62 = vpack.c.bf16 %v739_v54, %v739_v54  ;;  %v724_v63 = vadd.f32 %v1178_v45, %v572_v55  ;;  %v740_v0 = vadd.f32 %v1210_v46, %v636_v56 }
 0x10c   : > { %886 = vst.msk [vmem:[%s1465_s8 + $0x38] sm:$0xf] %vm871_vm1, %v1133_v57  ;;  %902 = vst.msk [vmem:[%s1465_s8 + $0x78] sm:$0xf] %vm871_vm1, %v1149_v58  ;;  %v1134_v1 = vpack.c.bf16 %v726_v59, %v726_v59  ;;  %v1150_v2 = vpack.c.bf16 %v742_v60, %v742_v60 }
 0x10d   : > { %884 = vst.msk [vmem:[%s1465_s8 + $0x30] sm:$0xf] %vm871_vm1, %v1131_v61  ;;  %900 = vst.msk [vmem:[%s1465_s8 + $0x70] sm:$0xf] %vm871_vm1, %v1147_v62  ;;  %v1132_v22 = vpack.c.bf16 %v724_v63, %v724_v63  ;;  %v1148_v3 = vpack.c.bf16 %v740_v0, %v740_v0 }
 0x10e   : > { %887 = vst.msk [vmem:[%s1465_s8 + $0x3c] sm:$0xf] %vm871_vm1, %v1134_v1  ;;  %903 = vst.msk [vmem:[%s1465_s8 + $0x7c] sm:$0xf] %vm871_vm1, %v1150_v2 }
 0x10f   : > { %885 = vst.msk [vmem:[%s1465_s8 + $0x34] sm:$0xf] %vm871_vm1, %v1132_v22  ;;  %901 = vst.msk [vmem:[%s1465_s8 + $0x74] sm:$0xf] %vm871_vm1, %v1148_v3 }
 0x110 PF: > { %s14_s17 = sadd.s32 1, %s1352_s17   ;;  %s1583_s15 = smov %s1348_s16 }
 0x111   : > { %p11_p5 = scmp.ge.s32.totalorder %s14_s17, 4   ;;  %s1584_s16 = smov %s1586_s18 }
 0x113   :  { %13 = sbr.rel (!%p11_p5) target bundleno = 2 (0x2), region = 72 }

// kernel: colornet_forward.44
= control target key start
LH: loop header
LB: loop body
LE: loop exit
PB: predicated region body
PF: predicated region fallthrough
CT: control target
= control target key end

     0   :  { %s2877_s21 = smov 0   ;;  %s2879_s22 = smov 0   ;;  %s3633_s0 = inlined_call_operand.vmem [shape: bf16[2,16,16,32], index: 0, kind: input, shape index: {}, may-alias: {0,1,2}]   ;;  %s3634_s1 = inlined_call_operand.vmem [shape: bf16[2,16,16,32], index: 1, kind: input, shape index: {}, may-alias: {0,1,2}]   ;;  %s3635_s2 = inlined_call_operand.vmem [shape: bf16[2,16,16,32], index: 2, kind: input, shape index: {}, may-alias: {0,1,2}]   ;;  %s3636_s3 = inlined_call_operand.vmem [shape: bf16[288,32], index: 3, kind: input, shape index: {}]   ;;  %s3637_s4 = inlined_call_operand.vmem [shape: f32[1,32], index: 4, kind: input, shape index: {}]   ;;  %s3638_s5 = inlined_call_operand.vmem [shape: bf16[2,16,16,32], index: 5, kind: input, shape index: {}]   ;;  %s3639_s6 = inlined_call_operand.vmem [shape: bf16[2,16,16,32], index: 6, kind: output, shape index: {}]  }
   0x1   :  { %s2881_s23 = smov 0  }
   0x2 LB: > { %s28_s24 = sadd.s32 1, %s2833_s22  ;;  %p2350_p0 = scmp.ge.s32.totalorder %s2837_s23, 1  ;;  %s2837_s23 = sphi %s2881_s23, %s16_s23   ;;  %s2833_s22 = sphi %s2879_s22, %s3643_s22   ;;  %s2829_s21 = sphi %s2877_s21, %s3642_s21  }
   0x3   : > { %p30_p1 = scmp.ge.s32.totalorder %s28_s24, 2  ;;  %p316_p2 = scmp.lt.s32.totalorder %s2837_s23, 3 }
   0x5   : > { %s3645_s24 = smov (%p30_p1, %s28_s24), 0  ;;  %p317_p3 = pnand %p2350_p0, %p316_p2 }
   0x6   : > { %p396_p4 = scmp.lt.s32.totalorder (!%p317_p3), %s2829_s21, 1  ;;  %vm754_vm0 = vcmask (!%p317_p3), 1040384   ;;  %vm755_vm1 = vsmask.f32 (!%p317_p3), 256  ;;  %vm1082_vm2 = vcmask (!%p317_p3), 1046528   ;;  %s2839_s29 = smov (!%p317_p3), 64  }
   0x7   : > { %320 = sbr.rel (%p317_p3) target bundleno = 591 (0x24f), region = 44  ;;  %vm2905_vm3 = vmand (!%p317_p3), %vm754_vm0, %vm755_vm1  ;;  %vm793_vm4 = vsmask.f32 (!%p317_p3), 7424  ;;  %s2840_s30 = smov (!%p317_p3), 32   ;;  %vm1173_vm5 = vcmask (!%p317_p3), 261120   ;;  %vm1210_vm6 = vcmask (!%p317_p3), 523264  }
   0x8   : > { %s2841_s8 = smov (!%p317_p3), 96   ;;  %vm1328_vm7 = vcmask (!%p317_p3), 785408   ;;  %vm2154_vm8 = vcmask (!%p317_p3), 257024  }
   0xe   : > { %s3647_s21 = smov (!%p396_p4, %s2829_s21), 1 }
   0xf   : > { %s2895_s25 = sshll.u32 %s3647_s21, 7 }
  0x10   : > { %s2901_s28 = scalar_lea.vmem %s3634_s1, %s2895_s25  ;;  %s2449_s7 = sadd.s32 120, %s2895_s25 }
  0x11   : > { %v2781_v0 = vld [vmem:[%s2901_s28 + $0x60] sm:$0xff]   ;;  %v2783_v7 = vld [vmem:[%s2901_s28 + $0x8] sm:$0xff]   ;;  %v2785_v10 = vld [vmem:[%s2901_s28 + $0x10] sm:$0xff]   ;;  %s432_s10 = scalar_lea.vmem %s3635_s2, %s2449_s7  ;;  %s404_s13 = scalar_lea.vmem %s3633_s0, %s2895_s25 }
  0x12   : > { %v2782_v1 = vld [vmem:[%s2901_s28] sm:$0xff]   ;;  %v684_v2 = vshrl.u32 %v2781_v0, 16  ;;  %v687_v3 = vshll.u32 %v2781_v0, 16  ;;  %v2784_v8 = vld [vmem:[%s2901_s28 + $0x68] sm:$0xff]   ;;  %v607_v12 = vshrl.u32 %v2783_v7, 16  ;;  %v610_v13 = vshll.u32 %v2783_v7, 16  ;;  %s3468_s14 = scalar_lea.vmem %s3638_s5, %s2895_s25  ;;  %s3494_s19 = scalar_lea.vmem %s3639_s6, %s2895_s25 }
  0x13   : > { %v600_v5 = vshrl.u32 %v2782_v1, 16  ;;  %v603_v6 = vshll.u32 %v2782_v1, 16  ;;  %v691_v14 = vshrl.u32 %v2784_v8, 16  ;;  %v694_v17 = vshll.u32 %v2784_v8, 16  ;;  %v2786_v59 = vld [vmem:[%s2901_s28 + $0x70] sm:$0xff]  }
  0x14   : > { %v686_v9 = vrot.slane %v684_v2, 7  ;;  %v614_v18 = vshrl.u32 %v2785_v10, 16  ;;  %v609_v22 = vrot.slane %v607_v12, 7  ;;  %v617_v53 = vshll.u32 %v2785_v10, 16 }
  0x15   : > { %v602_v11 = vrot.slane %v600_v5, 7  ;;  %v693_v26 = vrot.slane %v691_v14, 7  ;;  %v2788_v14 = vld [vmem:[%s2901_s28 + $0x78] sm:$0xff]  }
  0x16   : > { %v689_v15 = vor.u32 %v687_v3, %v686_v9  ;;  %v788_v16 = vsel %vm2905_vm3, %v686_v9, 0  ;;  %v612_v29 = vor.u32 %v610_v13, %v609_v22  ;;  %v777_v30 = vsel %vm2905_vm3, %v609_v22, 0  ;;  %v2787_v9 = vld [vmem:[%s2901_s28 + $0x18] sm:$0xff]  }
  0x17   : > { %v1123_v19 = vrot.slane %v788_v16, 1  ;;  %v605_v20 = vor.u32 %v603_v6, %v602_v11  ;;  %v776_v21 = vsel %vm2905_vm3, %v602_v11, 0  ;;  %v1090_v32 = vrot.slane %v777_v30, 1 }
  0x18   : > { %v2918_v23 = vsel %vm2905_vm3, 0, %v689_v15  ;;  %v1087_v24 = vrot.slane %v776_v21, 1  ;;  %v814_v25 = vshll.u32 %v776_v21, 16  ;;  %v2933_v36 = vsel %vm2905_vm3, 0, %v612_v29 }
  0x19   : > { %v1122_v27 = vrot.slane %v2918_v23, 1  ;;  %v2923_v28 = vsel %vm2905_vm3, 0, %v605_v20  ;;  %v696_v38 = vor.u32 %v694_v17, %v693_v26  ;;  %v1089_v40 = vrot.slane %v2933_v36, 1 }
  0x1a   : > { %v1086_v31 = vrot.slane %v2923_v28, 1  ;;  %v807_v33 = vshrl.u32 %v2923_v28, 16  ;;  %v809_v34 = vshll.u32 %v2923_v28, 16  ;;  %v816_v37 = vrot.slane %v814_v25, 1 }
  0x1b   : > { %v1124_v35 = vsel %vm1082_vm2, %v1122_v27, %v1123_v19  ;;  %v789_v42 = vsel %vm2905_vm3, %v693_v26, 0  ;;  %v2943_v43 = vsel %vm2905_vm3, 0, %v696_v38  ;;  %v819_v45 = vshrl.u32 %v2933_v36, 16 }
  0x1c   : > { %1163 = vrot.lane.b32.xlu0 %v1124_v35, %s2839_s29  ;;  %v1088_v39 = vsel %vm1082_vm2, %v1086_v31, %v1087_v24  ;;  %v811_v41 = vrot.slane %v809_v34, 1  ;;  %v1126_v44 = vrot.slane %v789_v42, 1  ;;  %v821_v46 = vshll.u32 %v2933_v36, 16  ;;  %v2975_v24 = vld [vmem:[%s2901_s28 + $0x20] sm:$0xff]  }
  0x1d   : > { %1139 = vrot.lane.b32.xlu1 %v1088_v39, %s2839_s29  ;;  %v1091_v47 = vsel %vm1082_vm2, %v1089_v40, %v1090_v32  ;;  %v1125_v49 = vrot.slane %v2943_v43, 1  ;;  %v826_v50 = vshll.u32 %v777_v30, 16  ;;  %v616_v52 = vrot.slane %v614_v18, 7 }
  0x1e   : > { %v812_v48 = vor.u32 %v811_v41, %v807_v33  ;;  %v823_v51 = vrot.slane %v821_v46, 1  ;;  %v951_v54 = vshrl.u32 %v2918_v23, 16  ;;  %v953_v58 = vshll.u32 %v2918_v23, 16 }
  0x1f   : > { %v1127_v56 = vsel %vm1082_vm2, %v1125_v49, %v1126_v44  ;;  %v828_v57 = vrot.slane %v826_v50, 1  ;;  %v619_v61 = vor.u32 %v617_v53, %v616_v52  ;;  %v778_v62 = vsel %vm2905_vm3, %v616_v52, 0 }
  0x20   : > { %v817_v55 = vsel %vm793_vm4, %v812_v48, %v816_v37  ;;  %v824_v60 = vor.u32 %v823_v51, %v819_v45  ;;  %v958_v63 = vshll.u32 %v788_v16, 16  ;;  %v1093_v0 = vrot.slane %v778_v62, 1 }
  0x21   : > { %1141 = vrot.lane.b32.xlu1 %v1091_v47, %s2839_s29  ;;  %1012 = vrot.lane.b32.xlu0 %v817_v55, %s2840_s30  ;;  %v955_v1 = vrot.slane %v953_v58, 1  ;;  %v963_v2 = vshrl.u32 %v2943_v43, 16  ;;  %v965_v3 = vshll.u32 %v2943_v43, 16  ;;  %v2963_v6 = vsel %vm2905_vm3, 0, %v619_v61  ;;  %v2790_v61 = vld [vmem:[%s2901_s28 + $0x28] sm:$0xff]  }
  0x22   : > { %v829_v5 = vsel %vm793_vm4, %v824_v60, %v828_v57  ;;  %v960_v7 = vrot.slane %v958_v63, 1  ;;  %v970_v8 = vshll.u32 %v789_v42, 16  ;;  %v1092_v10 = vrot.slane %v2963_v6, 1  ;;  %v2489_v60 = vld [vmem:[%s432_s10] sm:$0xff]  }
  0x23   : > { %v956_v11 = vor.u32 %v955_v1, %v951_v54  ;;  %v967_v12 = vrot.slane %v965_v3, 1  ;;  %v831_v13 = vshrl.u32 %v2963_v6, 16  ;;  %v833_v16 = vshll.u32 %v2963_v6, 16 }
  0x24   : > { %v972_v15 = vrot.slane %v970_v8, 1  ;;  %v838_v17 = vshll.u32 %v778_v62, 16  ;;  %v698_v18 = vshrl.u32 %v2786_v59, 16  ;;  %v1094_v19 = vsel %vm1082_vm2, %v1092_v10, %v1093_v0 }
  0x25   : > { %1165 = vrot.lane.b32.xlu1 %v1127_v56, %s2839_s29  ;;  %1014 = vrot.lane.b32.xlu0 %v829_v5, %s2840_s30  ;;  %v961_v20 = vsel %vm793_vm4, %v956_v11, %v960_v7  ;;  %v968_v21 = vor.u32 %v967_v12, %v963_v2  ;;  %v701_v22 = vshll.u32 %v2786_v59, 16  ;;  %v835_v25 = vrot.slane %v833_v16, 1 }
  0x26   : > { %v840_v26 = vrot.slane %v838_v17, 1  ;;  %v700_v27 = vrot.slane %v698_v18, 7  ;;  %v621_v29 = vshrl.u32 %v2787_v9, 16  ;;  %v624_v31 = vshll.u32 %v2787_v9, 16 }
  0x27   : > { %v973_v30 = vsel %vm793_vm4, %v968_v21, %v972_v15  ;;  %v705_v32 = vshrl.u32 %v2788_v14, 16  ;;  %v708_v33 = vshll.u32 %v2788_v14, 16  ;;  %v836_v34 = vor.u32 %v835_v25, %v831_v13 }
  0x28   : > { %v703_v35 = vor.u32 %v701_v22, %v700_v27  ;;  %v790_v37 = vsel %vm2905_vm3, %v700_v27, 0  ;;  %v623_v38 = vrot.slane %v621_v29, 7  ;;  %v628_v42 = vshrl.u32 %v2975_v24, 16 }
  0x29   : > { %1143 = vrot.lane.b32.xlu1 %v1094_v19, %s2839_s29  ;;  %1036 = vrot.lane.b32.xlu0 %v961_v20, %s2840_s30  ;;  %v1129_v39 = vrot.slane %v790_v37, 1  ;;  %v982_v40 = vshll.u32 %v790_v37, 16  ;;  %v707_v41 = vrot.slane %v705_v32, 7  ;;  %v841_v44 = vsel %vm793_vm4, %v836_v34, %v840_v26  ;;  %v2791_v26 = vld [vmem:[%s2901_s28 + $0x30] sm:$0xff]  }
  0x2a   : > { %v2987_v45 = vsel %vm2905_vm3, 0, %v703_v35  ;;  %v626_v46 = vor.u32 %v624_v31, %v623_v38  ;;  %v779_v47 = vsel %vm2905_vm3, %v623_v38, 0  ;;  %v630_v14 = vrot.slane %v628_v42, 7 }
  0x2b   : > { %v1128_v48 = vrot.slane %v2987_v45, 1  ;;  %v975_v49 = vshrl.u32 %v2987_v45, 16  ;;  %v977_v50 = vshll.u32 %v2987_v45, 16  ;;  %v984_v51 = vrot.slane %v982_v40, 1 }
  0x2c   : > { %v3001_v52 = vsel %vm2905_vm3, 0, %v626_v46  ;;  %v1096_v53 = vrot.slane %v779_v47, 1  ;;  %v850_v54 = vshll.u32 %v779_v47, 16  ;;  %v710_v55 = vor.u32 %v708_v33, %v707_v41 }
  0x2d   : > { %1038 = vrot.lane.b32.xlu1 %v973_v30, %s2840_s30  ;;  %1016 = vrot.lane.b32.xlu0 %v841_v44, %s2840_s30  ;;  %v1130_v56 = vsel %vm1082_vm2, %v1128_v48, %v1129_v39  ;;  %v979_v57 = vrot.slane %v977_v50, 1  ;;  %v1095_v58 = vrot.slane %v3001_v52, 1  ;;  %v843_v59 = vshrl.u32 %v3001_v52, 16  ;;  %v2792_v44 = vld [vmem:[%s2901_s28 + $0x38] sm:$0xff]  }
  0x2e   : > { %v845_v62 = vshll.u32 %v3001_v52, 16  ;;  %v852_v63 = vrot.slane %v850_v54, 1  ;;  %v3010_v0 = vsel %vm2905_vm3, 0, %v710_v55  ;;  %v791_v1 = vsel %vm2905_vm3, %v707_v41, 0 }
  0x2f   : > { %v980_v2 = vor.u32 %v979_v57, %v975_v49  ;;  %v1097_v3 = vsel %vm1082_vm2, %v1095_v58, %v1096_v53  ;;  %v1131_v5 = vrot.slane %v3010_v0, 1  ;;  %v1132_v7 = vrot.slane %v791_v1, 1 }
  0x30   : > { %v847_v8 = vrot.slane %v845_v62, 1  ;;  %v987_v9 = vshrl.u32 %v3010_v0, 16  ;;  %v989_v10 = vshll.u32 %v3010_v0, 16  ;;  %v994_v11 = vshll.u32 %v791_v1, 16 }
  0x31   : > { %1167 = vrot.lane.b32.xlu1 %v1130_v56, %s2839_s29  ;;  %v985_v12 = vsel %vm793_vm4, %v980_v2, %v984_v51  ;;  %v1133_v13 = vsel %vm1082_vm2, %v1131_v5, %v1132_v7  ;;  %v631_v15 = vshll.u32 %v2975_v24, 16  ;;  %v2490_v19 = vunpack.c.l.bf16 %v2489_v60 }
  0x32   : > { %1040 = vrot.lane.b32.xlu0 %v985_v12, %s2840_s30  ;;  %v848_v16 = vor.u32 %v847_v8, %v843_v59  ;;  %v991_v17 = vrot.slane %v989_v10, 1  ;;  %v996_v18 = vrot.slane %v994_v11, 1  ;;  %v780_v21 = vsel %vm2905_vm3, %v630_v14, 0 }
  0x33   : > { %v633_v20 = vor.u32 %v631_v15, %v630_v14  ;;  %v2491_v22 = vunpack.c.h.bf16 %v2489_v60  ;;  %v635_v25 = vshrl.u32 %v2790_v61, 16  ;;  %v1099_v24 = vrot.slane %v780_v21, 1 }
  0x34   : > { %v853_v27 = vsel %vm793_vm4, %v848_v16, %v852_v63  ;;  %v992_v29 = vor.u32 %v991_v17, %v987_v9  ;;  %v862_v30 = vshll.u32 %v780_v21, 16  ;;  %v509_v32 = vmul.f32 0.0, %v2490_v19 }
  0x35   : > { %1145 = vrot.lane.b32.xlu1 %v1097_v3, %s2839_s29  ;;  %v3030_v31 = vsel %vm2905_vm3, 0, %v633_v20  ;;  %v510_v33 = vmul.f32 0.0, %v2491_v22  ;;  %v637_v34 = vrot.slane %v635_v25, 7  ;;  %v638_v41 = vshll.u32 %v2790_v61, 16 }
  0x36   : > { %1018 = vrot.lane.b32.xlu0 %v853_v27, %s2840_s30  ;;  %v1098_v35 = vrot.slane %v3030_v31, 1  ;;  %v855_v37 = vshrl.u32 %v3030_v31, 16  ;;  %v857_v38 = vshll.u32 %v3030_v31, 16  ;;  %v997_v39 = vsel %vm793_vm4, %v992_v29, %v996_v18  ;;  %v2793_v18 = vld [vmem:[%s2901_s28 + $0x40] sm:$0xff]  }
  0x37   : > { %v511_v40 = vpack.c.bf16 %v510_v33, %v509_v32  ;;  %v781_v42 = vsel %vm2905_vm3, %v637_v34, 0  ;;  %v864_v48 = vrot.slane %v862_v30, 1  ;;  %v640_v53 = vor.u32 %v638_v41, %v637_v34 }
  0x38   : > { %v1100_v46 = vsel %vm1082_vm2, %v1098_v35, %v1099_v24  ;;  %v859_v47 = vrot.slane %v857_v38, 1  ;;  %v874_v49 = vshll.u32 %v781_v42, 16  ;;  %v642_v54 = vshrl.u32 %v2791_v26, 16 }
  0x39   : > { %1169 = vrot.lane.b32.xlu1 %v1133_v13, %s2839_s29  ;;  %v712_v50 = vshrl.u32 %v511_v40, 16  ;;  %v715_v51 = vshll.u32 %v511_v40, 16  ;;  %v1102_v56 = vrot.slane %v781_v42, 1  ;;  %v645_v58 = vshll.u32 %v2791_v26, 16 }
  0x3a   : > { %1042 = vrot.lane.b32.xlu0 %v997_v39, %s2840_s30  ;;  %v860_v55 = vor.u32 %v859_v47, %v855_v37  ;;  %v876_v57 = vrot.slane %v874_v49, 1  ;;  %v3045_v60 = vsel %vm2905_vm3, 0, %v640_v53  ;;  %v644_v61 = vrot.slane %v642_v54, 7  ;;  %v2485_v39 = vld [vmem:[%s404_s13] sm:$0xff]  }
  0x3b   : > { %v714_v59 = vrot.slane %v712_v50, 7  ;;  %v649_v62 = vshrl.u32 %v2792_v44, 16  ;;  %v1101_v1 = vrot.slane %v3045_v60, 1  ;;  %v867_v2 = vshrl.u32 %v3045_v60, 16 }
  0x3c   : > { %v865_v63 = vsel %vm793_vm4, %v860_v55, %v864_v48  ;;  %v869_v3 = vshll.u32 %v3045_v60, 16  ;;  %v647_v8 = vor.u32 %v645_v58, %v644_v61  ;;  %v782_v9 = vsel %vm2905_vm3, %v644_v61, 0  ;;  %v2794_v55 = vld [vmem:[%s2901_s28 + $0x48] sm:$0xff]  }
  0x3d   : > { %1147 = vrot.lane.b32.xlu1 %v1100_v46, %s2839_s29  ;;  %v717_v5 = vor.u32 %v715_v51, %v714_v59  ;;  %v792_v7 = vsel %vm2905_vm3, %v714_v59, 0  ;;  %v652_v13 = vshll.u32 %v2792_v44, 16  ;;  %v1103_v15 = vsel %vm1082_vm2, %v1101_v1, %v1102_v56 }
  0x3e   : > { %1020 = vrot.lane.b32.xlu0 %v865_v63, %s2840_s30  ;;  %v1135_v10 = vrot.slane %v792_v7, 1  ;;  %v1006_v11 = vshll.u32 %v792_v7, 16  ;;  %v871_v12 = vrot.slane %v869_v3, 1  ;;  %v3064_v16 = vsel %vm2905_vm3, 0, %v647_v8 }
  0x3f   : > { %v3059_v14 = vsel %vm2905_vm3, 0, %v717_v5  ;;  %v886_v17 = vshll.u32 %v782_v9, 16  ;;  %v1105_v22 = vrot.slane %v782_v9, 1  ;;  %v879_v27 = vshrl.u32 %v3064_v16, 16 }
  0x40   : > { %v1134_v19 = vrot.slane %v3059_v14, 1  ;;  %v999_v20 = vshrl.u32 %v3059_v14, 16  ;;  %v1001_v21 = vshll.u32 %v3059_v14, 16  ;;  %v1008_v25 = vrot.slane %v1006_v11, 1 }
  0x41   : > { %v872_v26 = vor.u32 %v871_v12, %v867_v2  ;;  %v881_v29 = vshll.u32 %v3064_v16, 16  ;;  %v1104_v32 = vrot.slane %v3064_v16, 1  ;;  %v651_v33 = vrot.slane %v649_v62, 7  ;;  %v2795_v2 = vld [vmem:[%s2901_s28 + $0x58] sm:$0xff]  }
  0x42   : > { %v1136_v24 = vsel %vm1082_vm2, %v1134_v19, %v1135_v10  ;;  %v1003_v30 = vrot.slane %v1001_v21, 1  ;;  %v888_v37 = vrot.slane %v886_v17, 1  ;;  %v656_v38 = vshrl.u32 %v2793_v18, 16 }
  0x43   : > { %1171 = vrot.lane.b32.xlu1 %v1136_v24, %s2839_s29  ;;  %v877_v34 = vsel %vm793_vm4, %v872_v26, %v876_v57  ;;  %v883_v35 = vrot.slane %v881_v29, 1  ;;  %v654_v41 = vor.u32 %v652_v13, %v651_v33  ;;  %v783_v42 = vsel %vm2905_vm3, %v651_v33, 0 }
  0x44   : > { %v1004_v40 = vor.u32 %v1003_v30, %v999_v20  ;;  %v659_v44 = vshll.u32 %v2793_v18, 16  ;;  %v1108_v47 = vrot.slane %v783_v42, 1  ;;  %v898_v48 = vshll.u32 %v783_v42, 16 }
  0x45   : > { %v884_v46 = vor.u32 %v883_v35, %v879_v27  ;;  %v658_v49 = vrot.slane %v656_v38, 7  ;;  %v3085_v51 = vsel %vm2905_vm3, 0, %v654_v41  ;;  %v2486_v53 = vunpack.c.l.bf16 %v2485_v39 }
  0x46   : > { %v1009_v50 = vsel %vm793_vm4, %v1004_v40, %v1008_v25  ;;  %v2487_v54 = vunpack.c.h.bf16 %v2485_v39  ;;  %v1106_v56 = vsel %vm1082_vm2, %v1104_v32, %v1105_v22  ;;  %v1107_v57 = vrot.slane %v3085_v51, 1 }
  0x47   : > { %1044 = vrot.lane.b32.xlu0 %v1009_v50, %s2840_s30  ;;  %1149 = vrot.lane.b32.xlu1 %v1103_v15, %s2839_s29  ;;  %v891_v58 = vshrl.u32 %v3085_v51, 16  ;;  %v893_v59 = vshll.u32 %v3085_v51, 16  ;;  %v889_v61 = vsel %vm793_vm4, %v884_v46, %v888_v37  ;;  %v661_v62 = vor.u32 %v659_v44, %v658_v49  ;;  %v2796_v37 = vld [vmem:[%s2901_s28 + $0x50] sm:$0xff]  }
  0x48   : > { %v784_v63 = vsel %vm2905_vm3, %v658_v49, 0  ;;  %v501_v1 = vmul.f32 0.0, %v2486_v53  ;;  %v1109_v3 = vsel %vm1082_vm2, %v1107_v57, %v1108_v47  ;;  %v900_v7 = vrot.slane %v898_v48, 1 }
  0x49   : > { %v895_v5 = vrot.slane %v893_v59, 1  ;;  %v1111_v8 = vrot.slane %v784_v63, 1  ;;  %v3101_v9 = vsel %vm2905_vm3, 0, %v661_v62  ;;  %v502_v10 = vmul.f32 0.0, %v2487_v54 }
  0x4a   : > { %v663_v11 = vshrl.u32 %v2794_v55, 16  ;;  %v666_v12 = vshll.u32 %v2794_v55, 16  ;;  %v1110_v15 = vrot.slane %v3101_v9, 1  ;;  %v905_v17 = vshll.u32 %v3101_v9, 16 }
  0x4b   : > { %1022 = vrot.lane.b32.xlu0 %v877_v34, %s2840_s30  ;;  %1151 = vrot.lane.b32.xlu1 %v1106_v56, %s2839_s29  ;;  %v896_v13 = vor.u32 %v895_v5, %v891_v58  ;;  %v910_v18 = vshll.u32 %v784_v63, 16  ;;  %v903_v19 = vshrl.u32 %v3101_v9, 16  ;;  %v503_v20 = vpack.c.bf16 %v502_v10, %v501_v1 }
  0x4c   : > { %v665_v21 = vrot.slane %v663_v11, 7  ;;  %v677_v22 = vshrl.u32 %v2795_v2, 16  ;;  %v907_v25 = vrot.slane %v905_v17, 1  ;;  %v680_v26 = vshll.u32 %v2795_v2, 16 }
  0x4d   : > { %v593_v27 = vshrl.u32 %v503_v20, 16  ;;  %v596_v29 = vshll.u32 %v503_v20, 16  ;;  %v901_v32 = vsel %vm793_vm4, %v896_v13, %v900_v7  ;;  %v1112_v33 = vsel %vm1082_vm2, %v1110_v15, %v1111_v8 }
  0x4e   : > { %v668_v24 = vor.u32 %v666_v12, %v665_v21  ;;  %v785_v30 = vsel %vm2905_vm3, %v665_v21, 0  ;;  %v912_v34 = vrot.slane %v910_v18, 1  ;;  %v679_v35 = vrot.slane %v677_v22, 7 }
  0x4f   : > { %1024 = vrot.lane.b32.xlu0 %v889_v61, %s2840_s30  ;;  %1153 = vrot.lane.b32.xlu1 %v1109_v3, %s2839_s29  ;;  %v908_v38 = vor.u32 %v907_v25, %v903_v19  ;;  %v595_v39 = vrot.slane %v593_v27, 7  ;;  %v922_v41 = vshll.u32 %v785_v30, 16  ;;  %v1114_v46 = vrot.slane %v785_v30, 1 }
  0x50   : > { %v3117_v40 = vsel %vm2905_vm3, 0, %v668_v24  ;;  %v682_v49 = vor.u32 %v680_v26, %v679_v35  ;;  %v787_v50 = vsel %vm2905_vm3, %v679_v35, 0  ;;  %v670_v56 = vshrl.u32 %v2796_v37, 16 }
  0x51   : > { %v915_v42 = vshrl.u32 %v3117_v40, 16  ;;  %v917_v44 = vshll.u32 %v3117_v40, 16  ;;  %v598_v47 = vor.u32 %v596_v29, %v595_v39  ;;  %v775_v48 = vsel %vm2905_vm3, %v595_v39, 0 }
  0x52   : > { %v1084_v53 = vrot.slane %v775_v48, 1  ;;  %v802_v54 = vshll.u32 %v775_v48, 16  ;;  %v913_v57 = vsel %vm793_vm4, %v908_v38, %v912_v34  ;;  %v924_v59 = vrot.slane %v922_v41, 1  ;;  %v2798_v48 = vld [vmem:[%s3636_s3] sm:$0xff]  }
  0x53   : > { %1026 = vrot.lane.b32.xlu0 %v901_v32, %s2840_s30  ;;  %1155 = vrot.lane.b32.xlu1 %v1112_v33, %s2839_s29  ;;  %v919_v55 = vrot.slane %v917_v44, 1  ;;  %v3130_v58 = vsel %vm2905_vm3, 0, %v598_v47  ;;  %v3134_v61 = vsel %vm2905_vm3, 0, %v682_v49  ;;  %v946_v2 = vshll.u32 %v787_v50, 16  ;;  %v2797_v47 = vld [vmem:[%s3636_s3 + $0x40] sm:$0xff]   ;;  %v2799_v49 = vld [vmem:[%s3636_s3 + $0x48] sm:$0xff]  }
  0x54   : > { %v1083_v62 = vrot.slane %v3130_v58, 1  ;;  %v795_v63 = vshrl.u32 %v3130_v58, 16  ;;  %v797_v1 = vshll.u32 %v3130_v58, 16  ;;  %v939_v5 = vshrl.u32 %v3134_v61, 16  ;;  %2572 = vmatprep.subr.bf16.mxu0 %v2797_v47  ;;  %2738 = vmatprep.subr.bf16.mxu1 %v2797_v47 }
  0x55   : > { %v920_v3 = vor.u32 %v919_v55, %v915_v42  ;;  %v941_v7 = vshll.u32 %v3134_v61, 16  ;;  %v673_v8 = vshll.u32 %v2796_v37, 16  ;;  %v804_v12 = vrot.slane %v802_v54, 1  ;;  %2573 = vmatpush3.bf16.msra.mxu0 %v2798_v48  ;;  %2746 = vmatpush3.bf16.msra.mxu1 %v2798_v48  ;;  %v2802_v54 = vld [vmem:[%s3636_s3 + $0x10] sm:$0xff]   ;;  %v2803_v55 = vld [vmem:[%s3636_s3 + $0x58] sm:$0xff]  }
  0x56   : > { %v1085_v10 = vsel %vm1082_vm2, %v1083_v62, %v1084_v53  ;;  %v799_v11 = vrot.slane %v797_v1, 1  ;;  %v1113_v13 = vrot.slane %v3117_v40, 1  ;;  %v672_v17 = vrot.slane %v670_v56, 7  ;;  %2574 = vmatprep.subr.bf16.mxu0 %v2799_v49  ;;  %v2801_v53 = vld [vmem:[%s3636_s3 + $0x50] sm:$0xff]   ;;  %2739 = vmatprep.subr.bf16.mxu1 %v2799_v49  ;;  %v2804_v56 = vld [vmem:[%s3636_s3 + $0x18] sm:$0xff]   ;;  %v2807_v62 = vld [vmem:[%s3636_s3 + $0x68] sm:$0xff]  }
  0x57   : > { %1028 = vrot.lane.b32.xlu0 %v913_v57, %s2840_s30  ;;  %1137 = vrot.lane.b32.xlu1 %v1085_v10, %s2839_s29  ;;  %v943_v15 = vrot.slane %v941_v7, 1  ;;  %v925_v19 = vsel %vm793_vm4, %v920_v3, %v924_v59  ;;  %v948_v20 = vrot.slane %v946_v2, 1  ;;  %v1120_v29 = vrot.slane %v787_v50, 1  ;;  %v2800_v50 = vld [vmem:[%s3636_s3 + $0x8] sm:$0xff]   ;;  %v2805_v57 = vld [vmem:[%s3636_s3 + $0x60] sm:$0xff]  }
  0x58   : > { %v800_v18 = vor.u32 %v799_v11, %v795_v63  ;;  %v675_v22 = vor.u32 %v673_v8, %v672_v17  ;;  %v786_v25 = vsel %vm2905_vm3, %v672_v17, 0  ;;  %v1115_v27 = vsel %vm1082_vm2, %v1113_v13, %v1114_v46  ;;  %v2806_v59 = vld [vmem:[%s3636_s3 + $0x20] sm:$0xff]   ;;  %v2808_v63 = vld [vmem:[%s3636_s3 + $0x28] sm:$0xff]   ;;  %v2809_v1 = vld [vmem:[%s3636_s3 + $0x70] sm:$0xff]  }
  0x59   : > { %v944_v21 = vor.u32 %v943_v15, %v939_v5  ;;  %v1119_v24 = vrot.slane %v3134_v61, 1  ;;  %v934_v32 = vshll.u32 %v786_v25, 16  ;;  %v1117_v33 = vrot.slane %v786_v25, 1  ;;  %2575 = vmatpush3.bf16.msra.mxu0 %v2800_v50  ;;  %2747 = vmatpush3.bf16.msra.mxu1 %v2800_v50  ;;  %v2810_v2 = vld [vmem:[%s3636_s3 + $0x30] sm:$0xff]   ;;  %v2811_v3 = vld [vmem:[%s3636_s3 + $0x78] sm:$0xff]   ;;  %v3227_v15 = vld [vmem:[%s3636_s3 + $0x80] sm:$0xff]  }
  0x5a   : > { %v805_v26 = vsel %vm793_vm4, %v800_v18, %v804_v12  ;;  %v3155_v30 = vsel %vm2905_vm3, 0, %v675_v22  ;;  %2576 = vmatprep.subr.bf16.mxu0 %v2801_v53  ;;  %2740 = vmatprep.subr.bf16.mxu1 %v2801_v53  ;;  %v2812_v5 = vld [vmem:[%s3636_s3 + $0x38] sm:$0xff]  }
  0x5b   : > { %1010 = vrot.lane.b32.xlu0 %v805_v26, %s2840_s30  ;;  %1030 = vrot.lane.b32.xlu1 %v925_v19, %s2840_s30  ;;  %v949_v34 = vsel %vm793_vm4, %v944_v21, %v948_v20  ;;  %v927_v35 = vshrl.u32 %v3155_v30, 16  ;;  %v929_v37 = vshll.u32 %v3155_v30, 16  ;;  %v1116_v38 = vrot.slane %v3155_v30, 1 }
  0x5c   : > { %v1121_v41 = vsel %vm1082_vm2, %v1119_v24, %v1120_v29  ;;  %v936_v42 = vrot.slane %v934_v32, 1 }
  0x5d   : > { %v931_v39 = vrot.slane %v929_v37, 1  ;;  %v1118_v44 = vsel %vm1082_vm2, %v1116_v38, %v1117_v33  ;;  %2577 = vmatpush3.bf16.msra.mxu0 %v2802_v54  ;;  %2748 = vmatpush3.bf16.msra.mxu1 %v2802_v54 }
  0x5e   : > { %2578 = vmatprep.subr.bf16.mxu0 %v2803_v55  ;;  %2741 = vmatprep.subr.bf16.mxu1 %v2803_v55 }
  0x5f   : > { %1034 = vrot.lane.b32.xlu0 %v949_v34, %s2840_s30  ;;  %1157 = vrot.lane.b32.xlu1 %v1115_v27, %s2839_s29  ;;  %v932_v4 = vor.u32 %v931_v39, %v927_v35 }
  0x61   : > { %v937_v46 = vsel %vm793_vm4, %v932_v4, %v936_v42  ;;  %2579 = vmatpush3.bf16.msra.mxu0 %v2804_v56  ;;  %2749 = vmatpush3.bf16.msra.mxu1 %v2804_v56 }
  0x62   : > { %2580 = vmatprep.subr.bf16.mxu0 %v2805_v57  ;;  %2742 = vmatprep.subr.bf16.mxu1 %v2805_v57 }
  0x63   : > { %1161 = vrot.lane.b32.xlu0 %v1121_v41, %s2839_s29  ;;  %1159 = vrot.lane.b32.xlu1 %v1118_v44, %s2839_s29 }
  0x65   : > { %2581 = vmatpush3.bf16.msra.mxu0 %v2806_v59  ;;  %2750 = vmatpush3.bf16.msra.mxu1 %v2806_v59 }
  0x66   : > { %2582 = vmatprep.subr.bf16.mxu0 %v2807_v62  ;;  %2743 = vmatprep.subr.bf16.mxu1 %v2807_v62 }
  0x67   : > { %1032 = vrot.lane.b32.xlu0 %v937_v46, %s2840_s30 }
  0x69   : > { %2583 = vmatpush3.bf16.msra.mxu0 %v2808_v63  ;;  %2751 = vmatpush3.bf16.msra.mxu1 %v2808_v63 }
  0x6a   : > { %2584 = vmatprep.subr.bf16.mxu0 %v2809_v1  ;;  %2744 = vmatprep.subr.bf16.mxu1 %v2809_v1 }
  0x6d   : > { %2585 = vmatpush3.bf16.msra.mxu0 %v2810_v2  ;;  %2752 = vmatpush3.bf16.msra.mxu1 %v2810_v2 }
  0x6e   : > { %2586 = vmatprep.subr.bf16.mxu0 %v2811_v3  ;;  %2745 = vmatprep.subr.bf16.mxu1 %v2811_v3 }
  0x71   : > { %2587 = vmatpush3.bf16.msra.mxu0 %v2812_v5  ;;  %2753 = vmatpush3.bf16.msra.mxu1 %v2812_v5 }
  0x72   : > { %2702 = vmatprep.subr.bf16.mxu1 %v3227_v15 }
  0x8e   : > { %v1164_v7 = vpop.permute.xlu0 %1163 }
  0x8f   : > { %v1140_v8 = vpop.permute.xlu1 %1139 }
  0x93   : > { %v1142_v10 = vpop.permute.xlu1 %1141  ;;  %v1013_v11 = vpop.permute.xlu0 %1012 }
  0x94   : > { %v1177_v12 = vsel %vm1173_vm5, %v2923_v28, %v1013_v11 }
  0x95   : > { %v3220_v13 = vsel %vm1210_vm6, %v1177_v12, %v1140_v8 }
  0x96   : > { %1263 = vrot.lane.b32.xlu0 %v3220_v13, %s2841_s8 }
  0x97   : > { %v1166_v17 = vpop.permute.xlu1 %1165  ;;  %v1015_v18 = vpop.permute.xlu0 %1014 }
  0x98   : > { %v1179_v19 = vsel %vm1173_vm5, %v2933_v36, %v1015_v18 }
  0x99   : > { %v3233_v28 = vsel %vm1210_vm6, %v1179_v19, %v1142_v10 }
  0x9a   : > { %1296 = vrot.lane.b32.xlu1 %v3233_v28, %s2839_s29 }
  0x9b   : > { %v1144_v20 = vpop.permute.xlu1 %1143  ;;  %v1037_v21 = vpop.permute.xlu0 %1036 }
  0x9c   : > { %v1201_v22 = vsel %vm1173_vm5, %v2918_v23, %v1037_v21 }
  0x9d   : > { %v3240_v25 = vsel %vm1210_vm6, %v1201_v22, %v1164_v7 }
  0x9e   : > { %1287 = vrot.lane.b32.xlu1 %v3240_v25, %s2841_s8 }
  0x9f   : > { %v1039_v36 = vpop.permute.xlu1 %1038  ;;  %v1017_v26 = vpop.permute.xlu0 %1016 }
  0xa0   : > { %v1203_v27 = vsel %vm1173_vm5, %v2943_v43, %v1039_v36  ;;  %v1181_v29 = vsel %vm1173_vm5, %v2963_v6, %v1017_v26 }
  0xa1   : > { %v3249_v24 = vsel %vm1210_vm6, %v1181_v29, %v1144_v20  ;;  %v3252_v32 = vsel %vm1210_vm6, %v1203_v27, %v1166_v17 }
  0xa2   : > { %1298 = vrot.lane.b32.xlu1 %v3249_v24, %s2839_s29  ;;  %1320 = vrot.lane.b32.xlu0 %v3252_v32, %s2839_s29 }
  0xa3   : > { %v1168_v23 = vpop.permute.xlu1 %1167 }
  0xa4   : > { %v1041_v33 = vpop.permute.xlu0 %1040 }
  0xa5   : > { %v1205_v43 = vsel %vm1173_vm5, %v2987_v45, %v1041_v33 }
  0xa6   : > { %1265 = vrot.lane.b32.xlu0 %v3233_v28, %s2841_s8  ;;  %v3263_v34 = vsel %vm1210_vm6, %v1205_v43, %v1168_v23 }
  0xa7   : > { %v1146_v6 = vpop.permute.xlu1 %1145  ;;  %1322 = vrot.lane.b32.xlu1 %v3263_v34, %s2839_s29 }
  0xa8   : > { %v1019_v35 = vpop.permute.xlu0 %1018 }
  0xa9   : > { %v1183_v37 = vsel %vm1173_vm5, %v3001_v52, %v1019_v35 }
  0xaa   : > { %1289 = vrot.lane.b32.xlu0 %v3252_v32, %s2841_s8  ;;  %v3272_v45 = vsel %vm1210_vm6, %v1183_v37, %v1146_v6 }
  0xab   : > { %v1170_v38 = vpop.permute.xlu1 %1169  ;;  %1300 = vrot.lane.b32.xlu1 %v3272_v45, %s2839_s29 }
  0xac   : > { %v1043_v39 = vpop.permute.xlu0 %1042 }
  0xad   : > { %v1207_v41 = vsel %vm1173_vm5, %v3010_v0, %v1043_v39 }
  0xae   : > { %1267 = vrot.lane.b32.xlu0 %v3249_v24, %s2841_s8  ;;  %v1244_v4 = vsel %vm1210_vm6, %v1207_v41, %v1170_v38 }
  0xaf   : > { %v1148_v52 = vpop.permute.xlu1 %1147  ;;  %1324 = vrot.lane.b32.xlu1 %v1244_v4, %s2839_s29 }
  0xb0   : > { %v1021_v42 = vpop.permute.xlu0 %1020 }
  0xb1   : > { %v1185_v44 = vsel %vm1173_vm5, %v3030_v31, %v1021_v42 }
  0xb2   : > { %1291 = vrot.lane.b32.xlu0 %v3263_v34, %s2841_s8  ;;  %v3287_v46 = vsel %vm1210_vm6, %v1185_v44, %v1148_v52 }
  0xb3   : > { %1302 = vrot.lane.b32.xlu1 %v3287_v46, %s2839_s29 }
  0xb5   : > { %v1172_v0 = vpop.permute.xlu1 %1171 }
  0xb6   : > { %1269 = vrot.lane.b32.xlu0 %v3272_v45, %s2841_s8 }
  0xb9   : > { %v1045_v47 = vpop.permute.xlu0 %1044  ;;  %v1150_v48 = vpop.permute.xlu1 %1149 }
  0xba   : > { %1293 = vrot.lane.b32.xlu0 %v1244_v4, %s2841_s8  ;;  %v1209_v31 = vsel %vm1173_vm5, %v3059_v14, %v1045_v47 }
  0xbb   : > { %v1246_v49 = vsel %vm1210_vm6, %v1209_v31, %v1172_v0 }
  0xbc   : > { %1326 = vrot.lane.b32.xlu1 %v1246_v49, %s2839_s29 }
  0xbd   : > { %v1023_v50 = vpop.permute.xlu0 %1022  ;;  %v1152_v53 = vpop.permute.xlu1 %1151 }
  0xbe   : > { %1271 = vrot.lane.b32.xlu0 %v3287_v46, %s2841_s8  ;;  %v1187_v54 = vsel %vm1173_vm5, %v3045_v60, %v1023_v50 }
  0xbf   : > { %v3303_v55 = vsel %vm1210_vm6, %v1187_v54, %v1150_v48 }
  0xc0   : > { %1304 = vrot.lane.b32.xlu1 %v3303_v55, %s2839_s29 }
  0xc1   : > { %v1025_v56 = vpop.permute.xlu0 %1024  ;;  %v1154_v14 = vpop.permute.xlu1 %1153 }
  0xc2   : > { %1273 = vrot.lane.b32.xlu0 %v3303_v55, %s2841_s8  ;;  %v1189_v57 = vsel %vm1173_vm5, %v3064_v16, %v1025_v56 }
  0xc3   : > { %v3312_v59 = vsel %vm1210_vm6, %v1189_v57, %v1152_v53 }
  0xc4   : > { %1306 = vrot.lane.b32.xlu1 %v3312_v59, %s2839_s29 }
  0xc5   : > { %v1027_v60 = vpop.permute.xlu0 %1026  ;;  %v1156_v62 = vpop.permute.xlu1 %1155 }
  0xc6   : > { %1275 = vrot.lane.b32.xlu0 %v3312_v59, %s2841_s8  ;;  %v1191_v63 = vsel %vm1173_vm5, %v3085_v51, %v1027_v60 }
  0xc7   : > { %v3321_v1 = vsel %vm1210_vm6, %v1191_v63, %v1154_v14 }
  0xc8   : > { %1308 = vrot.lane.b32.xlu1 %v3321_v1, %s2839_s29 }
  0xc9   : > { %v1029_v16 = vpop.permute.xlu0 %1028  ;;  %v1138_v3 = vpop.permute.xlu1 %1137 }
  0xca   : > { %1277 = vrot.lane.b32.xlu0 %v3321_v1, %s2841_s8  ;;  %v1193_v2 = vsel %vm1173_vm5, %v3101_v9, %v1029_v16 }
  0xcb   : > { %v3330_v5 = vsel %vm1210_vm6, %v1193_v2, %v1156_v62 }
  0xcc   : > { %1310 = vrot.lane.b32.xlu1 %v3330_v5, %s2839_s29 }
  0xcd   : > { %v1011_v51 = vpop.permute.xlu0 %1010  ;;  %v1031_v7 = vpop.permute.xlu1 %1030 }
  0xce   : > { %1279 = vrot.lane.b32.xlu0 %v3330_v5, %s2841_s8  ;;  %v1195_v8 = vsel %vm1173_vm5, %v3117_v40, %v1031_v7 }
  0xd1   : > { %v1035_v10 = vpop.permute.xlu0 %1034  ;;  %v1158_v11 = vpop.permute.xlu1 %1157 }
  0xd2   : > { %v3339_v12 = vsel %vm1210_vm6, %v1195_v8, %v1158_v11  ;;  %v1199_v19 = vsel %vm1173_vm5, %v3134_v61, %v1035_v10  ;;  %v1175_v61 = vsel %vm1173_vm5, %v3130_v58, %v1011_v51  ;;  %v2814_v58 = vld [vmem:[%s3636_s3 + $0x88] sm:$0xff]  }
  0xd3   : > { %1312 = vrot.lane.b32.xlu1 %v3339_v12, %s2839_s29  ;;  %v1212_v26 = vsel %vm1210_vm6, %v1175_v61, %v1138_v3 }
  0xd5   : > { %v1162_v9 = vpop.permute.xlu0 %1161  ;;  %v1160_v17 = vpop.permute.xlu1 %1159 }
  0xd6   : > { %v1236_v21 = vsel %vm1210_vm6, %v1199_v19, %v1162_v9 }
  0xd7   : > { %1281 = vrot.lane.b32.xlu1 %v3339_v12, %s2841_s8 }
  0xd9   : > { %v1033_v18 = vpop.permute.xlu0 %1032 }
  0xda   : > { %v1197_v40 = vsel %vm1173_vm5, %v3155_v30, %v1033_v18 }
  0xdb   : > { %v3350_v20 = vsel %vm1210_vm6, %v1197_v40, %v1160_v17  ;;  %1318 = vrot.lane.b32.xlu1 %v3240_v25, %s2839_s29 }
  0xdc   : > { %1314 = vrot.lane.b32.xlu0 %v3350_v20, %s2839_s29 }
  0xdf   : > { %1285 = vrot.lane.b32.xlu1 %v1236_v21, %s2841_s8 }
  0xe0   : > { %1316 = vrot.lane.b32.xlu0 %v1236_v21, %s2839_s29 }
  0xe4   : > { %1283 = vrot.lane.b32.xlu0 %v3350_v20, %s2841_s8 }
 0x108   : > { %v1264_v30 = vpop.permute.xlu0 %1263 }
 0x109   : > { %v1330_v27 = vsel %vm1328_vm7, %v1212_v26, %v1264_v30 }
 0x10c   : > { %v1297_v22 = vpop.permute.xlu1 %1296 }
 0x10d   : > { %v1378_v36 = vsel %vm1210_vm6, %v1264_v30, %v1297_v22 }
 0x10e   : > { %1640 = vmatprep.mubr.bf16.mxu0 %v1378_v36 }
 0x10f   : > { %1641 = vmatmul.mubr.bf16.vlgmr.msra.gmra.mrb[0].mxu0 %v1330_v27 }
 0x110   : > { %v1288_v29 = vpop.permute.xlu1 %1287 }
 0x111   : > { %v1366_v6 = vsel %vm1328_vm7, %v1236_v21, %v1288_v29 }
 0x114   : > { %v3366_v23 = vpop.permute.xlu0 %1320  ;;  %v1299_v43 = vpop.permute.xlu1 %1298 }
 0x115   : > { %v1414_v33 = vsel %vm1210_vm6, %v1288_v29, %v3366_v23 }
 0x116   : > { %1736 = vmatprep.mubr.bf16.mxu1 %v1414_v33 }
 0x117   : > { %1737 = vmatmul.mubr.bf16.vlgmr.msra.gmra.mrb[0].mxu1 %v1366_v6 }
 0x118   : > { %2703 = vmatpush3.bf16.msra.mxu1 %v3227_v15  ;;  %v1266_v35 = vpop.permute.xlu0 %1265 }
 0x119   : > { %v1381_v37 = vsel %vm1210_vm6, %v1266_v35, %v1299_v43  ;;  %v1333_v38 = vsel %vm1328_vm7, %v3220_v13, %v1266_v35  ;;  %2704 = vmatprep.subr.bf16.mxu1 %v2814_v58  ;;  %v3378_v39 = vpop.permute.xlu1 %1322 }
 0x11a   : > { %1648 = vmatprep.mubr.bf16.mxu0 %v1381_v37 }
 0x11b   : > { %1649 = vmatmul.mubr.bf16.gmra.mrb[4].mxu0 %v1333_v38 }
 0x11c   : > { %v1290_v41 = vpop.permute.xlu0 %1289  ;;  %2705 = vmatpush3.bf16.msra.mxu1 %v2814_v58 }
 0x11d   : > { %v1417_v4 = vsel %vm1210_vm6, %v1290_v41, %v3378_v39  ;;  %v1369_v52 = vsel %vm1328_vm7, %v3240_v25, %v1290_v41  ;;  %v1301_v15 = vpop.permute.xlu1 %1300 }
 0x11e   : > { %1744 = vmatprep.mubr.bf16.mxu1 %v1417_v4 }
 0x11f   : > { %1745 = vmatmul.mubr.bf16.gmra.mrb[4].mxu1 %v1369_v52 }
 0x120   : > { %v1268_v42 = vpop.permute.xlu0 %1267 }
 0x121   : > { %v1384_v44 = vsel %vm1210_vm6, %v1268_v42, %v1301_v15  ;;  %v1336_v13 = vsel %vm1328_vm7, %v3233_v28, %v1268_v42  ;;  %v3387_v0 = vpop.permute.xlu1 %1324 }
 0x122   : > { %1656 = vmatprep.mubr.bf16.mxu0 %v1384_v44 }
 0x123   : > { %1657 = vmatmul.mubr.bf16.gmra.mrb[8].mxu0 %v1336_v13 }
 0x124   : > { %v1292_v47 = vpop.permute.xlu0 %1291 }
 0x125   : > { %v1420_v48 = vsel %vm1210_vm6, %v1292_v47, %v3387_v0  ;;  %v1372_v25 = vsel %vm1328_vm7, %v3252_v32, %v1292_v47  ;;  %v1303_v31 = vpop.permute.xlu1 %1302 }
 0x126   : > { %1752 = vmatprep.mubr.bf16.mxu1 %v1420_v48 }
 0x127   : > { %1753 = vmatmul.mubr.bf16.gmra.mrb[8].mxu1 %v1372_v25 }
 0x128   : > { %v1270_v49 = vpop.permute.xlu0 %1269 }
 0x129   : > { %v1387_v50 = vsel %vm1210_vm6, %v1270_v49, %v1303_v31  ;;  %v1339_v28 = vsel %vm1328_vm7, %v3249_v24, %v1270_v49 }
 0x12a   : > { %1664 = vmatprep.mubr.bf16.mxu0 %v1387_v50 }
 0x12b   : > { %1665 = vmatmul.mubr.bf16.gmra.mrb[12].mxu0 %v1339_v28 }
 0x12c   : > { %v1294_v53 = vpop.permute.xlu0 %1293 }
 0x12d   : > { %v1375_v56 = vsel %vm1328_vm7, %v3263_v34, %v1294_v53 }
 0x12e   : > { %v3396_v54 = vpop.permute.xlu1 %1326 }
 0x12f   : > { %v1423_v32 = vsel %vm1210_vm6, %v1294_v53, %v3396_v54 }
 0x130   : > { %v1272_v14 = vpop.permute.xlu0 %1271  ;;  %1760 = vmatprep.mubr.bf16.mxu1 %v1423_v32 }
 0x131   : > { %1761 = vmatmul.mubr.bf16.gmra.mrb[12].mxu1 %v1375_v56  ;;  %v1342_v24 = vsel %vm1328_vm7, %v3272_v45, %v1272_v14 }
 0x132   : > { %v1305_v57 = vpop.permute.xlu1 %1304  ;;  %2706 = vmatprep.mubr.msk.bf16.mxu1 %vm1173_vm5, %v1297_v22 }
 0x133   : > { %v1390_v60 = vsel %vm1210_vm6, %v1272_v14, %v1305_v57 }
 0x134   : > { %1672 = vmatprep.mubr.bf16.mxu0 %v1390_v60  ;;  %v1274_v62 = vpop.permute.xlu0 %1273 }
 0x135   : > { %1673 = vmatmul.mubr.bf16.gmra.mrb[16].mxu0 %v1342_v24  ;;  %v1345_v3 = vsel %vm1328_vm7, %v3287_v46, %v1274_v62 }
 0x136   : > { %v1307_v63 = vpop.permute.xlu1 %1306 }
 0x137   : > { %v1393_v34 = vsel %vm1210_vm6, %v1274_v62, %v1307_v63 }
 0x138   : > { %1680 = vmatprep.mubr.bf16.mxu0 %v1393_v34  ;;  %v1276_v2 = vpop.permute.xlu0 %1275 }
 0x139   : > { %2707 = vmatmul.mubr.msk.bf16.vlgmr.msra.gmra.mrb[16].mxu1 %vm1173_vm5, %v1299_v43  ;;  %v1348_v8 = vsel %vm1328_vm7, %v3303_v55, %v1276_v2 }
 0x13a   : > { %v1309_v16 = vpop.permute.xlu1 %1308  ;;  %2710 = vmatprep.mubr.msk.bf16.mxu1 %vm1173_vm5, %v1301_v15 }
 0x13b   : > { %v1396_v45 = vsel %vm1210_vm6, %v1276_v2, %v1309_v16 }
 0x13c   : > { %v1278_v7 = vpop.permute.xlu0 %1277 }
 0x13d   : > { %1681 = vmatmul.mubr.bf16.gmra.mrb[20].mxu0 %v1345_v3  ;;  %v1351_v9 = vsel %vm1328_vm7, %v3312_v59, %v1278_v7 }
 0x13e   : > { %1688 = vmatprep.mubr.bf16.mxu0 %v1396_v45  ;;  %v1311_v51 = vpop.permute.xlu1 %1310 }
 0x13f   : > { %v1399_v10 = vsel %vm1210_vm6, %v1278_v7, %v1311_v51 }
 0x140   : > { %v1280_v11 = vpop.permute.xlu0 %1279 }
 0x141   : > { %2711 = vmatmul.mubr.msk.bf16.gmra.mrb[20].mxu1 %vm1173_vm5, %v1303_v31  ;;  %v1354_v40 = vsel %vm1328_vm7, %v3321_v1, %v1280_v11 }
 0x142   : > { %2714 = vmatprep.mubr.msk.bf16.mxu1 %vm1173_vm5, %v1305_v57 }
 0x145   : > { %1689 = vmatmul.mubr.bf16.gmra.mrb[24].mxu0 %v1348_v8  ;;  %v1313_v46 = vpop.permute.xlu1 %1312 }
 0x146   : > { %1696 = vmatprep.mubr.bf16.mxu0 %v1399_v10  ;;  %v1402_v17 = vsel %vm1210_vm6, %v1280_v11, %v1313_v46 }
 0x149   : > { %2715 = vmatmul.mubr.msk.bf16.gmra.mrb[24].mxu1 %vm1173_vm5, %v1307_v63  ;;  %v1282_v55 = vpop.permute.xlu1 %1281 }
 0x14a   : > { %2718 = vmatprep.mubr.msk.bf16.mxu1 %vm1173_vm5, %v1309_v16  ;;  %v1357_v30 = vsel %vm1328_vm7, %v3330_v5, %v1282_v55 }
 0x14d   : > { %1697 = vmatmul.mubr.bf16.gmra.mrb[28].mxu0 %v1351_v9  ;;  %v1319_v61 = vpop.permute.xlu1 %1318  ;;  %v2557_v9 = vld [vmem:[%s3468_s14 + $0x8] sm:$0xff]  }
 0x14e   : > { %1704 = vmatprep.mubr.bf16.mxu0 %v1402_v17  ;;  %v1315_v18 = vpop.permute.xlu0 %1314 }
 0x14f   : > { %v1405_v21 = vsel %vm1210_vm6, %v1282_v55, %v1315_v18  ;;  %v2493_v55 = vld [vmem:[%s3468_s14] sm:$0xff]  }
 0x151   : > { %2719 = vmatmul.mubr.msk.bf16.gmra.mrb[28].mxu1 %vm1173_vm5, %v1311_v51  ;;  %v1286_v1 = vpop.permute.xlu1 %1285 }
 0x152   : > { %2722 = vmatprep.mubr.msk.bf16.mxu1 %vm1173_vm5, %v1313_v46  ;;  %v1317_v19 = vpop.permute.xlu0 %1316  ;;  %v1411_v26 = vsel %vm1210_vm6, %v1286_v1, %v1319_v61  ;;  %v1363_v5 = vsel %vm1328_vm7, %v3350_v20, %v1286_v1 }
 0x155   : > { %1705 = vmatmul.mubr.bf16.gmra.mrb[32].mxu0 %v1354_v40 }
 0x156   : > { %1712 = vmatprep.mubr.bf16.mxu0 %v1405_v21  ;;  %v1284_v59 = vpop.permute.xlu0 %1283 }
 0x157   : > { %v1408_v22 = vsel %vm1210_vm6, %v1284_v59, %v1317_v19  ;;  %v1360_v36 = vsel %vm1328_vm7, %v3339_v12, %v1284_v59 }
 0x159   : > { %2723 = vmatmul.mubr.msk.bf16.gmra.mrb[32].mxu1 %vm1173_vm5, %v1315_v18  ;;  %v3478_v18 = vld [vmem:[%s3637_s4] ss:$0 sm:$0xff] }
 0x15a   : > { %2726 = vmatprep.mubr.msk.bf16.mxu1 %vm1173_vm5, %v1317_v19 }
 0x15d   : > { %1713 = vmatmul.mubr.bf16.gmra.mrb[36].mxu0 %v1357_v30 }
 0x15e   : > { %1720 = vmatprep.mubr.bf16.mxu0 %v1408_v22 }
 0x161   : > { %2727 = vmatmul.mubr.msk.bf16.gmra.mrb[36].mxu1 %vm1173_vm5, %v1319_v61  ;;  %v2498_v61 = vunpack.c.l.bf16 %v2557_v9 }
 0x162   : > { %2730 = vmatprep.mubr.msk.bf16.mxu1 %vm1173_vm5, %v3366_v23 }
 0x165   : > { %1721 = vmatmul.mubr.bf16.gmra.mrb[40].mxu0 %v1360_v36  ;;  %v2494_v36 = vunpack.c.l.bf16 %v2493_v55 }
 0x166   : > { %1728 = vmatprep.mubr.bf16.mxu0 %v1411_v26 }
 0x169   : > { %2731 = vmatmul.mubr.msk.bf16.gmra.mrb[40].mxu1 %vm1173_vm5, %v3378_v39 }
 0x16a   : > { %2734 = vmatprep.mubr.msk.bf16.mxu1 %vm1173_vm5, %v3387_v0 }
 0x16d   : > { %1729 = vmatmul.mubr.bf16.gmra.mrb[44].mxu0 %v1363_v5 }
 0x171   : > { %2735 = vmatmul.mubr.msk.bf16.gmra.mrb[44].mxu1 %vm1173_vm5, %v3396_v54 }
 0x1e2   : > { %v2588_v27 = vpop.f32.mrb[0].mxu0 }
 0x1e3   : > { %v2589_v29 = vpop.f32.mrb[1].mxu0 }
 0x1e4   : > { %v2590_v12 = vadd.f32 %v2589_v29, %v2588_v27  ;;  %v2591_v23 = vpop.f32.mrb[2].mxu0  ;;  %v2499_v29 = vunpack.c.h.bf16 %v2557_v9 }
 0x1e5   : > { %v2592_v33 = vpop.f32.mrb[3].mxu0 }
 0x1e6   : > { %v3446_v58 = vadd.f32 %v2592_v33, %v2591_v23  ;;  %v1643_v1 = vadd.f32 %v2590_v12, %v3478_v18 }
 0x1ea   : > { %v2660_v43 = vpop.f32.mrb[0].mxu1 }
 0x1eb   : > { %v2661_v6 = vpop.f32.mrb[1].mxu1 }
 0x1ec   : > { %v3448_v35 = vadd.f32 %v2661_v6, %v2660_v43  ;;  %v2663_v37 = vpop.f32.mrb[2].mxu1  ;;  %v1646_v43 = vadd.f32 %v3446_v58, %v3478_v18  ;;  %v2495_v6 = vunpack.c.h.bf16 %v2493_v55  ;;  %v2558_v58 = vld [vmem:[%s3468_s14 + $0x10] sm:$0xff]  }
 0x1ed   : > { %v2664_v38 = vpop.f32.mrb[3].mxu1 }
 0x1ee   : > { %v3450_v39 = vadd.f32 %v2664_v38, %v2663_v37  ;;  %v2594_v20 = vpop.f32.mrb[4].mxu0 }
 0x1ef   : > { %v2595_v41 = vpop.f32.mrb[5].mxu0 }
 0x1f0   : > { %v2596_v4 = vadd.f32 %v2595_v41, %v2594_v20  ;;  %v2597_v52 = vpop.f32.mrb[6].mxu0 }
 0x1f1   : > { %v2598_v15 = vpop.f32.mrb[7].mxu0 }
 0x1f2   : > { %v2599_v42 = vadd.f32 %v2598_v15, %v2597_v52  ;;  %v2666_v44 = vpop.f32.mrb[4].mxu1  ;;  %v1651_v59 = vadd.f32 %v2596_v4, %v3478_v18  ;;  %v2559_v52 = vld [vmem:[%s3468_s14 + $0x18] sm:$0xff]  }
 0x1f3   : > { %v2667_v13 = vpop.f32.mrb[5].mxu1 }
 0x1f4   : > { %v3452_v0 = vadd.f32 %v2667_v13, %v2666_v44  ;;  %v2669_v47 = vpop.f32.mrb[6].mxu1  ;;  %v1654_v27 = vadd.f32 %v2599_v42, %v3478_v18 }
 0x1f5   : > { %v2670_v48 = vpop.f32.mrb[7].mxu1 }
 0x1f6   : > { %v3454_v25 = vadd.f32 %v2670_v48, %v2669_v47  ;;  %v2600_v31 = vpop.f32.mrb[8].mxu0 }
 0x1f7   : > { %v2601_v49 = vpop.f32.mrb[9].mxu0 }
 0x1f8   : > { %v3456_v50 = vadd.f32 %v2601_v49, %v2600_v31  ;;  %v2603_v28 = vpop.f32.mrb[10].mxu0 }
 0x1f9   : > { %v2604_v53 = vpop.f32.mrb[11].mxu0 }
 0x1fa   : > { %v3458_v54 = vadd.f32 %v2604_v53, %v2603_v28  ;;  %v2672_v56 = vpop.f32.mrb[8].mxu1 }
 0x1fb   : > { %v2673_v32 = vpop.f32.mrb[9].mxu1 }
 0x1fc   : > { %v3460_v14 = vadd.f32 %v2673_v32, %v2672_v56  ;;  %v2675_v57 = vpop.f32.mrb[10].mxu1  ;;  %v2506_v56 = vunpack.c.l.bf16 %v2559_v52 }
 0x1fd   : > { %v2676_v24 = vpop.f32.mrb[11].mxu1 }
 0x1fe   : > { %v3462_v60 = vadd.f32 %v2676_v24, %v2675_v57  ;;  %v2606_v62 = vpop.f32.mrb[12].mxu0 }
 0x1ff   : > { %v2607_v63 = vpop.f32.mrb[13].mxu0 }
 0x200   : > { %v2608_v34 = vadd.f32 %v2607_v63, %v2606_v62  ;;  %v2609_v16 = vpop.f32.mrb[14].mxu0  ;;  %v1659_v62 = vadd.f32 %v3456_v50, %v3478_v18  ;;  %v2502_v63 = vunpack.c.l.bf16 %v2558_v58 }
 0x201   : > { %v2610_v2 = vpop.f32.mrb[15].mxu0 }
 0x202   : > { %v2611_v3 = vadd.f32 %v2610_v2, %v2609_v16  ;;  %v1667_v53 = vadd.f32 %v2608_v34, %v3478_v18 }
 0x204   : > { %v2678_v45 = vpop.f32.mrb[12].mxu1 }
 0x205   : > { %v2679_v51 = vpop.f32.mrb[13].mxu1 }
 0x206   : > { %v3470_v7 = vadd.f32 %v2679_v51, %v2678_v45  ;;  %v2681_v8 = vpop.f32.mrb[14].mxu1  ;;  %v1670_v45 = vadd.f32 %v2611_v3, %v3478_v18  ;;  %v2507_v51 = vunpack.c.h.bf16 %v2559_v52 }
 0x207   : > { %v2682_v10 = vpop.f32.mrb[15].mxu1 }
 0x208   : > { %v3472_v46 = vadd.f32 %v2682_v10, %v2681_v8  ;;  %v2612_v11 = vpop.f32.mrb[16].mxu0  ;;  %v1662_v10 = vadd.f32 %v3458_v54, %v3478_v18 }
 0x209   : > { %v2613_v17 = vpop.f32.mrb[17].mxu0 }
 0x20a   : > { %v3481_v19 = vadd.f32 %v2613_v17, %v2612_v11  ;;  %v2615_v40 = vpop.f32.mrb[18].mxu0  ;;  %v2503_v11 = vunpack.c.h.bf16 %v2558_v58 }
 0x20b   : > { %v2616_v21 = vpop.f32.mrb[19].mxu0 }
 0x20c   : > { %v3484_v30 = vadd.f32 %v2616_v21, %v2615_v40  ;;  %v2708_v22 = vpop.f32.mrb[16].mxu1 }
 0x20d   : > { %v1812_v26 = vadd.f32 %v2708_v22, %v1651_v59  ;;  %v1803_v5 = vpop.f32.mrb[17].mxu1  ;;  %v2561_v59 = vld [vmem:[%s3468_s14 + $0x28] sm:$0xff]  }
 0x20e   : > { %v1804_v23 = vadd.f32 %v1803_v5, %v1643_v1  ;;  %v2709_v33 = vpop.f32.mrb[18].mxu1  ;;  %v2560_v1 = vld [vmem:[%s3468_s14 + $0x20] sm:$0xff]   ;;  %v2515_v52 = vunpack.c.h.bf16 %v2561_v59 }
 0x20f   : > { %v1996_v37 = vadd.f32 %v2498_v61, %v1812_v26  ;;  %v1815_v38 = vadd.f32 %v2709_v33, %v1654_v27  ;;  %v1806_v20 = vpop.f32.mrb[19].mxu1  ;;  %v2514_v33 = vunpack.c.l.bf16 %v2561_v59  ;;  %v2511_v58 = vunpack.c.h.bf16 %v2560_v1 }
 0x210   : > { %v1994_v12 = vadd.f32 %v2494_v36, %v1804_v23  ;;  %v1807_v41 = vadd.f32 %v1806_v20, %v1646_v43  ;;  %v2618_v4 = vpop.f32.mrb[20].mxu0  ;;  %v2510_v20 = vunpack.c.l.bf16 %v2560_v1 }
 0x211   : > { %v2454_v15 = vpack.c.bf16 %v1996_v37, %v1996_v37  ;;  %v1997_v42 = vadd.f32 %v2499_v29, %v1815_v38  ;;  %v2619_v44 = vpop.f32.mrb[21].mxu0  ;;  %v1675_v38 = vadd.f32 %v3481_v19, %v3478_v18 }
 0x212   : > { %v2452_v13 = vpack.c.bf16 %v1994_v12, %v1994_v12  ;;  %v1995_v47 = vadd.f32 %v2495_v6, %v1807_v41  ;;  %v2620_v48 = vadd.f32 %v2619_v44, %v2618_v4  ;;  %v2621_v31 = vpop.f32.mrb[22].mxu0  ;;  %v1678_v44 = vadd.f32 %v3484_v30, %v3478_v18 }
 0x213   : > { %2157 = vst.msk [vmem:[%s3494_s19 + $0x8] sm:$0xf] %vm2154_vm8, %v2454_v15  ;;  %v2455_v49 = vpack.c.bf16 %v1997_v42, %v1997_v42  ;;  %v2622_v28 = vpop.f32.mrb[23].mxu0 }
 0x214   : > { %2155 = vst.msk [vmem:[%s3494_s19] sm:$0xf] %vm2154_vm8, %v2452_v13  ;;  %v2453_v32 = vpack.c.bf16 %v1995_v47, %v1995_v47  ;;  %v2623_v57 = vadd.f32 %v2622_v28, %v2621_v31  ;;  %v2712_v24 = vpop.f32.mrb[20].mxu1  ;;  %v1683_v23 = vadd.f32 %v2620_v48, %v3478_v18  ;;  %v2563_v28 = vld [vmem:[%s3468_s14 + $0x38] sm:$0xff]  }
 0x215   : > { %2158 = vst.msk [vmem:[%s3494_s19 + $0xc] sm:$0xf] %vm2154_vm8, %v2455_v49  ;;  %v1828_v16 = vadd.f32 %v2712_v24, %v1667_v53  ;;  %v1819_v2 = vpop.f32.mrb[21].mxu1  ;;  %v2562_v53 = vld [vmem:[%s3468_s14 + $0x30] sm:$0xff]  }
 0x216   : > { %2156 = vst.msk [vmem:[%s3494_s19 + $0x4] sm:$0xf] %vm2154_vm8, %v2453_v32  ;;  %v1820_v34 = vadd.f32 %v1819_v2, %v1659_v62  ;;  %v2713_v8 = vpop.f32.mrb[22].mxu1  ;;  %v1686_v4 = vadd.f32 %v2623_v57, %v3478_v18 }
 0x217   : > { %v2000_v50 = vadd.f32 %v2506_v56, %v1828_v16  ;;  %v1831_v9 = vadd.f32 %v2713_v8, %v1670_v45  ;;  %v1822_v17 = vpop.f32.mrb[23].mxu1  ;;  %v2522_v45 = vunpack.c.l.bf16 %v2563_v28 }
 0x218   : > { %v1998_v55 = vadd.f32 %v2502_v63, %v1820_v34  ;;  %v1823_v40 = vadd.f32 %v1822_v17, %v1662_v10  ;;  %v2624_v21 = vpop.f32.mrb[24].mxu0  ;;  %v2523_v17 = vunpack.c.h.bf16 %v2563_v28 }
 0x219   : > { %v2458_v3 = vpack.c.bf16 %v2000_v50, %v2000_v50  ;;  %v2001_v61 = vadd.f32 %v2507_v51, %v1831_v9  ;;  %v2625_v22 = vpop.f32.mrb[25].mxu0  ;;  %v2518_v51 = vunpack.c.l.bf16 %v2562_v53 }
 0x21a   : > { %v2456_v36 = vpack.c.bf16 %v1998_v55, %v1998_v55  ;;  %v1999_v26 = vadd.f32 %v2503_v11, %v1823_v40  ;;  %v2626_v5 = vadd.f32 %v2625_v22, %v2624_v21  ;;  %v2627_v27 = vpop.f32.mrb[26].mxu0  ;;  %v2519_v55 = vunpack.c.h.bf16 %v2562_v53 }
 0x21b   : > { %2161 = vst.msk [vmem:[%s3494_s19 + $0x18] sm:$0xf] %vm2154_vm8, %v2458_v3  ;;  %v2459_v54 = vpack.c.bf16 %v2001_v61, %v2001_v61  ;;  %v2628_v29 = vpop.f32.mrb[27].mxu0 }
 0x21c   : > { %2159 = vst.msk [vmem:[%s3494_s19 + $0x10] sm:$0xf] %vm2154_vm8, %v2456_v36  ;;  %v2457_v43 = vpack.c.bf16 %v1999_v26, %v1999_v26  ;;  %v2629_v6 = vadd.f32 %v2628_v29, %v2627_v27  ;;  %v2716_v37 = vpop.f32.mrb[24].mxu1  ;;  %v1691_v50 = vadd.f32 %v2626_v5, %v3478_v18 }
 0x21d   : > { %2162 = vst.msk [vmem:[%s3494_s19 + $0x1c] sm:$0xf] %vm2154_vm8, %v2459_v54  ;;  %v1844_v12 = vadd.f32 %v2716_v37, %v1683_v23  ;;  %v1835_v41 = vpop.f32.mrb[25].mxu1 }
 0x21e   : > { %2160 = vst.msk [vmem:[%s3494_s19 + $0x14] sm:$0xf] %vm2154_vm8, %v2457_v43  ;;  %v1836_v15 = vadd.f32 %v1835_v41, %v1675_v38  ;;  %v2717_v42 = vpop.f32.mrb[26].mxu1  ;;  %v1694_v61 = vadd.f32 %v2629_v6, %v3478_v18  ;;  %v2564_v38 = vld [vmem:[%s3468_s14 + $0x40] sm:$0xff]  }
 0x21f   : > { %v2004_v19 = vadd.f32 %v2514_v33, %v1844_v12  ;;  %v1847_v13 = vadd.f32 %v2717_v42, %v1686_v4  ;;  %v1838_v47 = vpop.f32.mrb[27].mxu1 }
 0x220   : > { %v2002_v48 = vadd.f32 %v2510_v20, %v1836_v15  ;;  %v1839_v31 = vadd.f32 %v1838_v47, %v1678_v44  ;;  %v2630_v49 = vpop.f32.mrb[28].mxu0  ;;  %v2526_v44 = vunpack.c.l.bf16 %v2564_v38 }
 0x221   : > { %v2462_v56 = vpack.c.bf16 %v2004_v19, %v2004_v19  ;;  %v2005_v32 = vadd.f32 %v2515_v52, %v1847_v13  ;;  %v2631_v57 = vpop.f32.mrb[29].mxu0  ;;  %v2527_v13 = vunpack.c.h.bf16 %v2564_v38 }
 0x222   : > { %v2460_v24 = vpack.c.bf16 %v2002_v48, %v2002_v48  ;;  %v2003_v62 = vadd.f32 %v2511_v58, %v1839_v31  ;;  %v2632_v63 = vadd.f32 %v2631_v57, %v2630_v49  ;;  %v2633_v16 = vpop.f32.mrb[30].mxu0 }
 0x223   : > { %2165 = vst.msk [vmem:[%s3494_s19 + $0x28] sm:$0xf] %vm2154_vm8, %v2462_v56  ;;  %v2463_v30 = vpack.c.bf16 %v2005_v32, %v2005_v32  ;;  %v2634_v2 = vpop.f32.mrb[31].mxu0  ;;  %v2565_v56 = vld [vmem:[%s3468_s14 + $0x48] sm:$0xff]  }
 0x224   : > { %2163 = vst.msk [vmem:[%s3494_s19 + $0x20] sm:$0xf] %vm2154_vm8, %v2460_v24  ;;  %v2461_v34 = vpack.c.bf16 %v2003_v62, %v2003_v62  ;;  %v2635_v8 = vadd.f32 %v2634_v2, %v2633_v16  ;;  %v1699_v10 = vadd.f32 %v2632_v63, %v3478_v18  ;;  %v2720_v11 = vpop.f32.mrb[28].mxu1  ;;  %v2530_v2 = vunpack.c.l.bf16 %v2565_v56 }
 0x225   : > { %2166 = vst.msk [vmem:[%s3494_s19 + $0x2c] sm:$0xf] %vm2154_vm8, %v2463_v30  ;;  %v1851_v9 = vpop.f32.mrb[29].mxu1 }
 0x226   : > { %2164 = vst.msk [vmem:[%s3494_s19 + $0x24] sm:$0xf] %vm2154_vm8, %v2461_v34  ;;  %v1860_v40 = vadd.f32 %v2720_v11, %v1699_v10  ;;  %v1852_v21 = vadd.f32 %v1851_v9, %v1691_v50  ;;  %v1702_v59 = vadd.f32 %v2635_v8, %v3478_v18  ;;  %v2721_v3 = vpop.f32.mrb[30].mxu1  ;;  %v2531_v11 = vunpack.c.h.bf16 %v2565_v56 }
 0x227   : > { %v1854_v22 = vpop.f32.mrb[31].mxu1 }
 0x228   : > { %v2008_v1 = vadd.f32 %v2522_v45, %v1860_v40  ;;  %v2006_v36 = vadd.f32 %v2518_v51, %v1852_v21  ;;  %v1863_v26 = vadd.f32 %v2721_v3, %v1702_v59  ;;  %v1855_v5 = vadd.f32 %v1854_v22, %v1694_v61  ;;  %v2636_v27 = vpop.f32.mrb[32].mxu0  ;;  %v2569_v59 = vld [vmem:[%s3468_s14 + $0x68] sm:$0xff]   ;;  %v2568_v3 = vld [vmem:[%s3468_s14 + $0x60] sm:$0xff]  }
 0x229   : > { %v2637_v54 = vpop.f32.mrb[33].mxu0 }
 0x22a   : > { %v2466_v29 = vpack.c.bf16 %v2008_v1, %v2008_v1  ;;  %v2464_v23 = vpack.c.bf16 %v2006_v36, %v2006_v36  ;;  %v2009_v33 = vadd.f32 %v2523_v17, %v1863_v26  ;;  %v2007_v43 = vadd.f32 %v2519_v55, %v1855_v5  ;;  %v2639_v37 = vpop.f32.mrb[34].mxu0  ;;  %v2566_v17 = vld [vmem:[%s3468_s14 + $0x50] sm:$0xff]  }
 0x22b   : > { %v2638_v20 = vadd.f32 %v2637_v54, %v2636_v27  ;;  %v2640_v12 = vpop.f32.mrb[35].mxu0  ;;  %v2534_v26 = vunpack.c.l.bf16 %v2566_v17  ;;  %v2535_v54 = vunpack.c.h.bf16 %v2566_v17  ;;  %v1763_v17 = vadd.f32 %v3470_v7, %v3478_v18 }
 0x22c   : > { %2169 = vst.msk [vmem:[%s3494_s19 + $0x38] sm:$0xf] %vm2154_vm8, %v2466_v29  ;;  %2167 = vst.msk [vmem:[%s3494_s19 + $0x30] sm:$0xf] %vm2154_vm8, %v2464_v23  ;;  %v2467_v6 = vpack.c.bf16 %v2009_v33, %v2009_v33  ;;  %v2465_v41 = vpack.c.bf16 %v2007_v43, %v2007_v43  ;;  %v2641_v4 = vadd.f32 %v2640_v12, %v2639_v37  ;;  %v2724_v52 = vpop.f32.mrb[32].mxu1  ;;  %v2546_v23 = vunpack.c.l.bf16 %v2569_v59 }
 0x22d   : > { %v1707_v15 = vadd.f32 %v2638_v20, %v3478_v18  ;;  %v1867_v42 = vpop.f32.mrb[33].mxu1  ;;  %v1747_v29 = vadd.f32 %v3452_v0, %v3478_v18  ;;  %v2542_v33 = vunpack.c.l.bf16 %v2568_v3  ;;  %v1739_v12 = vadd.f32 %v3448_v35, %v3478_v18  ;;  %v2571_v35 = vld [vmem:[%s3468_s14 + $0x78] sm:$0xff]  }
 0x22e   : > { %2170 = vst.msk [vmem:[%s3494_s19 + $0x3c] sm:$0xf] %vm2154_vm8, %v2467_v6  ;;  %2168 = vst.msk [vmem:[%s3494_s19 + $0x34] sm:$0xf] %vm2154_vm8, %v2465_v41  ;;  %v2725_v58 = vpop.f32.mrb[34].mxu1  ;;  %v1710_v19 = vadd.f32 %v2641_v4, %v3478_v18  ;;  %v3575_v6 = vld [vmem:[%s3468_s14 + $0x58] sm:$0xff]   ;;  %v1750_v0 = vadd.f32 %v3454_v25, %v3478_v18 }
 0x22f   : > { %v1868_v47 = vadd.f32 %v1867_v42, %v1707_v15  ;;  %v1870_v48 = vpop.f32.mrb[35].mxu1  ;;  %v2543_v15 = vunpack.c.h.bf16 %v2568_v3 }
 0x230   : > { %v1871_v31 = vadd.f32 %v1870_v48, %v1710_v19  ;;  %v2642_v49 = vpop.f32.mrb[36].mxu0 }
 0x231   : > { %v2010_v28 = vadd.f32 %v2526_v44, %v1868_v47  ;;  %v2643_v53 = vpop.f32.mrb[37].mxu0  ;;  %v2570_v47 = vld [vmem:[%s3468_s14 + $0x70] sm:$0xff]  }
 0x232   : > { %v2011_v32 = vadd.f32 %v2527_v13, %v1871_v31  ;;  %v2644_v57 = vadd.f32 %v2643_v53, %v2642_v49  ;;  %v2645_v24 = vpop.f32.mrb[38].mxu0  ;;  %v1742_v13 = vadd.f32 %v3450_v39, %v3478_v18  ;;  %v2550_v39 = vunpack.c.l.bf16 %v2570_v47 }
 0x233   : > { %v2468_v62 = vpack.c.bf16 %v2010_v28, %v2010_v28  ;;  %v2646_v63 = vpop.f32.mrb[39].mxu0  ;;  %v2538_v28 = vunpack.c.l.bf16 %v3575_v6 }
 0x234   : > { %v2469_v16 = vpack.c.bf16 %v2011_v32, %v2011_v32  ;;  %v1715_v30 = vadd.f32 %v2644_v57, %v3478_v18  ;;  %v2647_v45 = vadd.f32 %v2646_v63, %v2645_v24  ;;  %v3555_v51 = vpop.f32.mrb[36].mxu1 }
 0x235   : > { %2171 = vst.msk [vmem:[%s3494_s19 + $0x40] sm:$0xf] %vm2154_vm8, %v2468_v62  ;;  %v1883_v34 = vpop.f32.mrb[37].mxu1 }
 0x236   : > { %2172 = vst.msk [vmem:[%s3494_s19 + $0x44] sm:$0xf] %vm2154_vm8, %v2469_v16  ;;  %v1876_v8 = vadd.f32 %v2724_v52, %v1715_v30  ;;  %v1718_v10 = vadd.f32 %v2647_v45, %v3478_v18  ;;  %v3562_v50 = vpop.f32.mrb[38].mxu1  ;;  %v2547_v52 = vunpack.c.h.bf16 %v2569_v59  ;;  %v2554_v16 = vunpack.c.l.bf16 %v2571_v35 }
 0x237   : > { %v1886_v9 = vpop.f32.mrb[39].mxu1 }
 0x238   : > { %v2012_v55 = vadd.f32 %v2530_v2, %v1876_v8  ;;  %v1879_v40 = vadd.f32 %v2725_v58, %v1718_v10  ;;  %v2648_v21 = vpop.f32.mrb[40].mxu0 }
 0x239   : > { %v2649_v61 = vpop.f32.mrb[41].mxu0 }
 0x23a   : > { %v2470_v22 = vpack.c.bf16 %v2012_v55, %v2012_v55  ;;  %v2013_v1 = vadd.f32 %v2531_v11, %v1879_v40  ;;  %v2650_v36 = vadd.f32 %v2649_v61, %v2648_v21  ;;  %v2651_v5 = vpop.f32.mrb[42].mxu0  ;;  %v2555_v55 = vunpack.c.h.bf16 %v2571_v35 }
 0x23b   : > { %v2652_v27 = vpop.f32.mrb[43].mxu0  ;;  %v1755_v61 = vadd.f32 %v3460_v14, %v3478_v18  ;;  %v1758_v14 = vadd.f32 %v3462_v60, %v3478_v18 }
 0x23c   : > { %2173 = vst.msk [vmem:[%s3494_s19 + $0x48] sm:$0xf] %vm2154_vm8, %v2470_v22  ;;  %v2471_v43 = vpack.c.bf16 %v2013_v1, %v2013_v1  ;;  %v1723_v37 = vadd.f32 %v2650_v36, %v3478_v18  ;;  %v2653_v38 = vadd.f32 %v2652_v27, %v2651_v5  ;;  %v2732_v20 = vpop.f32.mrb[40].mxu1  ;;  %v2539_v1 = vunpack.c.h.bf16 %v3575_v6 }
 0x23d   : > { %v1908_v41 = vadd.f32 %v2732_v20, %v1747_v29  ;;  %v1899_v4 = vpop.f32.mrb[41].mxu1  ;;  %v2551_v29 = vunpack.c.h.bf16 %v2570_v47 }
 0x23e   : > { %2174 = vst.msk [vmem:[%s3494_s19 + $0x4c] sm:$0xf] %vm2154_vm8, %v2471_v43  ;;  %v1884_v42 = vadd.f32 %v1883_v34, %v1723_v37  ;;  %v1726_v44 = vadd.f32 %v2653_v38, %v3478_v18  ;;  %v1900_v58 = vadd.f32 %v1899_v4, %v1739_v12  ;;  %v2733_v19 = vpop.f32.mrb[42].mxu1 }
 0x23f   : > { %v2020_v48 = vadd.f32 %v2546_v23, %v1908_v41  ;;  %v1911_v31 = vadd.f32 %v2733_v19, %v1750_v0  ;;  %v1902_v49 = vpop.f32.mrb[43].mxu1 }
 0x240   : > { %v2014_v25 = vadd.f32 %v2534_v26, %v1884_v42  ;;  %v1887_v53 = vadd.f32 %v1886_v9, %v1726_v44  ;;  %v2018_v56 = vadd.f32 %v2542_v33, %v1900_v58  ;;  %v1903_v32 = vadd.f32 %v1902_v49, %v1742_v13  ;;  %v2654_v57 = vpop.f32.mrb[44].mxu0 }
 0x241   : > { %v2478_v24 = vpack.c.bf16 %v2020_v48, %v2020_v48  ;;  %v2021_v62 = vadd.f32 %v2547_v52, %v1911_v31  ;;  %v2655_v63 = vpop.f32.mrb[45].mxu0  ;;  %v1766_v26 = vadd.f32 %v3472_v46, %v3478_v18 }
 0x242   : > { %v2472_v30 = vpack.c.bf16 %v2014_v25, %v2014_v25  ;;  %v2015_v2 = vadd.f32 %v2535_v54, %v1887_v53  ;;  %v2476_v45 = vpack.c.bf16 %v2018_v56, %v2018_v56  ;;  %v2019_v34 = vadd.f32 %v2543_v15, %v1903_v32  ;;  %v2657_v8 = vpop.f32.mrb[46].mxu0 }
 0x243   : > { %2181 = vst.msk [vmem:[%s3494_s19 + $0x68] sm:$0xf] %vm2154_vm8, %v2478_v24  ;;  %v2479_v10 = vpack.c.bf16 %v2021_v62, %v2021_v62  ;;  %v2656_v11 = vadd.f32 %v2655_v63, %v2654_v57  ;;  %v2658_v9 = vpop.f32.mrb[47].mxu0 }
 0x244   : > { %2175 = vst.msk [vmem:[%s3494_s19 + $0x50] sm:$0xf] %vm2154_vm8, %v2472_v30  ;;  %v2473_v40 = vpack.c.bf16 %v2015_v2, %v2015_v2  ;;  %2179 = vst.msk [vmem:[%s3494_s19 + $0x60] sm:$0xf] %vm2154_vm8, %v2476_v45  ;;  %v2477_v21 = vpack.c.bf16 %v2019_v34, %v2019_v34  ;;  %v2659_v59 = vadd.f32 %v2658_v9, %v2657_v8  ;;  %v2736_v3 = vpop.f32.mrb[44].mxu1 }
 0x245   : > { %2182 = vst.msk [vmem:[%s3494_s19 + $0x6c] sm:$0xf] %vm2154_vm8, %v2479_v10  ;;  %v1731_v22 = vadd.f32 %v2656_v11, %v3478_v18  ;;  %v1924_v7 = vadd.f32 %v2736_v3, %v1763_v17  ;;  %v1915_v36 = vpop.f32.mrb[45].mxu1 }
 0x246   : > { %2176 = vst.msk [vmem:[%s3494_s19 + $0x54] sm:$0xf] %vm2154_vm8, %v2473_v40  ;;  %2180 = vst.msk [vmem:[%s3494_s19 + $0x64] sm:$0xf] %vm2154_vm8, %v2477_v21  ;;  %v1734_v5 = vadd.f32 %v2659_v59, %v3478_v18  ;;  %v1916_v27 = vadd.f32 %v1915_v36, %v1755_v61  ;;  %v2737_v54 = vpop.f32.mrb[46].mxu1 }
 0x247   : > { %v1892_v23 = vadd.f32 %v3555_v51, %v1731_v22  ;;  %v2024_v33 = vadd.f32 %v2554_v16, %v1924_v7  ;;  %v1927_v43 = vadd.f32 %v2737_v54, %v1766_v26  ;;  %v1918_v37 = vpop.f32.mrb[47].mxu1 }
 0x248   : > { %v1895_v46 = vadd.f32 %v3562_v50, %v1734_v5  ;;  %v2022_v38 = vadd.f32 %v2550_v39, %v1916_v27  ;;  %v1919_v20 = vadd.f32 %v1918_v37, %v1758_v14 }
 0x249   : > { %v2016_v12 = vadd.f32 %v2538_v28, %v1892_v23  ;;  %v2482_v6 = vpack.c.bf16 %v2024_v33, %v2024_v33  ;;  %v2025_v41 = vadd.f32 %v2555_v55, %v1927_v43 }
 0x24a   : > { %v2017_v60 = vadd.f32 %v2539_v1, %v1895_v46  ;;  %v2480_v18 = vpack.c.bf16 %v2022_v38, %v2022_v38  ;;  %v2023_v4 = vadd.f32 %v2551_v29, %v1919_v20 }
 0x24b   : > { %v2474_v0 = vpack.c.bf16 %v2016_v12, %v2016_v12  ;;  %2185 = vst.msk [vmem:[%s3494_s19 + $0x78] sm:$0xf] %vm2154_vm8, %v2482_v6  ;;  %v2483_v51 = vpack.c.bf16 %v2025_v41, %v2025_v41 }
 0x24c   : > { %v2475_v52 = vpack.c.bf16 %v2017_v60, %v2017_v60  ;;  %2183 = vst.msk [vmem:[%s3494_s19 + $0x70] sm:$0xf] %vm2154_vm8, %v2480_v18  ;;  %v2481_v15 = vpack.c.bf16 %v2023_v4, %v2023_v4 }
 0x24d   : > { %2177 = vst.msk [vmem:[%s3494_s19 + $0x58] sm:$0xf] %vm2154_vm8, %v2474_v0  ;;  %2186 = vst.msk [vmem:[%s3494_s19 + $0x7c] sm:$0xf] %vm2154_vm8, %v2483_v51 }
 0x24e   : > { %2178 = vst.msk [vmem:[%s3494_s19 + $0x5c] sm:$0xf] %vm2154_vm8, %v2475_v52  ;;  %2184 = vst.msk [vmem:[%s3494_s19 + $0x74] sm:$0xf] %vm2154_vm8, %v2481_v15 }
 0x24f PF: > { %s16_s23 = sadd.s32 1, %s2837_s23   ;;  %s3642_s21 = smov %s2833_s22 }
 0x250   : > { %p13_p5 = scmp.ge.s32.totalorder %s16_s23, 4   ;;  %s3643_s22 = smov %s3645_s24 }
 0x252   :  { %15 = sbr.rel (!%p13_p5) target bundleno = 2 (0x2), region = 83 }

// kernel: colornet_forward.45
= control target key start
LH: loop header
LB: loop body
LE: loop exit
PB: predicated region body
PF: predicated region fallthrough
CT: control target
= control target key end

     0   :  { %s2415_s18 = smov 0   ;;  %s2417_s19 = smov 0   ;;  %s3127_s0 = inlined_call_operand.vmem [shape: bf16[2,16,16,32], index: 0, kind: input, shape index: {}, may-alias: {0,1,2}]   ;;  %s3128_s1 = inlined_call_operand.vmem [shape: bf16[2,16,16,32], index: 1, kind: input, shape index: {}, may-alias: {0,1,2}]   ;;  %s3129_s2 = inlined_call_operand.vmem [shape: bf16[2,16,16,32], index: 2, kind: input, shape index: {}, may-alias: {0,1,2}]   ;;  %s3130_s3 = inlined_call_operand.vmem [shape: bf16[288,3], index: 3, kind: input, shape index: {}]   ;;  %s3131_s4 = inlined_call_operand.vmem [shape: f32[1,3], index: 4, kind: input, shape index: {}]   ;;  %s3132_s5 = inlined_call_operand.vmem [shape: f32[2,16,16,3], index: 5, kind: output, shape index: {}]  }
   0x1   :  { %s2419_s20 = smov 0  }
   0x2 LB: > { %s27_s21 = sadd.s32 1, %s2376_s19  ;;  %p2039_p0 = scmp.ge.s32.totalorder %s2380_s20, 1  ;;  %s2380_s20 = sphi %s2419_s20, %s15_s20   ;;  %s2376_s19 = sphi %s2417_s19, %s3136_s19   ;;  %s2372_s18 = sphi %s2415_s18, %s3135_s18  }
   0x3   : > { %p29_p1 = scmp.ge.s32.totalorder %s27_s21, 2  ;;  %p273_p2 = scmp.lt.s32.totalorder %s2380_s20, 3 }
   0x5   : > { %s3138_s21 = smov (%p29_p1, %s27_s21), 0  ;;  %p274_p3 = pnand %p2039_p0, %p273_p2 }
   0x6   : > { %p341_p4 = scmp.lt.s32.totalorder (!%p274_p3), %s2372_s18, 1  ;;  %vm688_vm0 = vcmask (!%p274_p3), 1040384   ;;  %vm689_vm1 = vsmask.f32 (!%p274_p3), 256  ;;  %vm1016_vm2 = vcmask (!%p274_p3), 1046528   ;;  %s2382_s26 = smov (!%p274_p3), 64  }
   0x7   : > { %277 = sbr.rel (%p274_p3) target bundleno = 587 (0x24b), region = 40  ;;  %vm2446_vm3 = vmand (!%p274_p3), %vm688_vm0, %vm689_vm1  ;;  %vm727_vm4 = vsmask.f32 (!%p274_p3), 7424  ;;  %s2383_s27 = smov (!%p274_p3), 32   ;;  %vm1107_vm5 = vcmask (!%p274_p3), 261120   ;;  %vm1144_vm6 = vcmask (!%p274_p3), 523264  }
   0x8   : > { %vm1262_vm7 = vcmask (!%p274_p3), 785408   ;;  %vm1864_vm8 = vcmask (!%p274_p3), 23552  }
   0xe   : > { %s3140_s18 = smov (!%p341_p4, %s2372_s18), 1 }
   0xf   : > { %s2436_s22 = sshll.u32 %s3140_s18, 7 }
  0x10   : > { %s2442_s25 = scalar_lea.vmem %s3128_s1, %s2436_s22  ;;  %s2104_s28 = sadd.s32 120, %s2436_s22 }
  0x11   : > { %v2324_v0 = vld [vmem:[%s2442_s25 + $0x60] sm:$0xff]   ;;  %v2326_v7 = vld [vmem:[%s2442_s25 + $0x8] sm:$0xff]   ;;  %v2328_v10 = vld [vmem:[%s2442_s25 + $0x10] sm:$0xff]   ;;  %s377_s6 = scalar_lea.vmem %s3129_s2, %s2104_s28  ;;  %s349_s9 = scalar_lea.vmem %s3127_s0, %s2436_s22 }
  0x12   : > { %v2325_v1 = vld [vmem:[%s2442_s25] sm:$0xff]   ;;  %v618_v2 = vshrl.u32 %v2324_v0, 16  ;;  %v621_v3 = vshll.u32 %v2324_v0, 16  ;;  %v2327_v8 = vld [vmem:[%s2442_s25 + $0x68] sm:$0xff]   ;;  %v541_v12 = vshrl.u32 %v2326_v7, 16  ;;  %v544_v13 = vshll.u32 %v2326_v7, 16 }
  0x13   : > { %v534_v5 = vshrl.u32 %v2325_v1, 16  ;;  %v537_v6 = vshll.u32 %v2325_v1, 16  ;;  %v625_v14 = vshrl.u32 %v2327_v8, 16  ;;  %v628_v17 = vshll.u32 %v2327_v8, 16  ;;  %v2329_v59 = vld [vmem:[%s2442_s25 + $0x70] sm:$0xff]  }
  0x14   : > { %v620_v9 = vrot.slane %v618_v2, 7  ;;  %v548_v18 = vshrl.u32 %v2328_v10, 16  ;;  %v543_v22 = vrot.slane %v541_v12, 7  ;;  %v551_v53 = vshll.u32 %v2328_v10, 16 }
  0x15   : > { %v536_v11 = vrot.slane %v534_v5, 7  ;;  %v627_v26 = vrot.slane %v625_v14, 7  ;;  %v2331_v14 = vld [vmem:[%s2442_s25 + $0x78] sm:$0xff]  }
  0x16   : > { %v623_v15 = vor.u32 %v621_v3, %v620_v9  ;;  %v722_v16 = vsel %vm2446_vm3, %v620_v9, 0  ;;  %v546_v29 = vor.u32 %v544_v13, %v543_v22  ;;  %v711_v30 = vsel %vm2446_vm3, %v543_v22, 0  ;;  %v2330_v9 = vld [vmem:[%s2442_s25 + $0x18] sm:$0xff]  }
  0x17   : > { %v1057_v19 = vrot.slane %v722_v16, 1  ;;  %v539_v20 = vor.u32 %v537_v6, %v536_v11  ;;  %v710_v21 = vsel %vm2446_vm3, %v536_v11, 0  ;;  %v1024_v32 = vrot.slane %v711_v30, 1 }
  0x18   : > { %v2459_v23 = vsel %vm2446_vm3, 0, %v623_v15  ;;  %v1021_v24 = vrot.slane %v710_v21, 1  ;;  %v748_v25 = vshll.u32 %v710_v21, 16  ;;  %v2474_v36 = vsel %vm2446_vm3, 0, %v546_v29 }
  0x19   : > { %v1056_v27 = vrot.slane %v2459_v23, 1  ;;  %v2464_v28 = vsel %vm2446_vm3, 0, %v539_v20  ;;  %v630_v38 = vor.u32 %v628_v17, %v627_v26  ;;  %v1023_v40 = vrot.slane %v2474_v36, 1 }
  0x1a   : > { %v1020_v31 = vrot.slane %v2464_v28, 1  ;;  %v741_v33 = vshrl.u32 %v2464_v28, 16  ;;  %v743_v34 = vshll.u32 %v2464_v28, 16  ;;  %v750_v37 = vrot.slane %v748_v25, 1 }
  0x1b   : > { %v1058_v35 = vsel %vm1016_vm2, %v1056_v27, %v1057_v19  ;;  %v723_v42 = vsel %vm2446_vm3, %v627_v26, 0  ;;  %v2484_v43 = vsel %vm2446_vm3, 0, %v630_v38  ;;  %v753_v45 = vshrl.u32 %v2474_v36, 16 }
  0x1c   : > { %1097 = vrot.lane.b32.xlu0 %v1058_v35, %s2382_s26  ;;  %v1022_v39 = vsel %vm1016_vm2, %v1020_v31, %v1021_v24  ;;  %v745_v41 = vrot.slane %v743_v34, 1  ;;  %v1060_v44 = vrot.slane %v723_v42, 1  ;;  %v755_v46 = vshll.u32 %v2474_v36, 16  ;;  %v2516_v24 = vld [vmem:[%s2442_s25 + $0x20] sm:$0xff]  }
  0x1d   : > { %1073 = vrot.lane.b32.xlu1 %v1022_v39, %s2382_s26  ;;  %v1025_v47 = vsel %vm1016_vm2, %v1023_v40, %v1024_v32  ;;  %v1059_v49 = vrot.slane %v2484_v43, 1  ;;  %v760_v50 = vshll.u32 %v711_v30, 16  ;;  %v550_v52 = vrot.slane %v548_v18, 7 }
  0x1e   : > { %v746_v48 = vor.u32 %v745_v41, %v741_v33  ;;  %v757_v51 = vrot.slane %v755_v46, 1  ;;  %v885_v54 = vshrl.u32 %v2459_v23, 16  ;;  %v887_v58 = vshll.u32 %v2459_v23, 16 }
  0x1f   : > { %v1061_v56 = vsel %vm1016_vm2, %v1059_v49, %v1060_v44  ;;  %v762_v57 = vrot.slane %v760_v50, 1  ;;  %v553_v61 = vor.u32 %v551_v53, %v550_v52  ;;  %v712_v62 = vsel %vm2446_vm3, %v550_v52, 0 }
  0x20   : > { %v751_v55 = vsel %vm727_vm4, %v746_v48, %v750_v37  ;;  %v758_v60 = vor.u32 %v757_v51, %v753_v45  ;;  %v892_v63 = vshll.u32 %v722_v16, 16  ;;  %v1027_v0 = vrot.slane %v712_v62, 1 }
  0x21   : > { %1075 = vrot.lane.b32.xlu1 %v1025_v47, %s2382_s26  ;;  %946 = vrot.lane.b32.xlu0 %v751_v55, %s2383_s27  ;;  %v889_v1 = vrot.slane %v887_v58, 1  ;;  %v897_v2 = vshrl.u32 %v2484_v43, 16  ;;  %v899_v3 = vshll.u32 %v2484_v43, 16  ;;  %v2504_v6 = vsel %vm2446_vm3, 0, %v553_v61  ;;  %v2333_v61 = vld [vmem:[%s2442_s25 + $0x28] sm:$0xff]  }
  0x22   : > { %v763_v5 = vsel %vm727_vm4, %v758_v60, %v762_v57  ;;  %v894_v7 = vrot.slane %v892_v63, 1  ;;  %v904_v8 = vshll.u32 %v723_v42, 16  ;;  %v1026_v10 = vrot.slane %v2504_v6, 1  ;;  %v2111_v60 = vld [vmem:[%s377_s6] sm:$0xff]   ;;  %s2105_s6 = sshll.u32 %s3140_s18, 8 }
  0x23   : > { %v890_v11 = vor.u32 %v889_v1, %v885_v54  ;;  %v901_v12 = vrot.slane %v899_v3, 1  ;;  %v765_v13 = vshrl.u32 %v2504_v6, 16  ;;  %v767_v16 = vshll.u32 %v2504_v6, 16  ;;  %s3013_s11 = scalar_lea.vmem %s3132_s5, %s2105_s6 }
  0x24   : > { %v906_v15 = vrot.slane %v904_v8, 1  ;;  %v772_v17 = vshll.u32 %v712_v62, 16  ;;  %v632_v18 = vshrl.u32 %v2329_v59, 16  ;;  %v1028_v19 = vsel %vm1016_vm2, %v1026_v10, %v1027_v0 }
  0x25   : > { %1099 = vrot.lane.b32.xlu1 %v1061_v56, %s2382_s26  ;;  %948 = vrot.lane.b32.xlu0 %v763_v5, %s2383_s27  ;;  %v895_v20 = vsel %vm727_vm4, %v890_v11, %v894_v7  ;;  %v902_v21 = vor.u32 %v901_v12, %v897_v2  ;;  %v635_v22 = vshll.u32 %v2329_v59, 16  ;;  %v769_v25 = vrot.slane %v767_v16, 1 }
  0x26   : > { %v774_v26 = vrot.slane %v772_v17, 1  ;;  %v634_v27 = vrot.slane %v632_v18, 7  ;;  %v555_v29 = vshrl.u32 %v2330_v9, 16  ;;  %v558_v31 = vshll.u32 %v2330_v9, 16 }
  0x27   : > { %v907_v30 = vsel %vm727_vm4, %v902_v21, %v906_v15  ;;  %v639_v32 = vshrl.u32 %v2331_v14, 16  ;;  %v642_v33 = vshll.u32 %v2331_v14, 16  ;;  %v770_v34 = vor.u32 %v769_v25, %v765_v13 }
  0x28   : > { %v637_v35 = vor.u32 %v635_v22, %v634_v27  ;;  %v724_v37 = vsel %vm2446_vm3, %v634_v27, 0  ;;  %v557_v38 = vrot.slane %v555_v29, 7  ;;  %v562_v42 = vshrl.u32 %v2516_v24, 16 }
  0x29   : > { %1077 = vrot.lane.b32.xlu1 %v1028_v19, %s2382_s26  ;;  %970 = vrot.lane.b32.xlu0 %v895_v20, %s2383_s27  ;;  %v1063_v39 = vrot.slane %v724_v37, 1  ;;  %v916_v40 = vshll.u32 %v724_v37, 16  ;;  %v641_v41 = vrot.slane %v639_v32, 7  ;;  %v775_v44 = vsel %vm727_vm4, %v770_v34, %v774_v26  ;;  %v2334_v26 = vld [vmem:[%s2442_s25 + $0x30] sm:$0xff]  }
  0x2a   : > { %v2528_v45 = vsel %vm2446_vm3, 0, %v637_v35  ;;  %v560_v46 = vor.u32 %v558_v31, %v557_v38  ;;  %v713_v47 = vsel %vm2446_vm3, %v557_v38, 0  ;;  %v564_v14 = vrot.slane %v562_v42, 7 }
  0x2b   : > { %v1062_v48 = vrot.slane %v2528_v45, 1  ;;  %v909_v49 = vshrl.u32 %v2528_v45, 16  ;;  %v911_v50 = vshll.u32 %v2528_v45, 16  ;;  %v918_v51 = vrot.slane %v916_v40, 1 }
  0x2c   : > { %v2542_v52 = vsel %vm2446_vm3, 0, %v560_v46  ;;  %v1030_v53 = vrot.slane %v713_v47, 1  ;;  %v784_v54 = vshll.u32 %v713_v47, 16  ;;  %v644_v55 = vor.u32 %v642_v33, %v641_v41 }
  0x2d   : > { %972 = vrot.lane.b32.xlu1 %v907_v30, %s2383_s27  ;;  %950 = vrot.lane.b32.xlu0 %v775_v44, %s2383_s27  ;;  %v1064_v56 = vsel %vm1016_vm2, %v1062_v48, %v1063_v39  ;;  %v913_v57 = vrot.slane %v911_v50, 1  ;;  %v1029_v58 = vrot.slane %v2542_v52, 1  ;;  %v777_v59 = vshrl.u32 %v2542_v52, 16  ;;  %v2335_v44 = vld [vmem:[%s2442_s25 + $0x38] sm:$0xff]  }
  0x2e   : > { %v779_v62 = vshll.u32 %v2542_v52, 16  ;;  %v786_v63 = vrot.slane %v784_v54, 1  ;;  %v2551_v0 = vsel %vm2446_vm3, 0, %v644_v55  ;;  %v725_v1 = vsel %vm2446_vm3, %v641_v41, 0 }
  0x2f   : > { %v914_v2 = vor.u32 %v913_v57, %v909_v49  ;;  %v1031_v3 = vsel %vm1016_vm2, %v1029_v58, %v1030_v53  ;;  %v1065_v5 = vrot.slane %v2551_v0, 1  ;;  %v1066_v7 = vrot.slane %v725_v1, 1 }
  0x30   : > { %v781_v8 = vrot.slane %v779_v62, 1  ;;  %v921_v9 = vshrl.u32 %v2551_v0, 16  ;;  %v923_v10 = vshll.u32 %v2551_v0, 16  ;;  %v928_v11 = vshll.u32 %v725_v1, 16 }
  0x31   : > { %1101 = vrot.lane.b32.xlu1 %v1064_v56, %s2382_s26  ;;  %v919_v12 = vsel %vm727_vm4, %v914_v2, %v918_v51  ;;  %v1067_v13 = vsel %vm1016_vm2, %v1065_v5, %v1066_v7  ;;  %v565_v15 = vshll.u32 %v2516_v24, 16  ;;  %v2112_v19 = vunpack.c.l.bf16 %v2111_v60 }
  0x32   : > { %974 = vrot.lane.b32.xlu0 %v919_v12, %s2383_s27  ;;  %v782_v16 = vor.u32 %v781_v8, %v777_v59  ;;  %v925_v17 = vrot.slane %v923_v10, 1  ;;  %v930_v18 = vrot.slane %v928_v11, 1  ;;  %v714_v21 = vsel %vm2446_vm3, %v564_v14, 0 }
  0x33   : > { %v567_v20 = vor.u32 %v565_v15, %v564_v14  ;;  %v2113_v22 = vunpack.c.h.bf16 %v2111_v60  ;;  %v569_v25 = vshrl.u32 %v2333_v61, 16  ;;  %v1033_v24 = vrot.slane %v714_v21, 1 }
  0x34   : > { %v787_v27 = vsel %vm727_vm4, %v782_v16, %v786_v63  ;;  %v926_v29 = vor.u32 %v925_v17, %v921_v9  ;;  %v796_v30 = vshll.u32 %v714_v21, 16  ;;  %v443_v32 = vmul.f32 0.0, %v2112_v19 }
  0x35   : > { %1079 = vrot.lane.b32.xlu1 %v1031_v3, %s2382_s26  ;;  %v2571_v31 = vsel %vm2446_vm3, 0, %v567_v20  ;;  %v444_v33 = vmul.f32 0.0, %v2113_v22  ;;  %v571_v34 = vrot.slane %v569_v25, 7  ;;  %v572_v41 = vshll.u32 %v2333_v61, 16 }
  0x36   : > { %952 = vrot.lane.b32.xlu0 %v787_v27, %s2383_s27  ;;  %v1032_v35 = vrot.slane %v2571_v31, 1  ;;  %v789_v37 = vshrl.u32 %v2571_v31, 16  ;;  %v791_v38 = vshll.u32 %v2571_v31, 16  ;;  %v931_v39 = vsel %vm727_vm4, %v926_v29, %v930_v18  ;;  %v2336_v18 = vld [vmem:[%s2442_s25 + $0x40] sm:$0xff]  }
  0x37   : > { %v445_v40 = vpack.c.bf16 %v444_v33, %v443_v32  ;;  %v715_v42 = vsel %vm2446_vm3, %v571_v34, 0  ;;  %v798_v48 = vrot.slane %v796_v30, 1  ;;  %v574_v53 = vor.u32 %v572_v41, %v571_v34 }
  0x38   : > { %v1034_v46 = vsel %vm1016_vm2, %v1032_v35, %v1033_v24  ;;  %v793_v47 = vrot.slane %v791_v38, 1  ;;  %v808_v49 = vshll.u32 %v715_v42, 16  ;;  %v576_v54 = vshrl.u32 %v2334_v26, 16 }
  0x39   : > { %1103 = vrot.lane.b32.xlu1 %v1067_v13, %s2382_s26  ;;  %v646_v50 = vshrl.u32 %v445_v40, 16  ;;  %v649_v51 = vshll.u32 %v445_v40, 16  ;;  %v1036_v56 = vrot.slane %v715_v42, 1  ;;  %v579_v58 = vshll.u32 %v2334_v26, 16 }
  0x3a   : > { %976 = vrot.lane.b32.xlu0 %v931_v39, %s2383_s27  ;;  %v794_v55 = vor.u32 %v793_v47, %v789_v37  ;;  %v810_v57 = vrot.slane %v808_v49, 1  ;;  %v2586_v60 = vsel %vm2446_vm3, 0, %v574_v53  ;;  %v578_v61 = vrot.slane %v576_v54, 7  ;;  %v2107_v39 = vld [vmem:[%s349_s9] sm:$0xff]  }
  0x3b   : > { %v648_v59 = vrot.slane %v646_v50, 7  ;;  %v583_v62 = vshrl.u32 %v2335_v44, 16  ;;  %v1035_v1 = vrot.slane %v2586_v60, 1  ;;  %v801_v2 = vshrl.u32 %v2586_v60, 16 }
  0x3c   : > { %v799_v63 = vsel %vm727_vm4, %v794_v55, %v798_v48  ;;  %v803_v3 = vshll.u32 %v2586_v60, 16  ;;  %v581_v8 = vor.u32 %v579_v58, %v578_v61  ;;  %v716_v9 = vsel %vm2446_vm3, %v578_v61, 0  ;;  %v2337_v55 = vld [vmem:[%s2442_s25 + $0x48] sm:$0xff]  }
  0x3d   : > { %1081 = vrot.lane.b32.xlu1 %v1034_v46, %s2382_s26  ;;  %v651_v5 = vor.u32 %v649_v51, %v648_v59  ;;  %v726_v7 = vsel %vm2446_vm3, %v648_v59, 0  ;;  %v586_v13 = vshll.u32 %v2335_v44, 16  ;;  %v1037_v15 = vsel %vm1016_vm2, %v1035_v1, %v1036_v56 }
  0x3e   : > { %954 = vrot.lane.b32.xlu0 %v799_v63, %s2383_s27  ;;  %v1069_v10 = vrot.slane %v726_v7, 1  ;;  %v940_v11 = vshll.u32 %v726_v7, 16  ;;  %v805_v12 = vrot.slane %v803_v3, 1  ;;  %v2605_v16 = vsel %vm2446_vm3, 0, %v581_v8 }
  0x3f   : > { %v2600_v14 = vsel %vm2446_vm3, 0, %v651_v5  ;;  %v820_v17 = vshll.u32 %v716_v9, 16  ;;  %v1039_v22 = vrot.slane %v716_v9, 1  ;;  %v813_v27 = vshrl.u32 %v2605_v16, 16 }
  0x40   : > { %v1068_v19 = vrot.slane %v2600_v14, 1  ;;  %v933_v20 = vshrl.u32 %v2600_v14, 16  ;;  %v935_v21 = vshll.u32 %v2600_v14, 16  ;;  %v942_v25 = vrot.slane %v940_v11, 1 }
  0x41   : > { %v806_v26 = vor.u32 %v805_v12, %v801_v2  ;;  %v815_v29 = vshll.u32 %v2605_v16, 16  ;;  %v1038_v32 = vrot.slane %v2605_v16, 1  ;;  %v585_v33 = vrot.slane %v583_v62, 7  ;;  %v2338_v2 = vld [vmem:[%s2442_s25 + $0x58] sm:$0xff]  }
  0x42   : > { %v1070_v24 = vsel %vm1016_vm2, %v1068_v19, %v1069_v10  ;;  %v937_v30 = vrot.slane %v935_v21, 1  ;;  %v822_v37 = vrot.slane %v820_v17, 1  ;;  %v590_v38 = vshrl.u32 %v2336_v18, 16 }
  0x43   : > { %1105 = vrot.lane.b32.xlu1 %v1070_v24, %s2382_s26  ;;  %v811_v34 = vsel %vm727_vm4, %v806_v26, %v810_v57  ;;  %v817_v35 = vrot.slane %v815_v29, 1  ;;  %v588_v41 = vor.u32 %v586_v13, %v585_v33  ;;  %v717_v42 = vsel %vm2446_vm3, %v585_v33, 0 }
  0x44   : > { %v938_v40 = vor.u32 %v937_v30, %v933_v20  ;;  %v593_v44 = vshll.u32 %v2336_v18, 16  ;;  %v1042_v47 = vrot.slane %v717_v42, 1  ;;  %v832_v48 = vshll.u32 %v717_v42, 16 }
  0x45   : > { %v818_v46 = vor.u32 %v817_v35, %v813_v27  ;;  %v592_v49 = vrot.slane %v590_v38, 7  ;;  %v2626_v51 = vsel %vm2446_vm3, 0, %v588_v41  ;;  %v2108_v53 = vunpack.c.l.bf16 %v2107_v39 }
  0x46   : > { %v943_v50 = vsel %vm727_vm4, %v938_v40, %v942_v25  ;;  %v2109_v54 = vunpack.c.h.bf16 %v2107_v39  ;;  %v1040_v56 = vsel %vm1016_vm2, %v1038_v32, %v1039_v22  ;;  %v1041_v57 = vrot.slane %v2626_v51, 1 }
  0x47   : > { %978 = vrot.lane.b32.xlu0 %v943_v50, %s2383_s27  ;;  %1083 = vrot.lane.b32.xlu1 %v1037_v15, %s2382_s26  ;;  %v825_v58 = vshrl.u32 %v2626_v51, 16  ;;  %v827_v59 = vshll.u32 %v2626_v51, 16  ;;  %v823_v61 = vsel %vm727_vm4, %v818_v46, %v822_v37  ;;  %v595_v62 = vor.u32 %v593_v44, %v592_v49  ;;  %v2339_v37 = vld [vmem:[%s2442_s25 + $0x50] sm:$0xff]  }
  0x48   : > { %v718_v63 = vsel %vm2446_vm3, %v592_v49, 0  ;;  %v435_v1 = vmul.f32 0.0, %v2108_v53  ;;  %v1043_v3 = vsel %vm1016_vm2, %v1041_v57, %v1042_v47  ;;  %v834_v7 = vrot.slane %v832_v48, 1 }
  0x49   : > { %v829_v5 = vrot.slane %v827_v59, 1  ;;  %v1045_v8 = vrot.slane %v718_v63, 1  ;;  %v2642_v9 = vsel %vm2446_vm3, 0, %v595_v62  ;;  %v436_v10 = vmul.f32 0.0, %v2109_v54 }
  0x4a   : > { %v597_v11 = vshrl.u32 %v2337_v55, 16  ;;  %v600_v12 = vshll.u32 %v2337_v55, 16  ;;  %v1044_v15 = vrot.slane %v2642_v9, 1  ;;  %v839_v17 = vshll.u32 %v2642_v9, 16 }
  0x4b   : > { %956 = vrot.lane.b32.xlu0 %v811_v34, %s2383_s27  ;;  %1085 = vrot.lane.b32.xlu1 %v1040_v56, %s2382_s26  ;;  %v830_v13 = vor.u32 %v829_v5, %v825_v58  ;;  %v844_v18 = vshll.u32 %v718_v63, 16  ;;  %v837_v19 = vshrl.u32 %v2642_v9, 16  ;;  %v437_v20 = vpack.c.bf16 %v436_v10, %v435_v1 }
  0x4c   : > { %v599_v21 = vrot.slane %v597_v11, 7  ;;  %v611_v22 = vshrl.u32 %v2338_v2, 16  ;;  %v841_v25 = vrot.slane %v839_v17, 1  ;;  %v614_v26 = vshll.u32 %v2338_v2, 16 }
  0x4d   : > { %v527_v27 = vshrl.u32 %v437_v20, 16  ;;  %v530_v29 = vshll.u32 %v437_v20, 16  ;;  %v835_v32 = vsel %vm727_vm4, %v830_v13, %v834_v7  ;;  %v1046_v33 = vsel %vm1016_vm2, %v1044_v15, %v1045_v8 }
  0x4e   : > { %v602_v24 = vor.u32 %v600_v12, %v599_v21  ;;  %v719_v30 = vsel %vm2446_vm3, %v599_v21, 0  ;;  %v846_v34 = vrot.slane %v844_v18, 1  ;;  %v613_v35 = vrot.slane %v611_v22, 7 }
  0x4f   : > { %958 = vrot.lane.b32.xlu0 %v823_v61, %s2383_s27  ;;  %1087 = vrot.lane.b32.xlu1 %v1043_v3, %s2382_s26  ;;  %v842_v38 = vor.u32 %v841_v25, %v837_v19  ;;  %v529_v39 = vrot.slane %v527_v27, 7  ;;  %v856_v41 = vshll.u32 %v719_v30, 16  ;;  %v1048_v46 = vrot.slane %v719_v30, 1 }
  0x50   : > { %v2658_v40 = vsel %vm2446_vm3, 0, %v602_v24  ;;  %v616_v49 = vor.u32 %v614_v26, %v613_v35  ;;  %v721_v50 = vsel %vm2446_vm3, %v613_v35, 0  ;;  %v604_v56 = vshrl.u32 %v2339_v37, 16 }
  0x51   : > { %v849_v42 = vshrl.u32 %v2658_v40, 16  ;;  %v851_v44 = vshll.u32 %v2658_v40, 16  ;;  %v532_v47 = vor.u32 %v530_v29, %v529_v39  ;;  %v709_v48 = vsel %vm2446_vm3, %v529_v39, 0 }
  0x52   : > { %v1018_v53 = vrot.slane %v709_v48, 1  ;;  %v736_v54 = vshll.u32 %v709_v48, 16  ;;  %v847_v57 = vsel %vm727_vm4, %v842_v38, %v846_v34  ;;  %v858_v59 = vrot.slane %v856_v41, 1  ;;  %v2341_v48 = vld [vmem:[%s3130_s3] sm:$0xff]  }
  0x53   : > { %960 = vrot.lane.b32.xlu0 %v835_v32, %s2383_s27  ;;  %1089 = vrot.lane.b32.xlu1 %v1046_v33, %s2382_s26  ;;  %v853_v55 = vrot.slane %v851_v44, 1  ;;  %v2671_v58 = vsel %vm2446_vm3, 0, %v532_v47  ;;  %v2675_v61 = vsel %vm2446_vm3, 0, %v616_v49  ;;  %v880_v2 = vshll.u32 %v721_v50, 16  ;;  %v2340_v47 = vld [vmem:[%s3130_s3 + $0x40] sm:$0xff]   ;;  %v2342_v49 = vld [vmem:[%s3130_s3 + $0x48] sm:$0xff]  }
  0x54   : > { %v1017_v62 = vrot.slane %v2671_v58, 1  ;;  %v729_v63 = vshrl.u32 %v2671_v58, 16  ;;  %v731_v1 = vshll.u32 %v2671_v58, 16  ;;  %v873_v5 = vshrl.u32 %v2675_v61, 16  ;;  %2115 = vmatprep.subr.bf16.mxu0 %v2340_v47  ;;  %2281 = vmatprep.subr.bf16.mxu1 %v2340_v47 }
  0x55   : > { %v854_v3 = vor.u32 %v853_v55, %v849_v42  ;;  %v875_v7 = vshll.u32 %v2675_v61, 16  ;;  %v607_v8 = vshll.u32 %v2339_v37, 16  ;;  %v738_v12 = vrot.slane %v736_v54, 1  ;;  %2116 = vmatpush3.bf16.msra.mxu0 %v2341_v48  ;;  %2289 = vmatpush3.bf16.msra.mxu1 %v2341_v48  ;;  %v2345_v54 = vld [vmem:[%s3130_s3 + $0x10] sm:$0xff]   ;;  %v2346_v55 = vld [vmem:[%s3130_s3 + $0x58] sm:$0xff]  }
  0x56   : > { %v1019_v10 = vsel %vm1016_vm2, %v1017_v62, %v1018_v53  ;;  %v733_v11 = vrot.slane %v731_v1, 1  ;;  %v1047_v13 = vrot.slane %v2658_v40, 1  ;;  %v606_v17 = vrot.slane %v604_v56, 7  ;;  %2117 = vmatprep.subr.bf16.mxu0 %v2342_v49  ;;  %v2344_v53 = vld [vmem:[%s3130_s3 + $0x50] sm:$0xff]   ;;  %2282 = vmatprep.subr.bf16.mxu1 %v2342_v49  ;;  %v2347_v56 = vld [vmem:[%s3130_s3 + $0x18] sm:$0xff]   ;;  %v2350_v62 = vld [vmem:[%s3130_s3 + $0x68] sm:$0xff]  }
  0x57   : > { %962 = vrot.lane.b32.xlu0 %v847_v57, %s2383_s27  ;;  %1071 = vrot.lane.b32.xlu1 %v1019_v10, %s2382_s26  ;;  %v877_v15 = vrot.slane %v875_v7, 1  ;;  %v859_v19 = vsel %vm727_vm4, %v854_v3, %v858_v59  ;;  %v882_v20 = vrot.slane %v880_v2, 1  ;;  %v1054_v29 = vrot.slane %v721_v50, 1  ;;  %v2343_v50 = vld [vmem:[%s3130_s3 + $0x8] sm:$0xff]   ;;  %v2348_v57 = vld [vmem:[%s3130_s3 + $0x60] sm:$0xff]  }
  0x58   : > { %v734_v18 = vor.u32 %v733_v11, %v729_v63  ;;  %v609_v22 = vor.u32 %v607_v8, %v606_v17  ;;  %v720_v25 = vsel %vm2446_vm3, %v606_v17, 0  ;;  %v1049_v27 = vsel %vm1016_vm2, %v1047_v13, %v1048_v46  ;;  %v2349_v59 = vld [vmem:[%s3130_s3 + $0x20] sm:$0xff]   ;;  %v2351_v63 = vld [vmem:[%s3130_s3 + $0x28] sm:$0xff]   ;;  %v2352_v1 = vld [vmem:[%s3130_s3 + $0x70] sm:$0xff]  }
  0x59   : > { %v878_v21 = vor.u32 %v877_v15, %v873_v5  ;;  %v1053_v24 = vrot.slane %v2675_v61, 1  ;;  %v868_v32 = vshll.u32 %v720_v25, 16  ;;  %v1051_v33 = vrot.slane %v720_v25, 1  ;;  %2118 = vmatpush3.bf16.msra.mxu0 %v2343_v50  ;;  %2290 = vmatpush3.bf16.msra.mxu1 %v2343_v50  ;;  %v2353_v2 = vld [vmem:[%s3130_s3 + $0x30] sm:$0xff]   ;;  %v2354_v3 = vld [vmem:[%s3130_s3 + $0x78] sm:$0xff]   ;;  %v2768_v15 = vld [vmem:[%s3130_s3 + $0x80] sm:$0xff]  }
  0x5a   : > { %v739_v26 = vsel %vm727_vm4, %v734_v18, %v738_v12  ;;  %v2696_v30 = vsel %vm2446_vm3, 0, %v609_v22  ;;  %2119 = vmatprep.subr.bf16.mxu0 %v2344_v53  ;;  %2283 = vmatprep.subr.bf16.mxu1 %v2344_v53  ;;  %v2355_v5 = vld [vmem:[%s3130_s3 + $0x38] sm:$0xff]  }
  0x5b   : > { %944 = vrot.lane.b32.xlu0 %v739_v26, %s2383_s27  ;;  %964 = vrot.lane.b32.xlu1 %v859_v19, %s2383_s27  ;;  %v883_v34 = vsel %vm727_vm4, %v878_v21, %v882_v20  ;;  %v861_v35 = vshrl.u32 %v2696_v30, 16  ;;  %v863_v37 = vshll.u32 %v2696_v30, 16  ;;  %v1050_v38 = vrot.slane %v2696_v30, 1 }
  0x5c   : > { %v1055_v41 = vsel %vm1016_vm2, %v1053_v24, %v1054_v29  ;;  %v870_v42 = vrot.slane %v868_v32, 1 }
  0x5d   : > { %v865_v39 = vrot.slane %v863_v37, 1  ;;  %v1052_v44 = vsel %vm1016_vm2, %v1050_v38, %v1051_v33  ;;  %2120 = vmatpush3.bf16.msra.mxu0 %v2345_v54  ;;  %2291 = vmatpush3.bf16.msra.mxu1 %v2345_v54 }
  0x5e   : > { %2121 = vmatprep.subr.bf16.mxu0 %v2346_v55  ;;  %2284 = vmatprep.subr.bf16.mxu1 %v2346_v55 }
  0x5f   : > { %968 = vrot.lane.b32.xlu0 %v883_v34, %s2383_s27  ;;  %1091 = vrot.lane.b32.xlu1 %v1049_v27, %s2382_s26  ;;  %v866_v4 = vor.u32 %v865_v39, %v861_v35 }
  0x61   : > { %v871_v46 = vsel %vm727_vm4, %v866_v4, %v870_v42  ;;  %2122 = vmatpush3.bf16.msra.mxu0 %v2347_v56  ;;  %2292 = vmatpush3.bf16.msra.mxu1 %v2347_v56 }
  0x62   : > { %2123 = vmatprep.subr.bf16.mxu0 %v2348_v57  ;;  %2285 = vmatprep.subr.bf16.mxu1 %v2348_v57 }
  0x63   : > { %1095 = vrot.lane.b32.xlu0 %v1055_v41, %s2382_s26  ;;  %1093 = vrot.lane.b32.xlu1 %v1052_v44, %s2382_s26 }
  0x65   : > { %2124 = vmatpush3.bf16.msra.mxu0 %v2349_v59  ;;  %2293 = vmatpush3.bf16.msra.mxu1 %v2349_v59 }
  0x66   : > { %2125 = vmatprep.subr.bf16.mxu0 %v2350_v62  ;;  %2286 = vmatprep.subr.bf16.mxu1 %v2350_v62 }
  0x67   : > { %966 = vrot.lane.b32.xlu0 %v871_v46, %s2383_s27  ;;  %s2384_s27 = smov 96  }
  0x69   : > { %2126 = vmatpush3.bf16.msra.mxu0 %v2351_v63  ;;  %2294 = vmatpush3.bf16.msra.mxu1 %v2351_v63 }
  0x6a   : > { %2127 = vmatprep.subr.bf16.mxu0 %v2352_v1  ;;  %2287 = vmatprep.subr.bf16.mxu1 %v2352_v1 }
  0x6d   : > { %2128 = vmatpush3.bf16.msra.mxu0 %v2353_v2  ;;  %2295 = vmatpush3.bf16.msra.mxu1 %v2353_v2 }
  0x6e   : > { %2129 = vmatprep.subr.bf16.mxu0 %v2354_v3  ;;  %2288 = vmatprep.subr.bf16.mxu1 %v2354_v3 }
  0x71   : > { %2130 = vmatpush3.bf16.msra.mxu0 %v2355_v5  ;;  %2296 = vmatpush3.bf16.msra.mxu1 %v2355_v5 }
  0x72   : > { %2245 = vmatprep.subr.bf16.mxu1 %v2768_v15 }
  0x8e   : > { %v1098_v7 = vpop.permute.xlu0 %1097 }
  0x8f   : > { %v1074_v8 = vpop.permute.xlu1 %1073 }
  0x93   : > { %v1076_v10 = vpop.permute.xlu1 %1075  ;;  %v947_v11 = vpop.permute.xlu0 %946 }
  0x94   : > { %v1111_v12 = vsel %vm1107_vm5, %v2464_v28, %v947_v11 }
  0x95   : > { %v2761_v13 = vsel %vm1144_vm6, %v1111_v12, %v1074_v8 }
  0x96   : > { %1197 = vrot.lane.b32.xlu0 %v2761_v13, %s2384_s27 }
  0x97   : > { %v1100_v17 = vpop.permute.xlu1 %1099  ;;  %v949_v18 = vpop.permute.xlu0 %948 }
  0x98   : > { %v1113_v19 = vsel %vm1107_vm5, %v2474_v36, %v949_v18 }
  0x99   : > { %v2774_v28 = vsel %vm1144_vm6, %v1113_v19, %v1076_v10 }
  0x9a   : > { %1230 = vrot.lane.b32.xlu1 %v2774_v28, %s2382_s26 }
  0x9b   : > { %v1078_v20 = vpop.permute.xlu1 %1077  ;;  %v971_v21 = vpop.permute.xlu0 %970 }
  0x9c   : > { %v1135_v22 = vsel %vm1107_vm5, %v2459_v23, %v971_v21 }
  0x9d   : > { %v2781_v25 = vsel %vm1144_vm6, %v1135_v22, %v1098_v7 }
  0x9e   : > { %1221 = vrot.lane.b32.xlu1 %v2781_v25, %s2384_s27 }
  0x9f   : > { %v973_v36 = vpop.permute.xlu1 %972  ;;  %v951_v26 = vpop.permute.xlu0 %950 }
  0xa0   : > { %v1137_v27 = vsel %vm1107_vm5, %v2484_v43, %v973_v36  ;;  %v1115_v29 = vsel %vm1107_vm5, %v2504_v6, %v951_v26 }
  0xa1   : > { %v2790_v24 = vsel %vm1144_vm6, %v1115_v29, %v1078_v20  ;;  %v2793_v32 = vsel %vm1144_vm6, %v1137_v27, %v1100_v17 }
  0xa2   : > { %1232 = vrot.lane.b32.xlu1 %v2790_v24, %s2382_s26  ;;  %1254 = vrot.lane.b32.xlu0 %v2793_v32, %s2382_s26 }
  0xa3   : > { %v1102_v23 = vpop.permute.xlu1 %1101 }
  0xa4   : > { %v975_v33 = vpop.permute.xlu0 %974 }
  0xa5   : > { %v1139_v43 = vsel %vm1107_vm5, %v2528_v45, %v975_v33 }
  0xa6   : > { %1199 = vrot.lane.b32.xlu0 %v2774_v28, %s2384_s27  ;;  %v2804_v34 = vsel %vm1144_vm6, %v1139_v43, %v1102_v23 }
  0xa7   : > { %v1080_v6 = vpop.permute.xlu1 %1079  ;;  %1256 = vrot.lane.b32.xlu1 %v2804_v34, %s2382_s26 }
  0xa8   : > { %v953_v35 = vpop.permute.xlu0 %952 }
  0xa9   : > { %v1117_v37 = vsel %vm1107_vm5, %v2542_v52, %v953_v35 }
  0xaa   : > { %1223 = vrot.lane.b32.xlu0 %v2793_v32, %s2384_s27  ;;  %v2813_v45 = vsel %vm1144_vm6, %v1117_v37, %v1080_v6 }
  0xab   : > { %v1104_v38 = vpop.permute.xlu1 %1103  ;;  %1234 = vrot.lane.b32.xlu1 %v2813_v45, %s2382_s26 }
  0xac   : > { %v977_v39 = vpop.permute.xlu0 %976 }
  0xad   : > { %v1141_v41 = vsel %vm1107_vm5, %v2551_v0, %v977_v39 }
  0xae   : > { %1201 = vrot.lane.b32.xlu0 %v2790_v24, %s2384_s27  ;;  %v1178_v4 = vsel %vm1144_vm6, %v1141_v41, %v1104_v38 }
  0xaf   : > { %v1082_v52 = vpop.permute.xlu1 %1081  ;;  %1258 = vrot.lane.b32.xlu1 %v1178_v4, %s2382_s26 }
  0xb0   : > { %v955_v42 = vpop.permute.xlu0 %954 }
  0xb1   : > { %v1119_v44 = vsel %vm1107_vm5, %v2571_v31, %v955_v42 }
  0xb2   : > { %1225 = vrot.lane.b32.xlu0 %v2804_v34, %s2384_s27  ;;  %v2828_v46 = vsel %vm1144_vm6, %v1119_v44, %v1082_v52 }
  0xb3   : > { %1236 = vrot.lane.b32.xlu1 %v2828_v46, %s2382_s26 }
  0xb5   : > { %v1106_v0 = vpop.permute.xlu1 %1105 }
  0xb6   : > { %1203 = vrot.lane.b32.xlu0 %v2813_v45, %s2384_s27 }
  0xb9   : > { %v979_v47 = vpop.permute.xlu0 %978  ;;  %v1084_v48 = vpop.permute.xlu1 %1083 }
  0xba   : > { %1227 = vrot.lane.b32.xlu0 %v1178_v4, %s2384_s27  ;;  %v1143_v31 = vsel %vm1107_vm5, %v2600_v14, %v979_v47 }
  0xbb   : > { %v1180_v49 = vsel %vm1144_vm6, %v1143_v31, %v1106_v0 }
  0xbc   : > { %1260 = vrot.lane.b32.xlu1 %v1180_v49, %s2382_s26 }
  0xbd   : > { %v957_v50 = vpop.permute.xlu0 %956  ;;  %v1086_v53 = vpop.permute.xlu1 %1085 }
  0xbe   : > { %1205 = vrot.lane.b32.xlu0 %v2828_v46, %s2384_s27  ;;  %v1121_v54 = vsel %vm1107_vm5, %v2586_v60, %v957_v50 }
  0xbf   : > { %v2844_v55 = vsel %vm1144_vm6, %v1121_v54, %v1084_v48 }
  0xc0   : > { %1238 = vrot.lane.b32.xlu1 %v2844_v55, %s2382_s26 }
  0xc1   : > { %v959_v56 = vpop.permute.xlu0 %958  ;;  %v1088_v14 = vpop.permute.xlu1 %1087 }
  0xc2   : > { %1207 = vrot.lane.b32.xlu0 %v2844_v55, %s2384_s27  ;;  %v1123_v57 = vsel %vm1107_vm5, %v2605_v16, %v959_v56 }
  0xc3   : > { %v2853_v59 = vsel %vm1144_vm6, %v1123_v57, %v1086_v53 }
  0xc4   : > { %1240 = vrot.lane.b32.xlu1 %v2853_v59, %s2382_s26 }
  0xc5   : > { %v961_v60 = vpop.permute.xlu0 %960  ;;  %v1090_v62 = vpop.permute.xlu1 %1089 }
  0xc6   : > { %1209 = vrot.lane.b32.xlu0 %v2853_v59, %s2384_s27  ;;  %v1125_v63 = vsel %vm1107_vm5, %v2626_v51, %v961_v60 }
  0xc7   : > { %v2862_v1 = vsel %vm1144_vm6, %v1125_v63, %v1088_v14 }
  0xc8   : > { %1242 = vrot.lane.b32.xlu1 %v2862_v1, %s2382_s26 }
  0xc9   : > { %v963_v16 = vpop.permute.xlu0 %962  ;;  %v1072_v3 = vpop.permute.xlu1 %1071 }
  0xca   : > { %1211 = vrot.lane.b32.xlu0 %v2862_v1, %s2384_s27  ;;  %v1127_v2 = vsel %vm1107_vm5, %v2642_v9, %v963_v16 }
  0xcb   : > { %v2871_v5 = vsel %vm1144_vm6, %v1127_v2, %v1090_v62 }
  0xcc   : > { %1244 = vrot.lane.b32.xlu1 %v2871_v5, %s2382_s26 }
  0xcd   : > { %v945_v51 = vpop.permute.xlu0 %944  ;;  %v965_v7 = vpop.permute.xlu1 %964 }
  0xce   : > { %1213 = vrot.lane.b32.xlu0 %v2871_v5, %s2384_s27  ;;  %v1129_v8 = vsel %vm1107_vm5, %v2658_v40, %v965_v7 }
  0xd1   : > { %v969_v10 = vpop.permute.xlu0 %968  ;;  %v1092_v11 = vpop.permute.xlu1 %1091 }
  0xd2   : > { %v2880_v12 = vsel %vm1144_vm6, %v1129_v8, %v1092_v11  ;;  %v1133_v19 = vsel %vm1107_vm5, %v2675_v61, %v969_v10  ;;  %v1109_v61 = vsel %vm1107_vm5, %v2671_v58, %v945_v51  ;;  %v2357_v58 = vld [vmem:[%s3130_s3 + $0x88] sm:$0xff]  }
  0xd3   : > { %1246 = vrot.lane.b32.xlu1 %v2880_v12, %s2382_s26  ;;  %v1146_v26 = vsel %vm1144_vm6, %v1109_v61, %v1072_v3 }
  0xd5   : > { %v1096_v9 = vpop.permute.xlu0 %1095  ;;  %v1094_v17 = vpop.permute.xlu1 %1093 }
  0xd6   : > { %v1170_v21 = vsel %vm1144_vm6, %v1133_v19, %v1096_v9 }
  0xd7   : > { %1215 = vrot.lane.b32.xlu1 %v2880_v12, %s2384_s27 }
  0xd9   : > { %v967_v18 = vpop.permute.xlu0 %966 }
  0xda   : > { %v1131_v40 = vsel %vm1107_vm5, %v2696_v30, %v967_v18 }
  0xdb   : > { %v2891_v20 = vsel %vm1144_vm6, %v1131_v40, %v1094_v17  ;;  %1252 = vrot.lane.b32.xlu1 %v2781_v25, %s2382_s26 }
  0xdc   : > { %1248 = vrot.lane.b32.xlu0 %v2891_v20, %s2382_s26 }
  0xdf   : > { %1219 = vrot.lane.b32.xlu1 %v1170_v21, %s2384_s27 }
  0xe0   : > { %1250 = vrot.lane.b32.xlu0 %v1170_v21, %s2382_s26 }
  0xe4   : > { %1217 = vrot.lane.b32.xlu0 %v2891_v20, %s2384_s27 }
 0x108   : > { %v1198_v30 = vpop.permute.xlu0 %1197 }
 0x109   : > { %v1264_v27 = vsel %vm1262_vm7, %v1146_v26, %v1198_v30 }
 0x10c   : > { %v1231_v22 = vpop.permute.xlu1 %1230 }
 0x10d   : > { %v1312_v36 = vsel %vm1144_vm6, %v1198_v30, %v1231_v22 }
 0x10e   : > { %1574 = vmatprep.mubr.bf16.mxu0 %v1312_v36 }
 0x10f   : > { %1575 = vmatmul.mubr.bf16.vlgmr.msra.gmra.mrb[0].mxu0 %v1264_v27 }
 0x110   : > { %v1222_v29 = vpop.permute.xlu1 %1221 }
 0x111   : > { %v1300_v6 = vsel %vm1262_vm7, %v1170_v21, %v1222_v29 }
 0x114   : > { %v2907_v23 = vpop.permute.xlu0 %1254  ;;  %v1233_v43 = vpop.permute.xlu1 %1232 }
 0x115   : > { %v1348_v33 = vsel %vm1144_vm6, %v1222_v29, %v2907_v23 }
 0x116   : > { %1670 = vmatprep.mubr.bf16.mxu1 %v1348_v33 }
 0x117   : > { %1671 = vmatmul.mubr.bf16.vlgmr.msra.gmra.mrb[0].mxu1 %v1300_v6 }
 0x118   : > { %2246 = vmatpush3.bf16.msra.mxu1 %v2768_v15  ;;  %v1200_v35 = vpop.permute.xlu0 %1199 }
 0x119   : > { %v1315_v37 = vsel %vm1144_vm6, %v1200_v35, %v1233_v43  ;;  %v1267_v38 = vsel %vm1262_vm7, %v2761_v13, %v1200_v35  ;;  %2247 = vmatprep.subr.bf16.mxu1 %v2357_v58  ;;  %v2919_v39 = vpop.permute.xlu1 %1256 }
 0x11a   : > { %1582 = vmatprep.mubr.bf16.mxu0 %v1315_v37 }
 0x11b   : > { %1583 = vmatmul.mubr.bf16.gmra.mrb[4].mxu0 %v1267_v38 }
 0x11c   : > { %v1224_v41 = vpop.permute.xlu0 %1223  ;;  %2248 = vmatpush3.bf16.msra.mxu1 %v2357_v58 }
 0x11d   : > { %v1351_v4 = vsel %vm1144_vm6, %v1224_v41, %v2919_v39  ;;  %v1303_v52 = vsel %vm1262_vm7, %v2781_v25, %v1224_v41  ;;  %v1235_v15 = vpop.permute.xlu1 %1234 }
 0x11e   : > { %1678 = vmatprep.mubr.bf16.mxu1 %v1351_v4 }
 0x11f   : > { %1679 = vmatmul.mubr.bf16.gmra.mrb[4].mxu1 %v1303_v52 }
 0x120   : > { %v1202_v42 = vpop.permute.xlu0 %1201 }
 0x121   : > { %v1318_v44 = vsel %vm1144_vm6, %v1202_v42, %v1235_v15  ;;  %v1270_v13 = vsel %vm1262_vm7, %v2774_v28, %v1202_v42  ;;  %v2928_v0 = vpop.permute.xlu1 %1258 }
 0x122   : > { %1590 = vmatprep.mubr.bf16.mxu0 %v1318_v44 }
 0x123   : > { %1591 = vmatmul.mubr.bf16.gmra.mrb[8].mxu0 %v1270_v13 }
 0x124   : > { %v1226_v47 = vpop.permute.xlu0 %1225 }
 0x125   : > { %v1354_v48 = vsel %vm1144_vm6, %v1226_v47, %v2928_v0  ;;  %v1306_v25 = vsel %vm1262_vm7, %v2793_v32, %v1226_v47  ;;  %v1237_v31 = vpop.permute.xlu1 %1236 }
 0x126   : > { %1686 = vmatprep.mubr.bf16.mxu1 %v1354_v48 }
 0x127   : > { %1687 = vmatmul.mubr.bf16.gmra.mrb[8].mxu1 %v1306_v25 }
 0x128   : > { %v1204_v49 = vpop.permute.xlu0 %1203 }
 0x129   : > { %v1321_v50 = vsel %vm1144_vm6, %v1204_v49, %v1237_v31  ;;  %v1273_v28 = vsel %vm1262_vm7, %v2790_v24, %v1204_v49 }
 0x12a   : > { %1598 = vmatprep.mubr.bf16.mxu0 %v1321_v50 }
 0x12b   : > { %1599 = vmatmul.mubr.bf16.gmra.mrb[12].mxu0 %v1273_v28 }
 0x12c   : > { %v1228_v53 = vpop.permute.xlu0 %1227 }
 0x12d   : > { %v1309_v56 = vsel %vm1262_vm7, %v2804_v34, %v1228_v53 }
 0x12e   : > { %v2937_v54 = vpop.permute.xlu1 %1260 }
 0x12f   : > { %v1357_v32 = vsel %vm1144_vm6, %v1228_v53, %v2937_v54 }
 0x130   : > { %v1206_v14 = vpop.permute.xlu0 %1205  ;;  %1694 = vmatprep.mubr.bf16.mxu1 %v1357_v32 }
 0x131   : > { %1695 = vmatmul.mubr.bf16.gmra.mrb[12].mxu1 %v1309_v56  ;;  %v1276_v24 = vsel %vm1262_vm7, %v2813_v45, %v1206_v14 }
 0x132   : > { %v1239_v57 = vpop.permute.xlu1 %1238  ;;  %2249 = vmatprep.mubr.msk.bf16.mxu1 %vm1107_vm5, %v1231_v22 }
 0x133   : > { %v1324_v60 = vsel %vm1144_vm6, %v1206_v14, %v1239_v57 }
 0x134   : > { %1606 = vmatprep.mubr.bf16.mxu0 %v1324_v60  ;;  %v1208_v62 = vpop.permute.xlu0 %1207 }
 0x135   : > { %1607 = vmatmul.mubr.bf16.gmra.mrb[16].mxu0 %v1276_v24  ;;  %v1279_v3 = vsel %vm1262_vm7, %v2828_v46, %v1208_v62 }
 0x136   : > { %v1241_v63 = vpop.permute.xlu1 %1240 }
 0x137   : > { %v1327_v34 = vsel %vm1144_vm6, %v1208_v62, %v1241_v63 }
 0x138   : > { %1614 = vmatprep.mubr.bf16.mxu0 %v1327_v34  ;;  %v1210_v2 = vpop.permute.xlu0 %1209 }
 0x139   : > { %2250 = vmatmul.mubr.msk.bf16.vlgmr.msra.gmra.mrb[16].mxu1 %vm1107_vm5, %v1233_v43  ;;  %v1282_v8 = vsel %vm1262_vm7, %v2844_v55, %v1210_v2 }
 0x13a   : > { %v1243_v16 = vpop.permute.xlu1 %1242  ;;  %2253 = vmatprep.mubr.msk.bf16.mxu1 %vm1107_vm5, %v1235_v15 }
 0x13b   : > { %v1330_v45 = vsel %vm1144_vm6, %v1210_v2, %v1243_v16 }
 0x13c   : > { %v1212_v7 = vpop.permute.xlu0 %1211 }
 0x13d   : > { %1615 = vmatmul.mubr.bf16.gmra.mrb[20].mxu0 %v1279_v3  ;;  %v1285_v9 = vsel %vm1262_vm7, %v2853_v59, %v1212_v7 }
 0x13e   : > { %1622 = vmatprep.mubr.bf16.mxu0 %v1330_v45  ;;  %v1245_v51 = vpop.permute.xlu1 %1244 }
 0x13f   : > { %v1333_v10 = vsel %vm1144_vm6, %v1212_v7, %v1245_v51 }
 0x140   : > { %v1214_v11 = vpop.permute.xlu0 %1213 }
 0x141   : > { %2254 = vmatmul.mubr.msk.bf16.gmra.mrb[20].mxu1 %vm1107_vm5, %v1237_v31  ;;  %v1288_v40 = vsel %vm1262_vm7, %v2862_v1, %v1214_v11 }
 0x142   : > { %2257 = vmatprep.mubr.msk.bf16.mxu1 %vm1107_vm5, %v1239_v57 }
 0x145   : > { %1623 = vmatmul.mubr.bf16.gmra.mrb[24].mxu0 %v1282_v8  ;;  %v1247_v46 = vpop.permute.xlu1 %1246 }
 0x146   : > { %1630 = vmatprep.mubr.bf16.mxu0 %v1333_v10  ;;  %v1336_v17 = vsel %vm1144_vm6, %v1214_v11, %v1247_v46 }
 0x149   : > { %2258 = vmatmul.mubr.msk.bf16.gmra.mrb[24].mxu1 %vm1107_vm5, %v1241_v63  ;;  %v1216_v55 = vpop.permute.xlu1 %1215 }
 0x14a   : > { %2261 = vmatprep.mubr.msk.bf16.mxu1 %vm1107_vm5, %v1243_v16  ;;  %v1291_v30 = vsel %vm1262_vm7, %v2871_v5, %v1216_v55 }
 0x14d   : > { %1631 = vmatmul.mubr.bf16.gmra.mrb[28].mxu0 %v1285_v9  ;;  %v1253_v61 = vpop.permute.xlu1 %1252 }
 0x14e   : > { %1638 = vmatprep.mubr.bf16.mxu0 %v1336_v17  ;;  %v1249_v18 = vpop.permute.xlu0 %1248  ;;  %v3007_v17 = vld [vmem:[%s3131_s4] ss:$0 sm:$0xff] }
 0x14f   : > { %v1339_v21 = vsel %vm1144_vm6, %v1216_v55, %v1249_v18 }
 0x151   : > { %2262 = vmatmul.mubr.msk.bf16.gmra.mrb[28].mxu1 %vm1107_vm5, %v1245_v51  ;;  %v1220_v1 = vpop.permute.xlu1 %1219 }
 0x152   : > { %2265 = vmatprep.mubr.msk.bf16.mxu1 %vm1107_vm5, %v1247_v46  ;;  %v1251_v19 = vpop.permute.xlu0 %1250  ;;  %v1345_v26 = vsel %vm1144_vm6, %v1220_v1, %v1253_v61  ;;  %v1297_v5 = vsel %vm1262_vm7, %v2891_v20, %v1220_v1 }
 0x155   : > { %1639 = vmatmul.mubr.bf16.gmra.mrb[32].mxu0 %v1288_v40 }
 0x156   : > { %1646 = vmatprep.mubr.bf16.mxu0 %v1339_v21  ;;  %v1218_v59 = vpop.permute.xlu0 %1217 }
 0x157   : > { %v1342_v22 = vsel %vm1144_vm6, %v1218_v59, %v1251_v19  ;;  %v1294_v36 = vsel %vm1262_vm7, %v2880_v12, %v1218_v59 }
 0x159   : > { %2266 = vmatmul.mubr.msk.bf16.gmra.mrb[32].mxu1 %vm1107_vm5, %v1249_v18 }
 0x15a   : > { %2269 = vmatprep.mubr.msk.bf16.mxu1 %vm1107_vm5, %v1251_v19 }
 0x15d   : > { %1647 = vmatmul.mubr.bf16.gmra.mrb[36].mxu0 %v1291_v30 }
 0x15e   : > { %1654 = vmatprep.mubr.bf16.mxu0 %v1342_v22 }
 0x161   : > { %2270 = vmatmul.mubr.msk.bf16.gmra.mrb[36].mxu1 %vm1107_vm5, %v1253_v61 }
 0x162   : > { %2273 = vmatprep.mubr.msk.bf16.mxu1 %vm1107_vm5, %v2907_v23 }
 0x165   : > { %1655 = vmatmul.mubr.bf16.gmra.mrb[40].mxu0 %v1294_v36 }
 0x166   : > { %1662 = vmatprep.mubr.bf16.mxu0 %v1345_v26 }
 0x169   : > { %2274 = vmatmul.mubr.msk.bf16.gmra.mrb[40].mxu1 %vm1107_vm5, %v2919_v39 }
 0x16a   : > { %2277 = vmatprep.mubr.msk.bf16.mxu1 %vm1107_vm5, %v2928_v0 }
 0x16d   : > { %1663 = vmatmul.mubr.bf16.gmra.mrb[44].mxu0 %v1297_v5 }
 0x171   : > { %2278 = vmatmul.mubr.msk.bf16.gmra.mrb[44].mxu1 %vm1107_vm5, %v2937_v54 }
 0x1e2   : > { %v2131_v27 = vpop.f32.mrb[0].mxu0 }
 0x1e3   : > { %v2132_v29 = vpop.f32.mrb[1].mxu0 }
 0x1e4   : > { %v2133_v12 = vadd.f32 %v2132_v29, %v2131_v27  ;;  %v2134_v23 = vpop.f32.mrb[2].mxu0 }
 0x1e5   : > { %v2135_v33 = vpop.f32.mrb[3].mxu0 }
 0x1e6   : > { %v2136_v58 = vadd.f32 %v2135_v33, %v2134_v23  ;;  %v1577_v61 = vadd.f32 %v2133_v12, %v3007_v17 }
 0x1e8   : > { %v1580_v5 = vadd.f32 %v2136_v58, %v3007_v17 }
 0x1ea   : > { %v2203_v43 = vpop.f32.mrb[0].mxu1 }
 0x1eb   : > { %v2204_v6 = vpop.f32.mrb[1].mxu1 }
 0x1ec   : > { %v2987_v35 = vadd.f32 %v2204_v6, %v2203_v43  ;;  %v2206_v37 = vpop.f32.mrb[2].mxu1 }
 0x1ed   : > { %v2207_v38 = vpop.f32.mrb[3].mxu1 }
 0x1ee   : > { %v2989_v39 = vadd.f32 %v2207_v38, %v2206_v37  ;;  %v2137_v41 = vpop.f32.mrb[4].mxu0 }
 0x1ef   : > { %v2138_v20 = vpop.f32.mrb[5].mxu0 }
 0x1f0   : > { %v2139_v4 = vadd.f32 %v2138_v20, %v2137_v41  ;;  %v2140_v52 = vpop.f32.mrb[6].mxu0 }
 0x1f1   : > { %v2141_v15 = vpop.f32.mrb[7].mxu0 }
 0x1f2   : > { %v2142_v42 = vadd.f32 %v2141_v15, %v2140_v52  ;;  %v2209_v44 = vpop.f32.mrb[4].mxu1  ;;  %v1585_v40 = vadd.f32 %v2139_v4, %v3007_v17 }
 0x1f3   : > { %v2210_v13 = vpop.f32.mrb[5].mxu1 }
 0x1f4   : > { %v2991_v0 = vadd.f32 %v2210_v13, %v2209_v44  ;;  %v2212_v47 = vpop.f32.mrb[6].mxu1  ;;  %v1588_v1 = vadd.f32 %v2142_v42, %v3007_v17 }
 0x1f5   : > { %v2213_v48 = vpop.f32.mrb[7].mxu1 }
 0x1f6   : > { %v2993_v25 = vadd.f32 %v2213_v48, %v2212_v47  ;;  %v2143_v31 = vpop.f32.mrb[8].mxu0 }
 0x1f7   : > { %v2144_v49 = vpop.f32.mrb[9].mxu0 }
 0x1f8   : > { %v2145_v50 = vadd.f32 %v2144_v49, %v2143_v31  ;;  %v2146_v28 = vpop.f32.mrb[10].mxu0 }
 0x1f9   : > { %v2147_v53 = vpop.f32.mrb[11].mxu0 }
 0x1fa   : > { %v2148_v54 = vadd.f32 %v2147_v53, %v2146_v28  ;;  %v2215_v56 = vpop.f32.mrb[8].mxu1  ;;  %v1593_v20 = vadd.f32 %v2145_v50, %v3007_v17 }
 0x1fb   : > { %v2216_v32 = vpop.f32.mrb[9].mxu1 }
 0x1fc   : > { %v2995_v14 = vadd.f32 %v2216_v32, %v2215_v56  ;;  %v2218_v57 = vpop.f32.mrb[10].mxu1  ;;  %v1596_v13 = vadd.f32 %v2148_v54, %v3007_v17 }
 0x1fd   : > { %v2219_v24 = vpop.f32.mrb[11].mxu1 }
 0x1fe   : > { %v2997_v60 = vadd.f32 %v2219_v24, %v2218_v57  ;;  %v2149_v62 = vpop.f32.mrb[12].mxu0 }
 0x1ff   : > { %v2150_v63 = vpop.f32.mrb[13].mxu0 }
 0x200   : > { %v2151_v34 = vadd.f32 %v2150_v63, %v2149_v62  ;;  %v2152_v16 = vpop.f32.mrb[14].mxu0 }
 0x201   : > { %v2153_v2 = vpop.f32.mrb[15].mxu0 }
 0x202   : > { %v2154_v3 = vadd.f32 %v2153_v2, %v2152_v16  ;;  %v1601_v58 = vadd.f32 %v2151_v34, %v3007_v17 }
 0x204   : > { %v2221_v45 = vpop.f32.mrb[12].mxu1  ;;  %v1604_v15 = vadd.f32 %v2154_v3, %v3007_v17 }
 0x205   : > { %v2222_v51 = vpop.f32.mrb[13].mxu1 }
 0x206   : > { %v2999_v7 = vadd.f32 %v2222_v51, %v2221_v45  ;;  %v2224_v8 = vpop.f32.mrb[14].mxu1 }
 0x207   : > { %v2225_v10 = vpop.f32.mrb[15].mxu1 }
 0x208   : > { %v3001_v46 = vadd.f32 %v2225_v10, %v2224_v8  ;;  %v2155_v11 = vpop.f32.mrb[16].mxu0 }
 0x209   : > { %v2156_v9 = vpop.f32.mrb[17].mxu0 }
 0x20a   : > { %v2157_v18 = vadd.f32 %v2156_v9, %v2155_v11  ;;  %v2158_v55 = vpop.f32.mrb[18].mxu0 }
 0x20b   : > { %v2159_v19 = vpop.f32.mrb[19].mxu0 }
 0x20c   : > { %v2160_v21 = vadd.f32 %v2159_v19, %v2158_v55  ;;  %v2251_v59 = vpop.f32.mrb[16].mxu1  ;;  %v1609_v24 = vadd.f32 %v2157_v18, %v3007_v17 }
 0x20d   : > { %v1746_v30 = vadd.f32 %v2251_v59, %v1585_v40  ;;  %v1737_v22 = vpop.f32.mrb[17].mxu1 }
 0x20e   : > { %v1738_v36 = vadd.f32 %v1737_v22, %v1577_v61  ;;  %v2252_v26 = vpop.f32.mrb[18].mxu1  ;;  %v1612_v3 = vadd.f32 %v2160_v21, %v3007_v17 }
 0x20f   : > { %1867 = vst.msk [vmem:[%s3013_s11 + $0x10] sm:$0xff] %vm1864_vm8, %v1746_v30  ;;  %v1749_v27 = vadd.f32 %v2252_v26, %v1588_v1  ;;  %v1740_v29 = vpop.f32.mrb[19].mxu1 }
 0x210   : > { %1865 = vst.msk [vmem:[%s3013_s11] sm:$0xff] %vm1864_vm8, %v1738_v36  ;;  %v1741_v23 = vadd.f32 %v1740_v29, %v1580_v5  ;;  %v2161_v33 = vpop.f32.mrb[20].mxu0 }
 0x211   : > { %1868 = vst.msk [vmem:[%s3013_s11 + $0x18] sm:$0xff] %vm1864_vm8, %v1749_v27  ;;  %v2162_v12 = vpop.f32.mrb[21].mxu0 }
 0x212   : > { %1866 = vst.msk [vmem:[%s3013_s11 + $0x8] sm:$0xff] %vm1864_vm8, %v1741_v23  ;;  %v2163_v43 = vadd.f32 %v2162_v12, %v2161_v33  ;;  %v2164_v6 = vpop.f32.mrb[22].mxu0 }
 0x213   : > { %v2165_v37 = vpop.f32.mrb[23].mxu0 }
 0x214   : > { %v2166_v38 = vadd.f32 %v2165_v37, %v2164_v6  ;;  %v2255_v41 = vpop.f32.mrb[20].mxu1  ;;  %v1617_v54 = vadd.f32 %v2163_v43, %v3007_v17 }
 0x215   : > { %v1762_v4 = vadd.f32 %v2255_v41, %v1601_v58  ;;  %v1753_v52 = vpop.f32.mrb[21].mxu1 }
 0x216   : > { %v1754_v42 = vadd.f32 %v1753_v52, %v1593_v20  ;;  %v2256_v44 = vpop.f32.mrb[22].mxu1  ;;  %v1620_v34 = vadd.f32 %v2166_v38, %v3007_v17 }
 0x217   : > { %1871 = vst.msk [vmem:[%s3013_s11 + $0x30] sm:$0xff] %vm1864_vm8, %v1762_v4  ;;  %v1765_v47 = vadd.f32 %v2256_v44, %v1604_v15  ;;  %v1756_v48 = vpop.f32.mrb[23].mxu1 }
 0x218   : > { %1869 = vst.msk [vmem:[%s3013_s11 + $0x20] sm:$0xff] %vm1864_vm8, %v1754_v42  ;;  %v1757_v31 = vadd.f32 %v1756_v48, %v1596_v13  ;;  %v2167_v49 = vpop.f32.mrb[24].mxu0 }
 0x219   : > { %1872 = vst.msk [vmem:[%s3013_s11 + $0x38] sm:$0xff] %vm1864_vm8, %v1765_v47  ;;  %v2168_v50 = vpop.f32.mrb[25].mxu0 }
 0x21a   : > { %1870 = vst.msk [vmem:[%s3013_s11 + $0x28] sm:$0xff] %vm1864_vm8, %v1757_v31  ;;  %v2169_v28 = vadd.f32 %v2168_v50, %v2167_v49  ;;  %v2170_v53 = vpop.f32.mrb[26].mxu0 }
 0x21b   : > { %v2171_v56 = vpop.f32.mrb[27].mxu0 }
 0x21c   : > { %v2172_v32 = vadd.f32 %v2171_v56, %v2170_v53  ;;  %v2259_v57 = vpop.f32.mrb[24].mxu1  ;;  %v1625_v59 = vadd.f32 %v2169_v28, %v3007_v17 }
 0x21d   : > { %v1778_v62 = vadd.f32 %v2259_v57, %v1617_v54  ;;  %v1769_v63 = vpop.f32.mrb[25].mxu1 }
 0x21e   : > { %v1770_v16 = vadd.f32 %v1769_v63, %v1609_v24  ;;  %v2260_v2 = vpop.f32.mrb[26].mxu1  ;;  %v1628_v26 = vadd.f32 %v2172_v32, %v3007_v17 }
 0x21f   : > { %1875 = vst.msk [vmem:[%s3013_s11 + $0x50] sm:$0xff] %vm1864_vm8, %v1778_v62  ;;  %v1781_v45 = vadd.f32 %v2260_v2, %v1620_v34  ;;  %v1772_v51 = vpop.f32.mrb[27].mxu1 }
 0x220   : > { %1873 = vst.msk [vmem:[%s3013_s11 + $0x40] sm:$0xff] %vm1864_vm8, %v1770_v16  ;;  %v1773_v8 = vadd.f32 %v1772_v51, %v1612_v3  ;;  %v2173_v10 = vpop.f32.mrb[28].mxu0  ;;  %v1681_v3 = vadd.f32 %v2991_v0, %v3007_v17 }
 0x221   : > { %1876 = vst.msk [vmem:[%s3013_s11 + $0x58] sm:$0xff] %vm1864_vm8, %v1781_v45  ;;  %v2174_v11 = vpop.f32.mrb[29].mxu0 }
 0x222   : > { %1874 = vst.msk [vmem:[%s3013_s11 + $0x48] sm:$0xff] %vm1864_vm8, %v1773_v8  ;;  %v2175_v9 = vadd.f32 %v2174_v11, %v2173_v10  ;;  %v2176_v18 = vpop.f32.mrb[30].mxu0  ;;  %v1673_v10 = vadd.f32 %v2987_v35, %v3007_v17 }
 0x223   : > { %v2177_v55 = vpop.f32.mrb[31].mxu0 }
 0x224   : > { %v2178_v19 = vadd.f32 %v2177_v55, %v2176_v18  ;;  %v1633_v40 = vadd.f32 %v2175_v9, %v3007_v17  ;;  %v2263_v21 = vpop.f32.mrb[28].mxu1  ;;  %v1684_v18 = vadd.f32 %v2993_v25, %v3007_v17 }
 0x225   : > { %v1785_v61 = vpop.f32.mrb[29].mxu1 }
 0x226   : > { %v1794_v30 = vadd.f32 %v2263_v21, %v1633_v40  ;;  %v1786_v22 = vadd.f32 %v1785_v61, %v1625_v59  ;;  %v1636_v1 = vadd.f32 %v2178_v19, %v3007_v17  ;;  %v2264_v36 = vpop.f32.mrb[30].mxu1  ;;  %v1676_v21 = vadd.f32 %v2989_v39, %v3007_v17 }
 0x227   : > { %v1788_v5 = vpop.f32.mrb[31].mxu1 }
 0x228   : > { %1879 = vst.msk [vmem:[%s3013_s11 + $0x70] sm:$0xff] %vm1864_vm8, %v1794_v30  ;;  %1877 = vst.msk [vmem:[%s3013_s11 + $0x60] sm:$0xff] %vm1864_vm8, %v1786_v22  ;;  %v1797_v27 = vadd.f32 %v2264_v36, %v1636_v1  ;;  %v1789_v29 = vadd.f32 %v1788_v5, %v1628_v26  ;;  %v2179_v23 = vpop.f32.mrb[32].mxu0  ;;  %v1697_v26 = vadd.f32 %v2999_v7, %v3007_v17 }
 0x229   : > { %v2180_v33 = vpop.f32.mrb[33].mxu0 }
 0x22a   : > { %1880 = vst.msk [vmem:[%s3013_s11 + $0x78] sm:$0xff] %vm1864_vm8, %v1797_v27  ;;  %1878 = vst.msk [vmem:[%s3013_s11 + $0x68] sm:$0xff] %vm1864_vm8, %v1789_v29  ;;  %v2181_v12 = vadd.f32 %v2180_v33, %v2179_v23  ;;  %v2182_v43 = vpop.f32.mrb[34].mxu0  ;;  %v1689_v23 = vadd.f32 %v2995_v14, %v3007_v17 }
 0x22b   : > { %v2183_v6 = vpop.f32.mrb[35].mxu0 }
 0x22c   : > { %v2184_v37 = vadd.f32 %v2183_v6, %v2182_v43  ;;  %v2267_v58 = vpop.f32.mrb[32].mxu1  ;;  %v1641_v38 = vadd.f32 %v2181_v12, %v3007_v17  ;;  %v1700_v43 = vadd.f32 %v3001_v46, %v3007_v17 }
 0x22d   : > { %v1801_v41 = vpop.f32.mrb[33].mxu1 }
 0x22e   : > { %v1802_v20 = vadd.f32 %v1801_v41, %v1641_v38  ;;  %v2268_v4 = vpop.f32.mrb[34].mxu1  ;;  %v1644_v52 = vadd.f32 %v2184_v37, %v3007_v17  ;;  %v1692_v38 = vadd.f32 %v2997_v60, %v3007_v17 }
 0x22f   : > { %v1804_v15 = vpop.f32.mrb[35].mxu1 }
 0x230   : > { %1881 = vst.msk [vmem:[%s3013_s11 + $0x80] sm:$0xff] %vm1864_vm8, %v1802_v20  ;;  %v1805_v42 = vadd.f32 %v1804_v15, %v1644_v52  ;;  %v2185_v44 = vpop.f32.mrb[36].mxu0 }
 0x231   : > { %v2186_v13 = vpop.f32.mrb[37].mxu0 }
 0x232   : > { %1882 = vst.msk [vmem:[%s3013_s11 + $0x88] sm:$0xff] %vm1864_vm8, %v1805_v42  ;;  %v2187_v47 = vadd.f32 %v2186_v13, %v2185_v44  ;;  %v2188_v48 = vpop.f32.mrb[38].mxu0 }
 0x233   : > { %v2189_v31 = vpop.f32.mrb[39].mxu0 }
 0x234   : > { %v1649_v49 = vadd.f32 %v2187_v47, %v3007_v17  ;;  %v2190_v50 = vadd.f32 %v2189_v31, %v2188_v48  ;;  %v2271_v28 = vpop.f32.mrb[36].mxu1 }
 0x235   : > { %v1817_v53 = vpop.f32.mrb[37].mxu1 }
 0x236   : > { %v1810_v56 = vadd.f32 %v2267_v58, %v1649_v49  ;;  %v1652_v54 = vadd.f32 %v2190_v50, %v3007_v17  ;;  %v2272_v32 = vpop.f32.mrb[38].mxu1 }
 0x237   : > { %v1820_v57 = vpop.f32.mrb[39].mxu1 }
 0x238   : > { %1883 = vst.msk [vmem:[%s3013_s11 + $0x90] sm:$0xff] %vm1864_vm8, %v1810_v56  ;;  %v1813_v24 = vadd.f32 %v2268_v4, %v1652_v54  ;;  %v2191_v62 = vpop.f32.mrb[40].mxu0 }
 0x239   : > { %v2192_v63 = vpop.f32.mrb[41].mxu0 }
 0x23a   : > { %1884 = vst.msk [vmem:[%s3013_s11 + $0x98] sm:$0xff] %vm1864_vm8, %v1813_v24  ;;  %v2193_v34 = vadd.f32 %v2192_v63, %v2191_v62  ;;  %v2194_v16 = vpop.f32.mrb[42].mxu0 }
 0x23b   : > { %v2195_v2 = vpop.f32.mrb[43].mxu0 }
 0x23c   : > { %v1657_v45 = vadd.f32 %v2193_v34, %v3007_v17  ;;  %v2196_v51 = vadd.f32 %v2195_v2, %v2194_v16  ;;  %v2275_v8 = vpop.f32.mrb[40].mxu1 }
 0x23d   : > { %v1842_v11 = vadd.f32 %v2275_v8, %v1681_v3  ;;  %v1833_v9 = vpop.f32.mrb[41].mxu1 }
 0x23e   : > { %v1818_v55 = vadd.f32 %v1817_v53, %v1657_v45  ;;  %v1660_v0 = vadd.f32 %v2196_v51, %v3007_v17  ;;  %v1834_v19 = vadd.f32 %v1833_v9, %v1673_v10  ;;  %v2276_v40 = vpop.f32.mrb[42].mxu1 }
 0x23f   : > { %1891 = vst.msk [vmem:[%s3013_s11 + $0xd0] sm:$0xff] %vm1864_vm8, %v1842_v11  ;;  %v1845_v59 = vadd.f32 %v2276_v40, %v1684_v18  ;;  %v1836_v35 = vpop.f32.mrb[43].mxu1 }
 0x240   : > { %1885 = vst.msk [vmem:[%s3013_s11 + $0xa0] sm:$0xff] %vm1864_vm8, %v1818_v55  ;;  %v1821_v61 = vadd.f32 %v1820_v57, %v1660_v0  ;;  %1889 = vst.msk [vmem:[%s3013_s11 + $0xc0] sm:$0xff] %vm1864_vm8, %v1834_v19  ;;  %v1837_v25 = vadd.f32 %v1836_v35, %v1676_v21  ;;  %v2197_v30 = vpop.f32.mrb[44].mxu0 }
 0x241   : > { %1892 = vst.msk [vmem:[%s3013_s11 + $0xd8] sm:$0xff] %vm1864_vm8, %v1845_v59  ;;  %v2198_v22 = vpop.f32.mrb[45].mxu0 }
 0x242   : > { %1886 = vst.msk [vmem:[%s3013_s11 + $0xa8] sm:$0xff] %vm1864_vm8, %v1821_v61  ;;  %1890 = vst.msk [vmem:[%s3013_s11 + $0xc8] sm:$0xff] %vm1864_vm8, %v1837_v25  ;;  %v2199_v1 = vadd.f32 %v2198_v22, %v2197_v30  ;;  %v2200_v39 = vpop.f32.mrb[46].mxu0 }
 0x243   : > { %v2201_v36 = vpop.f32.mrb[47].mxu0 }
 0x244   : > { %v1665_v5 = vadd.f32 %v2199_v1, %v3007_v17  ;;  %v2202_v27 = vadd.f32 %v2201_v36, %v2200_v39  ;;  %v2279_v29 = vpop.f32.mrb[44].mxu1 }
 0x245   : > { %v1858_v33 = vadd.f32 %v2279_v29, %v1697_v26  ;;  %v1849_v12 = vpop.f32.mrb[45].mxu1 }
 0x246   : > { %v1826_v6 = vadd.f32 %v2271_v28, %v1665_v5  ;;  %v1668_v7 = vadd.f32 %v2202_v27, %v3007_v17  ;;  %v1850_v37 = vadd.f32 %v1849_v12, %v1689_v23  ;;  %v2280_v58 = vpop.f32.mrb[46].mxu1 }
 0x247   : > { %1895 = vst.msk [vmem:[%s3013_s11 + $0xf0] sm:$0xff] %vm1864_vm8, %v1858_v33  ;;  %v1861_v41 = vadd.f32 %v2280_v58, %v1700_v43  ;;  %v1852_v14 = vpop.f32.mrb[47].mxu1 }
 0x248   : > { %1887 = vst.msk [vmem:[%s3013_s11 + $0xb0] sm:$0xff] %vm1864_vm8, %v1826_v6  ;;  %v1829_v20 = vadd.f32 %v2272_v32, %v1668_v7  ;;  %1893 = vst.msk [vmem:[%s3013_s11 + $0xe0] sm:$0xff] %vm1864_vm8, %v1850_v37  ;;  %v1853_v4 = vadd.f32 %v1852_v14, %v1692_v38 }
 0x249   : > { %1896 = vst.msk [vmem:[%s3013_s11 + $0xf8] sm:$0xff] %vm1864_vm8, %v1861_v41 }
 0x24a   : > { %1888 = vst.msk [vmem:[%s3013_s11 + $0xb8] sm:$0xff] %vm1864_vm8, %v1829_v20  ;;  %1894 = vst.msk [vmem:[%s3013_s11 + $0xe8] sm:$0xff] %vm1864_vm8, %v1853_v4 }
 0x24b PF: > { %s15_s20 = sadd.s32 1, %s2380_s20   ;;  %s3135_s18 = smov %s2376_s19 }
 0x24c   : > { %p12_p5 = scmp.ge.s32.totalorder %s15_s20, 4   ;;  %s3136_s19 = smov %s3138_s21 }
 0x24e   :  { %14 = sbr.rel (!%p12_p5) target bundleno = 2 (0x2), region = 76 }

</bundles_post_ra>
